<compile_context>
chip_gen: v5e
topology: v5e:2x2
jax: 0.10.0
libtpu: 0.0.40
codegen_flags: <defaults>
</compile_context>

<pallas_src>
import numpy as np
import jax
import jax.numpy as jnp
from jax import lax
from jax.experimental import pallas as pl
from jax.experimental.pallas import tpu as pltpu


# ------------------------------- Pallas kernel -------------------------------

def _inception_aux_kernel(x_ref, s_ref, w1s_ref, bias_ref, w2_ref, b2_ref,
                          wl_ref, bl_ref, o_ref, hbuf_ref, h2_ref):
    # x_ref    : (N*H*W, Cin)   all batch elements, spatial-major, channels-last
    # s_ref    : (N*P, N*H*W)   block-diagonal avg-pool gather matrix, 1/25 baked in
    # w1s_ref  : (Cin, 128)     1x1 conv weights with folded BN scale
    # bias_ref : (1, 128)       folded BN bias = (conv_b - mean) * scale + beta
    # w2_ref   : (P*128, 768)   5x5 conv weights, flattened (p, ci) -> row, bf16
    # b2_ref   : (1, 768)
    # wl_ref   : (768, OutC)    linear weights, bf16
    # bl_ref   : (1, OutC)
    # o_ref    : (N, OutC)
    # hbuf_ref : (N*P, 128)     scratch: post-ReLU6 activations
    # h2_ref   : (N, P*128)     scratch: conv2 input re-layout (lane-dense K=3200)

    # Stage 1+2 (reassociated): 1x1 conv (BN scale folded into w1s), then
    # AvgPool(5, stride=3) as one matmul against the block-diagonal gather
    # matrix.  Both matmuls are lane-dense (N = 128 output lanes).
    t = jnp.dot(x_ref[...], w1s_ref[...],
                preferred_element_type=jnp.float32)              # (N*H*W, 128)
    pooled = jnp.dot(s_ref[...], t,
                     preferred_element_type=jnp.float32)         # (N*P, 128)
    hbuf_ref[...] = jnp.clip(pooled + bias_ref[...], 0.0, 6.0)   # ReLU6

    # Re-layout (N*P, 128) -> (N, P*128): 50 aligned (1,128) row copies so the
    # whole conv2 contraction becomes a single K = P*128 = 3200 matmul.
    n, _ = o_ref.shape
    nrows, c1 = hbuf_ref.shape
    p = nrows // n
    for b in range(n):                       # static unroll (N = 2)
        for q in range(p):                   # static unroll (P = 25)
            r = b * p + q
            h2_ref[b:b + 1, q * c1:(q + 1) * c1] = hbuf_ref[r:r + 1, :]

    # Stage 3: 5x5 VALID conv (1x1 spatial output) == ONE (N, 3200) x (3200, 768)
    # bf16 matmul with f32 accumulation; weights streamed through the MXU once.
    feat = jnp.dot(h2_ref[...].astype(jnp.bfloat16), w2_ref[...],
                   preferred_element_type=jnp.float32) + b2_ref[...]   # (N, 768)

    # Stage 4: Dropout(p=0.7) in eval mode is identity; Linear head.
    o_ref[...] = jnp.dot(feat.astype(jnp.bfloat16), wl_ref[...],
                         preferred_element_type=jnp.float32) + bl_ref[...]


# ------------------------------- host wrapper --------------------------------

def _avgpool_matrix(H, W, k, s):
    """(Ho*Wo, H*W) matrix gathering each kxk pooling window (row-major), /k^2."""
    Ho = (H - k) // s + 1
    Wo = (W - k) // s + 1
    S = np.zeros((Ho * Wo, H * W), np.float32)
    for oh in range(Ho):
        for ow in range(Wo):
            row = oh * Wo + ow
            for kh in range(k):
                for kw in range(k):
                    S[row, (s * oh + kh) * W + (s * ow + kw)] = 1.0 / (k * k)
    return S


def inception_aux_forward(x_nchw, params):
    """x_nchw: (N, Cin, H, W) float32  ->  (N, OutC) float32."""
    N, Cin, H, W = x_nchw.shape
    w1, scale, bias = params["w1"], params["scale"], params["bias"]
    w2, b2 = params["w2"], params["b2"]
    wl, bl = params["wl"], params["bl"]
    C1 = w1.shape[1]                      # 128
    P, _, C2 = w2.shape                   # 25, 128, 768
    OutC = wl.shape[1]

    Ho = (H - 5) // 3 + 1
    Wo = (W - 5) // 3 + 1
    assert Ho * Wo == P, "conv2 (5x5, VALID) must consume the whole pooled map"

    # Host-side constants (trace-time, tiny):
    # block-diagonal pooling matrix with 1/25 baked in.
    S = _avgpool_matrix(H, W, 5, 3)                       # (P, H*W)
    S_bd = np.zeros((N * P, N * H * W), np.float32)
    for b in range(N):
        S_bd[b * P:(b + 1) * P, b * H * W:(b + 1) * H * W] = S
    S_bd = jnp.asarray(S_bd)

    w1s = (w1 * scale).astype(jnp.float32)                # fold BN scale into conv1
    w2f = w2.reshape(P * C1, C2)                          # (3200, 768), bf16

    # NCHW -> (N*H*W, Cin): spatial-major rows, channels last (batch folded into M).
    x2d = jnp.transpose(x_nchw, (0, 2, 3, 1)).reshape(N * H * W, Cin)
    x2d = x2d.astype(jnp.float32)

    out = pl.pallas_call(
        _inception_aux_kernel,
        out_shape=jax.ShapeDtypeStruct((N, OutC), jnp.float32),
        # grid-less: one invocation, every operand single-buffered in VMEM
        # (~5.5 MB total incl. the 4.7 MB bf16 conv2 weight).
        scratch_shapes=[
            pltpu.VMEM((N * P, C1), jnp.float32),     # hbuf
            pltpu.VMEM((N, P * C1), jnp.float32),     # h2 (conv2 input re-layout)
        ],
    )(x2d, S_bd, w1s, bias, w2f, b2, wl, bl)
    return out


# ------------------------- parameters (deterministic) ------------------------

def init_params(key, in_channels, out_channels):
    """Conv1(1x1)+BN folded, Conv2(5x5, bias), Linear — matching InceptionAux."""
    C1, C2, K = 128, 768, 5
    ks = jax.random.split(key, 10)
    w1 = 0.1 * jax.random.normal(ks[0], (in_channels, C1), jnp.float32)
    b1 = 0.1 * jax.random.normal(ks[1], (C1,), jnp.float32)
    gamma = 1.0 + 0.1 * jax.random.normal(ks[2], (C1,), jnp.float32)
    beta = 0.1 * jax.random.normal(ks[3], (C1,), jnp.float32)
    mean = 0.1 * jax.random.normal(ks[4], (C1,), jnp.float32)
    var = 1.0 + 0.1 * jnp.abs(jax.random.normal(ks[5], (C1,), jnp.float32))
    eps = 1e-5
    scale = gamma / jnp.sqrt(var + eps)
    bias = (b1 - mean) * scale + beta
    # The two big weights are stored in bfloat16 (HBM/MXU-friendly); f32 accum
    # is kept inside the kernel via preferred_element_type.
    w2 = (0.05 * jax.random.normal(ks[6], (K * K, C1, C2), jnp.float32)
          ).astype(jnp.bfloat16)                              # (p, ci, co)
    b2 = 0.1 * jax.random.normal(ks[7], (C2,), jnp.float32)
    wl = (0.05 * jax.random.normal(ks[8], (C2, out_channels), jnp.float32)
          ).astype(jnp.bfloat16)
    bl = 0.1 * jax.random.normal(ks[9], (out_channels,), jnp.float32)
    return dict(
        w1=w1, scale=scale.reshape(1, C1), bias=bias.reshape(1, C1),
        w2=w2, b2=b2.reshape(1, C2), wl=wl, bl=bl.reshape(1, out_channels))


# ----------------------------- pure-JAX reference ----------------------------

def reference_forward(x_nchw, params):
    """Full-f32 reference of the module (bf16 weights upcast to f32)."""
    x = jnp.transpose(x_nchw, (0, 2, 3, 1)).astype(jnp.float32)   # NHWC
    pooled = lax.reduce_window(x, 0.0, lax.add, (1, 5, 5, 1), (1, 3, 3, 1),
                               "VALID") / 25.0
    Cin = x.shape[-1]
    C1 = params["w1"].shape[1]
    w1 = params["w1"].reshape(1, 1, Cin, C1)
    y = lax.conv_general_dilated(pooled, w1, (1, 1), "VALID",
                                 dimension_numbers=("NHWC", "HWIO", "NHWC"))
    y = jnp.clip(y * params["scale"] + params["bias"], 0.0, 6.0)   # ReLU6
    P, _, C2 = params["w2"].shape
    k = int(round(np.sqrt(P)))
    w2 = params["w2"].astype(jnp.float32).reshape(k, k, C1, C2)
    z = lax.conv_general_dilated(y, w2, (1, 1), "VALID",
                                 dimension_numbers=("NHWC", "HWIO", "NHWC"))
    z = z + params["b2"]
    z = z.reshape(z.shape[0], -1)                 # (N, 768) -- x.view(N, -1)
    return z @ params["wl"].astype(jnp.float32) + params["bl"]   # dropout=identity


# ------------------------------------ main ------------------------------------

if __name__ == "__main__":
    key = jax.random.PRNGKey(0)
    # Spatial 17 is what the module implies: AvgPool(5,3) -> 5x5, Conv 5x5 -> 1x1,
    # so flatten feeds exactly 768 features into the Linear layer.
    N, in_c, H, W = 2, 4, 17, 17
    out_c = 16

    kx, kp = jax.random.split(key)
    x = jax.random.normal(kx, (N, in_c, H, W), jnp.float32)   # NCHW input
    params = init_params(kp, in_c, out_c)

    fwd = jax.jit(inception_aux_forward)
    out = jax.block_until_ready(fwd(x, params))
    ref = jax.block_until_ready(reference_forward(x, params))

    assert out.shape == (N, out_c), out.shape
    # Tolerance accounts for the bf16 activation casts at the conv2/linear
    # matmul inputs (weights are bf16 in both kernel and reference; all
    # accumulation is f32).  Expected max abs error is ~1e-3.
    err = float(jnp.max(jnp.abs(out - ref)))
    assert jnp.allclose(out, ref, rtol=2e-2, atol=2e-2), err

    print("KERNEL_OK")
</pallas_src>

<mosaic_0001>
module attributes {stable_mosaic.version = 11 : i64} {
  func.func @_inception_aux_kernel(%arg0: memref<578x4xf32, #tpu.memory_space<vmem>>, %arg1: memref<50x578xf32, #tpu.memory_space<vmem>>, %arg2: memref<4x128xf32, #tpu.memory_space<vmem>>, %arg3: memref<1x128xf32, #tpu.memory_space<vmem>>, %arg4: memref<3200x768xbf16, #tpu.memory_space<vmem>>, %arg5: memref<1x768xf32, #tpu.memory_space<vmem>>, %arg6: memref<768x16xbf16, #tpu.memory_space<vmem>>, %arg7: memref<1x16xf32, #tpu.memory_space<vmem>>, %arg8: memref<2x16xf32, #tpu.memory_space<vmem>>, %arg9: memref<50x128xf32, #tpu.memory_space<vmem>>, %arg10: memref<2x3200xf32, #tpu.memory_space<vmem>>) attributes {dimension_semantics = [], scalar_prefetch = 0 : i64, scratch_operands = 2 : i64, tpu.core_type = #tpu.core_type<tc>} {
    %c0 = arith.constant 0 : index
    %c0_0 = arith.constant 0 : index
    %0 = vector.load %arg0[%c0, %c0_0] : memref<578x4xf32, #tpu.memory_space<vmem>>, vector<578x4xf32>
    %c0_1 = arith.constant 0 : index
    %c0_2 = arith.constant 0 : index
    %1 = vector.load %arg2[%c0_1, %c0_2] : memref<4x128xf32, #tpu.memory_space<vmem>>, vector<4x128xf32>
    %cst = arith.constant dense<0.000000e+00> : vector<578x128xf32>
    %2 = tpu.matmul %0, %1, %cst {dimension_numbers = #tpu.dot_dimension_numbers<[1], [0], [0], [1], [0, 0, 1, 1], [], []>} : vector<578x4xf32>, vector<4x128xf32>, vector<578x128xf32> -> vector<578x128xf32>
    %c0_3 = arith.constant 0 : index
    %c0_4 = arith.constant 0 : index
    %3 = vector.load %arg1[%c0_3, %c0_4] : memref<50x578xf32, #tpu.memory_space<vmem>>, vector<50x578xf32>
    %cst_5 = arith.constant dense<0.000000e+00> : vector<50x128xf32>
    %4 = tpu.matmul %3, %2, %cst_5 {dimension_numbers = #tpu.dot_dimension_numbers<[1], [0], [0], [1], [0, 0, 1, 1], [], []>} : vector<50x578xf32>, vector<578x128xf32>, vector<50x128xf32> -> vector<50x128xf32>
    %c0_6 = arith.constant 0 : index
    %c0_7 = arith.constant 0 : index
    %5 = vector.load %arg3[%c0_6, %c0_7] : memref<1x128xf32, #tpu.memory_space<vmem>>, vector<1x128xf32>
    %6 = vector.broadcast %5 : vector<1x128xf32> to vector<50x128xf32>
    %7 = arith.addf %4, %6 : vector<50x128xf32>
    %cst_8 = arith.constant 0.000000e+00 : f32
    %cst_9 = arith.constant 6.000000e+00 : f32
    %8 = vector.broadcast %cst_8 : f32 to vector<50x128xf32>
    %9 = arith.maximumf %8, %7 : vector<50x128xf32>
    %10 = vector.broadcast %cst_9 : f32 to vector<50x128xf32>
    %11 = arith.minimumf %10, %9 : vector<50x128xf32>
    %c0_10 = arith.constant 0 : index
    %c0_11 = arith.constant 0 : index
    %12 = vector.load %arg9[%c0_10, %c0_11] : memref<50x128xf32, #tpu.memory_space<vmem>>, vector<50x128xf32>
    tpu.vector_store %arg9[%c0_10, %c0_11], %11 {strides = array<i32>} : memref<50x128xf32, #tpu.memory_space<vmem>>, vector<50x128xf32>,
    %c0_12 = arith.constant 0 : index
    %c0_13 = arith.constant 0 : index
    %13 = vector.load %arg9[%c0_12, %c0_13] : memref<50x128xf32, #tpu.memory_space<vmem>>, vector<1x128xf32>
    %c0_14 = arith.constant 0 : index
    %c0_15 = arith.constant 0 : index
    %14 = vector.load %arg10[%c0_14, %c0_15] : memref<2x3200xf32, #tpu.memory_space<vmem>>, vector<1x128xf32>
    tpu.vector_store %arg10[%c0_14, %c0_15], %13 {strides = array<i32>} : memref<2x3200xf32, #tpu.memory_space<vmem>>, vector<1x128xf32>,
    %c1 = arith.constant 1 : index
    %c0_16 = arith.constant 0 : index
    %15 = vector.load %arg9[%c1, %c0_16] : memref<50x128xf32, #tpu.memory_space<vmem>>, vector<1x128xf32>
    %c0_17 = arith.constant 0 : index
    %c128 = arith.constant 128 : index
    %16 = vector.load %arg10[%c0_17, %c128] : memref<2x3200xf32, #tpu.memory_space<vmem>>, vector<1x128xf32>
    tpu.vector_store %arg10[%c0_17, %c128], %15 {strides = array<i32>} : memref<2x3200xf32, #tpu.memory_space<vmem>>, vector<1x128xf32>,
    %c2 = arith.constant 2 : index
    %c0_18 = arith.constant 0 : index
    %17 = vector.load %arg9[%c2, %c0_18] : memref<50x128xf32, #tpu.memory_space<vmem>>, vector<1x128xf32>
    %c0_19 = arith.constant 0 : index
    %c256 = arith.constant 256 : index
    %18 = vector.load %arg10[%c0_19, %c256] : memref<2x3200xf32, #tpu.memory_space<vmem>>, vector<1x128xf32>
    tpu.vector_store %arg10[%c0_19, %c256], %17 {strides = array<i32>} : memref<2x3200xf32, #tpu.memory_space<vmem>>, vector<1x128xf32>,
    %c3 = arith.constant 3 : index
    %c0_20 = arith.constant 0 : index
    %19 = vector.load %arg9[%c3, %c0_20] : memref<50x128xf32, #tpu.memory_space<vmem>>, vector<1x128xf32>
    %c0_21 = arith.constant 0 : index
    %c384 = arith.constant 384 : index
    %20 = vector.load %arg10[%c0_21, %c384] : memref<2x3200xf32, #tpu.memory_space<vmem>>, vector<1x128xf32>
    tpu.vector_store %arg10[%c0_21, %c384], %19 {strides = array<i32>} : memref<2x3200xf32, #tpu.memory_space<vmem>>, vector<1x128xf32>,
    %c4 = arith.constant 4 : index
    %c0_22 = arith.constant 0 : index
    %21 = vector.load %arg9[%c4, %c0_22] : memref<50x128xf32, #tpu.memory_space<vmem>>, vector<1x128xf32>
    %c0_23 = arith.constant 0 : index
    %c512 = arith.constant 512 : index
    %22 = vector.load %arg10[%c0_23, %c512] : memref<2x3200xf32, #tpu.memory_space<vmem>>, vector<1x128xf32>
    tpu.vector_store %arg10[%c0_23, %c512], %21 {strides = array<i32>} : memref<2x3200xf32, #tpu.memory_space<vmem>>, vector<1x128xf32>,
    %c5 = arith.constant 5 : index
    %c0_24 = arith.constant 0 : index
    %23 = vector.load %arg9[%c5, %c0_24] : memref<50x128xf32, #tpu.memory_space<vmem>>, vector<1x128xf32>
    %c0_25 = arith.constant 0 : index
    %c640 = arith.constant 640 : index
    %24 = vector.load %arg10[%c0_25, %c640] : memref<2x3200xf32, #tpu.memory_space<vmem>>, vector<1x128xf32>
    tpu.vector_store %arg10[%c0_25, %c640], %23 {strides = array<i32>} : memref<2x3200xf32, #tpu.memory_space<vmem>>, vector<1x128xf32>,
    %c6 = arith.constant 6 : index
    %c0_26 = arith.constant 0 : index
    %25 = vector.load %arg9[%c6, %c0_26] : memref<50x128xf32, #tpu.memory_space<vmem>>, vector<1x128xf32>
    %c0_27 = arith.constant 0 : index
    %c768 = arith.constant 768 : index
    %26 = vector.load %arg10[%c0_27, %c768] : memref<2x3200xf32, #tpu.memory_space<vmem>>, vector<1x128xf32>
    tpu.vector_store %arg10[%c0_27, %c768], %25 {strides = array<i32>} : memref<2x3200xf32, #tpu.memory_space<vmem>>, vector<1x128xf32>,
    %c7 = arith.constant 7 : index
    %c0_28 = arith.constant 0 : index
    %27 = vector.load %arg9[%c7, %c0_28] : memref<50x128xf32, #tpu.memory_space<vmem>>, vector<1x128xf32>
    %c0_29 = arith.constant 0 : index
    %c896 = arith.constant 896 : index
    %28 = vector.load %arg10[%c0_29, %c896] : memref<2x3200xf32, #tpu.memory_space<vmem>>, vector<1x128xf32>
    tpu.vector_store %arg10[%c0_29, %c896], %27 {strides = array<i32>} : memref<2x3200xf32, #tpu.memory_space<vmem>>, vector<1x128xf32>,
    %c8 = arith.constant 8 : index
    %c0_30 = arith.constant 0 : index
    %29 = vector.load %arg9[%c8, %c0_30] : memref<50x128xf32, #tpu.memory_space<vmem>>, vector<1x128xf32>
    %c0_31 = arith.constant 0 : index
    %c1024 = arith.constant 1024 : index
    %30 = vector.load %arg10[%c0_31, %c1024] : memref<2x3200xf32, #tpu.memory_space<vmem>>, vector<1x128xf32>
    tpu.vector_store %arg10[%c0_31, %c1024], %29 {strides = array<i32>} : memref<2x3200xf32, #tpu.memory_space<vmem>>, vector<1x128xf32>,
    %c9 = arith.constant 9 : index
    %c0_32 = arith.constant 0 : index
    %31 = vector.load %arg9[%c9, %c0_32] : memref<50x128xf32, #tpu.memory_space<vmem>>, vector<1x128xf32>
    %c0_33 = arith.constant 0 : index
    %c1152 = arith.constant 1152 : index
    %32 = vector.load %arg10[%c0_33, %c1152] : memref<2x3200xf32, #tpu.memory_space<vmem>>, vector<1x128xf32>
    tpu.vector_store %arg10[%c0_33, %c1152], %31 {strides = array<i32>} : memref<2x3200xf32, #tpu.memory_space<vmem>>, vector<1x128xf32>,
    %c10 = arith.constant 10 : index
    %c0_34 = arith.constant 0 : index
    %33 = vector.load %arg9[%c10, %c0_34] : memref<50x128xf32, #tpu.memory_space<vmem>>, vector<1x128xf32>
    %c0_35 = arith.constant 0 : index
    %c1280 = arith.constant 1280 : index
    %34 = vector.load %arg10[%c0_35, %c1280] : memref<2x3200xf32, #tpu.memory_space<vmem>>, vector<1x128xf32>
    tpu.vector_store %arg10[%c0_35, %c1280], %33 {strides = array<i32>} : memref<2x3200xf32, #tpu.memory_space<vmem>>, vector<1x128xf32>,
    %c11 = arith.constant 11 : index
    %c0_36 = arith.constant 0 : index
    %35 = vector.load %arg9[%c11, %c0_36] : memref<50x128xf32, #tpu.memory_space<vmem>>, vector<1x128xf32>
    %c0_37 = arith.constant 0 : index
    %c1408 = arith.constant 1408 : index
    %36 = vector.load %arg10[%c0_37, %c1408] : memref<2x3200xf32, #tpu.memory_space<vmem>>, vector<1x128xf32>
    tpu.vector_store %arg10[%c0_37, %c1408], %35 {strides = array<i32>} : memref<2x3200xf32, #tpu.memory_space<vmem>>, vector<1x128xf32>,
    %c12 = arith.constant 12 : index
    %c0_38 = arith.constant 0 : index
    %37 = vector.load %arg9[%c12, %c0_38] : memref<50x128xf32, #tpu.memory_space<vmem>>, vector<1x128xf32>
    %c0_39 = arith.constant 0 : index
    %c1536 = arith.constant 1536 : index
    %38 = vector.load %arg10[%c0_39, %c1536] : memref<2x3200xf32, #tpu.memory_space<vmem>>, vector<1x128xf32>
    tpu.vector_store %arg10[%c0_39, %c1536], %37 {strides = array<i32>} : memref<2x3200xf32, #tpu.memory_space<vmem>>, vector<1x128xf32>,
    %c13 = arith.constant 13 : index
    %c0_40 = arith.constant 0 : index
    %39 = vector.load %arg9[%c13, %c0_40] : memref<50x128xf32, #tpu.memory_space<vmem>>, vector<1x128xf32>
    %c0_41 = arith.constant 0 : index
    %c1664 = arith.constant 1664 : index
    %40 = vector.load %arg10[%c0_41, %c1664] : memref<2x3200xf32, #tpu.memory_space<vmem>>, vector<1x128xf32>
    tpu.vector_store %arg10[%c0_41, %c1664], %39 {strides = array<i32>} : memref<2x3200xf32, #tpu.memory_space<vmem>>, vector<1x128xf32>,
    %c14 = arith.constant 14 : index
    %c0_42 = arith.constant 0 : index
    %41 = vector.load %arg9[%c14, %c0_42] : memref<50x128xf32, #tpu.memory_space<vmem>>, vector<1x128xf32>
    %c0_43 = arith.constant 0 : index
    %c1792 = arith.constant 1792 : index
    %42 = vector.load %arg10[%c0_43, %c1792] : memref<2x3200xf32, #tpu.memory_space<vmem>>, vector<1x128xf32>
    tpu.vector_store %arg10[%c0_43, %c1792], %41 {strides = array<i32>} : memref<2x3200xf32, #tpu.memory_space<vmem>>, vector<1x128xf32>,
    %c15 = arith.constant 15 : index
    %c0_44 = arith.constant 0 : index
    %43 = vector.load %arg9[%c15, %c0_44] : memref<50x128xf32, #tpu.memory_space<vmem>>, vector<1x128xf32>
    %c0_45 = arith.constant 0 : index
    %c1920 = arith.constant 1920 : index
    %44 = vector.load %arg10[%c0_45, %c1920] : memref<2x3200xf32, #tpu.memory_space<vmem>>, vector<1x128xf32>
    tpu.vector_store %arg10[%c0_45, %c1920], %43 {strides = array<i32>} : memref<2x3200xf32, #tpu.memory_space<vmem>>, vector<1x128xf32>,
    %c16 = arith.constant 16 : index
    %c0_46 = arith.constant 0 : index
    %45 = vector.load %arg9[%c16, %c0_46] : memref<50x128xf32, #tpu.memory_space<vmem>>, vector<1x128xf32>
    %c0_47 = arith.constant 0 : index
    %c2048 = arith.constant 2048 : index
    %46 = vector.load %arg10[%c0_47, %c2048] : memref<2x3200xf32, #tpu.memory_space<vmem>>, vector<1x128xf32>
    tpu.vector_store %arg10[%c0_47, %c2048], %45 {strides = array<i32>} : memref<2x3200xf32, #tpu.memory_space<vmem>>, vector<1x128xf32>,
    %c17 = arith.constant 17 : index
    %c0_48 = arith.constant 0 : index
    %47 = vector.load %arg9[%c17, %c0_48] : memref<50x128xf32, #tpu.memory_space<vmem>>, vector<1x128xf32>
    %c0_49 = arith.constant 0 : index
    %c2176 = arith.constant 2176 : index
    %48 = vector.load %arg10[%c0_49, %c2176] : memref<2x3200xf32, #tpu.memory_space<vmem>>, vector<1x128xf32>
    tpu.vector_store %arg10[%c0_49, %c2176], %47 {strides = array<i32>} : memref<2x3200xf32, #tpu.memory_space<vmem>>, vector<1x128xf32>,
    %c18 = arith.constant 18 : index
    %c0_50 = arith.constant 0 : index
    %49 = vector.load %arg9[%c18, %c0_50] : memref<50x128xf32, #tpu.memory_space<vmem>>, vector<1x128xf32>
    %c0_51 = arith.constant 0 : index
    %c2304 = arith.constant 2304 : index
    %50 = vector.load %arg10[%c0_51, %c2304] : memref<2x3200xf32, #tpu.memory_space<vmem>>, vector<1x128xf32>
    tpu.vector_store %arg10[%c0_51, %c2304], %49 {strides = array<i32>} : memref<2x3200xf32, #tpu.memory_space<vmem>>, vector<1x128xf32>,
    %c19 = arith.constant 19 : index
    %c0_52 = arith.constant 0 : index
    %51 = vector.load %arg9[%c19, %c0_52] : memref<50x128xf32, #tpu.memory_space<vmem>>, vector<1x128xf32>
    %c0_53 = arith.constant 0 : index
    %c2432 = arith.constant 2432 : index
    %52 = vector.load %arg10[%c0_53, %c2432] : memref<2x3200xf32, #tpu.memory_space<vmem>>, vector<1x128xf32>
    tpu.vector_store %arg10[%c0_53, %c2432], %51 {strides = array<i32>} : memref<2x3200xf32, #tpu.memory_space<vmem>>, vector<1x128xf32>,
    %c20 = arith.constant 20 : index
    %c0_54 = arith.constant 0 : index
    %53 = vector.load %arg9[%c20, %c0_54] : memref<50x128xf32, #tpu.memory_space<vmem>>, vector<1x128xf32>
    %c0_55 = arith.constant 0 : index
    %c2560 = arith.constant 2560 : index
    %54 = vector.load %arg10[%c0_55, %c2560] : memref<2x3200xf32, #tpu.memory_space<vmem>>, vector<1x128xf32>
    tpu.vector_store %arg10[%c0_55, %c2560], %53 {strides = array<i32>} : memref<2x3200xf32, #tpu.memory_space<vmem>>, vector<1x128xf32>,
    %c21 = arith.constant 21 : index
    %c0_56 = arith.constant 0 : index
    %55 = vector.load %arg9[%c21, %c0_56] : memref<50x128xf32, #tpu.memory_space<vmem>>, vector<1x128xf32>
    %c0_57 = arith.constant 0 : index
    %c2688 = arith.constant 2688 : index
    %56 = vector.load %arg10[%c0_57, %c2688] : memref<2x3200xf32, #tpu.memory_space<vmem>>, vector<1x128xf32>
    tpu.vector_store %arg10[%c0_57, %c2688], %55 {strides = array<i32>} : memref<2x3200xf32, #tpu.memory_space<vmem>>, vector<1x128xf32>,
    %c22 = arith.constant 22 : index
    %c0_58 = arith.constant 0 : index
    %57 = vector.load %arg9[%c22, %c0_58] : memref<50x128xf32, #tpu.memory_space<vmem>>, vector<1x128xf32>
    %c0_59 = arith.constant 0 : index
    %c2816 = arith.constant 2816 : index
    %58 = vector.load %arg10[%c0_59, %c2816] : memref<2x3200xf32, #tpu.memory_space<vmem>>, vector<1x128xf32>
    tpu.vector_store %arg10[%c0_59, %c2816], %57 {strides = array<i32>} : memref<2x3200xf32, #tpu.memory_space<vmem>>, vector<1x128xf32>,
    %c23 = arith.constant 23 : index
    %c0_60 = arith.constant 0 : index
    %59 = vector.load %arg9[%c23, %c0_60] : memref<50x128xf32, #tpu.memory_space<vmem>>, vector<1x128xf32>
    %c0_61 = arith.constant 0 : index
    %c2944 = arith.constant 2944 : index
    %60 = vector.load %arg10[%c0_61, %c2944] : memref<2x3200xf32, #tpu.memory_space<vmem>>, vector<1x128xf32>
    tpu.vector_store %arg10[%c0_61, %c2944], %59 {strides = array<i32>} : memref<2x3200xf32, #tpu.memory_space<vmem>>, vector<1x128xf32>,
    %c24 = arith.constant 24 : index
    %c0_62 = arith.constant 0 : index
    %61 = vector.load %arg9[%c24, %c0_62] : memref<50x128xf32, #tpu.memory_space<vmem>>, vector<1x128xf32>
    %c0_63 = arith.constant 0 : index
    %c3072 = arith.constant 3072 : index
    %62 = vector.load %arg10[%c0_63, %c3072] : memref<2x3200xf32, #tpu.memory_space<vmem>>, vector<1x128xf32>
    tpu.vector_store %arg10[%c0_63, %c3072], %61 {strides = array<i32>} : memref<2x3200xf32, #tpu.memory_space<vmem>>, vector<1x128xf32>,
    %c25 = arith.constant 25 : index
    %c0_64 = arith.constant 0 : index
    %63 = vector.load %arg9[%c25, %c0_64] : memref<50x128xf32, #tpu.memory_space<vmem>>, vector<1x128xf32>
    %c1_65 = arith.constant 1 : index
    %c0_66 = arith.constant 0 : index
    %64 = vector.load %arg10[%c1_65, %c0_66] : memref<2x3200xf32, #tpu.memory_space<vmem>>, vector<1x128xf32>
    tpu.vector_store %arg10[%c1_65, %c0_66], %63 {strides = array<i32>} : memref<2x3200xf32, #tpu.memory_space<vmem>>, vector<1x128xf32>,
    %c26 = arith.constant 26 : index
    %c0_67 = arith.constant 0 : index
    %65 = vector.load %arg9[%c26, %c0_67] : memref<50x128xf32, #tpu.memory_space<vmem>>, vector<1x128xf32>
    %c1_68 = arith.constant 1 : index
    %c128_69 = arith.constant 128 : index
    %66 = vector.load %arg10[%c1_68, %c128_69] : memref<2x3200xf32, #tpu.memory_space<vmem>>, vector<1x128xf32>
    tpu.vector_store %arg10[%c1_68, %c128_69], %65 {strides = array<i32>} : memref<2x3200xf32, #tpu.memory_space<vmem>>, vector<1x128xf32>,
    %c27 = arith.constant 27 : index
    %c0_70 = arith.constant 0 : index
    %67 = vector.load %arg9[%c27, %c0_70] : memref<50x128xf32, #tpu.memory_space<vmem>>, vector<1x128xf32>
    %c1_71 = arith.constant 1 : index
    %c256_72 = arith.constant 256 : index
    %68 = vector.load %arg10[%c1_71, %c256_72] : memref<2x3200xf32, #tpu.memory_space<vmem>>, vector<1x128xf32>
    tpu.vector_store %arg10[%c1_71, %c256_72], %67 {strides = array<i32>} : memref<2x3200xf32, #tpu.memory_space<vmem>>, vector<1x128xf32>,
    %c28 = arith.constant 28 : index
    %c0_73 = arith.constant 0 : index
    %69 = vector.load %arg9[%c28, %c0_73] : memref<50x128xf32, #tpu.memory_space<vmem>>, vector<1x128xf32>
    %c1_74 = arith.constant 1 : index
    %c384_75 = arith.constant 384 : index
    %70 = vector.load %arg10[%c1_74, %c384_75] : memref<2x3200xf32, #tpu.memory_space<vmem>>, vector<1x128xf32>
    tpu.vector_store %arg10[%c1_74, %c384_75], %69 {strides = array<i32>} : memref<2x3200xf32, #tpu.memory_space<vmem>>, vector<1x128xf32>,
    %c29 = arith.constant 29 : index
    %c0_76 = arith.constant 0 : index
    %71 = vector.load %arg9[%c29, %c0_76] : memref<50x128xf32, #tpu.memory_space<vmem>>, vector<1x128xf32>
    %c1_77 = arith.constant 1 : index
    %c512_78 = arith.constant 512 : index
    %72 = vector.load %arg10[%c1_77, %c512_78] : memref<2x3200xf32, #tpu.memory_space<vmem>>, vector<1x128xf32>
    tpu.vector_store %arg10[%c1_77, %c512_78], %71 {strides = array<i32>} : memref<2x3200xf32, #tpu.memory_space<vmem>>, vector<1x128xf32>,
    %c30 = arith.constant 30 : index
    %c0_79 = arith.constant 0 : index
    %73 = vector.load %arg9[%c30, %c0_79] : memref<50x128xf32, #tpu.memory_space<vmem>>, vector<1x128xf32>
    %c1_80 = arith.constant 1 : index
    %c640_81 = arith.constant 640 : index
    %74 = vector.load %arg10[%c1_80, %c640_81] : memref<2x3200xf32, #tpu.memory_space<vmem>>, vector<1x128xf32>
    tpu.vector_store %arg10[%c1_80, %c640_81], %73 {strides = array<i32>} : memref<2x3200xf32, #tpu.memory_space<vmem>>, vector<1x128xf32>,
    %c31 = arith.constant 31 : index
    %c0_82 = arith.constant 0 : index
    %75 = vector.load %arg9[%c31, %c0_82] : memref<50x128xf32, #tpu.memory_space<vmem>>, vector<1x128xf32>
    %c1_83 = arith.constant 1 : index
    %c768_84 = arith.constant 768 : index
    %76 = vector.load %arg10[%c1_83, %c768_84] : memref<2x3200xf32, #tpu.memory_space<vmem>>, vector<1x128xf32>
    tpu.vector_store %arg10[%c1_83, %c768_84], %75 {strides = array<i32>} : memref<2x3200xf32, #tpu.memory_space<vmem>>, vector<1x128xf32>,
    %c32 = arith.constant 32 : index
    %c0_85 = arith.constant 0 : index
    %77 = vector.load %arg9[%c32, %c0_85] : memref<50x128xf32, #tpu.memory_space<vmem>>, vector<1x128xf32>
    %c1_86 = arith.constant 1 : index
    %c896_87 = arith.constant 896 : index
    %78 = vector.load %arg10[%c1_86, %c896_87] : memref<2x3200xf32, #tpu.memory_space<vmem>>, vector<1x128xf32>
    tpu.vector_store %arg10[%c1_86, %c896_87], %77 {strides = array<i32>} : memref<2x3200xf32, #tpu.memory_space<vmem>>, vector<1x128xf32>,
    %c33 = arith.constant 33 : index
    %c0_88 = arith.constant 0 : index
    %79 = vector.load %arg9[%c33, %c0_88] : memref<50x128xf32, #tpu.memory_space<vmem>>, vector<1x128xf32>
    %c1_89 = arith.constant 1 : index
    %c1024_90 = arith.constant 1024 : index
    %80 = vector.load %arg10[%c1_89, %c1024_90] : memref<2x3200xf32, #tpu.memory_space<vmem>>, vector<1x128xf32>
    tpu.vector_store %arg10[%c1_89, %c1024_90], %79 {strides = array<i32>} : memref<2x3200xf32, #tpu.memory_space<vmem>>, vector<1x128xf32>,
    %c34 = arith.constant 34 : index
    %c0_91 = arith.constant 0 : index
    %81 = vector.load %arg9[%c34, %c0_91] : memref<50x128xf32, #tpu.memory_space<vmem>>, vector<1x128xf32>
    %c1_92 = arith.constant 1 : index
    %c1152_93 = arith.constant 1152 : index
    %82 = vector.load %arg10[%c1_92, %c1152_93] : memref<2x3200xf32, #tpu.memory_space<vmem>>, vector<1x128xf32>
    tpu.vector_store %arg10[%c1_92, %c1152_93], %81 {strides = array<i32>} : memref<2x3200xf32, #tpu.memory_space<vmem>>, vector<1x128xf32>,
    %c35 = arith.constant 35 : index
    %c0_94 = arith.constant 0 : index
    %83 = vector.load %arg9[%c35, %c0_94] : memref<50x128xf32, #tpu.memory_space<vmem>>, vector<1x128xf32>
    %c1_95 = arith.constant 1 : index
    %c1280_96 = arith.constant 1280 : index
    %84 = vector.load %arg10[%c1_95, %c1280_96] : memref<2x3200xf32, #tpu.memory_space<vmem>>, vector<1x128xf32>
    tpu.vector_store %arg10[%c1_95, %c1280_96], %83 {strides = array<i32>} : memref<2x3200xf32, #tpu.memory_space<vmem>>, vector<1x128xf32>,
    %c36 = arith.constant 36 : index
    %c0_97 = arith.constant 0 : index
    %85 = vector.load %arg9[%c36, %c0_97] : memref<50x128xf32, #tpu.memory_space<vmem>>, vector<1x128xf32>
    %c1_98 = arith.constant 1 : index
    %c1408_99 = arith.constant 1408 : index
    %86 = vector.load %arg10[%c1_98, %c1408_99] : memref<2x3200xf32, #tpu.memory_space<vmem>>, vector<1x128xf32>
    tpu.vector_store %arg10[%c1_98, %c1408_99], %85 {strides = array<i32>} : memref<2x3200xf32, #tpu.memory_space<vmem>>, vector<1x128xf32>,
    %c37 = arith.constant 37 : index
    %c0_100 = arith.constant 0 : index
    %87 = vector.load %arg9[%c37, %c0_100] : memref<50x128xf32, #tpu.memory_space<vmem>>, vector<1x128xf32>
    %c1_101 = arith.constant 1 : index
    %c1536_102 = arith.constant 1536 : index
    %88 = vector.load %arg10[%c1_101, %c1536_102] : memref<2x3200xf32, #tpu.memory_space<vmem>>, vector<1x128xf32>
    tpu.vector_store %arg10[%c1_101, %c1536_102], %87 {strides = array<i32>} : memref<2x3200xf32, #tpu.memory_space<vmem>>, vector<1x128xf32>,
    %c38 = arith.constant 38 : index
    %c0_103 = arith.constant 0 : index
    %89 = vector.load %arg9[%c38, %c0_103] : memref<50x128xf32, #tpu.memory_space<vmem>>, vector<1x128xf32>
    %c1_104 = arith.constant 1 : index
    %c1664_105 = arith.constant 1664 : index
    %90 = vector.load %arg10[%c1_104, %c1664_105] : memref<2x3200xf32, #tpu.memory_space<vmem>>, vector<1x128xf32>
    tpu.vector_store %arg10[%c1_104, %c1664_105], %89 {strides = array<i32>} : memref<2x3200xf32, #tpu.memory_space<vmem>>, vector<1x128xf32>,
    %c39 = arith.constant 39 : index
    %c0_106 = arith.constant 0 : index
    %91 = vector.load %arg9[%c39, %c0_106] : memref<50x128xf32, #tpu.memory_space<vmem>>, vector<1x128xf32>
    %c1_107 = arith.constant 1 : index
    %c1792_108 = arith.constant 1792 : index
    %92 = vector.load %arg10[%c1_107, %c1792_108] : memref<2x3200xf32, #tpu.memory_space<vmem>>, vector<1x128xf32>
    tpu.vector_store %arg10[%c1_107, %c1792_108], %91 {strides = array<i32>} : memref<2x3200xf32, #tpu.memory_space<vmem>>, vector<1x128xf32>,
    %c40 = arith.constant 40 : index
    %c0_109 = arith.constant 0 : index
    %93 = vector.load %arg9[%c40, %c0_109] : memref<50x128xf32, #tpu.memory_space<vmem>>, vector<1x128xf32>
    %c1_110 = arith.constant 1 : index
    %c1920_111 = arith.constant 1920 : index
    %94 = vector.load %arg10[%c1_110, %c1920_111] : memref<2x3200xf32, #tpu.memory_space<vmem>>, vector<1x128xf32>
    tpu.vector_store %arg10[%c1_110, %c1920_111], %93 {strides = array<i32>} : memref<2x3200xf32, #tpu.memory_space<vmem>>, vector<1x128xf32>,
    %c41 = arith.constant 41 : index
    %c0_112 = arith.constant 0 : index
    %95 = vector.load %arg9[%c41, %c0_112] : memref<50x128xf32, #tpu.memory_space<vmem>>, vector<1x128xf32>
    %c1_113 = arith.constant 1 : index
    %c2048_114 = arith.constant 2048 : index
    %96 = vector.load %arg10[%c1_113, %c2048_114] : memref<2x3200xf32, #tpu.memory_space<vmem>>, vector<1x128xf32>
    tpu.vector_store %arg10[%c1_113, %c2048_114], %95 {strides = array<i32>} : memref<2x3200xf32, #tpu.memory_space<vmem>>, vector<1x128xf32>,
    %c42 = arith.constant 42 : index
    %c0_115 = arith.constant 0 : index
    %97 = vector.load %arg9[%c42, %c0_115] : memref<50x128xf32, #tpu.memory_space<vmem>>, vector<1x128xf32>
    %c1_116 = arith.constant 1 : index
    %c2176_117 = arith.constant 2176 : index
    %98 = vector.load %arg10[%c1_116, %c2176_117] : memref<2x3200xf32, #tpu.memory_space<vmem>>, vector<1x128xf32>
    tpu.vector_store %arg10[%c1_116, %c2176_117], %97 {strides = array<i32>} : memref<2x3200xf32, #tpu.memory_space<vmem>>, vector<1x128xf32>,
    %c43 = arith.constant 43 : index
    %c0_118 = arith.constant 0 : index
    %99 = vector.load %arg9[%c43, %c0_118] : memref<50x128xf32, #tpu.memory_space<vmem>>, vector<1x128xf32>
    %c1_119 = arith.constant 1 : index
    %c2304_120 = arith.constant 2304 : index
    %100 = vector.load %arg10[%c1_119, %c2304_120] : memref<2x3200xf32, #tpu.memory_space<vmem>>, vector<1x128xf32>
    tpu.vector_store %arg10[%c1_119, %c2304_120], %99 {strides = array<i32>} : memref<2x3200xf32, #tpu.memory_space<vmem>>, vector<1x128xf32>,
    %c44 = arith.constant 44 : index
    %c0_121 = arith.constant 0 : index
    %101 = vector.load %arg9[%c44, %c0_121] : memref<50x128xf32, #tpu.memory_space<vmem>>, vector<1x128xf32>
    %c1_122 = arith.constant 1 : index
    %c2432_123 = arith.constant 2432 : index
    %102 = vector.load %arg10[%c1_122, %c2432_123] : memref<2x3200xf32, #tpu.memory_space<vmem>>, vector<1x128xf32>
    tpu.vector_store %arg10[%c1_122, %c2432_123], %101 {strides = array<i32>} : memref<2x3200xf32, #tpu.memory_space<vmem>>, vector<1x128xf32>,
    %c45 = arith.constant 45 : index
    %c0_124 = arith.constant 0 : index
    %103 = vector.load %arg9[%c45, %c0_124] : memref<50x128xf32, #tpu.memory_space<vmem>>, vector<1x128xf32>
    %c1_125 = arith.constant 1 : index
    %c2560_126 = arith.constant 2560 : index
    %104 = vector.load %arg10[%c1_125, %c2560_126] : memref<2x3200xf32, #tpu.memory_space<vmem>>, vector<1x128xf32>
    tpu.vector_store %arg10[%c1_125, %c2560_126], %103 {strides = array<i32>} : memref<2x3200xf32, #tpu.memory_space<vmem>>, vector<1x128xf32>,
    %c46 = arith.constant 46 : index
    %c0_127 = arith.constant 0 : index
    %105 = vector.load %arg9[%c46, %c0_127] : memref<50x128xf32, #tpu.memory_space<vmem>>, vector<1x128xf32>
    %c1_128 = arith.constant 1 : index
    %c2688_129 = arith.constant 2688 : index
    %106 = vector.load %arg10[%c1_128, %c2688_129] : memref<2x3200xf32, #tpu.memory_space<vmem>>, vector<1x128xf32>
    tpu.vector_store %arg10[%c1_128, %c2688_129], %105 {strides = array<i32>} : memref<2x3200xf32, #tpu.memory_space<vmem>>, vector<1x128xf32>,
    %c47 = arith.constant 47 : index
    %c0_130 = arith.constant 0 : index
    %107 = vector.load %arg9[%c47, %c0_130] : memref<50x128xf32, #tpu.memory_space<vmem>>, vector<1x128xf32>
    %c1_131 = arith.constant 1 : index
    %c2816_132 = arith.constant 2816 : index
    %108 = vector.load %arg10[%c1_131, %c2816_132] : memref<2x3200xf32, #tpu.memory_space<vmem>>, vector<1x128xf32>
    tpu.vector_store %arg10[%c1_131, %c2816_132], %107 {strides = array<i32>} : memref<2x3200xf32, #tpu.memory_space<vmem>>, vector<1x128xf32>,
    %c48 = arith.constant 48 : index
    %c0_133 = arith.constant 0 : index
    %109 = vector.load %arg9[%c48, %c0_133] : memref<50x128xf32, #tpu.memory_space<vmem>>, vector<1x128xf32>
    %c1_134 = arith.constant 1 : index
    %c2944_135 = arith.constant 2944 : index
    %110 = vector.load %arg10[%c1_134, %c2944_135] : memref<2x3200xf32, #tpu.memory_space<vmem>>, vector<1x128xf32>
    tpu.vector_store %arg10[%c1_134, %c2944_135], %109 {strides = array<i32>} : memref<2x3200xf32, #tpu.memory_space<vmem>>, vector<1x128xf32>,
    %c49 = arith.constant 49 : index
    %c0_136 = arith.constant 0 : index
    %111 = vector.load %arg9[%c49, %c0_136] : memref<50x128xf32, #tpu.memory_space<vmem>>, vector<1x128xf32>
    %c1_137 = arith.constant 1 : index
    %c3072_138 = arith.constant 3072 : index
    %112 = vector.load %arg10[%c1_137, %c3072_138] : memref<2x3200xf32, #tpu.memory_space<vmem>>, vector<1x128xf32>
    tpu.vector_store %arg10[%c1_137, %c3072_138], %111 {strides = array<i32>} : memref<2x3200xf32, #tpu.memory_space<vmem>>, vector<1x128xf32>,
    %c0_139 = arith.constant 0 : index
    %c0_140 = arith.constant 0 : index
    %113 = vector.load %arg10[%c0_139, %c0_140] : memref<2x3200xf32, #tpu.memory_space<vmem>>, vector<2x3200xf32>
    %114 = arith.truncf %113 : vector<2x3200xf32> to vector<2x3200xbf16>
    %c0_141 = arith.constant 0 : index
    %c0_142 = arith.constant 0 : index
    %115 = vector.load %arg4[%c0_141, %c0_142] : memref<3200x768xbf16, #tpu.memory_space<vmem>>, vector<3200x768xbf16>
    %cst_143 = arith.constant dense<0.000000e+00> : vector<2x768xf32>
    %116 = tpu.matmul %114, %115, %cst_143 {dimension_numbers = #tpu.dot_dimension_numbers<[1], [0], [0], [1], [0, 0, 1, 1], [], []>} : vector<2x3200xbf16>, vector<3200x768xbf16>, vector<2x768xf32> -> vector<2x768xf32>
    %c0_144 = arith.constant 0 : index
    %c0_145 = arith.constant 0 : index
    %117 = vector.load %arg5[%c0_144, %c0_145] : memref<1x768xf32, #tpu.memory_space<vmem>>, vector<1x768xf32>
    %118 = vector.broadcast %117 : vector<1x768xf32> to vector<2x768xf32>
    %119 = arith.addf %116, %118 : vector<2x768xf32>
    %120 = arith.truncf %119 : vector<2x768xf32> to vector<2x768xbf16>
    %c0_146 = arith.constant 0 : index
    %c0_147 = arith.constant 0 : index
    %121 = vector.load %arg6[%c0_146, %c0_147] : memref<768x16xbf16, #tpu.memory_space<vmem>>, vector<768x16xbf16>
    %cst_148 = arith.constant dense<0.000000e+00> : vector<2x16xf32>
    %122 = tpu.matmul %120, %121, %cst_148 {dimension_numbers = #tpu.dot_dimension_numbers<[1], [0], [0], [1], [0, 0, 1, 1], [], []>} : vector<2x768xbf16>, vector<768x16xbf16>, vector<2x16xf32> -> vector<2x16xf32>
    %c0_149 = arith.constant 0 : index
    %c0_150 = arith.constant 0 : index
    %123 = vector.load %arg7[%c0_149, %c0_150] : memref<1x16xf32, #tpu.memory_space<vmem>>, vector<1x16xf32>
    %124 = vector.broadcast %123 : vector<1x16xf32> to vector<2x16xf32>
    %125 = arith.addf %122, %124 : vector<2x16xf32>
    %c0_151 = arith.constant 0 : index
    %c0_152 = arith.constant 0 : index
    %126 = vector.load %arg8[%c0_151, %c0_152] : memref<2x16xf32, #tpu.memory_space<vmem>>, vector<2x16xf32>
    tpu.vector_store %arg8[%c0_151, %c0_152], %125 {strides = array<i32>} : memref<2x16xf32, #tpu.memory_space<vmem>>, vector<2x16xf32>,
    return
  }
}

</mosaic_0001>

<bundles_post_ra>
// kernel: inception_aux_forward.1
= control target key start
LH: loop header
LB: loop body
LE: loop exit
PB: predicated region body
PF: predicated region fallthrough
CT: control target
= control target key end

     0   :  { %13 = vsyncpa [#allocation5], 0  ;;  %s18522_s0 = inlined_call_operand.vmem [shape: f32[578,4], index: 0, kind: input, shape index: {}]   ;;  %s18523_s1 = inlined_call_operand.hbm [shape: f32[50,578], index: 1, kind: input, shape index: {}]   ;;  %s18524_s2 = inlined_call_operand.vmem [shape: f32[4,128], index: 2, kind: input, shape index: {}]   ;;  %s18525_s3 = inlined_call_operand.hbm [shape: f32[1,128], index: 3, kind: input, shape index: {}]   ;;  %s18526_s4 = inlined_call_operand.hbm [shape: bf16[3200,768], index: 4, kind: input, shape index: {}]   ;;  %s18527_s5 = inlined_call_operand.hbm [shape: f32[1,768], index: 5, kind: input, shape index: {}]   ;;  %s18528_s6 = inlined_call_operand.vmem [shape: bf16[768,16], index: 6, kind: input, shape index: {}]   ;;  %s18529_s7 = inlined_call_operand.hbm [shape: f32[1,16], index: 7, kind: input, shape index: {}]   ;;  %s18530_s8 = inlined_call_operand.hbm [shape: f32[2,16], index: 8, kind: output, shape index: {}]  }
   0x1   :  { %14 = vsyncpa [#allocation8], 0 }
   0x2   :  { %15 = vsyncpa [#allocation11], 0  ;;  %s39_s29 = sshll.u32 %s18525_s3, 4  ;;  %s40_s29 = int_to_ptr.hbm [resolvable:$true] %s39_s29 }
   0x3   :  { %16 = vsyncpa [#allocation6], 0  ;;  %s17257_s30 = smov [#allocation7]   ;;  %s63_s12 = sshll.u32 %s18527_s5, 4  ;;  %s64_s12 = int_to_ptr.hbm [resolvable:$true] %s63_s12 }
   0x4   :  { %s41_s9 = sshll.u32 %s17257_s30, 4  ;;  %s17258_s13 = smov [#allocation10]   ;;  %s42_s9 = int_to_ptr.vmem [resolvable:$true] %s41_s9 }
   0x5   :  { %44 = dma.hbm_to_vmem [thread:$0]  %s40_s29, 16, %s42_s9, [#allocation8]  }
   0x6   :  { %s65_s14 = sshll.u32 %s17258_s13, 4  ;;  %s23_s17 = sshll.u32 %s18523_s1, 4  ;;  %s66_s14 = int_to_ptr.vmem [resolvable:$true] %s65_s14  ;;  %s24_s17 = int_to_ptr.hbm [resolvable:$true] %s23_s17 }
   0x7   :  { %68 = dma.hbm_to_vmem [thread:$0]  %s64_s12, 96, %s66_s14, [#allocation11]  }
   0x8   :  { %s17259_s3 = smov [#allocation4]   ;;  %s49_s21 = sshll.u32 %s18526_s4, 4  ;;  %s50_s21 = int_to_ptr.hbm [resolvable:$true] %s49_s21 }
   0x9   :  { %s25_s18 = sshll.u32 %s17259_s3, 4  ;;  %s17260_s22 = smov 640   ;;  %s26_s18 = int_to_ptr.vmem [resolvable:$true] %s25_s18 }
   0xa   :  { %s17261_s5 = smov 40   ;;  %s17262_s23 = smov [#allocation9]  }
   0xb   :  { %31 = dma.hbm_to_vmem [thread:$0]  %s24_s17, 4480, %s26_s18, [#allocation5], %s17260_s22, %s17260_s22, %s17261_s5  }
   0xc   :  { %s51_s24 = sshll.u32 %s17262_s23, 4  ;;  %s17263_s25 = smov 384   ;;  %s52_s24 = int_to_ptr.vmem [resolvable:$true] %s51_s24 }
   0xd   :  { %s17264_s26 = smov 24   ;;  %s76_s28 = sshll.u32 %s18529_s7, 4  ;;  %s77_s28 = int_to_ptr.hbm [resolvable:$true] %s76_s28 }
   0xe   :  { %57 = dma.hbm_to_vmem [thread:$0]  %s50_s21, 153600, %s52_s24, [#allocation8], %s17263_s25, %s17263_s25, %s17264_s26  }
   0xf   :  { %s17265_s29 = smov [#allocation12]  }
  0x10   :  { %s78_s30 = sshll.u32 %s17265_s29, 4  ;;  %s79_s30 = int_to_ptr.vmem [resolvable:$true] %s78_s30 }
  0x11   :  { %81 = dma.hbm_to_vmem [thread:$0]  %s77_s28, 16, %s79_s30, [#allocation11]  }
  0x12   :  { %17249 = dma.done.wait [#allocation5], 4480  }
  0x13   :  { %17250 = vsyncadd [#allocation5], 4294962816 }
  0x14   :  { %17251 = dma.done.wait [#allocation8], 153616  }
  0x15   :  { %17252 = vsyncadd [#allocation8], 4294813680 }
  0x16   :  { %17253 = dma.done.wait [#allocation11], 112  }
  0x17   :  { %17254 = vsyncadd [#allocation11], 4294967184  ;;  %vm396_vm0 = vcmask 1043456   ;;  %vm176_vm1 = vcmask 31744   ;;  %v175_v0 = vld [vmem:[%s18524_s2] sm:$0xf] }
  0x18   :  { %v102_v1 = vld [vmem:[%s18522_s0] sm:$0xff]  ;;  %10766 = vmatpush.msk.msra.mxu0 %vm396_vm0, %v175_v0  ;;  %v103_v2 = vld [vmem:[%s18522_s0 + $0x8] sm:$0xff]  ;;  %v104_v3 = vld [vmem:[%s18522_s0 + $0x10] sm:$0xff]  ;;  %vm697_vm2 = vcmask 1041408   ;;  %vm675_vm3 = vcmask 539648   ;;  %s10754_s23 = sshll.u32 %s18530_s8, 4  ;;  %s10755_s23 = int_to_ptr.hbm [resolvable:$true] %s10754_s23 }
  0x19   :  { %10767 = vmatmul.msk.f32.vlgmr.msra.gmra.mxu0 %vm176_vm1, %v102_v1  ;;  %v105_v4 = vld [vmem:[%s18522_s0 + $0x18] sm:$0xff]  ;;  %v106_v5 = vld [vmem:[%s18522_s0 + $0x20] sm:$0xff]  ;;  %v107_v6 = vld [vmem:[%s18522_s0 + $0x28] sm:$0xff]  ;;  %vm10745_vm4 = vcmask 123904  }
  0x1a   :  { %v108_v7 = vld [vmem:[%s18522_s0 + $0x30] sm:$0xff]  ;;  %v109_v8 = vld [vmem:[%s18522_s0 + $0x38] sm:$0xff]  ;;  %v110_v9 = vld [vmem:[%s18522_s0 + $0x40] sm:$0xff] }
  0x1b   :  { %v111_v10 = vld [vmem:[%s18522_s0 + $0x48] sm:$0xff]  ;;  %v112_v11 = vld [vmem:[%s18522_s0 + $0x50] sm:$0xff]  ;;  %v113_v12 = vld [vmem:[%s18522_s0 + $0x58] sm:$0xff] }
  0x1c   :  { %v114_v13 = vld [vmem:[%s18522_s0 + $0x60] sm:$0xff]  ;;  %v115_v14 = vld [vmem:[%s18522_s0 + $0x68] sm:$0xff]  ;;  %v116_v15 = vld [vmem:[%s18522_s0 + $0x70] sm:$0xff] }
  0x1d   :  { %v117_v16 = vld [vmem:[%s18522_s0 + $0x78] sm:$0xff]  ;;  %v118_v18 = vld [vmem:[%s18522_s0 + $0x80] sm:$0xff]  ;;  %v119_v20 = vld [vmem:[%s18522_s0 + $0x88] sm:$0xff] }
  0x1e   :  { %v120_v22 = vld [vmem:[%s18522_s0 + $0x90] sm:$0xff]  ;;  %v121_v24 = vld [vmem:[%s18522_s0 + $0x98] sm:$0xff]  ;;  %v122_v26 = vld [vmem:[%s18522_s0 + $0xa0] sm:$0xff] }
  0x1f   :  { %v123_v28 = vld [vmem:[%s18522_s0 + $0xa8] sm:$0xff]  ;;  %v124_v30 = vld [vmem:[%s18522_s0 + $0xb0] sm:$0xff]  ;;  %v125_v32 = vld [vmem:[%s18522_s0 + $0xb8] sm:$0xff] }
  0x20   :  { %v126_v34 = vld [vmem:[%s18522_s0 + $0xc0] sm:$0xff]  ;;  %v127_v36 = vld [vmem:[%s18522_s0 + $0xc8] sm:$0xff]  ;;  %v128_v38 = vld [vmem:[%s18522_s0 + $0xd0] sm:$0xff] }
  0x21   :  { %10768 = vmatmul.msk.f32.gmra.mxu0 %vm176_vm1, %v103_v2  ;;  %v129_v40 = vld [vmem:[%s18522_s0 + $0xd8] sm:$0xff]  ;;  %v130_v42 = vld [vmem:[%s18522_s0 + $0xe0] sm:$0xff]  ;;  %v131_v44 = vld [vmem:[%s18522_s0 + $0xe8] sm:$0xff] }
  0x22   :  { %v132_v46 = vld [vmem:[%s18522_s0 + $0xf0] sm:$0xff]  ;;  %v133_v48 = vld [vmem:[%s18522_s0 + $0xf8] sm:$0xff]  ;;  %v134_v50 = vld [vmem:[%s18522_s0 + $0x100] sm:$0xff] }
  0x23   :  { %v135_v52 = vld [vmem:[%s18522_s0 + $0x108] sm:$0xff]  ;;  %v136_v54 = vld [vmem:[%s18522_s0 + $0x110] sm:$0xff]  ;;  %v137_v56 = vld [vmem:[%s18522_s0 + $0x118] sm:$0xff] }
  0x24   :  { %v138_v58 = vld [vmem:[%s18522_s0 + $0x120] sm:$0xff]  ;;  %v139_v60 = vld [vmem:[%s18522_s0 + $0x128] sm:$0xff]  ;;  %v140_v62 = vld [vmem:[%s18522_s0 + $0x130] sm:$0xff] }
  0x25   :  { %v141_v0 = vld [vmem:[%s18522_s0 + $0x138] sm:$0xff]  ;;  %v142_v2 = vld [vmem:[%s18522_s0 + $0x140] sm:$0xff] }
  0x29   :  { %10769 = vmatmul.msk.f32.gmra.mxu0 %vm176_vm1, %v104_v3 }
  0x31   :  { %10770 = vmatmul.msk.f32.gmra.mxu0 %vm176_vm1, %v105_v4  ;;  %v143_v4 = vld [vmem:[%s18522_s0 + $0x148] sm:$0xff] }
  0x39   :  { %10771 = vmatmul.msk.f32.gmra.mxu0 %vm176_vm1, %v106_v5 }
  0x41   :  { %10772 = vmatmul.msk.f32.gmra.mxu0 %vm176_vm1, %v107_v6  ;;  %v144_v6 = vld [vmem:[%s18522_s0 + $0x150] sm:$0xff] }
  0x49   :  { %10773 = vmatmul.msk.f32.gmra.mxu0 %vm176_vm1, %v108_v7 }
  0x51   :  { %10774 = vmatmul.msk.f32.gmra.mxu0 %vm176_vm1, %v109_v8  ;;  %v145_v8 = vld [vmem:[%s18522_s0 + $0x158] sm:$0xff] }
  0x59   :  { %10775 = vmatmul.msk.f32.gmra.mxu0 %vm176_vm1, %v110_v9 }
  0x61   :  { %10776 = vmatmul.msk.f32.gmra.mxu0 %vm176_vm1, %v111_v10  ;;  %v146_v10 = vld [vmem:[%s18522_s0 + $0x160] sm:$0xff] }
  0x69   :  { %10777 = vmatmul.msk.f32.gmra.mxu0 %vm176_vm1, %v112_v11 }
  0x71   :  { %10778 = vmatmul.msk.f32.gmra.mxu0 %vm176_vm1, %v113_v12  ;;  %v147_v12 = vld [vmem:[%s18522_s0 + $0x168] sm:$0xff] }
  0x79   :  { %10779 = vmatmul.msk.f32.gmra.mxu0 %vm176_vm1, %v114_v13 }
  0x81   :  { %10780 = vmatmul.msk.f32.gmra.mxu0 %vm176_vm1, %v115_v14  ;;  %v148_v14 = vld [vmem:[%s18522_s0 + $0x170] sm:$0xff] }
  0x89   :  { %10781 = vmatmul.msk.f32.gmra.mxu0 %vm176_vm1, %v116_v15 }
  0x91   :  { %10782 = vmatmul.msk.f32.gmra.mxu0 %vm176_vm1, %v117_v16  ;;  %v149_v16 = vld [vmem:[%s18522_s0 + $0x178] sm:$0xff] }
  0x96   :  { %v17394_v17 = vpop.f32.mrf.mxu0 }
  0x99   :  { %10783 = vmatmul.msk.f32.gmra.mxu0 %vm176_vm1, %v118_v18  ;;  %v150_v18 = vld [vmem:[%s18522_s0 + $0x180] sm:$0xff] }
  0x9e   :  { %v17400_v19 = vpop.f32.mrf.mxu0 }
  0xa1   :  { %10784 = vmatmul.msk.f32.gmra.mxu0 %vm176_vm1, %v119_v20  ;;  %v151_v20 = vld [vmem:[%s18522_s0 + $0x188] sm:$0xff] }
  0xa6   :  { %v17406_v21 = vpop.f32.mrf.mxu0 }
  0xa9   :  { %10785 = vmatmul.msk.f32.gmra.mxu0 %vm176_vm1, %v120_v22  ;;  %v152_v22 = vld [vmem:[%s18522_s0 + $0x190] sm:$0xff] }
  0xae   :  { %v426_v23 = vpop.f32.mrf.mxu0 }
  0xb1   :  { %10786 = vmatmul.msk.f32.gmra.mxu0 %vm176_vm1, %v121_v24  ;;  %v153_v24 = vld [vmem:[%s18522_s0 + $0x198] sm:$0xff] }
  0xb6   :  { %v429_v25 = vpop.f32.mrf.mxu0 }
  0xb9   :  { %10787 = vmatmul.msk.f32.gmra.mxu0 %vm176_vm1, %v122_v26  ;;  %v154_v26 = vld [vmem:[%s18522_s0 + $0x1a0] sm:$0xff] }
  0xbe   :  { %v432_v27 = vpop.f32.mrf.mxu0 }
  0xc1   :  { %10788 = vmatmul.msk.f32.gmra.mxu0 %vm176_vm1, %v123_v28  ;;  %v155_v28 = vld [vmem:[%s18522_s0 + $0x1a8] sm:$0xff] }
  0xc6   :  { %v435_v29 = vpop.f32.mrf.mxu0 }
  0xc9   :  { %10789 = vmatmul.msk.f32.gmra.mxu0 %vm176_vm1, %v124_v30  ;;  %v156_v30 = vld [vmem:[%s18522_s0 + $0x1b0] sm:$0xff] }
  0xce   :  { %v438_v31 = vpop.f32.mrf.mxu0 }
  0xd1   :  { %10790 = vmatmul.msk.f32.gmra.mxu0 %vm176_vm1, %v125_v32  ;;  %v157_v32 = vld [vmem:[%s18522_s0 + $0x1b8] sm:$0xff] }
  0xd6   :  { %v441_v33 = vpop.f32.mrf.mxu0 }
  0xd9   :  { %10791 = vmatmul.msk.f32.gmra.mxu0 %vm176_vm1, %v126_v34  ;;  %v158_v34 = vld [vmem:[%s18522_s0 + $0x1c0] sm:$0xff] }
  0xde   :  { %v444_v35 = vpop.f32.mrf.mxu0 }
  0xe1   :  { %10792 = vmatmul.msk.f32.gmra.mxu0 %vm176_vm1, %v127_v36  ;;  %v159_v36 = vld [vmem:[%s18522_s0 + $0x1c8] sm:$0xff] }
  0xe6   :  { %v447_v37 = vpop.f32.mrf.mxu0 }
  0xe9   :  { %10793 = vmatmul.msk.f32.gmra.mxu0 %vm176_vm1, %v128_v38  ;;  %v160_v38 = vld [vmem:[%s18522_s0 + $0x1d0] sm:$0xff] }
  0xee   :  { %v450_v39 = vpop.f32.mrf.mxu0 }
  0xf1   :  { %10794 = vmatmul.msk.f32.gmra.mxu0 %vm176_vm1, %v129_v40  ;;  %v161_v40 = vld [vmem:[%s18522_s0 + $0x1d8] sm:$0xff] }
  0xf6   :  { %v453_v41 = vpop.f32.mrf.mxu0 }
  0xf9   :  { %10795 = vmatmul.msk.f32.gmra.mxu0 %vm176_vm1, %v130_v42  ;;  %v162_v42 = vld [vmem:[%s18522_s0 + $0x1e0] sm:$0xff] }
  0xfe   :  { %v456_v43 = vpop.f32.mrf.mxu0 }
 0x101   :  { %10796 = vmatmul.msk.f32.gmra.mxu0 %vm176_vm1, %v131_v44  ;;  %v163_v44 = vld [vmem:[%s18522_s0 + $0x1e8] sm:$0xff] }
 0x106   :  { %v459_v45 = vpop.f32.mrf.mxu0 }
 0x109   :  { %10797 = vmatmul.msk.f32.gmra.mxu0 %vm176_vm1, %v132_v46  ;;  %v164_v46 = vld [vmem:[%s18522_s0 + $0x1f0] sm:$0xff] }
 0x10e   :  { %v462_v47 = vpop.f32.mrf.mxu0 }
 0x10f   :  { %701 = vmatpush.msra.mxu1 %v462_v47 }
 0x111   :  { %10798 = vmatmul.msk.f32.gmra.mxu0 %vm176_vm1, %v133_v48  ;;  %702 = vmatpush.msra.mxu1 %v459_v45  ;;  %v165_v48 = vld [vmem:[%s18522_s0 + $0x1f8] sm:$0xff] }
 0x113   :  { %703 = vmatpush.msra.mxu1 %v456_v43 }
 0x115   :  { %704 = vmatpush.msra.mxu1 %v453_v41 }
 0x116   :  { %v17464_v49 = vpop.f32.mrf.mxu0 }
 0x117   :  { %705 = vmatpush.msra.mxu1 %v450_v39 }
 0x119   :  { %10799 = vmatmul.msk.f32.gmra.mxu0 %vm176_vm1, %v134_v50  ;;  %706 = vmatpush.msra.mxu1 %v447_v37  ;;  %v166_v50 = vld [vmem:[%s18522_s0 + $0x200] sm:$0xff] }
 0x11b   :  { %707 = vmatpush.msra.mxu1 %v444_v35 }
 0x11d   :  { %708 = vmatpush.msra.mxu1 %v441_v33 }
 0x11e   :  { %v17470_v51 = vpop.f32.mrf.mxu0 }
 0x11f   :  { %709 = vmatpush.msra.mxu1 %v438_v31 }
 0x121   :  { %10800 = vmatmul.msk.f32.gmra.mxu0 %vm176_vm1, %v135_v52  ;;  %710 = vmatpush.msra.mxu1 %v435_v29  ;;  %v167_v52 = vld [vmem:[%s18522_s0 + $0x208] sm:$0xff] }
 0x123   :  { %711 = vmatpush.msra.mxu1 %v432_v27 }
 0x125   :  { %712 = vmatpush.msra.mxu1 %v429_v25 }
 0x126   :  { %v17476_v53 = vpop.f32.mrf.mxu0 }
 0x127   :  { %713 = vmatpush.msra.mxu1 %v426_v23 }
 0x129   :  { %10801 = vmatmul.msk.f32.gmra.mxu0 %vm176_vm1, %v136_v54  ;;  %714 = vmatpush.msra.mxu1 %v17406_v21  ;;  %v168_v54 = vld [vmem:[%s18522_s0 + $0x210] sm:$0xff] }
 0x12b   :  { %715 = vmatpush.msra.mxu1 %v17400_v19 }
 0x12d   :  { %716 = vmatpush.msra.mxu1 %v17394_v17 }
 0x12e   :  { %v474_v55 = vpop.f32.mrf.mxu0 }
 0x131   :  { %10802 = vmatmul.msk.f32.gmra.mxu0 %vm176_vm1, %v137_v56  ;;  %v169_v56 = vld [vmem:[%s18522_s0 + $0x218] sm:$0xff] }
 0x136   :  { %v477_v57 = vpop.f32.mrf.mxu0 }
 0x139   :  { %10803 = vmatmul.msk.f32.gmra.mxu0 %vm176_vm1, %v138_v58  ;;  %v170_v58 = vld [vmem:[%s18522_s0 + $0x220] sm:$0xff] }
 0x13e   :  { %v480_v59 = vpop.f32.mrf.mxu0 }
 0x141   :  { %10804 = vmatmul.msk.f32.gmra.mxu0 %vm176_vm1, %v139_v60  ;;  %v171_v60 = vld [vmem:[%s18522_s0 + $0x228] sm:$0xff] }
 0x146   :  { %v483_v61 = vpop.f32.mrf.mxu0 }
 0x149   :  { %10805 = vmatmul.msk.f32.gmra.mxu0 %vm176_vm1, %v140_v62  ;;  %v172_v62 = vld [vmem:[%s18522_s0 + $0x230] sm:$0xff] }
 0x14e   :  { %v486_v63 = vpop.f32.mrf.mxu0 }
 0x151   :  { %10806 = vmatmul.msk.f32.gmra.mxu0 %vm176_vm1, %v141_v0  ;;  %v173_v0 = vld [vmem:[%s18522_s0 + $0x238] sm:$0xff] }
 0x156   :  { %v489_v1 = vpop.f32.mrf.mxu0 }
 0x159   :  { %10807 = vmatmul.msk.f32.gmra.mxu0 %vm176_vm1, %v142_v2  ;;  %v174_v2 = vld [vmem:[%s18522_s0 + $0x240] sm:$0x3] }
 0x15e   :  { %v492_v3 = vpop.f32.mrf.mxu0 }
 0x161   :  { %10808 = vmatmul.msk.f32.gmra.mxu0 %vm176_vm1, %v143_v4  ;;  %v636_v4 = vld [vmem:[#allocation4] sm:$0xff] }
 0x162   :  { %717 = vmatmul.f32.vlgmr.msra.gmra.mxu1 %v636_v4 }
 0x166   :  { %v495_v5 = vpop.f32.mrf.mxu0 }
 0x169   :  { %10809 = vmatmul.msk.f32.gmra.mxu0 %vm176_vm1, %v144_v6  ;;  %v641_v6 = vld [vmem:[#allocation4 + $0x28] sm:$0xff] }
 0x16a   :  { %720 = vmatmul.f32.gmra.mxu1 %v641_v6  ;;  %v15885_v6 = vld [vmem:[#allocation9 + $0x164] sm:$0xf0] }
 0x16e   :  { %v498_v7 = vpop.f32.mrf.mxu0 }
 0x171   :  { %10810 = vmatmul.msk.f32.gmra.mxu0 %vm176_vm1, %v145_v8  ;;  %v646_v8 = vld [vmem:[#allocation4 + $0x50] sm:$0xff] }
 0x172   :  { %723 = vmatmul.f32.gmra.mxu1 %v646_v8 }
 0x176   :  { %v501_v9 = vpop.f32.mrf.mxu0 }
 0x179   :  { %10811 = vmatmul.msk.f32.gmra.mxu0 %vm176_vm1, %v146_v10  ;;  %v651_v10 = vld [vmem:[#allocation4 + $0x78] sm:$0xff] }
 0x17a   :  { %726 = vmatmul.f32.gmra.mxu1 %v651_v10  ;;  %v11594_v10 = vld [vmem:[#allocation9 + $0x5d0] sm:$0xf] }
 0x17e   :  { %v504_v11 = vpop.f32.mrf.mxu0 }
 0x181   :  { %10812 = vmatmul.msk.f32.gmra.mxu0 %vm176_vm1, %v147_v12  ;;  %v656_v12 = vld [vmem:[#allocation4 + $0xa0] sm:$0xff] }
 0x182   :  { %729 = vmatmul.f32.gmra.mxu1 %v656_v12 }
 0x186   :  { %v507_v13 = vpop.f32.mrf.mxu0 }
 0x189   :  { %10813 = vmatmul.msk.f32.gmra.mxu0 %vm176_vm1, %v148_v14  ;;  %v661_v14 = vld [vmem:[#allocation4 + $0xc8] sm:$0xff] }
 0x18a   :  { %732 = vmatmul.f32.gmra.mxu1 %v661_v14 }
 0x18e   :  { %v510_v15 = vpop.f32.mrf.mxu0 }
 0x18f   :  { %739 = vmatpush.msra.mxu2 %v510_v15 }
 0x191   :  { %10814 = vmatmul.msk.f32.gmra.mxu0 %vm176_vm1, %v149_v16  ;;  %740 = vmatpush.msra.mxu2 %v507_v13  ;;  %v637_v16 = vld [vmem:[#allocation4 + $0x8] sm:$0xff] }
 0x193   :  { %741 = vmatpush.msra.mxu2 %v504_v11 }
 0x195   :  { %742 = vmatpush.msra.mxu2 %v501_v9 }
 0x196   :  { %v17537_v17 = vpop.f32.mrf.mxu0 }
 0x197   :  { %743 = vmatpush.msra.mxu2 %v498_v7 }
 0x199   :  { %10815 = vmatmul.msk.f32.gmra.mxu0 %vm176_vm1, %v150_v18  ;;  %744 = vmatpush.msra.mxu2 %v495_v5  ;;  %v666_v18 = vld [vmem:[#allocation4 + $0xf0] sm:$0x3] }
 0x19a   :  { %735 = vmatmul.f32.gmra.mxu1 %v666_v18  ;;  %v11378_v18 = vld [vmem:[#allocation9 + $0x420] sm:$0xf] }
 0x19b   :  { %745 = vmatpush.msra.mxu2 %v492_v3 }
 0x19d   :  { %746 = vmatpush.msra.mxu2 %v489_v1 }
 0x19e   :  { %v17543_v19 = vpop.f32.mrf.mxu0 }
 0x19f   :  { %747 = vmatpush.msra.mxu2 %v486_v63 }
 0x1a1   :  { %10816 = vmatmul.msk.f32.gmra.mxu0 %vm176_vm1, %v151_v20  ;;  %748 = vmatpush.msra.mxu2 %v483_v61  ;;  %v642_v20 = vld [vmem:[#allocation4 + $0x30] sm:$0xff] }
 0x1a3   :  { %749 = vmatpush.msra.mxu2 %v480_v59 }
 0x1a5   :  { %750 = vmatpush.msra.mxu2 %v477_v57 }
 0x1a6   :  { %v17549_v21 = vpop.f32.mrf.mxu0 }
 0x1a7   :  { %751 = vmatpush.msra.mxu2 %v474_v55 }
 0x1a9   :  { %10817 = vmatmul.msk.f32.gmra.mxu0 %vm176_vm1, %v152_v22  ;;  %752 = vmatpush.msra.mxu2 %v17476_v53 }
 0x1ab   :  { %753 = vmatpush.msra.mxu2 %v17470_v51 }
 0x1ad   :  { %754 = vmatpush.msra.mxu2 %v17464_v49 }
 0x1ae   :  { %v522_v23 = vpop.f32.mrf.mxu0  ;;  %755 = vmatmul.f32.vlgmr.msra.gmra.mxu2 %v637_v16  ;;  %v10994_v16 = vld [vmem:[#allocation9 + $0x120] sm:$0xf] }
 0x1b1   :  { %10818 = vmatmul.msk.f32.gmra.mxu0 %vm176_vm1, %v153_v24  ;;  %v648_v24 = vld [vmem:[#allocation4 + $0x60] sm:$0xff] }
 0x1b6   :  { %v525_v25 = vpop.f32.mrf.mxu0  ;;  %758 = vmatmul.f32.gmra.mxu2 %v642_v20  ;;  %v15975_v20 = vld [vmem:[#allocation9 + $0x434] sm:$0xf0] }
 0x1b9   :  { %10819 = vmatmul.msk.f32.gmra.mxu0 %vm176_vm1, %v154_v26  ;;  %v652_v26 = vld [vmem:[#allocation4 + $0x80] sm:$0xff] }
 0x1be   :  { %v528_v27 = vpop.f32.mrf.mxu0 }
 0x1c1   :  { %10820 = vmatmul.msk.f32.gmra.mxu0 %vm176_vm1, %v155_v28  ;;  %v639_v28 = vld [vmem:[#allocation4 + $0x18] sm:$0xff] }
 0x1c6   :  { %v531_v29 = vpop.f32.mrf.mxu0 }
 0x1c9   :  { %10821 = vmatmul.msk.f32.gmra.mxu0 %vm176_vm1, %v156_v30  ;;  %v657_v30 = vld [vmem:[#allocation4 + $0xa8] sm:$0xff] }
 0x1ce   :  { %v534_v31 = vpop.f32.mrf.mxu0 }
 0x1d1   :  { %10822 = vmatmul.msk.f32.gmra.mxu0 %vm176_vm1, %v157_v32  ;;  %v644_v32 = vld [vmem:[#allocation4 + $0x40] sm:$0xff] }
 0x1d6   :  { %v537_v33 = vpop.f32.mrf.mxu0 }
 0x1d9   :  { %10823 = vmatmul.msk.f32.gmra.mxu0 %vm176_vm1, %v158_v34  ;;  %v662_v34 = vld [vmem:[#allocation4 + $0xd0] sm:$0xff] }
 0x1de   :  { %v540_v35 = vpop.f32.mrf.mxu0 }
 0x1e1   :  { %10824 = vmatmul.msk.f32.gmra.mxu0 %vm176_vm1, %v159_v36  ;;  %v649_v36 = vld [vmem:[#allocation4 + $0x68] sm:$0xff] }
 0x1e6   :  { %v543_v37 = vpop.f32.mrf.mxu0 }
 0x1e9   :  { %10825 = vmatmul.msk.f32.gmra.mxu0 %vm176_vm1, %v160_v38  ;;  %v667_v38 = vld [vmem:[#allocation4 + $0xf8] sm:$0x3] }
 0x1ee   :  { %v546_v39 = vpop.f32.mrf.mxu0 }
 0x1f1   :  { %10826 = vmatmul.msk.f32.gmra.mxu0 %vm176_vm1, %v161_v40  ;;  %v654_v40 = vld [vmem:[#allocation4 + $0x90] sm:$0xff] }
 0x1f6   :  { %v549_v41 = vpop.f32.mrf.mxu0 }
 0x1f9   :  { %10827 = vmatmul.msk.f32.gmra.mxu0 %vm176_vm1, %v162_v42  ;;  %v659_v42 = vld [vmem:[#allocation4 + $0xb8] sm:$0xff] }
 0x1fe   :  { %v552_v43 = vpop.f32.mrf.mxu0 }
 0x201   :  { %10828 = vmatmul.msk.f32.gmra.mxu0 %vm176_vm1, %v163_v44  ;;  %v664_v44 = vld [vmem:[#allocation4 + $0xe0] sm:$0xff] }
 0x206   :  { %v555_v45 = vpop.f32.mrf.mxu0 }
 0x209   :  { %10829 = vmatmul.msk.f32.gmra.mxu0 %vm176_vm1, %v164_v46  ;;  %v669_v46 = vld [vmem:[#allocation4 + $0x108] sm:$0x3] }
 0x20e   :  { %v558_v47 = vpop.f32.mrf.mxu0 }
 0x20f   :  { %777 = vmatpush.msra.mxu3 %v558_v47  ;;  %v17663_v47 = vpop.f32.mrf.mxu1 }
 0x211   :  { %10830 = vmatmul.msk.f32.gmra.mxu0 %vm176_vm1, %v165_v48  ;;  %778 = vmatpush.msra.mxu3 %v555_v45  ;;  %v640_v48 = vld [vmem:[#allocation4 + $0x20] sm:$0xff] }
 0x213   :  { %779 = vmatpush.msra.mxu3 %v552_v43 }
 0x215   :  { %780 = vmatpush.msra.mxu3 %v549_v41 }
 0x216   :  { %v17610_v49 = vpop.f32.mrf.mxu0 }
 0x217   :  { %781 = vmatpush.msra.mxu3 %v546_v39  ;;  %v668_v39 = vld [vmem:[#allocation4 + $0x100] sm:$0x3] }
 0x219   :  { %10831 = vmatmul.msk.f32.gmra.mxu0 %vm176_vm1, %v166_v50  ;;  %782 = vmatpush.msra.mxu3 %v543_v37  ;;  %v645_v50 = vld [vmem:[#allocation4 + $0x48] sm:$0xff] }
 0x21b   :  { %783 = vmatpush.msra.mxu3 %v540_v35  ;;  %v663_v35 = vld [vmem:[#allocation4 + $0xd8] sm:$0xff] }
 0x21d   :  { %784 = vmatpush.msra.mxu3 %v537_v33 }
 0x21e   :  { %v17616_v51 = vpop.f32.mrf.mxu0 }
 0x21f   :  { %785 = vmatpush.msra.mxu3 %v534_v31  ;;  %v658_v31 = vld [vmem:[#allocation4 + $0xb0] sm:$0xff] }
 0x221   :  { %10832 = vmatmul.msk.f32.gmra.mxu0 %vm176_vm1, %v167_v52  ;;  %786 = vmatpush.msra.mxu3 %v531_v29  ;;  %v650_v52 = vld [vmem:[#allocation4 + $0x70] sm:$0xff] }
 0x223   :  { %787 = vmatpush.msra.mxu3 %v528_v27  ;;  %v653_v27 = vld [vmem:[#allocation4 + $0x88] sm:$0xff] }
 0x225   :  { %788 = vmatpush.msra.mxu3 %v525_v25 }
 0x226   :  { %v17622_v53 = vpop.f32.mrf.mxu0 }
 0x227   :  { %789 = vmatpush.msra.mxu3 %v522_v23  ;;  %v647_v23 = vld [vmem:[#allocation4 + $0x58] sm:$0xff] }
 0x228   :  { %761 = vmatmul.f32.gmra.mxu2 %v647_v23  ;;  %v11379_v23 = vor.u32 %v15975_v20, %v11378_v18  ;;  %v11474_v18 = vld [vmem:[#allocation9 + $0x4e0] sm:$0xf] }
 0x229   :  { %10833 = vmatmul.msk.f32.gmra.mxu0 %vm176_vm1, %v168_v54  ;;  %790 = vmatpush.msra.mxu3 %v17549_v21  ;;  %v643_v21 = vld [vmem:[#allocation4 + $0x38] sm:$0xff] }
 0x22a   :  { %v655_v54 = vld [vmem:[#allocation4 + $0x98] sm:$0xff] }
 0x22b   :  { %791 = vmatpush.msra.mxu3 %v17543_v19 }
 0x22d   :  { %792 = vmatpush.msra.mxu3 %v17537_v17  ;;  %v638_v17 = vld [vmem:[#allocation4 + $0x10] sm:$0xff] }
 0x22e   :  { %v17631_v55 = vpop.f32.mrf.mxu0  ;;  %793 = vmatmul.f32.vlgmr.msra.gmra.mxu3 %v638_v17  ;;  %v15879_v17 = vld [vmem:[#allocation9 + $0x134] sm:$0xf0] }
 0x230   :  { %764 = vmatmul.f32.gmra.mxu2 %v652_v26  ;;  %v15873_v26 = vld [vmem:[#allocation9 + $0x104] sm:$0xf0] }
 0x231   :  { %10834 = vmatmul.msk.f32.gmra.mxu0 %vm176_vm1, %v169_v56  ;;  %v660_v56 = vld [vmem:[#allocation4 + $0xc0] sm:$0xff] }
 0x236   :  { %v573_v57 = vpop.f32.mrf.mxu0  ;;  %796 = vmatmul.f32.gmra.mxu3 %v643_v21  ;;  %v11570_v21 = vld [vmem:[#allocation9 + $0x5a0] sm:$0xf] }
 0x238   :  { %767 = vmatmul.f32.gmra.mxu2 %v657_v30  ;;  %v11546_v30 = vld [vmem:[#allocation9 + $0x570] sm:$0xf] }
 0x239   :  { %10835 = vmatmul.msk.f32.gmra.mxu0 %vm176_vm1, %v170_v58  ;;  %v665_v58 = vld [vmem:[#allocation4 + $0xe8] sm:$0xff] }
 0x23e   :  { %v576_v59 = vpop.f32.mrf.mxu0  ;;  %799 = vmatmul.f32.gmra.mxu3 %v648_v24 }
 0x240   :  { %770 = vmatmul.f32.gmra.mxu2 %v662_v34 }
 0x241   :  { %10836 = vmatmul.msk.f32.gmra.mxu0 %vm176_vm1, %v171_v60 }
 0x246   :  { %v579_v61 = vpop.f32.mrf.mxu0  ;;  %802 = vmatmul.f32.gmra.mxu3 %v653_v27  ;;  %v11354_v27 = vld [vmem:[#allocation9 + $0x3f0] sm:$0xf] }
 0x248   :  { %773 = vmatmul.f32.gmra.mxu2 %v667_v38  ;;  %v10946_v38 = vld [vmem:[#allocation9 + $0xc0] sm:$0xf] }
 0x249   :  { %10837 = vmatmul.msk.f32.gmra.mxu0 %vm176_vm1, %v172_v62  ;;  %v756_v62 = vpop.f32.mrf.mxu2 }
 0x24e   :  { %v582_v63 = vpop.f32.mrf.mxu0  ;;  %805 = vmatmul.f32.gmra.mxu3 %v658_v31  ;;  %v16017_v31 = vld [vmem:[#allocation9 + $0x584] sm:$0xf0] }
 0x251   :  { %10838 = vmatmul.msk.f32.gmra.mxu0 %vm176_vm1, %v173_v0  ;;  %v17686_v0 = vpop.f32.mrf.mxu2 }
 0x256   :  { %v585_v1 = vpop.f32.mrf.mxu0  ;;  %808 = vmatmul.f32.gmra.mxu3 %v663_v35 }
 0x259   :  { %10839 = vmatmul.msk.f32.gmra.mxu0 %vm176_vm1, %v174_v2 }
 0x25e   :  { %v588_v3 = vpop.f32.mrf.mxu0  ;;  %811 = vmatmul.f32.gmra.mxu3 %v668_v39  ;;  %v15867_v39 = vld [vmem:[#allocation9 + $0xd4] sm:$0xf0] }
 0x266   :  { %v591_v5 = vpop.f32.mrf.mxu0 }
 0x26e   :  { %v594_v7 = vpop.f32.mrf.mxu0 }
 0x276   :  { %v597_v9 = vpop.f32.mrf.mxu0 }
 0x27e   :  { %v600_v11 = vpop.f32.mrf.mxu0 }
 0x286   :  { %v603_v13 = vpop.f32.mrf.mxu0 }
 0x28e   :  { %v606_v15 = vpop.f32.mrf.mxu0 }
 0x28f   :  { %815 = vmatpush.msrb.mxu1 %v606_v15 }
 0x291   :  { %816 = vmatpush.msrb.mxu1 %v603_v13 }
 0x293   :  { %817 = vmatpush.msrb.mxu1 %v600_v11  ;;  %v16029_v11 = vld [vmem:[#allocation9 + $0x5e4] sm:$0xf0] }
 0x294   :  { %v11595_v13 = vor.u32 %v16029_v11, %v11594_v10  ;;  %v10898_v11 = vld [vmem:[#allocation9 + $0x60] sm:$0xf] }
 0x295   :  { %818 = vmatpush.msrb.mxu1 %v597_v9  ;;  %v15981_v9 = vld [vmem:[#allocation9 + $0x464] sm:$0xf0] }
 0x296   :  { %v17657_v19 = vpop.f32.mrf.mxu0 }
 0x297   :  { %819 = vmatpush.msrb.mxu1 %v594_v7  ;;  %v11402_v7 = vld [vmem:[#allocation9 + $0x450] sm:$0xf] }
 0x298   :  { %v11403_v12 = vor.u32 %v15981_v9, %v11402_v7  ;;  %v16794_v7 = vld [vmem:[#allocation9 + $0x1dd4] sm:$0xf] }
 0x299   :  { %820 = vmatpush.msrb.mxu1 %v591_v5  ;;  %v11018_v5 = vld [vmem:[#allocation9 + $0x150] sm:$0xf] }
 0x29a   :  { %v11019_v8 = vor.u32 %v15885_v6, %v11018_v5 }
 0x29b   :  { %821 = vmatpush.msrb.mxu1 %v588_v3 }
 0x29c   :  { %8323 = vmatpush.bf16.msrb.mxu3 %v11019_v8  ;;  %v14668_v8 = vld [vmem:[#allocation9 + $0x1de8] sm:$0xf0] }
 0x29d   :  { %822 = vmatpush.msrb.mxu1 %v585_v1  ;;  %v14671_v9 = vor.u32 %v16794_v7, %v14668_v8  ;;  %v10850_v8 = vld [vmem:[#allocation9] sm:$0xf] }
 0x29e   :  { %v612_v22 = vpop.f32.mrf.mxu0 }
 0x29f   :  { %823 = vmatpush.msrb.mxu1 %v582_v63  ;;  %v670_v63 = vld [vmem:[#allocation4 + $0x110] sm:$0x3]  ;;  %8895 = vmatpush.bf16.msrb.mxu0 %v14671_v9  ;;  %v15843_v9 = vld [vmem:[#allocation9 + $0x14] sm:$0xf0] }
 0x2a1   :  { %824 = vmatpush.msrb.mxu1 %v579_v61 }
 0x2a3   :  { %825 = vmatpush.msrb.mxu1 %v576_v59  ;;  %v17681_v59 = vld [vmem:[#allocation7] ss:$0 sm:$0xff] }
 0x2a5   :  { %826 = vmatpush.msrb.mxu1 %v573_v57 }
 0x2a6   :  { %v615_v25 = vpop.f32.mrf.mxu0 }
 0x2a7   :  { %827 = vmatpush.msrb.mxu1 %v17631_v55 }
 0x2a9   :  { %828 = vmatpush.msrb.mxu1 %v17622_v53 }
 0x2ab   :  { %829 = vmatpush.msrb.mxu1 %v17616_v51  ;;  %v17688_v1 = vpop.f32.mrf.mxu2 }
 0x2ad   :  { %830 = vmatpush.msrb.mxu1 %v17610_v49  ;;  %v17665_v49 = vpop.f32.mrf.mxu1 }
 0x2ae   :  { %v618_v29 = vpop.f32.mrf.mxu0  ;;  %831 = vmatmul.f32.vlgmr.msrb.gmra.mxu1 %v639_v28 }
 0x2af   :  { %8349 = vmatpush.bf16.msra.mxu1 %v11403_v12  ;;  %v15855_v12 = vld [vmem:[#allocation9 + $0x74] sm:$0xf0] }
 0x2b1   :  { %v794_v34 = vpop.f32.mrf.mxu3 }
 0x2b3   :  { %v17690_v2 = vpop.f32.mrf.mxu2  ;;  %8350 = vmatpush.bf16.msra.mxu1 %v11379_v23  ;;  %v16788_v23 = vld [vmem:[#allocation9 + $0x1da4] sm:$0xf] }
 0x2b5   :  { %v17669_v51 = vpop.f32.mrf.mxu1 }
 0x2b6   :  { %v621_v33 = vpop.f32.mrf.mxu0  ;;  %834 = vmatmul.f32.gmra.mxu1 %v644_v32 }
 0x2bb   :  { %v17692_v3 = vpop.f32.mrf.mxu2 }
 0x2bd   :  { %v17672_v53 = vpop.f32.mrf.mxu1 }
 0x2be   :  { %v624_v37 = vpop.f32.mrf.mxu0  ;;  %837 = vmatmul.f32.gmra.mxu1 %v649_v36  ;;  %v719_v36 = vadd.f32 %v17681_v59, %v17663_v47  ;;  %v15861_v47 = vld [vmem:[#allocation9 + $0xa4] sm:$0xf0] }
 0x2c3   :  { %v17694_v4 = vpop.f32.mrf.mxu2 }
 0x2c5   :  { %v17675_v55 = vpop.f32.mrf.mxu1 }
 0x2c6   :  { %v627_v41 = vpop.f32.mrf.mxu0  ;;  %840 = vmatmul.f32.gmra.mxu1 %v654_v40  ;;  %v11330_v40 = vld [vmem:[#allocation9 + $0x3c0] sm:$0xf] }
 0x2cb   :  { %v774_v14 = vpop.f32.mrf.mxu2 }
 0x2cd   :  { %v17678_v57 = vpop.f32.mrf.mxu1 }
 0x2ce   :  { %v630_v43 = vpop.f32.mrf.mxu0  ;;  %843 = vmatmul.f32.gmra.mxu1 %v659_v42  ;;  %v10947_v42 = vor.u32 %v15867_v39, %v10946_v38  ;;  %v16782_v38 = vld [vmem:[#allocation9 + $0x1d74] sm:$0xf] }
 0x2d5   :  { %v736_v60 = vpop.f32.mrf.mxu1 }
 0x2d6   :  { %v633_v45 = vpop.f32.mrf.mxu0  ;;  %846 = vmatmul.f32.gmra.mxu1 %v664_v44  ;;  %v737_v61 = vadd.f32 %v17681_v59, %v736_v60  ;;  %v11522_v44 = vld [vmem:[#allocation9 + $0x540] sm:$0xf] }
 0x2d7   :  { %10840 = vmatpush.msk.msrb.mxu2 %vm697_vm2, %v633_v45  ;;  %v16011_v45 = vld [vmem:[#allocation9 + $0x554] sm:$0xf0] }
 0x2d8   :  { %v17696_v15 = vadd.f32 %v774_v14, %v737_v61  ;;  %v15957_v61 = vld [vmem:[#allocation9 + $0x3a4] sm:$0xf0] }
 0x2d9   :  { %861 = vmatpush.msrb.mxu2 %v630_v43  ;;  %v15963_v43 = vld [vmem:[#allocation9 + $0x3d4] sm:$0xf0] }
 0x2db   :  { %862 = vmatpush.msrb.mxu2 %v627_v41  ;;  %v797_v41 = vpop.f32.mrf.mxu3 }
 0x2dd   :  { %863 = vmatpush.msrb.mxu2 %v624_v37  ;;  %v757_v37 = vadd.f32 %v756_v62, %v719_v36  ;;  %v11498_v62 = vld [vmem:[#allocation9 + $0x510] sm:$0xf] }
 0x2de   :  { %849 = vmatmul.f32.gmra.mxu1 %v669_v46  ;;  %v11331_v46 = vor.u32 %v15963_v43, %v11330_v40 }
 0x2df   :  { %864 = vmatpush.msrb.mxu2 %v621_v33  ;;  %v11547_v33 = vor.u32 %v16017_v31, %v11546_v30  ;;  %v15849_v30 = vld [vmem:[#allocation9 + $0x44] sm:$0xf0] }
 0x2e1   :  { %865 = vmatpush.msrb.mxu2 %v618_v29  ;;  %v15969_v29 = vld [vmem:[#allocation9 + $0x404] sm:$0xf0] }
 0x2e2   :  { %v11355_v32 = vor.u32 %v15969_v29, %v11354_v27  ;;  %v10874_v29 = vld [vmem:[#allocation9 + $0x30] sm:$0xf] }
 0x2e3   :  { %866 = vmatpush.msrb.mxu2 %v615_v25  ;;  %v10970_v25 = vld [vmem:[#allocation9 + $0xf0] sm:$0xf]  ;;  %v10875_v31 = vor.u32 %v15849_v30, %v10874_v29 }
 0x2e4   :  { %v10971_v28 = vor.u32 %v15873_v26, %v10970_v25  ;;  %8351 = vmatpush.bf16.msra.mxu1 %v11355_v32  ;;  %v800_v25 = vpop.f32.mrf.mxu3  ;;  %v11258_v32 = vld [vmem:[#allocation9 + $0x330] sm:$0xf] }
 0x2e5   :  { %867 = vmatpush.msrb.mxu2 %v612_v22  ;;  %v16023_v22 = vld [vmem:[#allocation9 + $0x5b4] sm:$0xf0] }
 0x2e6   :  { %v11571_v24 = vor.u32 %v16023_v22, %v11570_v21 }
 0x2e7   :  { %868 = vmatpush.msrb.mxu2 %v17657_v19  ;;  %v10995_v19 = vor.u32 %v15879_v17, %v10994_v16  ;;  %v10899_v16 = vor.u32 %v15855_v12, %v10898_v11  ;;  %v15951_v17 = vld [vmem:[#allocation9 + $0x374] sm:$0xf0]  ;;  %v10851_v12 = vor.u32 %v15843_v9, %v10850_v8 }
 0x2e8   :  { %10841 = vmatmul.msk.f32.vlgmr.msrb.gmra.mxu2 %vm675_vm3, %v640_v48  ;;  %v11523_v48 = vor.u32 %v16011_v45, %v11522_v44  ;;  %8352 = vmatpush.bf16.msra.mxu1 %v11331_v46 }
 0x2e9   :  { %8362 = vmatpush.bf16.msra.mxu2 %v11595_v13  ;;  %8324 = vmatpush.bf16.msrb.mxu3 %v10995_v19  ;;  %v11282_v13 = vld [vmem:[#allocation9 + $0x360] sm:$0xf]  ;;  %v15999_v19 = vld [vmem:[#allocation9 + $0x4f4] sm:$0xf0] }
 0x2ea   :  { %v11283_v21 = vor.u32 %v15951_v17, %v11282_v13  ;;  %v11475_v22 = vor.u32 %v15999_v19, %v11474_v18  ;;  %v15939_v13 = vld [vmem:[#allocation9 + $0x314] sm:$0xf0]  ;;  %v731_v18 = vadd.f32 %v17681_v59, %v17675_v55 }
 0x2eb   :  { %v15987_v17 = vld [vmem:[#allocation9 + $0x494] sm:$0xf0] }
 0x2ec   :  { %v769_v30 = vadd.f32 %v17692_v3, %v731_v18 }
 0x2ed   :  { %8363 = vmatpush.bf16.msra.mxu2 %v11571_v24  ;;  %8325 = vmatpush.bf16.msrb.mxu3 %v10971_v28  ;;  %v14644_v24 = vld [vmem:[#allocation9 + $0x1db8] sm:$0xf0] }
 0x2ee   :  { %v14647_v26 = vor.u32 %v16788_v23, %v14644_v24  ;;  %v14596_v23 = vld [vmem:[#allocation9 + $0x1d58] sm:$0xf0]  ;;  %v11210_v24 = vld [vmem:[#allocation9 + $0x2d0] sm:$0xf] }
 0x2f0   :  { %10842 = vmatmul.msk.f32.gmra.mxu2 %vm675_vm3, %v645_v50  ;;  %v722_v50 = vadd.f32 %v17681_v59, %v17665_v49  ;;  %8896 = vmatpush.bf16.msrb.mxu0 %v14647_v26  ;;  %v15933_v26 = vld [vmem:[#allocation9 + $0x2e4] sm:$0xf0] }
 0x2f1   :  { %8364 = vmatpush.bf16.msra.mxu2 %v11547_v33  ;;  %8326 = vmatpush.bf16.msrb.mxu3 %v10947_v42  ;;  %v15945_v33 = vld [vmem:[#allocation9 + $0x344] sm:$0xf0]  ;;  %v14620_v42 = vld [vmem:[#allocation9 + $0x1d88] sm:$0xf0]  ;;  %v11211_v55 = vor.u32 %v15933_v26, %v11210_v24 }
 0x2f2   :  { %v760_v49 = vadd.f32 %v17686_v0, %v722_v50  ;;  %v725_v0 = vadd.f32 %v17681_v59, %v17669_v51  ;;  %v11259_v36 = vor.u32 %v15945_v33, %v11258_v32  ;;  %v14623_v43 = vor.u32 %v16782_v38, %v14620_v42  ;;  %v16173_v32 = vld [vmem:[#allocation9 + $0xa64] sm:$0xf0]  ;;  %v16770_v33 = vld [vmem:[#allocation9 + $0x1d14] sm:$0xf]  ;;  %v11186_v38 = vld [vmem:[#allocation9 + $0x2a0] sm:$0xf] }
 0x2f3   :  { %v734_v42 = vadd.f32 %v17681_v59, %v17678_v57 }
 0x2f4   :  { %v798_v27 = vadd.f32 %v797_v41, %v760_v49  ;;  %v763_v41 = vadd.f32 %v17688_v1, %v725_v0  ;;  %8897 = vmatpush.bf16.msrb.mxu0 %v14623_v43  ;;  %v11978_v0 = vld [vmem:[#allocation9 + $0x8d0] sm:$0xf]  ;;  %v12146_v43 = vld [vmem:[#allocation9 + $0xa20] sm:$0xf] }
 0x2f5   :  { %8365 = vmatpush.bf16.msra.mxu2 %v11523_v48  ;;  %v803_v48 = vpop.f32.mrf.mxu3 }
 0x2f6   :  { %v801_v46 = vadd.f32 %v800_v25, %v763_v41  ;;  %v16119_v41 = vld [vmem:[#allocation9 + $0x8b4] sm:$0xf0] }
 0x2f8   :  { %10843 = vmatmul.msk.f32.gmra.mxu2 %vm675_vm3, %v650_v52  ;;  %v795_v52 = vadd.f32 %v794_v34, %v757_v37  ;;  %v11450_v34 = vld [vmem:[#allocation9 + $0x4b0] sm:$0xf]  ;;  %v15993_v37 = vld [vmem:[#allocation9 + $0x4c4] sm:$0xf0] }
 0x2f9   :  { %v11451_v40 = vor.u32 %v15993_v37, %v11450_v34  ;;  %v14572_v34 = vld [vmem:[#allocation9 + $0x1d28] sm:$0xf0] }
 0x2fa   :  { %v14575_v37 = vor.u32 %v16770_v33, %v14572_v34  ;;  %v15915_v33 = vld [vmem:[#allocation9 + $0x254] sm:$0xf0]  ;;  %v11906_v34 = vld [vmem:[#allocation9 + $0x840] sm:$0xf] }
 0x300   :  { %10844 = vmatmul.msk.f32.gmra.mxu2 %vm675_vm3, %v655_v54  ;;  %v10922_v54 = vld [vmem:[#allocation9 + $0x90] sm:$0xf] }
 0x301   :  { %v10923_v60 = vor.u32 %v15861_v47, %v10922_v54 }
 0x303   :  { %8327 = vmatpush.bf16.msrb.mxu3 %v10923_v60 }
 0x307   :  { %8328 = vmatpush.bf16.msrb.mxu3 %v10899_v16  ;;  %v11426_v16 = vld [vmem:[#allocation9 + $0x480] sm:$0xf] }
 0x308   :  { %10845 = vmatmul.msk.f32.gmra.mxu2 %vm675_vm3, %v660_v56  ;;  %v11306_v56 = vld [vmem:[#allocation9 + $0x390] sm:$0xf] }
 0x309   :  { %v11307_v5 = vor.u32 %v15957_v61, %v11306_v56 }
 0x30b   :  { %8353 = vmatpush.bf16.msra.mxu1 %v11307_v5  ;;  %8329 = vmatpush.bf16.msrb.mxu3 %v10875_v31  ;;  %v728_v5 = vadd.f32 %v17681_v59, %v17672_v53 }
 0x30d   :  { %v766_v53 = vadd.f32 %v17690_v2, %v728_v5  ;;  %v12170_v2 = vld [vmem:[#allocation9 + $0xa50] sm:$0xf] }
 0x30f   :  { %8354 = vmatpush.bf16.msra.mxu1 %v11283_v21  ;;  %8330 = vmatpush.bf16.msrb.mxu3 %v10851_v12  ;;  %v16776_v21 = vld [vmem:[#allocation9 + $0x1d44] sm:$0xf]  ;;  %v804_v29 = vadd.f32 %v803_v48, %v766_v53  ;;  %v11930_v53 = vld [vmem:[#allocation9 + $0x870] sm:$0xf] }
 0x310   :  { %10846 = vmatmul.msk.f32.gmra.mxu2 %vm675_vm3, %v665_v58  ;;  %v14599_v25 = vor.u32 %v16776_v21, %v14596_v23 }
 0x312   :  { %8898 = vmatpush.bf16.msrb.mxu0 %v14599_v25  ;;  %v12122_v25 = vld [vmem:[#allocation9 + $0x9f0] sm:$0xf] }
 0x313   :  { %8355 = vmatpush.bf16.msra.mxu1 %v11259_v36  ;;  %8336 = vmatpush.bf16.msra.mxu3 %v11211_v55  ;;  %v12171_v36 = vor.u32 %v16173_v32, %v12170_v2 }
 0x316   :  { %8899 = vmatpush.bf16.msrb.mxu0 %v14575_v37 }
 0x318   :  { %10847 = vmatmul.msk.f32.gmra.mxu2 %vm675_vm3, %v670_v63  ;;  %v16005_v63 = vld [vmem:[#allocation9 + $0x524] sm:$0xf0] }
 0x319   :  { %v11499_v6 = vor.u32 %v16005_v63, %v11498_v62 }
 0x31b   :  { %8366 = vmatpush.bf16.msra.mxu2 %v11499_v6 }
 0x31f   :  { %8367 = vmatpush.bf16.msra.mxu2 %v11475_v22  ;;  %v806_v22 = vpop.f32.mrf.mxu3 }
 0x323   :  { %8368 = vmatpush.bf16.msra.mxu2 %v11451_v40  ;;  %v11954_v40 = vld [vmem:[#allocation9 + $0x8a0] sm:$0xf] }
 0x324   :  { %v11955_v3 = vor.u32 %v16119_v41, %v11954_v40  ;;  %v12098_v40 = vld [vmem:[#allocation9 + $0x9c0] sm:$0xf] }
 0x327   :  { %v809_v5 = vpop.f32.mrf.mxu3 }
 0x32b   :  { %v832_v35 = vpop.f32.mrf.mxu1 }
 0x32c   :  { %v833_v10 = vadd.f32 %v832_v35, %v795_v52 }
 0x333   :  { %v835_v58 = vpop.f32.mrf.mxu1 }
 0x334   :  { %v836_v51 = vadd.f32 %v835_v58, %v798_v27 }
 0x33b   :  { %v838_v39 = vpop.f32.mrf.mxu1 }
 0x33c   :  { %v839_v56 = vadd.f32 %v838_v39, %v801_v46  ;;  %v15927_v39 = vld [vmem:[#allocation9 + $0x2b4] sm:$0xf0]  ;;  %v14548_v46 = vld [vmem:[#allocation9 + $0x1cf8] sm:$0xf0] }
 0x343   :  { %v17706_v58 = vpop.f32.mrf.mxu1 }
 0x344   :  { %v842_v48 = vadd.f32 %v17706_v58, %v804_v29  ;;  %v14524_v29 = vld [vmem:[#allocation9 + $0x1cc8] sm:$0xf0] }
 0x36b   :  { %v870_v14 = vpop.f32.mrf.mxu2 }
 0x36c   :  { %v871_v20 = vadd.f32 %v870_v14, %v833_v10  ;;  %v11234_v10 = vld [vmem:[#allocation9 + $0x300] sm:$0xf] }
 0x36d   :  { %v11235_v14 = vor.u32 %v15939_v13, %v11234_v10 }
 0x36e   :  { %v891_v28 = vmax.f32 %v871_v20, 0.0  ;;  %v11427_v20 = vor.u32 %v15987_v17, %v11426_v16 }
 0x36f   :  { %8356 = vmatpush.bf16.msra.mxu1 %v11235_v14 }
 0x370   :  { %v898_v35 = vmin.f32 %v891_v28, 6.0  ;;  %8369 = vmatpush.bf16.msra.mxu2 %v11427_v20  ;;  %v16125_v28 = vld [vmem:[#allocation9 + $0x8e4] sm:$0xf0] }
 0x371   :  { %v11979_v31 = vor.u32 %v16125_v28, %v11978_v0  ;;  %v16161_v0 = vld [vmem:[#allocation9 + $0xa04] sm:$0xf0] }
 0x372   :  { %905 = vst [vmem:[#allocation2] sm:$0xff] %v898_v35  ;;  %v844_v35 = vpop.f32.mrf.mxu1  ;;  %v12123_v2 = vor.u32 %v16161_v0, %v12122_v25 }
 0x373   :  { %v873_v44 = vpop.f32.mrf.mxu2  ;;  %8388 = vmatpush.bf16.msrb.mxu1 %v11979_v31  ;;  %v11138_v31 = vld [vmem:[#allocation9 + $0x240] sm:$0xf] }
 0x374   :  { %v874_v45 = vadd.f32 %v873_v44, %v836_v51  ;;  %v11187_v51 = vor.u32 %v15927_v39, %v11186_v38  ;;  %8401 = vmatpush.bf16.msrb.mxu2 %v12171_v36  ;;  %v16167_v44 = vld [vmem:[#allocation9 + $0xa34] sm:$0xf0]  ;;  %v11139_v37 = vor.u32 %v15915_v33, %v11138_v31  ;;  %v15897_v31 = vld [vmem:[#allocation9 + $0x1c4] sm:$0xf0] }
 0x375   :  { %v16107_v38 = vld [vmem:[#allocation9 + $0x854] sm:$0xf0] }
 0x376   :  { %v892_v50 = vmax.f32 %v874_v45, 0.0  ;;  %v16764_v45 = vld [vmem:[#allocation9 + $0x1ce4] sm:$0xf]  ;;  %8337 = vmatpush.bf16.msra.mxu3 %v11187_v51  ;;  %v11907_v39 = vor.u32 %v16107_v38, %v11906_v34  ;;  %v11834_v34 = vld [vmem:[#allocation9 + $0x7b0] sm:$0xf] }
 0x377   :  { %8389 = vmatpush.bf16.msrb.mxu1 %v11955_v3  ;;  %v14500_v3 = vld [vmem:[#allocation9 + $0x1c98] sm:$0xf0]  ;;  %v12026_v38 = vld [vmem:[#allocation9 + $0x930] sm:$0xf] }
 0x378   :  { %v899_v49 = vmin.f32 %v892_v50, 6.0  ;;  %v807_v50 = vadd.f32 %v806_v22, %v769_v30 }
 0x379   :  { %v912_v52 = vld [vmem:[#allocation2] sm:$0x1]  ;;  %v914_v54 = vld [vmem:[#allocation2 + $0x1] sm:$0x1]  ;;  %v916_v47 = vld [vmem:[#allocation2 + $0x2] sm:$0x1] }
 0x37a   :  { %913 = vst [vmem:[#allocation3] sm:$0x1] %v912_v52  ;;  %v918_v60 = vld [vmem:[#allocation2 + $0x3] sm:$0x1]  ;;  %v920_v61 = vld [vmem:[#allocation2 + $0x4] sm:$0x1]  ;;  %v12147_v52 = vor.u32 %v16167_v44, %v12146_v43  ;;  %v847_v12 = vpop.f32.mrf.mxu1 }
 0x37b   :  { %915 = vst [vmem:[#allocation3 + $0x2] sm:$0x1] %v914_v54  ;;  %v922_v1 = vld [vmem:[#allocation2 + $0x5] sm:$0x1]  ;;  %v924_v62 = vld [vmem:[#allocation2 + $0x6] sm:$0x1]  ;;  %v876_v63 = vpop.f32.mrf.mxu2  ;;  %v14551_v54 = vor.u32 %v16764_v45, %v14548_v46 }
 0x37c   :  { %917 = vst [vmem:[#allocation3 + $0x4] sm:$0x1] %v916_v47  ;;  %v926_v6 = vld [vmem:[#allocation2 + $0x7] sm:$0x1]  ;;  %v877_v7 = vadd.f32 %v876_v63, %v839_v56  ;;  %v11162_v47 = vld [vmem:[#allocation9 + $0x270] sm:$0xf]  ;;  %8402 = vmatpush.bf16.msrb.mxu2 %v12147_v52 }
 0x37d   :  { %919 = vst [vmem:[#allocation3 + $0x6] sm:$0x1] %v918_v60  ;;  %v15921_v56 = vld [vmem:[#allocation9 + $0x284] sm:$0xf0]  ;;  %8900 = vmatpush.bf16.msrb.mxu0 %v14551_v54  ;;  %v16752_v43 = vld [vmem:[#allocation9 + $0x1c84] sm:$0xf] }
 0x37e   :  { %921 = vst [vmem:[#allocation3 + $0x8] sm:$0x1] %v920_v61  ;;  %v893_v11 = vmax.f32 %v877_v7, 0.0  ;;  %v11163_v59 = vor.u32 %v15921_v56, %v11162_v47  ;;  %v845_v7 = vadd.f32 %v844_v35, %v807_v50  ;;  %v11114_v44 = vld [vmem:[#allocation9 + $0x210] sm:$0xf]  ;;  %v14503_v45 = vor.u32 %v16752_v43, %v14500_v3  ;;  %v812_v50 = vpop.f32.mrf.mxu3 }
 0x37f   :  { %923 = vst [vmem:[#allocation3 + $0xa] sm:$0x1] %v922_v1  ;;  %v772_v1 = vadd.f32 %v17694_v4, %v734_v42  ;;  %v16155_v42 = vld [vmem:[#allocation9 + $0x9d4] sm:$0xf0]  ;;  %v15909_v46 = vld [vmem:[#allocation9 + $0x224] sm:$0xf0] }
 0x380   :  { %925 = vst [vmem:[#allocation3 + $0xc] sm:$0x1] %v924_v62  ;;  %v900_v19 = vmin.f32 %v893_v11, 6.0  ;;  %8338 = vmatpush.bf16.msra.mxu3 %v11163_v59  ;;  %8403 = vmatpush.bf16.msrb.mxu2 %v12123_v2  ;;  %v12099_v41 = vor.u32 %v16155_v42, %v12098_v40  ;;  %v11115_v52 = vor.u32 %v15909_v46, %v11114_v44  ;;  %v16101_v54 = vld [vmem:[#allocation9 + $0x824] sm:$0xf0] }
 0x381   :  { %927 = vst [vmem:[#allocation3 + $0xe] sm:$0x1] %v926_v6  ;;  %v810_v10 = vadd.f32 %v809_v5, %v772_v1  ;;  %v12074_v47 = vld [vmem:[#allocation9 + $0x990] sm:$0xf]  ;;  %v15436_v59 = vld [vmem:[#allocation9 + $0x23e8] sm:$0xf0] }
 0x382   :  { %906 = vst [vmem:[#allocation2 + $0x8] sm:$0xff] %v899_v49  ;;  %v11090_v1 = vld [vmem:[#allocation9 + $0x1e0] sm:$0xf] }
 0x383   :  { %907 = vst [vmem:[#allocation2 + $0x10] sm:$0xff] %v900_v19  ;;  %v879_v27 = vpop.f32.mrf.mxu2  ;;  %v16113_v19 = vld [vmem:[#allocation9 + $0x884] sm:$0xf0]  ;;  %v848_v20 = vadd.f32 %v847_v12, %v810_v10  ;;  %v12050_v10 = vld [vmem:[#allocation9 + $0x960] sm:$0xf] }
 0x384   :  { %v880_v63 = vadd.f32 %v879_v27, %v842_v48  ;;  %v11931_v24 = vor.u32 %v16113_v19, %v11930_v53  ;;  %v16758_v27 = vld [vmem:[#allocation9 + $0x1cb4] sm:$0xf]  ;;  %8339 = vmatpush.bf16.msra.mxu3 %v11139_v37  ;;  %8404 = vmatpush.bf16.msrb.mxu2 %v12099_v41  ;;  %v11882_v48 = vld [vmem:[#allocation9 + $0x810] sm:$0xf]  ;;  %v15412_v12 = vld [vmem:[#allocation9 + $0x23b8] sm:$0xf0] }
 0x385   :  { %v14527_v32 = vor.u32 %v16758_v27, %v14524_v29  ;;  %v11883_v56 = vor.u32 %v16101_v54, %v11882_v48  ;;  %v11066_v27 = vld [vmem:[#allocation9 + $0x1b0] sm:$0xf]  ;;  %v15388_v41 = vld [vmem:[#allocation9 + $0x2388] sm:$0xf0]  ;;  %v11042_v44 = vld [vmem:[#allocation9 + $0x180] sm:$0xf] }
 0x386   :  { %v894_v4 = vmax.f32 %v880_v63, 0.0  ;;  %8390 = vmatpush.bf16.msrb.mxu1 %v11931_v24  ;;  %v813_v63 = vadd.f32 %v812_v50, %v17696_v15  ;;  %v11067_v33 = vor.u32 %v15897_v31, %v11066_v27  ;;  %v11810_v50 = vld [vmem:[#allocation9 + $0x780] sm:$0xf] }
 0x387   :  { %8901 = vmatpush.bf16.msrb.mxu0 %v14527_v32 }
 0x388   :  { %v901_v22 = vmin.f32 %v894_v4, 6.0  ;;  %8340 = vmatpush.bf16.msra.mxu3 %v11115_v52  ;;  %v16980_v4 = vld [vmem:[#allocation9 + $0x23a4] sm:$0xf]  ;;  %v16083_v52 = vld [vmem:[#allocation9 + $0x794] sm:$0xf0] }
 0x389   :  { %v928_v60 = vld [vmem:[#allocation2 + $0x8] sm:$0x1]  ;;  %v930_v61 = vld [vmem:[#allocation2 + $0x9] sm:$0x1]  ;;  %v932_v57 = vld [vmem:[#allocation2 + $0xa] sm:$0x1]  ;;  %v15415_v15 = vor.u32 %v16980_v4, %v15412_v12  ;;  %v11811_v54 = vor.u32 %v16083_v52, %v11810_v50 }
 0x38a   :  { %929 = vst [vmem:[#allocation3 + $0x10] sm:$0x1] %v928_v60  ;;  %v934_v62 = vld [vmem:[#allocation2 + $0xb] sm:$0x1]  ;;  %v936_v58 = vld [vmem:[#allocation2 + $0xc] sm:$0x1]  ;;  %8391 = vmatpush.bf16.msrb.mxu1 %v11907_v39 }
 0x38b   :  { %931 = vst [vmem:[#allocation3 + $0x12] sm:$0x1] %v930_v61  ;;  %v882_v6 = vpop.f32.mrf.mxu2  ;;  %v938_v8 = vld [vmem:[#allocation2 + $0xd] sm:$0x1]  ;;  %v940_v9 = vld [vmem:[#allocation2 + $0xe] sm:$0x1]  ;;  %8902 = vmatpush.bf16.msrb.mxu0 %v14503_v45 }
 0x38c   :  { %933 = vst [vmem:[#allocation3 + $0x14] sm:$0x1] %v932_v57  ;;  %v942_v49 = vld [vmem:[#allocation2 + $0xf] sm:$0x1]  ;;  %v883_v11 = vadd.f32 %v882_v6, %v845_v7  ;;  %v944_v13 = vld [vmem:[#allocation2 + $0x10] sm:$0x1] }
 0x38d   :  { %935 = vst [vmem:[#allocation3 + $0x16] sm:$0x1] %v934_v62  ;;  %v946_v14 = vld [vmem:[#allocation2 + $0x11] sm:$0x1]  ;;  %v948_v16 = vld [vmem:[#allocation2 + $0x12] sm:$0x1] }
 0x38e   :  { %937 = vst [vmem:[#allocation3 + $0x18] sm:$0x1] %v936_v58  ;;  %v950_v17 = vld [vmem:[#allocation2 + $0x13] sm:$0x1]  ;;  %v952_v18 = vld [vmem:[#allocation2 + $0x14] sm:$0x1]  ;;  %8392 = vmatpush.bf16.msrb.mxu1 %v11883_v56 }
 0x38f   :  { %939 = vst [vmem:[#allocation3 + $0x1a] sm:$0x1] %v938_v8  ;;  %v954_v21 = vld [vmem:[#allocation2 + $0x15] sm:$0x1]  ;;  %v895_v23 = vmax.f32 %v883_v11, 0.0  ;;  %v850_v8 = vpop.f32.mrf.mxu1 }
 0x390   :  { %941 = vst [vmem:[#allocation3 + $0x1c] sm:$0x1] %v940_v9  ;;  %v956_v26 = vld [vmem:[#allocation2 + $0x16] sm:$0x1]  ;;  %v958_v28 = vld [vmem:[#allocation2 + $0x17] sm:$0x1] }
 0x391   :  { %943 = vst [vmem:[#allocation3 + $0x1e] sm:$0x1] %v942_v49  ;;  %v902_v35 = vmin.f32 %v895_v23, 6.0  ;;  %v16149_v60 = vld [vmem:[#allocation9 + $0x9a4] sm:$0xf0] }
 0x392   :  { %945 = vst [vmem:[#allocation3 + $0x20] sm:$0x1] %v944_v13  ;;  %v16986_v61 = vld [vmem:[#allocation9 + $0x23d4] sm:$0xf]  ;;  %v12075_v57 = vor.u32 %v16149_v60, %v12074_v47  ;;  %v15903_v62 = vld [vmem:[#allocation9 + $0x1f4] sm:$0xf0] }
 0x393   :  { %947 = vst [vmem:[#allocation3 + $0x22] sm:$0x1] %v946_v14  ;;  %v885_v55 = vpop.f32.mrf.mxu2  ;;  %v15439_v5 = vor.u32 %v16986_v61, %v15436_v59  ;;  %v11091_v58 = vor.u32 %v15903_v62, %v11090_v1  ;;  %v11858_v6 = vld [vmem:[#allocation9 + $0x7e0] sm:$0xf]  ;;  %v16095_v7 = vld [vmem:[#allocation9 + $0x7f4] sm:$0xf0] }
 0x394   :  { %949 = vst [vmem:[#allocation3 + $0x24] sm:$0x1] %v948_v16  ;;  %v886_v30 = vadd.f32 %v885_v55, %v848_v20  ;;  %8405 = vmatpush.bf16.msrb.mxu2 %v12075_v57  ;;  %v11859_v9 = vor.u32 %v16095_v7, %v11858_v6  ;;  %v16143_v49 = vld [vmem:[#allocation9 + $0x974] sm:$0xf0]  ;;  %v16137_v39 = vld [vmem:[#allocation9 + $0x944] sm:$0xf0] }
 0x395   :  { %951 = vst [vmem:[#allocation3 + $0x26] sm:$0x1] %v950_v17  ;;  %8947 = vmatpush.bf16.msra.mxu0 %v15439_v5  ;;  %v12051_v11 = vor.u32 %v16143_v49, %v12050_v10  ;;  %8341 = vmatpush.bf16.msra.mxu3 %v11091_v58  ;;  %v12027_v42 = vor.u32 %v16137_v39, %v12026_v38  ;;  %v15891_v45 = vld [vmem:[#allocation9 + $0x194] sm:$0xf0]  ;;  %v12002_v47 = vld [vmem:[#allocation9 + $0x900] sm:$0xf] }
 0x396   :  { %953 = vst [vmem:[#allocation3 + $0x28] sm:$0x1] %v952_v18  ;;  %v896_v36 = vmax.f32 %v886_v30, 0.0  ;;  %v851_v18 = vadd.f32 %v850_v8, %v813_v63  ;;  %8393 = vmatpush.bf16.msrb.mxu1 %v11859_v9  ;;  %v11043_v48 = vor.u32 %v15891_v45, %v11042_v44  ;;  %v16131_v56 = vld [vmem:[#allocation9 + $0x914] sm:$0xf0] }
 0x397   :  { %955 = vst [vmem:[#allocation3 + $0x2a] sm:$0x1] %v954_v21  ;;  %v12003_v60 = vor.u32 %v16131_v56, %v12002_v47  ;;  %v16968_v61 = vld [vmem:[#allocation9 + $0x2344] sm:$0xf]  ;;  %v15364_v57 = vld [vmem:[#allocation9 + $0x2358] sm:$0xf0] }
 0x398   :  { %957 = vst [vmem:[#allocation3 + $0x2c] sm:$0x1] %v956_v26  ;;  %v903_v51 = vmin.f32 %v896_v36, 6.0  ;;  %8406 = vmatpush.bf16.msrb.mxu2 %v12051_v11  ;;  %v15367_v1 = vor.u32 %v16968_v61, %v15364_v57  ;;  %v16962_v58 = vld [vmem:[#allocation9 + $0x2314] sm:$0xf] }
 0x399   :  { %959 = vst [vmem:[#allocation3 + $0x2e] sm:$0x1] %v958_v28  ;;  %8948 = vmatpush.bf16.msra.mxu0 %v15415_v15  ;;  %8342 = vmatpush.bf16.msra.mxu3 %v11067_v33  ;;  %v15340_v7 = vld [vmem:[#allocation9 + $0x2328] sm:$0xf0]  ;;  %v16956_v9 = vld [vmem:[#allocation9 + $0x22e4] sm:$0xf] }
 0x39a   :  { %908 = vst [vmem:[#allocation2 + $0x18] sm:$0xff] %v901_v22  ;;  %v15343_v8 = vor.u32 %v16962_v58, %v15340_v7  ;;  %v15316_v10 = vld [vmem:[#allocation9 + $0x22f8] sm:$0xf0]  ;;  %v11786_v4 = vld [vmem:[#allocation9 + $0x750] sm:$0xf] }
 0x39b   :  { %909 = vst [vmem:[#allocation2 + $0x20] sm:$0xff] %v902_v35  ;;  %v888_v17 = vpop.f32.mrf.mxu2  ;;  %v16089_v35 = vld [vmem:[#allocation9 + $0x7c4] sm:$0xf0]  ;;  %v15319_v49 = vor.u32 %v16956_v9, %v15316_v10  ;;  %v16950_v11 = vld [vmem:[#allocation9 + $0x22b4] sm:$0xf] }
 0x39c   :  { %910 = vst [vmem:[#allocation2 + $0x28] sm:$0xff] %v903_v51  ;;  %v17719_v21 = vadd.f32 %v888_v17, %v851_v18  ;;  %v11835_v37 = vor.u32 %v16089_v35, %v11834_v34  ;;  %v16974_v51 = vld [vmem:[#allocation9 + $0x2374] sm:$0xf]  ;;  %8407 = vmatpush.bf16.msrb.mxu2 %v12027_v42  ;;  %v16077_v12 = vld [vmem:[#allocation9 + $0x764] sm:$0xf0] }
 0x39d   :  { %v15391_v3 = vor.u32 %v16974_v51, %v15388_v41  ;;  %8343 = vmatpush.bf16.msra.mxu3 %v11043_v48  ;;  %v12746_v17 = vld [vmem:[#allocation9 + $0xed0] sm:$0xf]  ;;  %v16317_v15 = vld [vmem:[#allocation9 + $0xee4] sm:$0xf0]  ;;  %v15268_v35 = vld [vmem:[#allocation9 + $0x2298] sm:$0xf0] }
 0x39e   :  { %v897_v26 = vmax.f32 %v17719_v21, 0.0  ;;  %8394 = vmatpush.bf16.msrb.mxu1 %v11835_v37  ;;  %v16071_v21 = vld [vmem:[#allocation9 + $0x734] sm:$0xf0]  ;;  %v12747_v31 = vor.u32 %v16317_v15, %v12746_v17  ;;  %v16065_v42 = vld [vmem:[#allocation9 + $0x704] sm:$0xf0] }
 0x39f   :  { %8949 = vmatpush.bf16.msra.mxu0 %v15391_v3  ;;  %v12506_v41 = vld [vmem:[#allocation9 + $0xcf0] sm:$0xf]  ;;  %v16305_v44 = vld [vmem:[#allocation9 + $0xe84] sm:$0xf0]  ;;  %v11714_v50 = vld [vmem:[#allocation9 + $0x6c0] sm:$0xf] }
 0x3a0   :  { %8408 = vmatpush.bf16.msrb.mxu2 %v12003_v60  ;;  %v904_v5 = vmin.f32 %v897_v26, 6.0  ;;  %v12698_v3 = vld [vmem:[#allocation9 + $0xe70] sm:$0xf]  ;;  %v16059_v52 = vld [vmem:[#allocation9 + $0x6d4] sm:$0xf0] }
 0x3a1   :  { %v960_v13 = vld [vmem:[#allocation2 + $0x18] sm:$0x1]  ;;  %v962_v14 = vld [vmem:[#allocation2 + $0x19] sm:$0x1]  ;;  %v964_v16 = vld [vmem:[#allocation2 + $0x1a] sm:$0x1]  ;;  %v12699_v47 = vor.u32 %v16305_v44, %v12698_v3 }
 0x3a2   :  { %961 = vst [vmem:[#allocation3 + $0x30] sm:$0x1] %v960_v13  ;;  %v966_v53 = vld [vmem:[#allocation2 + $0x1b] sm:$0x1]  ;;  %v968_v19 = vld [vmem:[#allocation2 + $0x1c] sm:$0x1]  ;;  %8395 = vmatpush.bf16.msrb.mxu1 %v11811_v54 }
 0x3a3   :  { %963 = vst [vmem:[#allocation3 + $0x1] sm:$0x1] %v962_v14  ;;  %v970_v20 = vld [vmem:[#allocation2 + $0x1d] sm:$0x1]  ;;  %v972_v22 = vld [vmem:[#allocation2 + $0x1e] sm:$0x1]  ;;  %8950 = vmatpush.bf16.msra.mxu0 %v15367_v1 }
 0x3a4   :  { %965 = vst [vmem:[#allocation3 + $0x3] sm:$0x1] %v964_v16  ;;  %v974_v23 = vld [vmem:[#allocation2 + $0x1f] sm:$0x1]  ;;  %v976_v24 = vld [vmem:[#allocation2 + $0x20] sm:$0x1] }
 0x3a5   :  { %967 = vst [vmem:[#allocation3 + $0x5] sm:$0x1] %v966_v53  ;;  %v978_v25 = vld [vmem:[#allocation2 + $0x21] sm:$0x1]  ;;  %v980_v0 = vld [vmem:[#allocation2 + $0x22] sm:$0x1] }
 0x3a6   :  { %969 = vst [vmem:[#allocation3 + $0x7] sm:$0x1] %v968_v19  ;;  %v982_v55 = vld [vmem:[#allocation2 + $0x23] sm:$0x1]  ;;  %v984_v28 = vld [vmem:[#allocation2 + $0x24] sm:$0x1] }
 0x3a7   :  { %971 = vst [vmem:[#allocation3 + $0x9] sm:$0x1] %v970_v20  ;;  %v986_v2 = vld [vmem:[#allocation2 + $0x25] sm:$0x1]  ;;  %v988_v29 = vld [vmem:[#allocation2 + $0x26] sm:$0x1]  ;;  %8951 = vmatpush.bf16.msra.mxu0 %v15343_v8 }
 0x3a8   :  { %973 = vst [vmem:[#allocation3 + $0xb] sm:$0x1] %v972_v22  ;;  %v990_v30 = vld [vmem:[#allocation2 + $0x27] sm:$0x1]  ;;  %v992_v32 = vld [vmem:[#allocation2 + $0x28] sm:$0x1] }
 0x3a9   :  { %975 = vst [vmem:[#allocation3 + $0xd] sm:$0x1] %v974_v23  ;;  %v994_v36 = vld [vmem:[#allocation2 + $0x29] sm:$0x1]  ;;  %v996_v40 = vld [vmem:[#allocation2 + $0x2a] sm:$0x1]  ;;  %v11787_v23 = vor.u32 %v16077_v12, %v11786_v4 }
 0x3aa   :  { %977 = vst [vmem:[#allocation3 + $0xf] sm:$0x1] %v976_v24  ;;  %v998_v43 = vld [vmem:[#allocation2 + $0x2b] sm:$0x1]  ;;  %v1000_v46 = vld [vmem:[#allocation2 + $0x2c] sm:$0x1] }
 0x3ab   :  { %979 = vst [vmem:[#allocation3 + $0x11] sm:$0x1] %v978_v25  ;;  %v1002_v59 = vld [vmem:[#allocation2 + $0x2d] sm:$0x1]  ;;  %v1004_v62 = vld [vmem:[#allocation2 + $0x2e] sm:$0x1]  ;;  %8952 = vmatpush.bf16.msra.mxu0 %v15319_v49 }
 0x3ac   :  { %981 = vst [vmem:[#allocation3 + $0x13] sm:$0x1] %v980_v0  ;;  %v1006_v63 = vld [vmem:[#allocation2 + $0x2f] sm:$0x1]  ;;  %v12554_v13 = vld [vmem:[#allocation9 + $0xd50] sm:$0xf] }
 0x3ad   :  { %983 = vst [vmem:[#allocation3 + $0x15] sm:$0x1] %v982_v55  ;;  %v1012_v6 = vld [vmem:[#allocation3] sm:$0xff]  ;;  %v15292_v14 = vld [vmem:[#allocation9 + $0x22c8] sm:$0xf0] }
 0x3ae   :  { %985 = vst [vmem:[#allocation3 + $0x17] sm:$0x1] %v984_v28  ;;  %v16269_v16 = vld [vmem:[#allocation9 + $0xd64] sm:$0xf0]  ;;  %v15295_v18 = vor.u32 %v16950_v11, %v15292_v14  ;;  %v11762_v20 = vld [vmem:[#allocation9 + $0x720] sm:$0xf] }
 0x3af   :  { %987 = vst [vmem:[#allocation3 + $0x19] sm:$0x1] %v986_v2  ;;  %v12530_v24 = vld [vmem:[#allocation9 + $0xd20] sm:$0xf]  ;;  %v16263_v25 = vld [vmem:[#allocation9 + $0xd34] sm:$0xf0]  ;;  %v12555_v27 = vor.u32 %v16269_v16, %v12554_v13  ;;  %v11763_v37 = vor.u32 %v16071_v21, %v11762_v20 }
 0x3b0   :  { %989 = vst [vmem:[#allocation3 + $0x1b] sm:$0x1] %v988_v29  ;;  %v12722_v55 = vld [vmem:[#allocation9 + $0xea0] sm:$0xf]  ;;  %v16311_v28 = vld [vmem:[#allocation9 + $0xeb4] sm:$0xf0]  ;;  %8953 = vmatpush.bf16.msra.mxu0 %v15295_v18  ;;  %v12531_v39 = vor.u32 %v16263_v25, %v12530_v24 }
 0x3b1   :  { %991 = vst [vmem:[#allocation3 + $0x1d] sm:$0x1] %v990_v30  ;;  %v1013_v33 = vld [vmem:[#allocation3 + $0x8] sm:$0xff]  ;;  %v12723_v51 = vor.u32 %v16311_v28, %v12722_v55  ;;  %v16251_v56 = vld [vmem:[#allocation9 + $0xcd4] sm:$0xf0] }
 0x3b2   :  { %993 = vst [vmem:[#allocation3 + $0x1f] sm:$0x1] %v992_v32  ;;  %v16944_v32 = vld [vmem:[#allocation9 + $0x2284] sm:$0xf]  ;;  %v12482_v54 = vld [vmem:[#allocation9 + $0xcc0] sm:$0xf] }
 0x3b3   :  { %995 = vst [vmem:[#allocation3 + $0x21] sm:$0x1] %v994_v36  ;;  %v15271_v38 = vor.u32 %v16944_v32, %v15268_v35  ;;  %v12674_v60 = vld [vmem:[#allocation9 + $0xe40] sm:$0xf]  ;;  %v16299_v61 = vld [vmem:[#allocation9 + $0xe54] sm:$0xf0]  ;;  %v12483_v58 = vor.u32 %v16251_v56, %v12482_v54 }
 0x3b4   :  { %997 = vst [vmem:[#allocation3 + $0x23] sm:$0x1] %v996_v40  ;;  %v11738_v40 = vld [vmem:[#allocation9 + $0x6f0] sm:$0xf]  ;;  %v12675_v8 = vor.u32 %v16299_v61, %v12674_v60  ;;  %v16245_v9 = vld [vmem:[#allocation9 + $0xca4] sm:$0xf0] }
 0x3b5   :  { %999 = vst [vmem:[#allocation3 + $0x25] sm:$0x1] %v998_v43  ;;  %v1014_v2 = vld [vmem:[#allocation3 + $0x10] sm:$0xff]  ;;  %8954 = vmatpush.bf16.msra.mxu0 %v15271_v38  ;;  %v11690_v1 = vld [vmem:[#allocation9 + $0x690] sm:$0xf] }
 0x3b6   :  { %1001 = vst [vmem:[#allocation3 + $0x27] sm:$0x1] %v1000_v46  ;;  %v16257_v43 = vld [vmem:[#allocation9 + $0xd04] sm:$0xf0]  ;;  %v11739_v46 = vor.u32 %v16065_v42, %v11738_v40  ;;  %v12458_v7 = vld [vmem:[#allocation9 + $0xc90] sm:$0xf] }
 0x3b7   :  { %1003 = vst [vmem:[#allocation3 + $0x29] sm:$0x1] %v1002_v59  ;;  %v12507_v48 = vor.u32 %v16257_v43, %v12506_v41  ;;  %v12650_v10 = vld [vmem:[#allocation9 + $0xe10] sm:$0xf]  ;;  %v16293_v49 = vld [vmem:[#allocation9 + $0xe24] sm:$0xf0]  ;;  %v12459_v17 = vor.u32 %v16245_v9, %v12458_v7 }
 0x3b8   :  { %1005 = vst [vmem:[#allocation3 + $0x2b] sm:$0x1] %v1004_v62  ;;  %v11715_v62 = vor.u32 %v16059_v52, %v11714_v50  ;;  %v11410_v11 = vld [vmem:[#allocation9 + $0x458] sm:$0xf]  ;;  %v15982_v14 = vld [vmem:[#allocation9 + $0x46c] sm:$0xf0]  ;;  %v12651_v20 = vor.u32 %v16293_v49, %v12650_v10 }
 0x3b9   :  { %1007 = vst [vmem:[#allocation3 + $0x2d] sm:$0x1] %v1006_v63  ;;  %v11666_v15 = vld [vmem:[#allocation9 + $0x660] sm:$0xf]  ;;  %v16047_v18 = vld [vmem:[#allocation9 + $0x674] sm:$0xf0]  ;;  %v11411_v28 = vor.u32 %v15982_v14, %v11410_v11 }
 0x3ba   :  { %911 = vst [vmem:[#allocation2 + $0x30] sm:$0x3] %v904_v5  ;;  %v16239_v21 = vld [vmem:[#allocation9 + $0xc74] sm:$0xf0]  ;;  %v11386_v25 = vld [vmem:[#allocation9 + $0x428] sm:$0xf] }
 0x3bb   :  { %1026 = vst [vmem:[#allocation1] ss:$4 sm:$0xff] %v1012_v6  ;;  %v16053_v6 = vld [vmem:[#allocation9 + $0x6a4] sm:$0xf0]  ;;  %v12410_v35 = vld [vmem:[#allocation9 + $0xc30] sm:$0xf] }
 0x3bc   :  { %1028 = vst [vmem:[#allocation1 + $0x20] ss:$4 sm:$0xff] %v1013_v33  ;;  %v11691_v12 = vor.u32 %v16053_v6, %v11690_v1  ;;  %v11362_v42 = vld [vmem:[#allocation9 + $0x3f8] sm:$0xf]  ;;  %v11618_v44 = vld [vmem:[#allocation9 + $0x600] sm:$0xf] }
 0x3bd   :  { %v1016_v45 = vld [vmem:[#allocation3 + $0x20] sm:$0xff]  ;;  %v12578_v52 = vld [vmem:[#allocation9 + $0xd80] sm:$0xf]  ;;  %v12362_v56 = vld [vmem:[#allocation9 + $0xbd0] sm:$0xf] }
 0x3be   :  { %v16227_v50 = vld [vmem:[#allocation9 + $0xc14] sm:$0xf0]  ;;  %v16221_v60 = vld [vmem:[#allocation9 + $0xbe4] sm:$0xf0]  ;;  %v13130_v1 = vld [vmem:[#allocation9 + $0x11d0] sm:$0xf] }
 0x3bf   :  { %v11338_v61 = vld [vmem:[#allocation9 + $0x3c8] sm:$0xf]  ;;  %v13322_v9 = vld [vmem:[#allocation9 + $0x1350] sm:$0xf]  ;;  %v12338_v11 = vld [vmem:[#allocation9 + $0xba0] sm:$0xf] }
 0x3c0   :  { %v16461_v10 = vld [vmem:[#allocation9 + $0x1364] sm:$0xf0] }
 0x3c1   :  { %v1008_v53 = vld [vmem:[#allocation2 + $0x30] sm:$0x1]  ;;  %v1010_v19 = vld [vmem:[#allocation2 + $0x31] sm:$0x1] }
 0x3c2   :  { %1009 = vst [vmem:[#allocation3 + $0x2f] sm:$0x1] %v1008_v53  ;;  %v1029_v22 = vld.sshfl [vmem:[#allocation1] sm:$0xff pattern:$0x73625140] }
 0x3c3   :  { %1011 = vst [vmem:[#allocation3 + $0x31] sm:$0x1] %v1010_v19  ;;  %v17722_v26 = vpack.c.bf16 %v1029_v22, %v1029_v22  ;;  %v1031_v0 = vld.sshfl [vmem:[#allocation1 + $0x10] sm:$0xff pattern:$0x73625140] }
 0x3c4   :  { %v17724_v29 = vpack.c.bf16 %v1031_v0, %v1031_v0  ;;  %v1032_v30 = vld.sshfl [vmem:[#allocation1 + $0x18] sm:$0xff pattern:$0x73625140]  ;;  %v1030_v36 = vld.sshfl [vmem:[#allocation1 + $0x8] sm:$0xff pattern:$0x73625140] }
 0x3c5   :  { %8331 = vmatmul.bf16.vlgmr.msrb.gmra.mxu3 %v17722_v26  ;;  %v17727_v34 = vpack.c.bf16 %v1032_v30, %v1032_v30  ;;  %1037 = vst [vmem:[#allocation1] ss:$4 sm:$0xff] %v1014_v2  ;;  %v1034_v4 = vld.sshfl [vmem:[#allocation1 + $0x28] sm:$0xff pattern:$0x73625140]  ;;  %v17739_v16 = vpack.c.bf16 %v1030_v36, %v1030_v36  ;;  %v11667_v2 = vor.u32 %v16047_v18, %v11666_v15 }
 0x3c6   :  { %8357 = vmatmul.bf16.vlgmr.msra.gmra.mxu1 %v17724_v29  ;;  %8375 = vmatpush.bf16.msrb.mxu3 %v11787_v23  ;;  %v1035_v13 = vld.sshfl [vmem:[#allocation1 + $0x30] sm:$0xff pattern:$0x73625140]  ;;  %v12434_v53 = vld [vmem:[#allocation9 + $0xc60] sm:$0xf]  ;;  %v17741_v19 = vpack.c.bf16 %v1034_v4, %v1034_v4  ;;  %v12363_v4 = vor.u32 %v16221_v60, %v12362_v56 }
 0x3c7   :  { %8370 = vmatmul.bf16.vlgmr.msra.gmra.mxu2 %v17727_v34  ;;  %8427 = vmatpush.bf16.msra.mxu1 %v12555_v27  ;;  %v12626_v22 = vld [vmem:[#allocation9 + $0xde0] sm:$0xf]  ;;  %v16287_v23 = vld [vmem:[#allocation9 + $0xdf4] sm:$0xf0]  ;;  %v17744_v24 = vpack.c.bf16 %v1035_v13, %v1035_v13  ;;  %v11642_v27 = vld [vmem:[#allocation9 + $0x630] sm:$0xf]  ;;  %v12435_v33 = vor.u32 %v16239_v21, %v12434_v53 }
 0x3c8   :  { %8440 = vmatpush.bf16.msra.mxu2 %v12747_v31  ;;  %v15976_v0 = vld [vmem:[#allocation9 + $0x43c] sm:$0xf0]  ;;  %v16041_v30 = vld [vmem:[#allocation9 + $0x644] sm:$0xf0]  ;;  %v1015_v31 = vld [vmem:[#allocation3 + $0x18] sm:$0xff]  ;;  %v12627_v38 = vor.u32 %v16287_v23, %v12626_v22 }
 0x3c9   :  { %v16233_v36 = vld [vmem:[#allocation9 + $0xc44] sm:$0xf0]  ;;  %v1033_v40 = vld.sshfl [vmem:[#allocation1 + $0x20] sm:$0xff pattern:$0x73625140]  ;;  %v11387_v43 = vor.u32 %v15976_v0, %v11386_v25  ;;  %v11643_v3 = vor.u32 %v16041_v30, %v11642_v27 }
 0x3ca   :  { %8376 = vmatpush.bf16.msrb.mxu3 %v11763_v37  ;;  %v12602_v37 = vld [vmem:[#allocation9 + $0xdb0] sm:$0xf]  ;;  %v13106_v13 = vld [vmem:[#allocation9 + $0x11a0] sm:$0xf]  ;;  %v16407_v15 = vld [vmem:[#allocation9 + $0x11b4] sm:$0xf0]  ;;  %v17761_v27 = vpack.c.bf16 %v1033_v40, %v1033_v40 }
 0x3cb   :  { %8428 = vmatpush.bf16.msra.mxu1 %v12531_v39  ;;  %v16281_v39 = vld [vmem:[#allocation9 + $0xdc4] sm:$0xf0]  ;;  %v17751_v41 = vld.sshfl [vmem:[#allocation1 + $0x38] sm:$0xff pattern:$0x73625140] }
 0x3cc   :  { %8441 = vmatpush.bf16.msra.mxu2 %v12723_v51  ;;  %v17731_v57 = vld.sshfl [vmem:[#allocation1] sm:$0xff pattern:$0x73625140]  ;;  %v17733_v59 = vld.sshfl [vmem:[#allocation1 + $0x8] sm:$0xff pattern:$0x73625140]  ;;  %v12603_v54 = vor.u32 %v16281_v39, %v12602_v37 }
 0x3cd   :  { %v17735_v63 = vld.sshfl [vmem:[#allocation1 + $0x10] sm:$0xff pattern:$0x73625140]  ;;  %v17737_v5 = vld.sshfl [vmem:[#allocation1 + $0x18] sm:$0xff pattern:$0x73625140]  ;;  %v17765_v30 = vpack.c.bf16 %v17731_v57, %v17731_v57 }
 0x3ce   :  { %8377 = vmatpush.bf16.msrb.mxu3 %v11739_v46  ;;  %1047 = vst [vmem:[#allocation1] ss:$4 sm:$0xff] %v1016_v45  ;;  %v15970_v51 = vld [vmem:[#allocation9 + $0x40c] sm:$0xf0]  ;;  %v16035_v45 = vld [vmem:[#allocation9 + $0x614] sm:$0xf0]  ;;  %v12411_v46 = vor.u32 %v16233_v36, %v12410_v35  ;;  %v17770_v36 = vpack.c.bf16 %v17733_v59, %v17733_v59 }
 0x3cf   :  { %8429 = vmatpush.bf16.msra.mxu1 %v12507_v48  ;;  %1038 = vst [vmem:[#allocation1 + $0x20] ss:$4 sm:$0xff] %v1015_v31  ;;  %v12386_v48 = vld [vmem:[#allocation9 + $0xc00] sm:$0xf]  ;;  %v11363_v6 = vor.u32 %v15970_v51, %v11362_v42  ;;  %v11619_v7 = vor.u32 %v16035_v45, %v11618_v44  ;;  %v16455_v53 = vld [vmem:[#allocation9 + $0x1334] sm:$0xf0]  ;;  %v13107_v31 = vor.u32 %v16407_v15, %v13106_v13 }
 0x3d0   :  { %8442 = vmatpush.bf16.msra.mxu2 %v12699_v47  ;;  %v16275_v47 = vld [vmem:[#allocation9 + $0xd94] sm:$0xf0]  ;;  %v12387_v49 = vor.u32 %v16227_v50, %v12386_v48  ;;  %v13298_v18 = vld [vmem:[#allocation9 + $0x1320] sm:$0xf]  ;;  %v16209_v35 = vld [vmem:[#allocation9 + $0xb84] sm:$0xf0] }
 0x3d1   :  { %v12579_v14 = vor.u32 %v16275_v47, %v12578_v52  ;;  %v13299_v37 = vor.u32 %v16455_v53, %v13298_v18  ;;  %v16401_v39 = vld [vmem:[#allocation9 + $0x1184] sm:$0xf0]  ;;  %v13274_v42 = vld [vmem:[#allocation9 + $0x12f0] sm:$0xf]  ;;  %v12290_v45 = vld [vmem:[#allocation9 + $0xb40] sm:$0xf] }
 0x3d2   :  { %8378 = vmatpush.bf16.msrb.mxu3 %v11715_v62  ;;  %v16413_v62 = vld [vmem:[#allocation9 + $0x11e4] sm:$0xf0]  ;;  %v16203_v59 = vld [vmem:[#allocation9 + $0xb54] sm:$0xf0]  ;;  %v13058_v48 = vld [vmem:[#allocation9 + $0x1140] sm:$0xf] }
 0x3d3   :  { %8430 = vmatpush.bf16.msra.mxu1 %v12483_v58  ;;  %v1017_v58 = vld [vmem:[#allocation3 + $0x28] sm:$0xff]  ;;  %v16449_v57 = vld [vmem:[#allocation9 + $0x1304] sm:$0xf0]  ;;  %v16395_v50 = vld [vmem:[#allocation9 + $0x1154] sm:$0xf0] }
 0x3d4   :  { %8443 = vmatpush.bf16.msra.mxu2 %v12675_v8  ;;  %v15964_v8 = vld [vmem:[#allocation9 + $0x3dc] sm:$0xf0]  ;;  %v11290_v51 = vld [vmem:[#allocation9 + $0x368] sm:$0xf]  ;;  %v16443_v56 = vld [vmem:[#allocation9 + $0x12d4] sm:$0xf0] }
 0x3d5   :  { %8344 = vmatmul.bf16.vlgmr.msra.gmra.mxu3 %v17739_v16  ;;  %v1052_v55 = vld.sshfl [vmem:[#allocation1 + $0x18] sm:$0xff pattern:$0x73625140]  ;;  %v11339_v23 = vor.u32 %v15964_v8, %v11338_v61  ;;  %v13250_v52 = vld [vmem:[#allocation9 + $0x12c0] sm:$0xf] }
 0x3d6   :  { %8379 = vmatpush.bf16.msrb.mxu3 %v11691_v12  ;;  %8396 = vmatmul.bf16.vlgmr.msrb.gmra.mxu1 %v17741_v19  ;;  %v17748_v32 = vpack.c.bf16 %v1052_v55, %v1052_v55  ;;  %v16215_v12 = vld [vmem:[#allocation9 + $0xbb4] sm:$0xf0]  ;;  %v17755_v22 = vld.sshfl [vmem:[#allocation1 + $0x28] sm:$0xff pattern:$0x73625140]  ;;  %v13251_v8 = vor.u32 %v16443_v56, %v13250_v52 }
 0x3d7   :  { %8409 = vmatmul.bf16.vlgmr.msrb.gmra.mxu2 %v17744_v24  ;;  %8431 = vmatpush.bf16.msra.mxu1 %v12459_v17  ;;  %v13131_v17 = vor.u32 %v16413_v62, %v13130_v1  ;;  %v17753_v21 = vld.sshfl [vmem:[#allocation1 + $0x20] sm:$0xff pattern:$0x73625140]  ;;  %v17757_v25 = vld.sshfl [vmem:[#allocation1 + $0x30] sm:$0xff pattern:$0x73625140]  ;;  %v12291_v62 = vor.u32 %v16203_v59, %v12290_v45 }
 0x3d8   :  { %8444 = vmatpush.bf16.msra.mxu2 %v12651_v20  ;;  %8903 = vmatmul.bf16.vlgmr.msrb.gmra.mxu0 %v17748_v32  ;;  %v13323_v20 = vor.u32 %v16461_v10, %v13322_v9  ;;  %v17759_v0 = vld.sshfl [vmem:[#allocation1 + $0x38] sm:$0xff pattern:$0x73625140]  ;;  %v11314_v55 = vld [vmem:[#allocation9 + $0x398] sm:$0xf] }
 0x3d9   :  { %8999 = vmatpush.bf16.msrb.mxu0 %v11411_v28  ;;  %1048 = vst [vmem:[#allocation1 + $0x20] ss:$4 sm:$0xff] %v1017_v58  ;;  %v15958_v28 = vld [vmem:[#allocation9 + $0x3ac] sm:$0xf0]  ;;  %v11266_v61 = vld [vmem:[#allocation9 + $0x338] sm:$0xf]  ;;  %v13059_v58 = vor.u32 %v16395_v50, %v13058_v48 }
 0x3da   :  { %8380 = vmatpush.bf16.msrb.mxu3 %v11667_v2  ;;  %v12339_v2 = vor.u32 %v16215_v12, %v12338_v11  ;;  %v11315_v40 = vor.u32 %v15958_v28, %v11314_v55  ;;  %v15946_v1 = vld [vmem:[#allocation9 + $0x34c] sm:$0xf0]  ;;  %v16389_v10 = vld [vmem:[#allocation9 + $0x1124] sm:$0xf0]  ;;  %v15940_v13 = vld [vmem:[#allocation9 + $0x31c] sm:$0xf0] }
 0x3db   :  { %8432 = vmatpush.bf16.msra.mxu1 %v12435_v33  ;;  %v12314_v33 = vld [vmem:[#allocation9 + $0xb70] sm:$0xf]  ;;  %v16437_v11 = vld [vmem:[#allocation9 + $0x12a4] sm:$0xf0]  ;;  %v12242_v53 = vld [vmem:[#allocation9 + $0xae0] sm:$0xf] }
 0x3dc   :  { %8445 = vmatpush.bf16.msra.mxu2 %v12627_v38  ;;  %v13082_v38 = vld [vmem:[#allocation9 + $0x1170] sm:$0xf]  ;;  %v11242_v12 = vld [vmem:[#allocation9 + $0x308] sm:$0xf]  ;;  %v13010_v55 = vld [vmem:[#allocation9 + $0x10e0] sm:$0xf] }
 0x3dd   :  { %9000 = vmatpush.bf16.msrb.mxu0 %v11387_v43  ;;  %v15952_v43 = vld [vmem:[#allocation9 + $0x37c] sm:$0xf0]  ;;  %v13083_v44 = vor.u32 %v16401_v39, %v13082_v38  ;;  %v13034_v9 = vld [vmem:[#allocation9 + $0x1110] sm:$0xf]  ;;  %v16383_v28 = vld [vmem:[#allocation9 + $0x10f4] sm:$0xf0] }
 0x3de   :  { %8381 = vmatpush.bf16.msrb.mxu3 %v11643_v3  ;;  %v12315_v3 = vor.u32 %v16209_v35, %v12314_v33  ;;  %v11291_v47 = vor.u32 %v15952_v43, %v11290_v51  ;;  %v13035_v15 = vor.u32 %v16389_v10, %v13034_v9  ;;  %v16174_v18 = vld [vmem:[#allocation9 + $0xa6c] sm:$0xf0]  ;;  %v16431_v33 = vld [vmem:[#allocation9 + $0x1274] sm:$0xf0]  ;;  %v12154_v38 = vld [vmem:[#allocation9 + $0xa28] sm:$0xf]  ;;  %v13011_v39 = vor.u32 %v16383_v28, %v13010_v55 }
 0x3df   :  { %8433 = vmatpush.bf16.msra.mxu1 %v12411_v46  ;;  %v13275_v46 = vor.u32 %v16449_v57, %v13274_v42  ;;  %v12218_v42 = vld [vmem:[#allocation9 + $0xab0] sm:$0xf]  ;;  %v16185_v57 = vld [vmem:[#allocation9 + $0xac4] sm:$0xf0]  ;;  %v12130_v48 = vld [vmem:[#allocation9 + $0x9f8] sm:$0xf] }
 0x3e0   :  { %8446 = vmatpush.bf16.msra.mxu2 %v12603_v54  ;;  %v1056_v54 = vld.sshfl [vmem:[#allocation1 + $0x38] sm:$0xff pattern:$0x73625140]  ;;  %v16425_v45 = vld [vmem:[#allocation9 + $0x1244] sm:$0xf0] }
 0x3e1   :  { %9001 = vmatpush.bf16.msrb.mxu0 %v11363_v6  ;;  %v17774_v60 = vpack.c.bf16 %v1056_v54, %v1056_v54  ;;  %v12266_v6 = vld [vmem:[#allocation9 + $0xb10] sm:$0xf]  ;;  %v12194_v52 = vld [vmem:[#allocation9 + $0xa80] sm:$0xf]  ;;  %v16557_v9 = vld [vmem:[#allocation9 + $0x1664] sm:$0xf0] }
 0x3e2   :  { %8382 = vmatpush.bf16.msrb.mxu3 %v11619_v7  ;;  %v16197_v7 = vld [vmem:[#allocation9 + $0xb24] sm:$0xf0]  ;;  %v12986_v43 = vld [vmem:[#allocation9 + $0x10b0] sm:$0xf]  ;;  %v12962_v56 = vld [vmem:[#allocation9 + $0x1080] sm:$0xf] }
 0x3e3   :  { %8434 = vmatpush.bf16.msra.mxu1 %v12387_v49  ;;  %v11267_v49 = vor.u32 %v15946_v1, %v11266_v61  ;;  %v16162_v50 = vld [vmem:[#allocation9 + $0xa0c] sm:$0xf0]  ;;  %v16371_v61 = vld [vmem:[#allocation9 + $0x1094] sm:$0xf0]  ;;  %v13682_v55 = vld [vmem:[#allocation9 + $0x1620] sm:$0xf] }
 0x3e4   :  { %8447 = vmatpush.bf16.msra.mxu2 %v12579_v14  ;;  %v12267_v14 = vor.u32 %v16197_v7, %v12266_v6  ;;  %v16365_v6 = vld [vmem:[#allocation9 + $0x1064] sm:$0xf0]  ;;  %v16419_v7 = vld [vmem:[#allocation9 + $0x1214] sm:$0xf0]  ;;  %v12131_v10 = vor.u32 %v16162_v50, %v12130_v48  ;;  %v16144_v48 = vld [vmem:[#allocation9 + $0x97c] sm:$0xf0] }
 0x3e5   :  { %8383 = vmatmul.bf16.vlgmr.msrb.gmra.mxu3 %v17761_v27  ;;  %9002 = vmatpush.bf16.msrb.mxu0 %v11339_v23  ;;  %v16551_v28 = vld [vmem:[#allocation9 + $0x1634] sm:$0xf0] }
 0x3e6   :  { %8414 = vmatpush.bf16.msra.mxu3 %v12363_v4  ;;  %8435 = vmatmul.bf16.vlgmr.msra.gmra.mxu1 %v17765_v30  ;;  %v13226_v4 = vld [vmem:[#allocation9 + $0x1290] sm:$0xf] }
 0x3e7   :  { %8466 = vmatpush.bf16.msrb.mxu1 %v13131_v17  ;;  %8448 = vmatmul.bf16.vlgmr.msra.gmra.mxu2 %v17770_v36  ;;  %v12178_v17 = vld [vmem:[#allocation9 + $0xa58] sm:$0xf]  ;;  %v13227_v23 = vor.u32 %v16437_v11, %v13226_v4  ;;  %v13898_v4 = vld [vmem:[#allocation9 + $0x17d0] sm:$0xf]  ;;  %v16605_v11 = vld [vmem:[#allocation9 + $0x17e4] sm:$0xf0] }
 0x3e8   :  { %8479 = vmatpush.bf16.msrb.mxu2 %v13323_v20  ;;  %8955 = vmatmul.bf16.vlgmr.msra.gmra.mxu0 %v17774_v60  ;;  %v16191_v20 = vld [vmem:[#allocation9 + $0xaf4] sm:$0xf0]  ;;  %v12179_v35 = vor.u32 %v16174_v18, %v12178_v17 }
 0x3e9   :  { %9003 = vmatpush.bf16.msrb.mxu0 %v11315_v40  ;;  %v16168_v40 = vld [vmem:[#allocation9 + $0xa3c] sm:$0xf0] }
 0x3ea   :  { %8415 = vmatpush.bf16.msra.mxu3 %v12339_v2  ;;  %v11243_v2 = vor.u32 %v15940_v13, %v11242_v12  ;;  %v12155_v59 = vor.u32 %v16168_v40, %v12154_v38  ;;  %v12963_v12 = vor.u32 %v16371_v61, %v12962_v56  ;;  %v12106_v13 = vld [vmem:[#allocation9 + $0x9c8] sm:$0xf]  ;;  %v16150_v38 = vld [vmem:[#allocation9 + $0x9ac] sm:$0xf0]  ;;  %v17784_v40 = vpack.c.bf16 %v17737_v5, %v17737_v5  ;;  %v13634_v56 = vld [vmem:[#allocation9 + $0x15c0] sm:$0xf] }
 0x3eb   :  { %8467 = vmatpush.bf16.msrb.mxu1 %v13107_v31  ;;  %v13202_v31 = vld [vmem:[#allocation9 + $0x1260] sm:$0xf]  ;;  %v16593_v5 = vld [vmem:[#allocation9 + $0x1784] sm:$0xf0]  ;;  %v16539_v61 = vld [vmem:[#allocation9 + $0x15d4] sm:$0xf0] }
 0x3ec   :  { %8480 = vmatpush.bf16.msrb.mxu2 %v13299_v37  ;;  %v12243_v37 = vor.u32 %v16191_v20, %v12242_v53  ;;  %v13203_v51 = vor.u32 %v16431_v33, %v13202_v31  ;;  %v12914_v53 = vld [vmem:[#allocation9 + $0x1020] sm:$0xf]  ;;  %v16359_v20 = vld [vmem:[#allocation9 + $0x1034] sm:$0xf0] }
 0x3ed   :  { %9004 = vmatpush.bf16.msrb.mxu0 %v11291_v47  ;;  %v16179_v47 = vld [vmem:[#allocation9 + $0xa94] sm:$0xf0]  ;;  %v13874_v31 = vld [vmem:[#allocation9 + $0x17a0] sm:$0xf] }
 0x3ee   :  { %8416 = vmatpush.bf16.msra.mxu3 %v12315_v3  ;;  %v16377_v3 = vld [vmem:[#allocation9 + $0x10c4] sm:$0xf0]  ;;  %v16599_v33 = vld [vmem:[#allocation9 + $0x17b4] sm:$0xf0] }
 0x3ef   :  { %8468 = vmatpush.bf16.msrb.mxu1 %v13083_v44  ;;  %v13178_v44 = vld [vmem:[#allocation9 + $0x1230] sm:$0xf]  ;;  %v12987_v54 = vor.u32 %v16377_v3, %v12986_v43  ;;  %v17789_v43 = vpack.c.bf16 %v17753_v21, %v17753_v21  ;;  %v16347_v21 = vld [vmem:[#allocation9 + $0xfd4] sm:$0xf0] }
 0x3f0   :  { %8481 = vmatpush.bf16.msrb.mxu2 %v13275_v46  ;;  %v12219_v46 = vor.u32 %v16185_v57, %v12218_v42  ;;  %v13179_v1 = vor.u32 %v16425_v45, %v13178_v44  ;;  %v13683_v42 = vor.u32 %v16551_v28, %v13682_v55  ;;  %v12890_v57 = vld [vmem:[#allocation9 + $0xff0] sm:$0xf]  ;;  %v16545_v44 = vld [vmem:[#allocation9 + $0x1604] sm:$0xf0]  ;;  %v12818_v28 = vld [vmem:[#allocation9 + $0xf60] sm:$0xf] }
 0x3f1   :  { %9005 = vmatpush.bf16.msrb.mxu0 %v11267_v49  ;;  %v12195_v49 = vor.u32 %v16179_v47, %v12194_v52  ;;  %v13658_v3 = vld [vmem:[#allocation9 + $0x15f0] sm:$0xf] }
 0x3f2   :  { %8417 = vmatpush.bf16.msra.mxu3 %v12291_v62  ;;  %v13154_v62 = vld [vmem:[#allocation9 + $0x1200] sm:$0xf]  ;;  %v13659_v52 = vor.u32 %v16545_v44, %v13658_v3  ;;  %v16366_v55 = vld [vmem:[#allocation9 + $0x106c] sm:$0xf0] }
 0x3f3   :  { %8469 = vmatpush.bf16.msrb.mxu1 %v13059_v58  ;;  %v12938_v58 = vld [vmem:[#allocation9 + $0x1050] sm:$0xf]  ;;  %v16360_v44 = vld [vmem:[#allocation9 + $0x103c] sm:$0xf0] }
 0x3f4   :  { %8482 = vmatpush.bf16.msrb.mxu2 %v13251_v8  ;;  %v13706_v8 = vld [vmem:[#allocation9 + $0x1650] sm:$0xf]  ;;  %v12939_v17 = vor.u32 %v16365_v6, %v12938_v58  ;;  %v16587_v58 = vld [vmem:[#allocation9 + $0x1754] sm:$0xf0] }
 0x3f5   :  { %9006 = vmatpush.bf16.msrb.mxu0 %v11243_v2  ;;  %v13707_v18 = vor.u32 %v16557_v9, %v13706_v8  ;;  %v12034_v6 = vld [vmem:[#allocation9 + $0x938] sm:$0xf]  ;;  %v13635_v9 = vor.u32 %v16539_v61, %v13634_v56  ;;  %v16354_v56 = vld [vmem:[#allocation9 + $0x100c] sm:$0xf0]  ;;  %v12770_v61 = vld [vmem:[#allocation9 + $0xf00] sm:$0xf] }
 0x3f6   :  { %8418 = vmatpush.bf16.msra.mxu3 %v12267_v14  ;;  %v16156_v14 = vld [vmem:[#allocation9 + $0x9dc] sm:$0xf0] }
 0x3f7   :  { %8470 = vmatpush.bf16.msrb.mxu1 %v13035_v15  ;;  %v13155_v15 = vor.u32 %v16419_v7, %v13154_v62  ;;  %v12107_v2 = vor.u32 %v16156_v14, %v12106_v13  ;;  %v13826_v62 = vld [vmem:[#allocation9 + $0x1740] sm:$0xf]  ;;  %v16138_v7 = vld [vmem:[#allocation9 + $0x94c] sm:$0xf0] }
 0x3f8   :  { %8483 = vmatpush.bf16.msrb.mxu2 %v13227_v23  ;;  %9007 = vmatmul.bf16.vlgmr.msrb.gmra.mxu0 %v17724_v29  ;;  %v13899_v23 = vor.u32 %v16605_v11, %v13898_v4  ;;  %v13827_v4 = vor.u32 %v16587_v58, %v13826_v62  ;;  %v13610_v11 = vld [vmem:[#allocation9 + $0x1590] sm:$0xf]  ;;  %v12035_v13 = vor.u32 %v16138_v7, %v12034_v6  ;;  %v16323_v62 = vld [vmem:[#allocation9 + $0xf14] sm:$0xf0]  ;;  %v13538_v58 = vld [vmem:[#allocation9 + $0x1500] sm:$0xf] }
 0x3f9   :  { %9051 = vmatpush.bf16.msra.mxu0 %v12179_v35  ;;  %v17780_v35 = vpack.c.bf16 %v17751_v41, %v17751_v41  ;;  %v13875_v41 = vor.u32 %v16599_v33, %v13874_v31  ;;  %v13802_v14 = vld [vmem:[#allocation9 + $0x1710] sm:$0xf]  ;;  %v13586_v33 = vld [vmem:[#allocation9 + $0x1560] sm:$0xf]  ;;  %v16515_v6 = vld [vmem:[#allocation9 + $0x1514] sm:$0xf0] }
 0x3fa   :  { %8419 = vmatpush.bf16.msra.mxu3 %v12243_v37  ;;  %v12082_v37 = vld [vmem:[#allocation9 + $0x998] sm:$0xf] }
 0x3fb   :  { %8471 = vmatpush.bf16.msrb.mxu1 %v13011_v39  ;;  %v12915_v39 = vor.u32 %v16359_v20, %v12914_v53  ;;  %v12083_v45 = vor.u32 %v16150_v38, %v12082_v37  ;;  %v12946_v20 = vld [vmem:[#allocation9 + $0x1058] sm:$0xf] }
 0x3fc   :  { %8484 = vmatpush.bf16.msrb.mxu2 %v13203_v51  ;;  %v16353_v51 = vld [vmem:[#allocation9 + $0x1004] sm:$0xf0]  ;;  %v16527_v37 = vld [vmem:[#allocation9 + $0x1574] sm:$0xf0] }
 0x3fd   :  { %9052 = vmatpush.bf16.msra.mxu0 %v12155_v59  ;;  %v13850_v59 = vld [vmem:[#allocation9 + $0x1770] sm:$0xf]  ;;  %v12891_v50 = vor.u32 %v16353_v51, %v12890_v57  ;;  %v12947_v57 = vor.u32 %v16366_v55, %v12946_v20  ;;  %v13587_v3 = vor.u32 %v16527_v37, %v13586_v33  ;;  %v16503_v55 = vld [vmem:[#allocation9 + $0x14b4] sm:$0xf0]  ;;  %v14258_v33 = vld [vmem:[#allocation9 + $0x1aa0] sm:$0xf] }
 0x3fe   :  { %8420 = vmatpush.bf16.msra.mxu3 %v12219_v46  ;;  %v12058_v46 = vld [vmem:[#allocation9 + $0x968] sm:$0xf]  ;;  %v13851_v47 = vor.u32 %v16593_v5, %v13850_v59  ;;  %v16695_v37 = vld [vmem:[#allocation9 + $0x1ab4] sm:$0xf0] }
 0x3ff   :  { %8472 = vmatpush.bf16.msrb.mxu1 %v12987_v54  ;;  %v12866_v54 = vld [vmem:[#allocation9 + $0xfc0] sm:$0xf]  ;;  %v16329_v59 = vld [vmem:[#allocation9 + $0xf44] sm:$0xf0] }
 0x400   :  { %8485 = vmatpush.bf16.msrb.mxu2 %v13179_v1  ;;  %v12059_v1 = vor.u32 %v16144_v48, %v12058_v46  ;;  %v12867_v8 = vor.u32 %v16347_v21, %v12866_v54  ;;  %v13562_v46 = vld [vmem:[#allocation9 + $0x1530] sm:$0xf]  ;;  %v16521_v48 = vld [vmem:[#allocation9 + $0x1544] sm:$0xf0] }
 0x401   :  { %9053 = vmatpush.bf16.msra.mxu0 %v12131_v10  ;;  %v12842_v10 = vld [vmem:[#allocation9 + $0xf90] sm:$0xf] }
 0x402   :  { %8421 = vmatpush.bf16.msra.mxu3 %v12195_v49  ;;  %v16341_v49 = vld [vmem:[#allocation9 + $0xfa4] sm:$0xf0] }
 0x403   :  { %8473 = vmatpush.bf16.msrb.mxu1 %v12963_v12  ;;  %v16533_v12 = vld [vmem:[#allocation9 + $0x15a4] sm:$0xf0]  ;;  %v12843_v53 = vor.u32 %v16341_v49, %v12842_v10  ;;  %v16563_v49 = vld [vmem:[#allocation9 + $0x1694] sm:$0xf0] }
 0x404   :  { %8486 = vmatpush.bf16.msrb.mxu2 %v13155_v15  ;;  %v12010_v15 = vld [vmem:[#allocation9 + $0x908] sm:$0xf] }
 0x405   :  { %8422 = vmatmul.bf16.vlgmr.msra.gmra.mxu3 %v17780_v35  ;;  %9054 = vmatpush.bf16.msra.mxu0 %v12107_v2  ;;  %v16335_v2 = vld [vmem:[#allocation9 + $0xf74] sm:$0xf0]  ;;  %v16509_v10 = vld [vmem:[#allocation9 + $0x14e4] sm:$0xf0] }
 0x406   :  { %8453 = vmatpush.bf16.msrb.mxu3 %v12939_v17  ;;  %8474 = vmatmul.bf16.vlgmr.msrb.gmra.mxu1 %v17784_v40  ;;  %v16581_v17 = vld [vmem:[#allocation9 + $0x1724] sm:$0xf0]  ;;  %v12819_v51 = vor.u32 %v16335_v2, %v12818_v28  ;;  %v1018_v28 = vld [vmem:[#allocation3 + $0x30] sm:$0x3] }
 0x407   :  { %8505 = vmatpush.bf16.msra.mxu1 %v13707_v18  ;;  %8487 = vmatmul.bf16.vlgmr.msrb.gmra.mxu2 %v17789_v43  ;;  %v16132_v18 = vld [vmem:[#allocation9 + $0x91c] sm:$0xf0]  ;;  %v13803_v31 = vor.u32 %v16581_v17, %v13802_v14  ;;  %v12874_v14 = vld [vmem:[#allocation9 + $0xfc8] sm:$0xf]  ;;  %v14474_v17 = vld [vmem:[#allocation9 + $0x1c50] sm:$0xf] }
 0x408   :  { %8518 = vmatpush.bf16.msra.mxu2 %v13899_v23  ;;  %v13611_v23 = vor.u32 %v16533_v12, %v13610_v11  ;;  %v12011_v38 = vor.u32 %v16132_v18, %v12010_v15  ;;  %v16701_v11 = vld [vmem:[#allocation9 + $0x1ae4] sm:$0xf0]  ;;  %v13539_v18 = vor.u32 %v16515_v6, %v13538_v58 }
 0x409   :  { %9055 = vmatpush.bf16.msra.mxu0 %v12083_v45  ;;  %v12794_v45 = vld [vmem:[#allocation9 + $0xf30] sm:$0xf]  ;;  %v16749_v15 = vld [vmem:[#allocation9 + $0x1c64] sm:$0xf0] }
 0x40a   :  { %8454 = vmatpush.bf16.msrb.mxu3 %v12915_v39  ;;  %v13778_v39 = vld [vmem:[#allocation9 + $0x16e0] sm:$0xf]  ;;  %v12795_v21 = vor.u32 %v16329_v59, %v12794_v45  ;;  %v12850_v45 = vld [vmem:[#allocation9 + $0xf98] sm:$0xf]  ;;  %v16342_v59 = vld [vmem:[#allocation9 + $0xfac] sm:$0xf0] }
 0x40b   :  { %8506 = vmatpush.bf16.msra.mxu1 %v13683_v42  ;;  %v16575_v42 = vld [vmem:[#allocation9 + $0x16f4] sm:$0xf0] }
 0x40c   :  { %8519 = vmatpush.bf16.msra.mxu2 %v13875_v41  ;;  %v12922_v41 = vld [vmem:[#allocation9 + $0x1028] sm:$0xf]  ;;  %v13779_v5 = vor.u32 %v16575_v42, %v13778_v39  ;;  %v14475_v39 = vor.u32 %v16749_v15, %v14474_v17  ;;  %v16743_v42 = vld [vmem:[#allocation9 + $0x1c34] sm:$0xf0]  ;;  %v13418_v15 = vld [vmem:[#allocation9 + $0x1410] sm:$0xf] }
 0x40d   :  { %9056 = vmatpush.bf16.msra.mxu0 %v12059_v1  ;;  %v12923_v54 = vor.u32 %v16360_v44, %v12922_v41  ;;  %v13563_v1 = vor.u32 %v16521_v48, %v13562_v46  ;;  %v17796_v41 = vld.sshfl [vmem:[#allocation1 + $0x10] sm:$0xff pattern:$0x73625140]  ;;  %v17802_v44 = vpack.c.bf16 %v17735_v63, %v17735_v63  ;;  %v17806_v46 = vpack.c.bf16 %v17757_v25, %v17757_v25  ;;  %v14426_v25 = vld [vmem:[#allocation9 + $0x1bf0] sm:$0xf] }
 0x40e   :  { %8455 = vmatpush.bf16.msrb.mxu3 %v12891_v50  ;;  %v13754_v50 = vld [vmem:[#allocation9 + $0x16b0] sm:$0xf]  ;;  %v14259_v48 = vor.u32 %v16695_v37, %v14258_v33  ;;  %v16324_v33 = vld [vmem:[#allocation9 + $0xf1c] sm:$0xf0] }
 0x40f   :  { %8507 = vmatpush.bf16.msra.mxu1 %v13659_v52  ;;  %v16569_v52 = vld [vmem:[#allocation9 + $0x16c4] sm:$0xf0] }
 0x410   :  { %8520 = vmatpush.bf16.msra.mxu2 %v13851_v47  ;;  %v12898_v47 = vld [vmem:[#allocation9 + $0xff8] sm:$0xf]  ;;  %v13755_v7 = vor.u32 %v16569_v52, %v13754_v50  ;;  %v13466_v50 = vld [vmem:[#allocation9 + $0x1470] sm:$0xf]  ;;  %v16497_v52 = vld [vmem:[#allocation9 + $0x1484] sm:$0xf0] }
 0x411   :  { %9057 = vmatpush.bf16.msra.mxu0 %v12035_v13  ;;  %v12899_v12 = vor.u32 %v16354_v56, %v12898_v47  ;;  %v12771_v13 = vor.u32 %v16323_v62, %v12770_v61  ;;  %v16689_v47 = vld [vmem:[#allocation9 + $0x1a84] sm:$0xf0]  ;;  %v12851_v56 = vor.u32 %v16342_v59, %v12850_v45  ;;  %v16336_v62 = vld [vmem:[#allocation9 + $0xf7c] sm:$0xf0]  ;;  %v13467_v58 = vor.u32 %v16497_v52, %v13466_v50  ;;  %v16479_v45 = vld [vmem:[#allocation9 + $0x13f4] sm:$0xf0] }
 0x412   :  { %8456 = vmatpush.bf16.msrb.mxu3 %v12867_v8  ;;  %v13730_v8 = vld [vmem:[#allocation9 + $0x1680] sm:$0xf]  ;;  %v16737_v61 = vld [vmem:[#allocation9 + $0x1c04] sm:$0xf0] }
 0x413   :  { %8508 = vmatpush.bf16.msra.mxu1 %v13635_v9  ;;  %v13514_v9 = vld [vmem:[#allocation9 + $0x14d0] sm:$0xf]  ;;  %v13731_v2 = vor.u32 %v16563_v49, %v13730_v8  ;;  %v14427_v8 = vor.u32 %v16737_v61, %v14426_v25  ;;  %v14354_v52 = vld [vmem:[#allocation9 + $0x1b60] sm:$0xf] }
 0x414   :  { %8521 = vmatpush.bf16.msra.mxu2 %v13827_v4  ;;  %v14282_v4 = vld [vmem:[#allocation9 + $0x1ad0] sm:$0xf]  ;;  %v13515_v20 = vor.u32 %v16509_v10, %v13514_v9  ;;  %v14210_v9 = vld [vmem:[#allocation9 + $0x1a40] sm:$0xf]  ;;  %v16683_v10 = vld [vmem:[#allocation9 + $0x1a54] sm:$0xf0] }
 0x415   :  { %9058 = vmatpush.bf16.msra.mxu0 %v12011_v38  ;;  %v14450_v38 = vld [vmem:[#allocation9 + $0x1c20] sm:$0xf]  ;;  %v14211_v17 = vor.u32 %v16683_v10, %v14210_v9 }
 0x416   :  { %8457 = vmatpush.bf16.msrb.mxu3 %v12843_v53  ;;  %v16348_v53 = vld [vmem:[#allocation9 + $0xfdc] sm:$0xf0]  ;;  %v14451_v63 = vor.u32 %v16743_v42, %v14450_v38  ;;  %v13714_v38 = vld [vmem:[#allocation9 + $0x1658] sm:$0xf]  ;;  %v16558_v42 = vld [vmem:[#allocation9 + $0x166c] sm:$0xf0] }
 0x417   :  { %8509 = vmatpush.bf16.msra.mxu1 %v13611_v23  ;;  %v13490_v23 = vld [vmem:[#allocation9 + $0x14a0] sm:$0xf] }
 0x418   :  { %8522 = vmatpush.bf16.msra.mxu2 %v13803_v31  ;;  %9059 = vmatmul.bf16.vlgmr.msra.gmra.mxu0 %v17744_v24  ;;  %v14283_v31 = vor.u32 %v16701_v11, %v14282_v4  ;;  %v14402_v4 = vld [vmem:[#allocation9 + $0x1bc0] sm:$0xf]  ;;  %v16731_v11 = vld [vmem:[#allocation9 + $0x1bd4] sm:$0xf0] }
 0x419   :  { %9103 = vmatpush.bf16.msrb.mxu0 %v12947_v57  ;;  %v17794_v57 = vld.sshfl [vmem:[#allocation1 + $0x8] sm:$0xff pattern:$0x73625140] }
 0x41a   :  { %8458 = vmatpush.bf16.msrb.mxu3 %v12819_v51  ;;  %v12875_v51 = vor.u32 %v16348_v53, %v12874_v14  ;;  %v14403_v53 = vor.u32 %v16731_v11, %v14402_v4  ;;  %v16552_v61 = vld [vmem:[#allocation9 + $0x163c] sm:$0xf0]  ;;  %v16546_v4 = vld [vmem:[#allocation9 + $0x160c] sm:$0xf0] }
 0x41b   :  { %8510 = vmatpush.bf16.msra.mxu1 %v13587_v3  ;;  %v17798_v3 = vld.sshfl [vmem:[#allocation1] sm:$0xff pattern:$0x73625140]  ;;  %v13346_v11 = vld [vmem:[#allocation9 + $0x1380] sm:$0xf] }
 0x41c   :  { %8523 = vmatpush.bf16.msra.mxu2 %v13779_v5  ;;  %v13491_v5 = vor.u32 %v16503_v55, %v13490_v23  ;;  %1057 = vst [vmem:[#allocation1] ss:$4 sm:$0xff] %v1018_v28  ;;  %v16677_v23 = vld [vmem:[#allocation9 + $0x1a24] sm:$0xf0]  ;;  %v14378_v28 = vld [vmem:[#allocation9 + $0x1b90] sm:$0xf] }
 0x41d   :  { %9104 = vmatpush.bf16.msrb.mxu0 %v12923_v54  ;;  %v17811_v54 = vpack.c.bf16 %v17759_v0, %v17759_v0  ;;  %v13442_v0 = vld [vmem:[#allocation9 + $0x1440] sm:$0xf] }
 0x41e   :  { %8459 = vmatpush.bf16.msrb.mxu3 %v12795_v21  ;;  %v14234_v21 = vld [vmem:[#allocation9 + $0x1a70] sm:$0xf] }
 0x41f   :  { %8511 = vmatpush.bf16.msra.mxu1 %v13563_v1  ;;  %v12826_v1 = vld [vmem:[#allocation9 + $0xf68] sm:$0xf]  ;;  %v14235_v6 = vor.u32 %v16689_v47, %v14234_v21  ;;  %v13715_v21 = vor.u32 %v16558_v42, %v13714_v38  ;;  %v16540_v42 = vld [vmem:[#allocation9 + $0x15dc] sm:$0xf0] }
 0x420   :  { %8524 = vmatpush.bf16.msra.mxu2 %v13755_v7  ;;  %v16491_v7 = vld [vmem:[#allocation9 + $0x1454] sm:$0xf0]  ;;  %v12827_v49 = vor.u32 %v16336_v62, %v12826_v1  ;;  %v13370_v1 = vld [vmem:[#allocation9 + $0x13b0] sm:$0xf]  ;;  %v16473_v62 = vld [vmem:[#allocation9 + $0x13c4] sm:$0xf0] }
 0x421   :  { %9105 = vmatpush.bf16.msrb.mxu0 %v12899_v12  ;;  %v12802_v12 = vld [vmem:[#allocation9 + $0xf38] sm:$0xf]  ;;  %v13443_v14 = vor.u32 %v16491_v7, %v13442_v0  ;;  %v16665_v0 = vld [vmem:[#allocation9 + $0x19c4] sm:$0xf0]  ;;  %v14330_v7 = vld [vmem:[#allocation9 + $0x1b30] sm:$0xf]  ;;  %v13371_v10 = vor.u32 %v16473_v62, %v13370_v1 }
 0x422   :  { %8460 = vmatpush.bf16.msrb.mxu3 %v12771_v13  ;;  %v16330_v13 = vld [vmem:[#allocation9 + $0xf4c] sm:$0xf0] }
 0x423   :  { %8512 = vmatpush.bf16.msra.mxu1 %v13539_v18  ;;  %v16485_v18 = vld [vmem:[#allocation9 + $0x1424] sm:$0xf0]  ;;  %v12803_v55 = vor.u32 %v16330_v13, %v12802_v12  ;;  %v16467_v13 = vld [vmem:[#allocation9 + $0x1394] sm:$0xf0]  ;;  %v16534_v1 = vld [vmem:[#allocation9 + $0x15ac] sm:$0xf0] }
 0x424   :  { %8525 = vmatpush.bf16.msra.mxu2 %v13731_v2  ;;  %v16725_v2 = vld [vmem:[#allocation9 + $0x1ba4] sm:$0xf0]  ;;  %v13419_v37 = vor.u32 %v16485_v18, %v13418_v15  ;;  %v14306_v18 = vld [vmem:[#allocation9 + $0x1b00] sm:$0xf] }
 0x425   :  { %8461 = vmatmul.bf16.vlgmr.msrb.gmra.mxu3 %v17802_v44  ;;  %9106 = vmatpush.bf16.msrb.mxu0 %v12875_v51  ;;  %v13394_v51 = vld [vmem:[#allocation9 + $0x13e0] sm:$0xf]  ;;  %v14379_v59 = vor.u32 %v16725_v2, %v14378_v28  ;;  %v16845_v28 = vld [vmem:[#allocation9 + $0x1f64] sm:$0xf0] }
 0x426   :  { %8492 = vmatpush.bf16.msra.mxu3 %v13515_v20  ;;  %8513 = vmatmul.bf16.vlgmr.msra.gmra.mxu1 %v17806_v46  ;;  %v14186_v20 = vld [vmem:[#allocation9 + $0x1a10] sm:$0xf]  ;;  %v13395_v47 = vor.u32 %v16479_v45, %v13394_v51 }
 0x427   :  { %8544 = vmatpush.bf16.msrb.mxu1 %v14283_v31  ;;  %8526 = vmatmul.bf16.vlgmr.msra.gmra.mxu2 %v17811_v54  ;;  %v12778_v31 = vld [vmem:[#allocation9 + $0xf08] sm:$0xf] }
 0x428   :  { %8557 = vmatpush.bf16.msrb.mxu2 %v14475_v39  ;;  %v14187_v39 = vor.u32 %v16677_v23, %v14186_v20  ;;  %v12779_v50 = vor.u32 %v16324_v33, %v12778_v31  ;;  %v16653_v20 = vld [vmem:[#allocation9 + $0x1964] sm:$0xf0]  ;;  %v16707_v23 = vld [vmem:[#allocation9 + $0x1b14] sm:$0xf0]  ;;  %v13347_v31 = vor.u32 %v16467_v13, %v13346_v11  ;;  %v15050_v33 = vld [vmem:[#allocation9 + $0x20d0] sm:$0xf] }
 0x429   :  { %9107 = vmatpush.bf16.msrb.mxu0 %v12851_v56  ;;  %v13690_v56 = vld [vmem:[#allocation9 + $0x1628] sm:$0xf]  ;;  %v14307_v45 = vor.u32 %v16707_v23, %v14306_v18  ;;  %v14786_v18 = vld [vmem:[#allocation9 + $0x1ec0] sm:$0xf] }
 0x42a   :  { %8493 = vmatpush.bf16.msra.mxu3 %v13491_v5  ;;  %v14162_v5 = vld [vmem:[#allocation9 + $0x19e0] sm:$0xf]  ;;  %v13691_v9 = vor.u32 %v16552_v61, %v13690_v56  ;;  %v16887_v56 = vld [vmem:[#allocation9 + $0x20b4] sm:$0xf0]  ;;  %v13594_v11 = vld [vmem:[#allocation9 + $0x1568] sm:$0xf] }
 0x42b   :  { %8545 = vmatpush.bf16.msrb.mxu1 %v14259_v48  ;;  %v16671_v48 = vld [vmem:[#allocation9 + $0x19f4] sm:$0xf0]  ;;  %v14978_v23 = vld [vmem:[#allocation9 + $0x2040] sm:$0xf] }
 0x42c   :  { %8558 = vmatpush.bf16.msrb.mxu2 %v14451_v63  ;;  %v16719_v63 = vld [vmem:[#allocation9 + $0x1b74] sm:$0xf0]  ;;  %v14163_v25 = vor.u32 %v16671_v48, %v14162_v5  ;;  %v14066_v5 = vld [vmem:[#allocation9 + $0x1920] sm:$0xf] }
 0x42d   :  { %9108 = vmatpush.bf16.msrb.mxu0 %v12827_v49  ;;  %v13666_v49 = vld [vmem:[#allocation9 + $0x15f8] sm:$0xf] }
 0x42e   :  { %8494 = vmatpush.bf16.msra.mxu3 %v13467_v58  ;;  %v14355_v58 = vor.u32 %v16719_v63, %v14354_v52  ;;  %v13667_v2 = vor.u32 %v16546_v4, %v13666_v49  ;;  %v16647_v48 = vld [vmem:[#allocation9 + $0x1934] sm:$0xf0]  ;;  %v14834_v52 = vld [vmem:[#allocation9 + $0x1f20] sm:$0xf]  ;;  %v15002_v4 = vld [vmem:[#allocation9 + $0x2070] sm:$0xf] }
 0x42f   :  { %8546 = vmatpush.bf16.msrb.mxu1 %v14235_v6  ;;  %v14138_v6 = vld [vmem:[#allocation9 + $0x19b0] sm:$0xf]  ;;  %v16839_v63 = vld [vmem:[#allocation9 + $0x1f34] sm:$0xf0]  ;;  %v14067_v62 = vor.u32 %v16647_v48, %v14066_v5  ;;  %v16869_v48 = vld [vmem:[#allocation9 + $0x2024] sm:$0xf0] }
 0x430   :  { %8559 = vmatpush.bf16.msrb.mxu2 %v14427_v8  ;;  %v16713_v8 = vld [vmem:[#allocation9 + $0x1b44] sm:$0xf0]  ;;  %v14139_v12 = vor.u32 %v16665_v0, %v14138_v6  ;;  %v13618_v61 = vld [vmem:[#allocation9 + $0x1598] sm:$0xf]  ;;  %v14835_v6 = vor.u32 %v16839_v63, %v14834_v52  ;;  %v14042_v0 = vld [vmem:[#allocation9 + $0x18f0] sm:$0xf] }
 0x431   :  { %9109 = vmatpush.bf16.msrb.mxu0 %v12803_v55  ;;  %v14331_v15 = vor.u32 %v16713_v8, %v14330_v7  ;;  %v14858_v55 = vld [vmem:[#allocation9 + $0x1f50] sm:$0xf]  ;;  %v16641_v7 = vld [vmem:[#allocation9 + $0x1904] sm:$0xf0]  ;;  %v17827_v8 = vpack.c.bf16 %v17796_v41, %v17796_v41  ;;  %v13619_v49 = vor.u32 %v16534_v1, %v13618_v61  ;;  %v16635_v41 = vld [vmem:[#allocation9 + $0x18d4] sm:$0xf0] }
 0x432   :  { %8495 = vmatpush.bf16.msra.mxu3 %v13443_v14  ;;  %v14114_v14 = vld [vmem:[#allocation9 + $0x1980] sm:$0xf]  ;;  %v14043_v13 = vor.u32 %v16641_v7, %v14042_v0  ;;  %v14954_v5 = vld [vmem:[#allocation9 + $0x2010] sm:$0xf]  ;;  %v16623_v1 = vld [vmem:[#allocation9 + $0x1874] sm:$0xf0] }
 0x433   :  { %8547 = vmatpush.bf16.msrb.mxu1 %v14211_v17  ;;  %v16659_v17 = vld [vmem:[#allocation9 + $0x1994] sm:$0xf0]  ;;  %v16516_v52 = vld [vmem:[#allocation9 + $0x151c] sm:$0xf0] }
 0x434   :  { %8560 = vmatpush.bf16.msrb.mxu2 %v14403_v53  ;;  %v14090_v53 = vld [vmem:[#allocation9 + $0x1950] sm:$0xf]  ;;  %v14115_v38 = vor.u32 %v16659_v17, %v14114_v14  ;;  %v14018_v17 = vld [vmem:[#allocation9 + $0x18c0] sm:$0xf]  ;;  %v16815_v7 = vld [vmem:[#allocation9 + $0x1e74] sm:$0xf0] }
 0x435   :  { %9110 = vmatpush.bf16.msrb.mxu0 %v12779_v50  ;;  %v14091_v51 = vor.u32 %v16653_v20, %v14090_v53  ;;  %v16827_v53 = vld [vmem:[#allocation9 + $0x1ed4] sm:$0xf0]  ;;  %v13970_v61 = vld [vmem:[#allocation9 + $0x1860] sm:$0xf] }
 0x436   :  { %8496 = vmatpush.bf16.msra.mxu3 %v13419_v37  ;;  %v16893_v37 = vld [vmem:[#allocation9 + $0x20e4] sm:$0xf0]  ;;  %v14738_v0 = vld [vmem:[#allocation9 + $0x1e60] sm:$0xf] }
 0x437   :  { %8548 = vmatpush.bf16.msrb.mxu1 %v14187_v39  ;;  %v13642_v39 = vld [vmem:[#allocation9 + $0x15c8] sm:$0xf]  ;;  %v15051_v50 = vor.u32 %v16893_v37, %v15050_v33  ;;  %v14787_v37 = vor.u32 %v16827_v53, %v14786_v18  ;;  %v14714_v18 = vld [vmem:[#allocation9 + $0x1e30] sm:$0xf] }
 0x438   :  { %8561 = vmatpush.bf16.msrb.mxu2 %v14379_v59  ;;  %9111 = vmatmul.bf16.vlgmr.msrb.gmra.mxu0 %v17802_v44  ;;  %v14859_v59 = vor.u32 %v16845_v28, %v14858_v55  ;;  %v16875_v55 = vld [vmem:[#allocation9 + $0x2054] sm:$0xf0]  ;;  %v16809_v53 = vld [vmem:[#allocation9 + $0x1e44] sm:$0xf0] }
 0x439   :  { %9155 = vmatpush.bf16.msra.mxu0 %v13715_v21  ;;  %v13643_v21 = vor.u32 %v16540_v42, %v13642_v39  ;;  %v13570_v28 = vld [vmem:[#allocation9 + $0x1538] sm:$0xf]  ;;  %v16629_v39 = vld [vmem:[#allocation9 + $0x18a4] sm:$0xf0]  ;;  %v14979_v42 = vor.u32 %v16875_v55, %v14978_v23  ;;  %v2309_v55 = vld [vmem:[#allocation10] sm:$0x3f] }
 0x43a   :  { %8497 = vmatpush.bf16.msra.mxu3 %v13395_v47  ;;  %v15026_v47 = vld [vmem:[#allocation9 + $0x20a0] sm:$0xf]  ;;  %v16857_v23 = vld [vmem:[#allocation9 + $0x1fc4] sm:$0xf0] }
 0x43b   :  { %8549 = vmatpush.bf16.msrb.mxu1 %v14163_v25  ;;  %v17818_v25 = vpack.c.bf16 %v17755_v22, %v17755_v22  ;;  %v15027_v22 = vor.u32 %v16887_v56, %v15026_v47  ;;  %v16750_v56 = vld [vmem:[#allocation9 + $0x1c6c] sm:$0xf0] }
 0x43c   :  { %8562 = vmatpush.bf16.msrb.mxu2 %v14355_v58  ;;  %v17822_v58 = vpack.c.bf16 %v17794_v57, %v17794_v57  ;;  %v16881_v57 = vld [vmem:[#allocation9 + $0x2084] sm:$0xf0] }
 0x43d   :  { %9156 = vmatpush.bf16.msra.mxu0 %v13691_v9  ;;  %v14810_v9 = vld [vmem:[#allocation9 + $0x1ef0] sm:$0xf] }
 0x43e   :  { %8498 = vmatpush.bf16.msra.mxu3 %v13371_v10  ;;  %v16833_v10 = vld [vmem:[#allocation9 + $0x1f04] sm:$0xf0] }
 0x43f   :  { %8550 = vmatpush.bf16.msrb.mxu1 %v14139_v12  ;;  %v16528_v12 = vld [vmem:[#allocation9 + $0x157c] sm:$0xf0]  ;;  %v14811_v14 = vor.u32 %v16833_v10, %v14810_v9  ;;  %v16863_v10 = vld [vmem:[#allocation9 + $0x1ff4] sm:$0xf0] }
 0x440   :  { %8563 = vmatpush.bf16.msrb.mxu2 %v14331_v15  ;;  %v15003_v15 = vor.u32 %v16881_v57, %v15002_v4  ;;  %v13595_v20 = vor.u32 %v16528_v12, %v13594_v11  ;;  %v14930_v9 = vld [vmem:[#allocation9 + $0x1fe0] sm:$0xf]  ;;  %v13971_v57 = vor.u32 %v16623_v1, %v13970_v61  ;;  %v14458_v11 = vld [vmem:[#allocation9 + $0x1c28] sm:$0xf] }
 0x441   :  { %9157 = vmatpush.bf16.msra.mxu0 %v13667_v2  ;;  %v16522_v2 = vld [vmem:[#allocation9 + $0x154c] sm:$0xf0] }
 0x442   :  { %8499 = vmatpush.bf16.msra.mxu3 %v13347_v31  ;;  %v14019_v31 = vor.u32 %v16635_v41, %v14018_v17  ;;  %v13946_v17 = vld [vmem:[#allocation9 + $0x1830] sm:$0xf]  ;;  %v16617_v41 = vld [vmem:[#allocation9 + $0x1844] sm:$0xf0] }
 0x443   :  { %8551 = vmatpush.bf16.msrb.mxu1 %v14115_v38  ;;  %v17831_v33 = vpop.f32.mrf.mxu1  ;;  %v13994_v38 = vld [vmem:[#allocation9 + $0x1890] sm:$0xf] }
 0x444   :  { %8564 = vmatpush.bf16.msrb.mxu2 %v14307_v45  ;;  %v16821_v45 = vld [vmem:[#allocation9 + $0x1ea4] sm:$0xf0]  ;;  %v13995_v63 = vor.u32 %v16629_v39, %v13994_v38  ;;  %v13922_v38 = vld [vmem:[#allocation9 + $0x1800] sm:$0xf]  ;;  %v14715_v39 = vor.u32 %v16809_v53, %v14714_v18  ;;  %v16983_v53 = vld [vmem:[#allocation9 + $0x23b4] sm:$0xf0] }
 0x445   :  { %8500 = vmatmul.bf16.vlgmr.msra.gmra.mxu3 %v17818_v25  ;;  %9158 = vmatpush.bf16.msra.mxu0 %v13643_v21  ;;  %v14482_v21 = vld [vmem:[#allocation9 + $0x1c58] sm:$0xf]  ;;  %v15410_v18 = vld [vmem:[#allocation9 + $0x23a0] sm:$0xf] }
 0x446   :  { %8531 = vmatpush.bf16.msrb.mxu3 %v14091_v51  ;;  %8552 = vmatmul.bf16.vlgmr.msrb.gmra.mxu1 %v17822_v58  ;;  %v14762_v51 = vld [vmem:[#allocation9 + $0x1e90] sm:$0xf]  ;;  %v14483_v4 = vor.u32 %v16750_v56, %v14482_v21 }
 0x447   :  { %8583 = vmatpush.bf16.msra.mxu1 %v14859_v59  ;;  %8565 = vmatmul.bf16.vlgmr.msrb.gmra.mxu2 %v17827_v8  ;;  %v13571_v59 = vor.u32 %v16522_v2, %v13570_v28  ;;  %v14763_v47 = vor.u32 %v16821_v45, %v14762_v51  ;;  %v13947_v2 = vor.u32 %v16617_v41, %v13946_v17  ;;  %v14690_v51 = vld [vmem:[#allocation9 + $0x1e00] sm:$0xf]  ;;  %v16803_v45 = vld [vmem:[#allocation9 + $0x1e14] sm:$0xf0]  ;;  %v15434_v21 = vld [vmem:[#allocation9 + $0x23d0] sm:$0xf] }
 0x448   :  { %8596 = vmatpush.bf16.msra.mxu2 %v15051_v50  ;;  %v13546_v50 = vld [vmem:[#allocation9 + $0x1508] sm:$0xf]  ;;  %v14642_v17 = vld [vmem:[#allocation9 + $0x1da0] sm:$0xf]  ;;  %v16791_v41 = vld [vmem:[#allocation9 + $0x1db4] sm:$0xf0] }
 0x449   :  { %9159 = vmatpush.bf16.msra.mxu0 %v13619_v49 }
 0x44a   :  { %8532 = vmatpush.bf16.msrb.mxu3 %v14067_v62  ;;  %v17833_v62 = vpop.f32.mrf.mxu3  ;;  %v17835_v49 = vpop.f32.mrf.mxu2 }
 0x44b   :  { %8584 = vmatpush.bf16.msra.mxu1 %v14835_v6  ;;  %v14955_v6 = vor.u32 %v16869_v48, %v14954_v5  ;;  %v8360_v12 = vpop.f32.mrf.mxu1  ;;  %v14882_v48 = vld [vmem:[#allocation9 + $0x1f80] sm:$0xf] }
 0x44c   :  { %8597 = vmatpush.bf16.msra.mxu2 %v15027_v22  ;;  %v13547_v22 = vor.u32 %v16516_v52, %v13546_v50  ;;  %v14666_v50 = vld [vmem:[#allocation9 + $0x1dd0] sm:$0xf]  ;;  %v16797_v52 = vld [vmem:[#allocation9 + $0x1de4] sm:$0xf0] }
 0x44d   :  { %9160 = vmatpush.bf16.msra.mxu0 %v13595_v20  ;;  %v14906_v20 = vld [vmem:[#allocation9 + $0x1fb0] sm:$0xf] }
 0x44e   :  { %8533 = vmatpush.bf16.msrb.mxu3 %v14043_v13  ;;  %v14739_v13 = vor.u32 %v16815_v7, %v14738_v0  ;;  %v14907_v5 = vor.u32 %v16857_v23, %v14906_v20  ;;  %v17037_v0 = vld [vmem:[#allocation9 + $0x2564] sm:$0xf0]  ;;  %v2311_v7 = vperm.slane %v2309_v55, 0  ;;  %v15602_v55 = vld [vmem:[#allocation9 + $0x2520] sm:$0xf] }
 0x44f   :  { %8585 = vmatpush.bf16.msra.mxu1 %v14811_v14  ;;  %v16744_v14 = vld [vmem:[#allocation9 + $0x1c3c] sm:$0xf0] }
 0x450   :  { %8598 = vmatpush.bf16.msra.mxu2 %v15003_v15  ;;  %v14931_v15 = vor.u32 %v16863_v10, %v14930_v9  ;;  %v14459_v28 = vor.u32 %v16744_v14, %v14458_v11  ;;  %v14691_v9 = vor.u32 %v16803_v45, %v14690_v51  ;;  %v14410_v10 = vld [vmem:[#allocation9 + $0x1bc8] sm:$0xf]  ;;  %v1053_v11 = vld.sshfl [vmem:[#allocation1 + $0x20] sm:$0xff pattern:$0x73625140]  ;;  %v15411_v45 = vor.u32 %v16983_v53, %v15410_v18 }
 0x451   :  { %9161 = vmatpush.bf16.msra.mxu0 %v13571_v59  ;;  %v1054_v14 = vld.sshfl [vmem:[#allocation1 + $0x28] sm:$0xff pattern:$0x73625140]  ;;  %v17847_v51 = vpack.c.bf16 %v1053_v11, %v1053_v11  ;;  %v16714_v18 = vld [vmem:[#allocation9 + $0x1b4c] sm:$0xf0] }
 0x452   :  { %8534 = vmatpush.bf16.msrb.mxu3 %v14019_v31  ;;  %v14434_v31 = vld [vmem:[#allocation9 + $0x1bf8] sm:$0xf]  ;;  %v8334_v59 = vpop.f32.mrf.mxu3  ;;  %v8373_v56 = vpop.f32.mrf.mxu2  ;;  %v15362_v11 = vld [vmem:[#allocation9 + $0x2340] sm:$0xf] }
 0x453   :  { %8586 = vmatpush.bf16.msra.mxu1 %v14787_v37  ;;  %v16738_v37 = vld [vmem:[#allocation9 + $0x1c0c] sm:$0xf0]  ;;  %v17025_v56 = vld [vmem:[#allocation9 + $0x2504] sm:$0xf0] }
 0x454   :  { %8599 = vmatpush.bf16.msra.mxu2 %v14979_v42  ;;  %v16611_v42 = vld [vmem:[#allocation9 + $0x1814] sm:$0xf0]  ;;  %v14435_v61 = vor.u32 %v16738_v37, %v14434_v31  ;;  %v17845_v31 = vpack.c.bf16 %v17798_v3, %v17798_v3  ;;  %v14618_v59 = vld [vmem:[#allocation9 + $0x1d70] sm:$0xf] }
 0x455   :  { %9162 = vmatpush.bf16.msra.mxu0 %v13547_v22  ;;  %v13923_v1 = vor.u32 %v16611_v42, %v13922_v38  ;;  %v17838_v22 = vpop.f32.mrf.mxu1  ;;  %v17840_v20 = vpop.f32.mrf.mxu0  ;;  %v14386_v37 = vld [vmem:[#allocation9 + $0x1b98] sm:$0xf]  ;;  %v16726_v38 = vld [vmem:[#allocation9 + $0x1bac] sm:$0xf0] }
 0x456   :  { %8535 = vmatpush.bf16.msrb.mxu3 %v13995_v63  ;;  %v16851_v63 = vld [vmem:[#allocation9 + $0x1f94] sm:$0xf0]  ;;  %v15386_v3 = vld [vmem:[#allocation9 + $0x2370] sm:$0xf] }
 0x457   :  { %8587 = vmatpush.bf16.msra.mxu1 %v14763_v47  ;;  %v16989_v47 = vld [vmem:[#allocation9 + $0x23e4] sm:$0xf0]  ;;  %v14883_v12 = vor.u32 %v16851_v63, %v14882_v48 }
 0x458   :  { %8600 = vmatpush.bf16.msra.mxu2 %v14955_v6  ;;  %9163 = vmatmul.bf16.vlgmr.msra.gmra.mxu0 %v17806_v46  ;;  %v15626_v6 = vld [vmem:[#allocation9 + $0x2550] sm:$0xf] }
 0x459   :  { %9207 = vmatpush.bf16.msrb.mxu0 %v14483_v4  ;;  %v16732_v4 = vld [vmem:[#allocation9 + $0x1bdc] sm:$0xf0] }
 0x45a   :  { %8536 = vmatpush.bf16.msrb.mxu3 %v13971_v57  ;;  %v14667_v57 = vor.u32 %v16797_v52, %v14666_v50  ;;  %v14411_v23 = vor.u32 %v16732_v4, %v14410_v10  ;;  %v8345_v42 = vpop.f32.mrf.mxu3  ;;  %v16977_v52 = vld [vmem:[#allocation9 + $0x2384] sm:$0xf0]  ;;  %v17852_v63 = vpop.f32.mrf.mxu2  ;;  %v14594_v10 = vld [vmem:[#allocation9 + $0x1d40] sm:$0xf]  ;;  %v16779_v4 = vld [vmem:[#allocation9 + $0x1d54] sm:$0xf0] }
 0x45b   :  { %8588 = vmatpush.bf16.msra.mxu1 %v14739_v13  ;;  %v15435_v13 = vor.u32 %v16989_v47, %v15434_v21  ;;  %v14387_v21 = vor.u32 %v16726_v38, %v14386_v37  ;;  %v15578_v47 = vld [vmem:[#allocation9 + $0x24f0] sm:$0xf]  ;;  %v14595_v53 = vor.u32 %v16779_v4, %v14594_v10  ;;  %v17007_v10 = vld [vmem:[#allocation9 + $0x2474] sm:$0xf0] }
 0x45c   :  { %8601 = vmatpush.bf16.msra.mxu2 %v14931_v15  ;;  %v15627_v15 = vor.u32 %v17037_v0, %v15626_v6  ;;  %v14362_v6 = vld [vmem:[#allocation9 + $0x1b68] sm:$0xf]  ;;  %v16720_v0 = vld [vmem:[#allocation9 + $0x1b7c] sm:$0xf0]  ;;  %v15338_v38 = vld [vmem:[#allocation9 + $0x2310] sm:$0xf] }
 0x45d   :  { %9208 = vmatpush.bf16.msrb.mxu0 %v14459_v28  ;;  %v17031_v28 = vld [vmem:[#allocation9 + $0x2534] sm:$0xf0] }
 0x45e   :  { %8537 = vmatpush.bf16.msrb.mxu3 %v13947_v2  ;;  %v8333_v2 = vadd.f32 %v17833_v62, %v2311_v7  ;;  %v17850_v62 = vpack.c.bf16 %v1054_v14, %v1054_v14  ;;  %v15603_v50 = vor.u32 %v17031_v28, %v15602_v55  ;;  %v8906_v14 = vpop.f32.mrf.mxu0  ;;  %v14570_v28 = vld [vmem:[#allocation9 + $0x1d10] sm:$0xf] }
 0x45f   :  { %8589 = vmatpush.bf16.msra.mxu1 %v14715_v39  ;;  %v14643_v39 = vor.u32 %v16791_v41, %v14642_v17  ;;  %v15554_v17 = vld [vmem:[#allocation9 + $0x24c0] sm:$0xf]  ;;  %v17019_v41 = vld [vmem:[#allocation9 + $0x24d4] sm:$0xf0] }
 0x460   :  { %8602 = vmatpush.bf16.msra.mxu2 %v14907_v5  ;;  %v16785_v5 = vld [vmem:[#allocation9 + $0x1d84] sm:$0xf0]  ;;  %v8346_v48 = vadd.f32 %v8345_v42, %v8333_v2  ;;  %v15555_v37 = vor.u32 %v17019_v41, %v15554_v17  ;;  %v14522_v17 = vld [vmem:[#allocation9 + $0x1cb0] sm:$0xf] }
 0x461   :  { %9209 = vmatpush.bf16.msrb.mxu0 %v14435_v61  ;;  %v14619_v7 = vor.u32 %v16785_v5, %v14618_v59  ;;  %v16773_v2 = vld [vmem:[#allocation9 + $0x1d24] sm:$0xf0] }
 0x462   :  { %8538 = vmatpush.bf16.msrb.mxu3 %v13923_v1  ;;  %v8359_v61 = vadd.f32 %v17831_v33, %v8346_v48  ;;  %v8399_v1 = vpop.f32.mrf.mxu1  ;;  %v14363_v33 = vor.u32 %v16720_v0, %v14362_v6  ;;  %v17013_v59 = vld [vmem:[#allocation9 + $0x24a4] sm:$0xf0]  ;;  %v15314_v6 = vld [vmem:[#allocation9 + $0x22e0] sm:$0xf]  ;;  %v16959_v0 = vld [vmem:[#allocation9 + $0x22f4] sm:$0xf0] }
 0x463   :  { %8590 = vmatpush.bf16.msra.mxu1 %v14691_v9  ;;  %v15387_v9 = vor.u32 %v16977_v52, %v15386_v3  ;;  %v14314_v48 = vld [vmem:[#allocation9 + $0x1b08] sm:$0xf]  ;;  %v14571_v3 = vor.u32 %v16773_v2, %v14570_v28  ;;  %v15250_v52 = vld [vmem:[#allocation9 + $0x2258] sm:$0xf]  ;;  %v15315_v14 = vor.u32 %v16959_v0, %v15314_v6  ;;  %v15482_v2 = vld [vmem:[#allocation9 + $0x2430] sm:$0xf] }
 0x464   :  { %8603 = vmatpush.bf16.msra.mxu2 %v14883_v12  ;;  %v16971_v12 = vld [vmem:[#allocation9 + $0x2354] sm:$0xf0]  ;;  %v16761_v41 = vld [vmem:[#allocation9 + $0x1cc4] sm:$0xf0]  ;;  %v15930_v6 = vld [vmem:[#allocation9 + $0x2d4] sm:$0xf] }
 0x465   :  { %8539 = vmatmul.bf16.vlgmr.msrb.gmra.mxu3 %v17845_v31  ;;  %9210 = vmatpush.bf16.msrb.mxu0 %v14411_v23  ;;  %v8347_v23 = vpop.f32.mrf.mxu3  ;;  %v15363_v55 = vor.u32 %v16971_v12, %v15362_v11  ;;  %v15226_v11 = vld [vmem:[#allocation9 + $0x2228] sm:$0xf]  ;;  %v11212_v0 = vld [vmem:[#allocation9 + $0x2e8] sm:$0xf0] }
 0x466   :  { %8570 = vmatpush.bf16.msra.mxu3 %v14667_v57  ;;  %8591 = vmatmul.bf16.vlgmr.msra.gmra.mxu1 %v17847_v51  ;;  %v15579_v57 = vor.u32 %v17025_v56, %v15578_v47  ;;  %v16942_v47 = vld [vmem:[#allocation9 + $0x226c] sm:$0xf0]  ;;  %v14546_v56 = vld [vmem:[#allocation9 + $0x1ce0] sm:$0xf]  ;;  %v16953_v23 = vld [vmem:[#allocation9 + $0x22c4] sm:$0xf0] }
 0x467   :  { %8622 = vmatpush.bf16.msrb.mxu1 %v15435_v13  ;;  %8604 = vmatmul.bf16.vlgmr.msra.gmra.mxu2 %v17850_v62  ;;  %v8372_v13 = vadd.f32 %v17835_v49, %v8359_v61  ;;  %v8412_v49 = vpop.f32.mrf.mxu2  ;;  %v16767_v61 = vld [vmem:[#allocation9 + $0x1cf4] sm:$0xf0]  ;;  %v15251_v4 = vor.u32 %v16942_v47, %v15250_v52  ;;  %v15458_v47 = vld [vmem:[#allocation9 + $0x2400] sm:$0xf] }
 0x468   :  { %8635 = vmatpush.bf16.msrb.mxu2 %v15627_v15  ;;  %v14338_v15 = vld [vmem:[#allocation9 + $0x1b38] sm:$0xf] }
 0x469   :  { %9211 = vmatpush.bf16.msrb.mxu0 %v14387_v21  ;;  %v14339_v42 = vor.u32 %v16714_v18, %v14338_v15  ;;  %v16947_v52 = vld [vmem:[#allocation9 + $0x2294] sm:$0xf0] }
 0x46a   :  { %8571 = vmatpush.bf16.msra.mxu3 %v14643_v39  ;;  %v16965_v39 = vld [vmem:[#allocation9 + $0x2324] sm:$0xf0]  ;;  %v17858_v5 = vpop.f32.mrf.mxu1 }
 0x46b   :  { %8623 = vmatpush.bf16.msrb.mxu1 %v15411_v45  ;;  %v15530_v45 = vld [vmem:[#allocation9 + $0x2490] sm:$0xf]  ;;  %v15339_v21 = vor.u32 %v16965_v39, %v15338_v38 }
 0x46c   :  { %8636 = vmatpush.bf16.msrb.mxu2 %v15603_v50  ;;  %v16708_v50 = vld [vmem:[#allocation9 + $0x1b1c] sm:$0xf0]  ;;  %v15531_v1 = vor.u32 %v17013_v59, %v15530_v45  ;;  %v15202_v45 = vld [vmem:[#allocation9 + $0x21f8] sm:$0xf]  ;;  %v16930_v59 = vld [vmem:[#allocation9 + $0x220c] sm:$0xf0] }
 0x46d   :  { %9212 = vmatpush.bf16.msrb.mxu0 %v14363_v33  ;;  %v8384_v12 = vpop.f32.mrf.mxu3  ;;  %v16936_v33 = vld [vmem:[#allocation9 + $0x223c] sm:$0xf0] }
 0x46e   :  { %8572 = vmatpush.bf16.msra.mxu3 %v14619_v7  ;;  %v14315_v7 = vor.u32 %v16708_v50, %v14314_v48  ;;  %v8385_v15 = vadd.f32 %v8384_v12, %v8372_v13  ;;  %v15227_v49 = vor.u32 %v16936_v33, %v15226_v11  ;;  %v14498_v13 = vld [vmem:[#allocation9 + $0x1c80] sm:$0xf]  ;;  %v16755_v50 = vld [vmem:[#allocation9 + $0x1c94] sm:$0xf0]  ;;  %v15178_v12 = vld [vmem:[#allocation9 + $0x21c8] sm:$0xf] }
 0x46f   :  { %8624 = vmatpush.bf16.msrb.mxu1 %v15387_v9  ;;  %v15506_v9 = vld [vmem:[#allocation9 + $0x2460] sm:$0xf]  ;;  %v17862_v28 = vpop.f32.mrf.mxu2 }
 0x470   :  { %8637 = vmatpush.bf16.msrb.mxu2 %v15579_v57  ;;  %v14547_v57 = vor.u32 %v16767_v61, %v14546_v56  ;;  %v15507_v18 = vor.u32 %v17007_v10, %v15506_v9  ;;  %v8398_v38 = vadd.f32 %v17838_v22, %v8385_v15  ;;  %v15242_v56 = vld [vmem:[#allocation9 + $0x2250] sm:$0xf]  ;;  %v16941_v61 = vld [vmem:[#allocation9 + $0x2264] sm:$0xf0]  ;;  %v14499_v9 = vor.u32 %v16755_v50, %v14498_v13  ;;  %v15978_v10 = vld [vmem:[#allocation9 + $0x454] sm:$0xf] }
 0x471   :  { %9213 = vmatpush.bf16.msrb.mxu0 %v14339_v42  ;;  %v14523_v42 = vor.u32 %v16761_v41, %v14522_v17  ;;  %v15243_v33 = vor.u32 %v16941_v61, %v15242_v56  ;;  %v11215_v41 = vor.u32 %v15930_v6, %v11212_v0  ;;  %v15218_v15 = vld [vmem:[#allocation9 + $0x2220] sm:$0xf]  ;;  %v15194_v50 = vld [vmem:[#allocation9 + $0x21f0] sm:$0xf]  ;;  %v11164_v56 = vld [vmem:[#allocation9 + $0x288] sm:$0xf0] }
 0x472   :  { %8573 = vmatpush.bf16.msra.mxu3 %v14595_v53  ;;  %v15290_v53 = vld [vmem:[#allocation9 + $0x22b0] sm:$0xf]  ;;  %v8438_v39 = vpop.f32.mrf.mxu1  ;;  %v17867_v22 = vadd.f32 %v17852_v63, %v8398_v38  ;;  %v1058_v63 = vld.sshfl [vmem:[#allocation1] sm:$0xff pattern:$0x73625140] }
 0x473   :  { %8625 = vmatpush.bf16.msrb.mxu1 %v15363_v55  ;;  %v17860_v55 = vpop.f32.mrf.mxu0  ;;  %v15291_v48 = vor.u32 %v16953_v23, %v15290_v53  ;;  %v11188_v38 = vld [vmem:[#allocation9 + $0x2b8] sm:$0xf0]  ;;  %v11356_v6 = vld [vmem:[#allocation9 + $0x408] sm:$0xf0]  ;;  %v15130_v0 = vld [vmem:[#allocation9 + $0x2168] sm:$0xf] }
 0x474   :  { %8638 = vmatpush.bf16.msrb.mxu2 %v15555_v37  ;;  %v17001_v37 = vld [vmem:[#allocation9 + $0x2444] sm:$0xf0] }
 0x475   :  { %9214 = vmatpush.bf16.msrb.mxu0 %v14315_v7  ;;  %v15203_v7 = vor.u32 %v16930_v59, %v15202_v45  ;;  %v15154_v45 = vld [vmem:[#allocation9 + $0x2198] sm:$0xf]  ;;  %v16918_v59 = vld [vmem:[#allocation9 + $0x21ac] sm:$0xf0] }
 0x476   :  { %8574 = vmatpush.bf16.msra.mxu3 %v14571_v3  ;;  %v15266_v3 = vld [vmem:[#allocation9 + $0x2280] sm:$0xf]  ;;  %v15155_v61 = vor.u32 %v16918_v59, %v15154_v45  ;;  %v15954_v45 = vld [vmem:[#allocation9 + $0x394] sm:$0xf]  ;;  %v11308_v59 = vld [vmem:[#allocation9 + $0x3a8] sm:$0xf0] }
 0x477   :  { %8626 = vmatpush.bf16.msrb.mxu1 %v15339_v21  ;;  %v15483_v21 = vor.u32 %v17001_v37, %v15482_v2  ;;  %v15267_v11 = vor.u32 %v16947_v52, %v15266_v3  ;;  %v8451_v23 = vpop.f32.mrf.mxu2  ;;  %v15924_v37 = vld [vmem:[#allocation9 + $0x2a4] sm:$0xf]  ;;  %v16929_v3 = vld [vmem:[#allocation9 + $0x2204] sm:$0xf0]  ;;  %v17870_v52 = vpack.c.bf16 %v1058_v63, %v1058_v63  ;;  %v11332_v63 = vld [vmem:[#allocation9 + $0x3d8] sm:$0xf0] }
 0x478   :  { %8639 = vmatpush.bf16.msrb.mxu2 %v15531_v1  ;;  %9215 = vmatmul.bf16.vlgmr.msrb.gmra.mxu0 %v17827_v8  ;;  %v16995_v1 = vld [vmem:[#allocation9 + $0x2414] sm:$0xf0] }
 0x479   :  { %9259 = vmatpush.bf16.msra.mxu0 %v15251_v4  ;;  %v11404_v4 = vld [vmem:[#allocation9 + $0x468] sm:$0xf0]  ;;  %v15459_v17 = vor.u32 %v16995_v1, %v15458_v47  ;;  %v15918_v47 = vld [vmem:[#allocation9 + $0x274] sm:$0xf] }
 0x47a   :  { %8575 = vmatpush.bf16.msra.mxu3 %v14547_v57  ;;  %v8386_v57 = vpop.f32.mrf.mxu3  ;;  %v11407_v2 = vor.u32 %v15978_v10, %v11404_v4  ;;  %v15966_v1 = vld [vmem:[#allocation9 + $0x3f4] sm:$0xf]  ;;  %v11167_v10 = vor.u32 %v15918_v47, %v11164_v56  ;;  %v15170_v4 = vld [vmem:[#allocation9 + $0x21c0] sm:$0xf] }
 0x47b   :  { %8627 = vmatpush.bf16.msrb.mxu1 %v15315_v14  ;;  %v16924_v14 = vld [vmem:[#allocation9 + $0x21dc] sm:$0xf0]  ;;  %v8958_v53 = vpop.f32.mrf.mxu0  ;;  %v16923_v57 = vld [vmem:[#allocation9 + $0x21d4] sm:$0xf0]  ;;  %v11220_v56 = vld [vmem:[#allocation9 + $0x2f0] sm:$0xf0] }
 0x47c   :  { %8640 = vmatpush.bf16.msrb.mxu2 %v15507_v18  ;;  %v16935_v18 = vld [vmem:[#allocation9 + $0x2234] sm:$0xf0]  ;;  %v15179_v39 = vor.u32 %v16924_v14, %v15178_v12  ;;  %v11359_v12 = vor.u32 %v15966_v1, %v11356_v6  ;;  %v15912_v14 = vld [vmem:[#allocation9 + $0x244] sm:$0xf]  ;;  %v15171_v53 = vor.u32 %v16923_v57, %v15170_v4  ;;  %v11284_v57 = vld [vmem:[#allocation9 + $0x378] sm:$0xf0] }
 0x47d   :  { %9260 = vmatpush.bf16.msra.mxu0 %v15227_v49  ;;  %v15972_v49 = vld [vmem:[#allocation9 + $0x424] sm:$0xf]  ;;  %v15219_v13 = vor.u32 %v16935_v18, %v15218_v15  ;;  %v15106_v15 = vld [vmem:[#allocation9 + $0x2138] sm:$0xf]  ;;  %v16906_v18 = vld [vmem:[#allocation9 + $0x214c] sm:$0xf0] }
 0x47e   :  { %8576 = vmatpush.bf16.msra.mxu3 %v14523_v42  ;;  %v11380_v42 = vld [vmem:[#allocation9 + $0x438] sm:$0xf0]  ;;  %v16911_v1 = vld [vmem:[#allocation9 + $0x2174] sm:$0xf0]  ;;  %v15948_v4 = vld [vmem:[#allocation9 + $0x364] sm:$0xf] }
 0x47f   :  { %8628 = vmatpush.bf16.msrb.mxu1 %v15291_v48  ;;  %v11191_v48 = vor.u32 %v15924_v37, %v11188_v38  ;;  %v16917_v37 = vld [vmem:[#allocation9 + $0x21a4] sm:$0xf0] }
 0x480   :  { %8641 = vmatpush.bf16.msrb.mxu2 %v15483_v21  ;;  %v11383_v21 = vor.u32 %v15972_v49, %v11380_v42  ;;  %v11116_v49 = vld [vmem:[#allocation9 + $0x228] sm:$0xf0]  ;;  %v15107_v42 = vor.u32 %v16906_v18, %v15106_v15  ;;  %v11196_v15 = vld [vmem:[#allocation9 + $0x2c0] sm:$0xf0]  ;;  %v15098_v18 = vld [vmem:[#allocation9 + $0x2130] sm:$0xf] }
 0x481   :  { %9261 = vmatpush.bf16.msra.mxu0 %v15203_v7  ;;  %v16912_v7 = vld [vmem:[#allocation9 + $0x217c] sm:$0xf0] }
 0x482   :  { %8577 = vmatpush.bf16.msra.mxu3 %v14499_v9  ;;  %v15195_v9 = vor.u32 %v16929_v3, %v15194_v50  ;;  %v16900_v50 = vld [vmem:[#allocation9 + $0x211c] sm:$0xf0] }
 0x483   :  { %8629 = vmatpush.bf16.msrb.mxu1 %v15267_v11  ;;  %v17874_v11 = vpop.f32.mrf.mxu0 }
 0x484   :  { %8642 = vmatpush.bf16.msrb.mxu2 %v15459_v17  ;;  %v15131_v17 = vor.u32 %v16912_v7, %v15130_v0  ;;  %v11311_v0 = vor.u32 %v15954_v45, %v11308_v59  ;;  %v15900_v7 = vld [vmem:[#allocation9 + $0x1e4] sm:$0xf]  ;;  %v11260_v45 = vld [vmem:[#allocation9 + $0x348] sm:$0xf0] }
 0x485   :  { %8578 = vmatmul.bf16.vlgmr.msra.gmra.mxu3 %v17748_v32  ;;  %9262 = vmatpush.bf16.msra.mxu0 %v15179_v39  ;;  %v15906_v39 = vld [vmem:[#allocation9 + $0x214] sm:$0xf] }
 0x486   :  { %8609 = vmatpush.bf16.msrb.mxu3 %v15243_v33  ;;  %8630 = vmatmul.bf16.vlgmr.msrb.gmra.mxu1 %v17774_v60  ;;  %v11140_v33 = vld [vmem:[#allocation9 + $0x258] sm:$0xf0]  ;;  %v11119_v47 = vor.u32 %v15906_v39, %v11116_v49 }
 0x487   :  { %8661 = vmatpush.bf16.msra.mxu1 %v11215_v41  ;;  %8643 = vmatmul.bf16.vlgmr.msrb.gmra.mxu2 %v17870_v52  ;;  %v15960_v41 = vld [vmem:[#allocation9 + $0x3c4] sm:$0xf]  ;;  %v11143_v23 = vor.u32 %v15912_v14, %v11140_v33 }
 0x488   :  { %8674 = vmatpush.bf16.msra.mxu2 %v11407_v2  ;;  %v15146_v2 = vld [vmem:[#allocation9 + $0x2190] sm:$0xf]  ;;  %v11335_v38 = vor.u32 %v15960_v41, %v11332_v63  ;;  %v1055_v14 = vld.sshfl [vmem:[#allocation1 + $0x30] sm:$0xff pattern:$0x73625140]  ;;  %v8423_v41 = vpop.f32.mrf.mxu3 }
 0x489   :  { %9263 = vmatpush.bf16.msra.mxu0 %v15155_v61  ;;  %v15147_v3 = vor.u32 %v16917_v37, %v15146_v2  ;;  %v15122_v61 = vld [vmem:[#allocation9 + $0x2160] sm:$0xf]  ;;  %v11287_v2 = vor.u32 %v15948_v4, %v11284_v57  ;;  %v15894_v37 = vld [vmem:[#allocation9 + $0x1b4] sm:$0xf]  ;;  %v17881_v49 = vpack.c.bf16 %v1055_v14, %v1055_v14  ;;  %v11236_v4 = vld [vmem:[#allocation9 + $0x318] sm:$0xf0] }
 0x48a   :  { %8610 = vmatpush.bf16.msrb.mxu3 %v15219_v13  ;;  %v17876_v13 = vpop.f32.mrf.mxu1  ;;  %v15123_v33 = vor.u32 %v16911_v1, %v15122_v61  ;;  %v17879_v39 = vpop.f32.mrf.mxu2  ;;  %v16899_v61 = vld [vmem:[#allocation9 + $0x2114] sm:$0xf0]  ;;  %v15888_v1 = vld [vmem:[#allocation9 + $0x184] sm:$0xf]  ;;  %v16074_v57 = vld [vmem:[#allocation9 + $0x754] sm:$0xf] }
 0x48b   :  { %8662 = vmatpush.bf16.msra.mxu1 %v11191_v48  ;;  %v15082_v48 = vld [vmem:[#allocation9 + $0x2108] sm:$0xf]  ;;  %v9010_v6 = vpop.f32.mrf.mxu0 }
 0x48c   :  { %8675 = vmatpush.bf16.msra.mxu2 %v11383_v21  ;;  %v15931_v21 = vld [vmem:[#allocation9 + $0x2dc] sm:$0xf] }
 0x48d   :  { %9264 = vmatpush.bf16.msra.mxu0 %v15131_v17  ;;  %v15925_v17 = vld [vmem:[#allocation9 + $0x2ac] sm:$0xf]  ;;  %v11044_v6 = vld [vmem:[#allocation9 + $0x198] sm:$0xf0] }
 0x48e   :  { %8611 = vmatpush.bf16.msrb.mxu3 %v15195_v9  ;;  %v11092_v9 = vld [vmem:[#allocation9 + $0x1f8] sm:$0xf0] }
 0x48f   :  { %8663 = vmatpush.bf16.msra.mxu1 %v11167_v10  ;;  %v15083_v10 = vor.u32 %v16900_v50, %v15082_v48  ;;  %v11095_v63 = vor.u32 %v15900_v7, %v11092_v9  ;;  %v11199_v50 = vor.u32 %v15925_v17, %v11196_v15  ;;  %v15936_v7 = vld [vmem:[#allocation9 + $0x304] sm:$0xf]  ;;  %v15882_v9 = vld [vmem:[#allocation9 + $0x154] sm:$0xf]  ;;  %v11047_v15 = vor.u32 %v15888_v1, %v11044_v6  ;;  %v10972_v6 = vld [vmem:[#allocation9 + $0x108] sm:$0xf0] }
 0x490   :  { %8676 = vmatpush.bf16.msra.mxu2 %v11359_v12  ;;  %v11223_v12 = vor.u32 %v15931_v21, %v11220_v56  ;;  %v15919_v21 = vld [vmem:[#allocation9 + $0x27c] sm:$0xf]  ;;  %v16122_v17 = vld [vmem:[#allocation9 + $0x8d4] sm:$0xf] }
 0x491   :  { %9265 = vmatpush.bf16.msra.mxu0 %v15107_v42  ;;  %v15942_v42 = vld [vmem:[#allocation9 + $0x334] sm:$0xf] }
 0x492   :  { %8612 = vmatpush.bf16.msrb.mxu3 %v15171_v53  ;;  %v16905_v53 = vld [vmem:[#allocation9 + $0x2144] sm:$0xf0]  ;;  %v8477_v48 = vpop.f32.mrf.mxu1  ;;  %v15870_v1 = vld [vmem:[#allocation9 + $0xf4] sm:$0xf] }
 0x493   :  { %8664 = vmatpush.bf16.msra.mxu1 %v11143_v23  ;;  %v8424_v23 = vadd.f32 %v8423_v41, %v17867_v22  ;;  %v15074_v22 = vld [vmem:[#allocation9 + $0x2100] sm:$0xf]  ;;  %v11980_v41 = vld [vmem:[#allocation9 + $0x8e8] sm:$0xf0]  ;;  %v11764_v48 = vld [vmem:[#allocation9 + $0x738] sm:$0xf0] }
 0x494   :  { %8677 = vmatpush.bf16.msra.mxu2 %v11335_v38  ;;  %v11068_v38 = vld [vmem:[#allocation9 + $0x1c8] sm:$0xf0] }
 0x495   :  { %9266 = vmatpush.bf16.msra.mxu0 %v15083_v10  ;;  %v8437_v59 = vadd.f32 %v17858_v5, %v8424_v23  ;;  %v11071_v56 = vor.u32 %v15894_v37, %v11068_v38  ;;  %v11020_v10 = vld [vmem:[#allocation9 + $0x168] sm:$0xf0]  ;;  %v10996_v38 = vld [vmem:[#allocation9 + $0x138] sm:$0xf0] }
 0x496   :  { %8613 = vmatpush.bf16.msrb.mxu3 %v15147_v3  ;;  %v15099_v3 = vor.u32 %v16905_v53, %v15098_v18  ;;  %v15913_v18 = vld [vmem:[#allocation9 + $0x24c] sm:$0xf]  ;;  %v11148_v53 = vld [vmem:[#allocation9 + $0x260] sm:$0xf0]  ;;  %v11023_v23 = vor.u32 %v15882_v9, %v11020_v10  ;;  %v16062_v9 = vld [vmem:[#allocation9 + $0x6f4] sm:$0xf] }
 0x497   :  { %8665 = vmatpush.bf16.msra.mxu1 %v11119_v47  ;;  %v11172_v47 = vld [vmem:[#allocation9 + $0x290] sm:$0xf0]  ;;  %v17886_v5 = vadd.f32 %v17862_v28, %v8437_v59  ;;  %v15876_v28 = vld [vmem:[#allocation9 + $0x124] sm:$0xf]  ;;  %v11740_v10 = vld [vmem:[#allocation9 + $0x708] sm:$0xf0] }
 0x498   :  { %8678 = vmatpush.bf16.msra.mxu2 %v11311_v0  ;;  %9267 = vmatmul.bf16.vlgmr.msra.gmra.mxu0 %v17881_v49  ;;  %v11263_v0 = vor.u32 %v15942_v42, %v11260_v45  ;;  %v11175_v14 = vor.u32 %v15919_v21, %v11172_v47  ;;  %v8490_v42 = vpop.f32.mrf.mxu2  ;;  %v11983_v45 = vor.u32 %v16122_v17, %v11980_v41  ;;  %v16068_v59 = vld [vmem:[#allocation9 + $0x724] sm:$0xf]  ;;  %v11956_v21 = vld [vmem:[#allocation9 + $0x8b8] sm:$0xf0] }
 0x499   :  { %9311 = vmatpush.bf16.msrb.mxu0 %v11223_v12  ;;  %v11788_v12 = vld [vmem:[#allocation9 + $0x768] sm:$0xf0]  ;;  %v15907_v47 = vld [vmem:[#allocation9 + $0x21c] sm:$0xf]  ;;  %v10975_v17 = vor.u32 %v15870_v1, %v10972_v6  ;;  %v11743_v41 = vor.u32 %v16062_v9, %v11740_v10  ;;  %v11076_v42 = vld [vmem:[#allocation9 + $0x1d0] sm:$0xf0] }
 0x49a   :  { %8614 = vmatpush.bf16.msrb.mxu3 %v15123_v33  ;;  %v15075_v33 = vor.u32 %v16899_v61, %v15074_v22  ;;  %v11791_v37 = vor.u32 %v16074_v57, %v11788_v12  ;;  %v11124_v22 = vld [vmem:[#allocation9 + $0x230] sm:$0xf0]  ;;  %v11767_v61 = vor.u32 %v16068_v59, %v11764_v48  ;;  %v11932_v12 = vld [vmem:[#allocation9 + $0x888] sm:$0xf0]  ;;  %v11052_v9 = vld [vmem:[#allocation9 + $0x1a0] sm:$0xf0] }
 0x49b   :  { %8666 = vmatpush.bf16.msra.mxu1 %v11095_v63  ;;  %v8425_v63 = vpop.f32.mrf.mxu3  ;;  %v16110_v57 = vld [vmem:[#allocation9 + $0x874] sm:$0xf]  ;;  %v11884_v1 = vld [vmem:[#allocation9 + $0x828] sm:$0xf0] }
 0x49c   :  { %8679 = vmatpush.bf16.msra.mxu2 %v11287_v2  ;;  %v11239_v2 = vor.u32 %v15936_v7, %v11236_v4  ;;  %v11127_v4 = vor.u32 %v15907_v47, %v11124_v22  ;;  %v15864_v63 = vld [vmem:[#allocation9 + $0xc4] sm:$0xf]  ;;  %v15858_v48 = vld [vmem:[#allocation9 + $0x94] sm:$0xf]  ;;  %v11692_v22 = vld [vmem:[#allocation9 + $0x6a8] sm:$0xf0] }
 0x49d   :  { %9312 = vmatpush.bf16.msrb.mxu0 %v11199_v50  ;;  %v11151_v50 = vor.u32 %v15913_v18, %v11148_v53  ;;  %v11935_v18 = vor.u32 %v16110_v57, %v11932_v12  ;;  %v16056_v53 = vld [vmem:[#allocation9 + $0x6c4] sm:$0xf]  ;;  %v16050_v47 = vld [vmem:[#allocation9 + $0x694] sm:$0xf] }
 0x49e   :  { %8615 = vmatpush.bf16.msrb.mxu3 %v15099_v3  ;;  %v16116_v3 = vld [vmem:[#allocation9 + $0x8a4] sm:$0xf]  ;;  %v11695_v57 = vor.u32 %v16050_v47, %v11692_v22  ;;  %v11988_v12 = vld [vmem:[#allocation9 + $0x8f0] sm:$0xf0] }
 0x49f   :  { %8667 = vmatpush.bf16.msra.mxu1 %v11071_v56  ;;  %v10999_v56 = vor.u32 %v15876_v28, %v10996_v38  ;;  %v11959_v7 = vor.u32 %v16116_v3, %v11956_v21  ;;  %v11908_v28 = vld [vmem:[#allocation9 + $0x858] sm:$0xf0]  ;;  %v16086_v22 = vld [vmem:[#allocation9 + $0x7b4] sm:$0xf] }
 0x4a0   :  { %8680 = vmatpush.bf16.msra.mxu2 %v11263_v0  ;;  %v17888_v0 = vpop.f32.mrf.mxu0  ;;  %v15895_v38 = vld [vmem:[#allocation9 + $0x1bc] sm:$0xf] }
 0x4a1   :  { %9313 = vmatpush.bf16.msrb.mxu0 %v11175_v14  ;;  %v15901_v14 = vld [vmem:[#allocation9 + $0x1ec] sm:$0xf] }
 0x4a2   :  { %8616 = vmatpush.bf16.msrb.mxu3 %v15075_v33  ;;  %v11100_v33 = vld [vmem:[#allocation9 + $0x200] sm:$0xf0] }
 0x4a3   :  { %8668 = vmatpush.bf16.msra.mxu1 %v11047_v15  ;;  %v10948_v15 = vld [vmem:[#allocation9 + $0xd8] sm:$0xf0]  ;;  %v17893_v6 = vpop.f32.mrf.mxu1 }
 0x4a4   :  { %8681 = vmatpush.bf16.msra.mxu2 %v11239_v2  ;;  %v11103_v2 = vor.u32 %v15901_v14, %v11100_v33  ;;  %v15852_v14 = vld [vmem:[#allocation9 + $0x64] sm:$0xf]  ;;  %v10900_v33 = vld [vmem:[#allocation9 + $0x78] sm:$0xf0] }
 0x4a5   :  { %8617 = vmatmul.bf16.vlgmr.msrb.gmra.mxu3 %v17881_v49  ;;  %9314 = vmatpush.bf16.msrb.mxu0 %v11151_v50  ;;  %v10924_v50 = vld [vmem:[#allocation9 + $0xa8] sm:$0xf0] }
 0x4a6   :  { %8648 = vmatpush.bf16.msra.mxu3 %v11023_v23  ;;  %8669 = vmatmul.bf16.vlgmr.msra.gmra.mxu1 %v17739_v16  ;;  %v11716_v23 = vld [vmem:[#allocation9 + $0x6d8] sm:$0xf0]  ;;  %v10927_v10 = vor.u32 %v15858_v48, %v10924_v50 }
 0x4a7   :  { %8700 = vmatpush.bf16.msrb.mxu1 %v11791_v37  ;;  %8682 = vmatmul.bf16.vlgmr.msra.gmra.mxu2 %v17724_v29  ;;  %v16104_v37 = vld [vmem:[#allocation9 + $0x844] sm:$0xf]  ;;  %v11719_v59 = vor.u32 %v16056_v53, %v11716_v23  ;;  %v11860_v53 = vld [vmem:[#allocation9 + $0x7f8] sm:$0xf0] }
 0x4a8   :  { %8713 = vmatpush.bf16.msrb.mxu2 %v11983_v45  ;;  %v10951_v45 = vor.u32 %v15864_v63, %v10948_v15  ;;  %v9062_v3 = vpop.f32.mrf.mxu0  ;;  %v11911_v21 = vor.u32 %v16104_v37, %v11908_v28  ;;  %v11668_v63 = vld [vmem:[#allocation9 + $0x678] sm:$0xf0]  ;;  %v16117_v37 = vld [vmem:[#allocation9 + $0x8ac] sm:$0xf]  ;;  %v8462_v28 = vpop.f32.mrf.mxu3 }
 0x4a9   :  { %9315 = vmatpush.bf16.msrb.mxu0 %v11127_v4  ;;  %v16123_v4 = vld [vmem:[#allocation9 + $0x8dc] sm:$0xf]  ;;  %v8463_v48 = vadd.f32 %v8462_v28, %v17886_v5  ;;  %v16038_v3 = vld [vmem:[#allocation9 + $0x634] sm:$0xf] }
 0x4aa   :  { %8649 = vmatpush.bf16.msra.mxu3 %v10999_v56  ;;  %v11079_v56 = vor.u32 %v15895_v38, %v11076_v42  ;;  %v11991_v23 = vor.u32 %v16123_v4, %v11988_v12  ;;  %v11964_v42 = vld [vmem:[#allocation9 + $0x8c0] sm:$0xf0]  ;;  %v17896_v47 = vpop.f32.mrf.mxu2  ;;  %v11940_v4 = vld [vmem:[#allocation9 + $0x890] sm:$0xf0]  ;;  %v10852_v12 = vld [vmem:[#allocation9 + $0x18] sm:$0xf0] }
 0x4ab   :  { %8701 = vmatpush.bf16.msrb.mxu1 %v11767_v61  ;;  %v16098_v61 = vld [vmem:[#allocation9 + $0x814] sm:$0xf] }
 0x4ac   :  { %8714 = vmatpush.bf16.msrb.mxu2 %v11959_v7  ;;  %v15889_v7 = vld [vmem:[#allocation9 + $0x18c] sm:$0xf]  ;;  %v16266_v28 = vld [vmem:[#allocation9 + $0xd54] sm:$0xf] }
 0x4ad   :  { %9316 = vmatpush.bf16.msrb.mxu0 %v11103_v2  ;;  %v11055_v15 = vor.u32 %v15889_v7, %v11052_v9  ;;  %v10903_v2 = vor.u32 %v15852_v14, %v10900_v33  ;;  %v11967_v7 = vor.u32 %v16117_v37, %v11964_v42  ;;  %v16032_v14 = vld [vmem:[#allocation9 + $0x604] sm:$0xf]  ;;  %v11620_v33 = vld [vmem:[#allocation9 + $0x618] sm:$0xf0] }
 0x4ae   :  { %8650 = vmatpush.bf16.msra.mxu3 %v10975_v17  ;;  %v11887_v17 = vor.u32 %v16098_v61, %v11884_v1  ;;  %v8476_v61 = vadd.f32 %v17876_v13, %v8463_v48  ;;  %v8516_v1 = vpop.f32.mrf.mxu1  ;;  %v11916_v48 = vld [vmem:[#allocation9 + $0x860] sm:$0xf0] }
 0x4af   :  { %8702 = vmatpush.bf16.msrb.mxu1 %v11743_v41  ;;  %v16044_v41 = vld [vmem:[#allocation9 + $0x664] sm:$0xf] }
 0x4b0   :  { %8715 = vmatpush.bf16.msrb.mxu2 %v11935_v18  ;;  %v16092_v18 = vld [vmem:[#allocation9 + $0x7e4] sm:$0xf]  ;;  %v11671_v38 = vor.u32 %v16044_v41, %v11668_v63  ;;  %v16026_v63 = vld [vmem:[#allocation9 + $0x5d4] sm:$0xf]  ;;  %v17901_v13 = vadd.f32 %v17879_v39, %v8476_v61  ;;  %v8464_v42 = vpop.f32.mrf.mxu3 }
 0x4b1   :  { %9317 = vmatpush.bf16.msrb.mxu0 %v11079_v56  ;;  %v11863_v50 = vor.u32 %v16092_v18, %v11860_v53  ;;  %v11836_v56 = vld [vmem:[#allocation9 + $0x7c8] sm:$0xf0]  ;;  %v16080_v41 = vld [vmem:[#allocation9 + $0x784] sm:$0xf]  ;;  %v11812_v18 = vld [vmem:[#allocation9 + $0x798] sm:$0xf0] }
 0x4b2   :  { %8651 = vmatpush.bf16.msra.mxu3 %v10951_v45  ;;  %v15846_v45 = vld [vmem:[#allocation9 + $0x34] sm:$0xf]  ;;  %v16020_v39 = vld [vmem:[#allocation9 + $0x5a4] sm:$0xf] }
 0x4b3   :  { %8703 = vmatpush.bf16.msrb.mxu1 %v11719_v59  ;;  %v10876_v59 = vld [vmem:[#allocation9 + $0x48] sm:$0xf0]  ;;  %v16218_v53 = vld [vmem:[#allocation9 + $0xbd4] sm:$0xf]  ;;  %v16212_v1 = vld [vmem:[#allocation9 + $0xba4] sm:$0xf] }
 0x4b4   :  { %8716 = vmatpush.bf16.msrb.mxu2 %v11911_v21  ;;  %v11644_v21 = vld [vmem:[#allocation9 + $0x648] sm:$0xf0]  ;;  %v10879_v9 = vor.u32 %v15846_v45, %v10876_v59  ;;  %v11623_v45 = vor.u32 %v16032_v14, %v11620_v33  ;;  %v16014_v33 = vld [vmem:[#allocation9 + $0x574] sm:$0xf] }
 0x4b5   :  { %9318 = vmatpush.bf16.msrb.mxu0 %v11055_v15  ;;  %v11647_v5 = vor.u32 %v16038_v3, %v11644_v21  ;;  %v11596_v15 = vld [vmem:[#allocation9 + $0x5e8] sm:$0xf0]  ;;  %v11815_v3 = vor.u32 %v16080_v41, %v11812_v18  ;;  %v17903_v41 = vpop.f32.mrf.mxu0 }
 0x4b6   :  { %8652 = vmatpush.bf16.msra.mxu3 %v10927_v10  ;;  %v16111_v10 = vld [vmem:[#allocation9 + $0x87c] sm:$0xf]  ;;  %v16105_v59 = vld [vmem:[#allocation9 + $0x84c] sm:$0xf]  ;;  %18531 = vst [vmem:[#allocation18_spill] sm:$0xff] %v17903_v41 }
 0x4b7   :  { %8704 = vmatpush.bf16.msrb.mxu1 %v11695_v57  ;;  %v15840_v57 = vld [vmem:[#allocation9 + $0x4] sm:$0xf]  ;;  %v12316_v18 = vld [vmem:[#allocation9 + $0xb88] sm:$0xf0] }
 0x4b8   :  { %8717 = vmatpush.bf16.msrb.mxu2 %v11887_v17  ;;  %9319 = vmatmul.bf16.vlgmr.msrb.gmra.mxu0 %v17739_v16  ;;  %v11839_v17 = vor.u32 %v16086_v22, %v11836_v56  ;;  %v10855_v37 = vor.u32 %v15840_v57, %v10852_v12  ;;  %v11572_v22 = vld [vmem:[#allocation9 + $0x5b8] sm:$0xf0]  ;;  %v8529_v56 = vpop.f32.mrf.mxu2  ;;  %v16356_v41 = vld [vmem:[#allocation9 + $0x1024] sm:$0xf] }
 0x4b9   :  { %9363 = vmatpush.bf16.msra.mxu0 %v11991_v23  ;;  %v12364_v23 = vld [vmem:[#allocation9 + $0xbe8] sm:$0xf0]  ;;  %v16099_v57 = vld [vmem:[#allocation9 + $0x81c] sm:$0xf]  ;;  %v11575_v12 = vor.u32 %v16020_v39, %v11572_v22  ;;  %v16248_v39 = vld [vmem:[#allocation9 + $0xcc4] sm:$0xf] }
 0x4ba   :  { %8653 = vmatpush.bf16.msra.mxu3 %v10903_v2  ;;  %v11943_v2 = vor.u32 %v16111_v10, %v11940_v4  ;;  %v12367_v21 = vor.u32 %v16218_v53, %v12364_v23  ;;  %v16260_v10 = vld [vmem:[#allocation9 + $0xd24] sm:$0xf]  ;;  %v12532_v4 = vld [vmem:[#allocation9 + $0xd38] sm:$0xf0]  ;;  %v16254_v23 = vld [vmem:[#allocation9 + $0xcf4] sm:$0xf] }
 0x4bb   :  { %8705 = vmatpush.bf16.msrb.mxu1 %v11671_v38  ;;  %v12556_v38 = vld [vmem:[#allocation9 + $0xd68] sm:$0xf0]  ;;  %v12484_v22 = vld [vmem:[#allocation9 + $0xcd8] sm:$0xf0] }
 0x4bc   :  { %8718 = vmatpush.bf16.msrb.mxu2 %v11863_v50  ;;  %v11599_v50 = vor.u32 %v16026_v63, %v11596_v15  ;;  %v12559_v61 = vor.u32 %v16266_v28, %v12556_v38  ;;  %v12535_v63 = vor.u32 %v16260_v10, %v12532_v4  ;;  %v16206_v15 = vld [vmem:[#allocation9 + $0xb74] sm:$0xf]  ;;  %v11868_v28 = vld [vmem:[#allocation9 + $0x800] sm:$0xf0]  ;;  %v16087_v56 = vld [vmem:[#allocation9 + $0x7bc] sm:$0xf] }
 0x4bd   :  { %9364 = vmatpush.bf16.msra.mxu0 %v11967_v7  ;;  %v12340_v7 = vld [vmem:[#allocation9 + $0xbb8] sm:$0xf0]  ;;  %v12319_v42 = vor.u32 %v16206_v15, %v12316_v18  ;;  %v11500_v10 = vld [vmem:[#allocation9 + $0x528] sm:$0xf0]  ;;  %v9114_v4 = vpop.f32.mrf.mxu0  ;;  %v11820_v18 = vld [vmem:[#allocation9 + $0x7a0] sm:$0xf0] }
 0x4be   :  { %8654 = vmatpush.bf16.msra.mxu3 %v10879_v9  ;;  %v11919_v9 = vor.u32 %v16105_v59, %v11916_v48  ;;  %v12343_v14 = vor.u32 %v16212_v1, %v12340_v7  ;;  %v11524_v59 = vld [vmem:[#allocation9 + $0x558] sm:$0xf0]  ;;  %v16081_v15 = vld [vmem:[#allocation9 + $0x78c] sm:$0xf] }
 0x4bf   :  { %8706 = vmatpush.bf16.msrb.mxu1 %v11647_v5  ;;  %v11892_v5 = vld [vmem:[#allocation9 + $0x830] sm:$0xf0] }
 0x4c0   :  { %8719 = vmatpush.bf16.msrb.mxu2 %v11839_v17  ;;  %v11548_v17 = vld [vmem:[#allocation9 + $0x588] sm:$0xf0]  ;;  %v11895_v53 = vor.u32 %v16099_v57, %v11892_v5  ;;  %v12487_v57 = vor.u32 %v16248_v39, %v12484_v22  ;;  %v16194_v5 = vld [vmem:[#allocation9 + $0xb14] sm:$0xf] }
 0x4c1   :  { %9365 = vmatpush.bf16.msra.mxu0 %v11943_v2  ;;  %v12508_v2 = vld [vmem:[#allocation9 + $0xd08] sm:$0xf0]  ;;  %v11551_v38 = vor.u32 %v16014_v33, %v11548_v17  ;;  %v16242_v33 = vld [vmem:[#allocation9 + $0xc94] sm:$0xf] }
 0x4c2   :  { %8655 = vmatpush.bf16.msra.mxu3 %v10855_v37  ;;  %v16093_v37 = vld [vmem:[#allocation9 + $0x7ec] sm:$0xf]  ;;  %v12511_v48 = vor.u32 %v16254_v23, %v12508_v2  ;;  %v16315_v23 = vld [vmem:[#allocation9 + $0xedc] sm:$0xf] }
 0x4c3   :  { %8707 = vmatpush.bf16.msrb.mxu1 %v11623_v45  ;;  %v16008_v45 = vld [vmem:[#allocation9 + $0x544] sm:$0xf]  ;;  %v12460_v17 = vld [vmem:[#allocation9 + $0xca8] sm:$0xf0] }
 0x4c4   :  { %8720 = vmatpush.bf16.msrb.mxu2 %v11815_v3  ;;  %v12292_v3 = vld [vmem:[#allocation9 + $0xb58] sm:$0xf0]  ;;  %v11527_v1 = vor.u32 %v16008_v45, %v11524_v59  ;;  %v16188_v45 = vld [vmem:[#allocation9 + $0xae4] sm:$0xf]  ;;  %v16309_v22 = vld [vmem:[#allocation9 + $0xeac] sm:$0xf] }
 0x4c5   :  { %8656 = vmatmul.bf16.vlgmr.msra.gmra.mxu3 %v17722_v26  ;;  %9366 = vmatpush.bf16.msra.mxu0 %v11919_v9  ;;  %v16002_v9 = vld [vmem:[#allocation9 + $0x514] sm:$0xf]  ;;  %v12244_v59 = vld [vmem:[#allocation9 + $0xaf8] sm:$0xf0] }
 0x4c6   :  { %8687 = vmatpush.bf16.msrb.mxu3 %v11599_v50  ;;  %8708 = vmatmul.bf16.vlgmr.msrb.gmra.mxu1 %v17761_v27  ;;  %v16200_v50 = vld [vmem:[#allocation9 + $0xb44] sm:$0xf] }
 0x4c7   :  { %8739 = vmatpush.bf16.msra.mxu1 %v12367_v21  ;;  %8721 = vmatmul.bf16.vlgmr.msrb.gmra.mxu2 %v17741_v19  ;;  %v11871_v21 = vor.u32 %v16093_v37, %v11868_v28  ;;  %v12295_v7 = vor.u32 %v16200_v50, %v12292_v3  ;;  %v12756_v37 = vld [vmem:[#allocation9 + $0xef0] sm:$0xf0]  ;;  %v15996_v28 = vld [vmem:[#allocation9 + $0x4e4] sm:$0xf]  ;;  %v12436_v3 = vld [vmem:[#allocation9 + $0xc78] sm:$0xf0] }
 0x4c8   :  { %8752 = vmatpush.bf16.msra.mxu2 %v12559_v61  ;;  %v11844_v61 = vld [vmem:[#allocation9 + $0x7d0] sm:$0xf0]  ;;  %v16236_v50 = vld [vmem:[#allocation9 + $0xc64] sm:$0xf] }
 0x4c9   :  { %9367 = vmatpush.bf16.msra.mxu0 %v11895_v53  ;;  %v11503_v53 = vor.u32 %v16002_v9, %v11500_v10  ;;  %v11452_v9 = vld [vmem:[#allocation9 + $0x4c8] sm:$0xf0]  ;;  %v12439_v4 = vor.u32 %v16236_v50, %v12436_v3  ;;  %v12388_v3 = vld [vmem:[#allocation9 + $0xc18] sm:$0xf0] }
 0x4ca   :  { %8688 = vmatpush.bf16.msrb.mxu3 %v11575_v12  ;;  %v12268_v12 = vld [vmem:[#allocation9 + $0xb28] sm:$0xf0] }
 0x4cb   :  { %8740 = vmatpush.bf16.msra.mxu1 %v12343_v14  ;;  %v11847_v14 = vor.u32 %v16087_v56, %v11844_v61  ;;  %v12271_v2 = vor.u32 %v16194_v5, %v12268_v12  ;;  %v8501_v56 = vpop.f32.mrf.mxu3  ;;  %v12247_v61 = vor.u32 %v16188_v45, %v12244_v59  ;;  %v12220_v5 = vld [vmem:[#allocation9 + $0xac8] sm:$0xf0]  ;;  %v17911_v12 = vpop.f32.mrf.mxu2  ;;  %v16224_v59 = vld [vmem:[#allocation9 + $0xc04] sm:$0xf] }
 0x4cc   :  { %8753 = vmatpush.bf16.msra.mxu2 %v12535_v63  ;;  %v17908_v63 = vpop.f32.mrf.mxu1  ;;  %v8502_v10 = vadd.f32 %v8501_v56, %v17901_v13  ;;  %v12172_v50 = vld [vmem:[#allocation9 + $0xa68] sm:$0xf0] }
 0x4cd   :  { %9368 = vmatpush.bf16.msra.mxu0 %v11871_v21  ;;  %v12759_v21 = vor.u32 %v16315_v23, %v12756_v37  ;;  %v16303_v23 = vld [vmem:[#allocation9 + $0xe7c] sm:$0xf]  ;;  %v15984_v37 = vld [vmem:[#allocation9 + $0x484] sm:$0xf] }
 0x4ce   :  { %8689 = vmatpush.bf16.msrb.mxu3 %v11551_v38  ;;  %v11476_v38 = vld [vmem:[#allocation9 + $0x4f8] sm:$0xf0] }
 0x4cf   :  { %8741 = vmatpush.bf16.msra.mxu1 %v12319_v42  ;;  %v12463_v42 = vor.u32 %v16242_v33, %v12460_v17  ;;  %v11479_v39 = vor.u32 %v15996_v28, %v11476_v38  ;;  %v12412_v33 = vld [vmem:[#allocation9 + $0xc48] sm:$0xf0]  ;;  %v8515_v17 = vadd.f32 %v17893_v6, %v8502_v10  ;;  %v11428_v28 = vld [vmem:[#allocation9 + $0x498] sm:$0xf0]  ;;  %v16176_v38 = vld [vmem:[#allocation9 + $0xa84] sm:$0xf] }
 0x4d0   :  { %8754 = vmatpush.bf16.msra.mxu2 %v12511_v48  ;;  %v11823_v48 = vor.u32 %v16081_v15, %v11820_v18  ;;  %v11431_v56 = vor.u32 %v15984_v37, %v11428_v28  ;;  %v16297_v10 = vld [vmem:[#allocation9 + $0xe4c] sm:$0xf]  ;;  %v16291_v37 = vld [vmem:[#allocation9 + $0xe1c] sm:$0xf] }
 0x4d1   :  { %9369 = vmatpush.bf16.msra.mxu0 %v11847_v14  ;;  %v16230_v14 = vld [vmem:[#allocation9 + $0xc34] sm:$0xf]  ;;  %v17916_v6 = vadd.f32 %v17896_v47, %v8515_v17  ;;  %v16164_v47 = vld [vmem:[#allocation9 + $0xa24] sm:$0xf] }
 0x4d2   :  { %8690 = vmatpush.bf16.msrb.mxu3 %v11527_v1  ;;  %v12732_v1 = vld [vmem:[#allocation9 + $0xec0] sm:$0xf0]  ;;  %v12415_v45 = vor.u32 %v16230_v14, %v12412_v33  ;;  %v12148_v33 = vld [vmem:[#allocation9 + $0xa38] sm:$0xf0] }
 0x4d3   :  { %8742 = vmatpush.bf16.msra.mxu1 %v12295_v7  ;;  %v15990_v7 = vld [vmem:[#allocation9 + $0x4b4] sm:$0xf]  ;;  %v12735_v18 = vor.u32 %v16309_v22, %v12732_v1  ;;  %v13132_v1 = vld [vmem:[#allocation9 + $0x11e8] sm:$0xf0]  ;;  %v8568_v17 = vpop.f32.mrf.mxu2  ;;  %v12151_v28 = vor.u32 %v16164_v47, %v12148_v33  ;;  %v13060_v47 = vld [vmem:[#allocation9 + $0x1158] sm:$0xf0] }
 0x4d4   :  { %8755 = vmatpush.bf16.msra.mxu2 %v12487_v57  ;;  %v16182_v57 = vld [vmem:[#allocation9 + $0xab4] sm:$0xf]  ;;  %v8555_v15 = vpop.f32.mrf.mxu1  ;;  %v16279_v33 = vld [vmem:[#allocation9 + $0xdbc] sm:$0xf] }
 0x4d5   :  { %9370 = vmatpush.bf16.msra.mxu0 %v11823_v48  ;;  %v12223_v13 = vor.u32 %v16182_v57, %v12220_v5  ;;  %v16170_v48 = vld [vmem:[#allocation9 + $0xa54] sm:$0xf]  ;;  %v12391_v5 = vor.u32 %v16224_v59, %v12388_v3  ;;  %v17918_v59 = vpop.f32.mrf.mxu0  ;;  %v12892_v3 = vld [vmem:[#allocation9 + $0x1008] sm:$0xf0] }
 0x4d6   :  { %8691 = vmatpush.bf16.msrb.mxu3 %v11503_v53  ;;  %v11455_v53 = vor.u32 %v15990_v7, %v11452_v9  ;;  %v8503_v7 = vpop.f32.mrf.mxu3  ;;  %v12175_v57 = vor.u32 %v16170_v48, %v12172_v50  ;;  %18532 = vst [vmem:[#allocation19_spill] sm:$0xff] %v17918_v59  ;;  %v16350_v50 = vld [vmem:[#allocation9 + $0xff4] sm:$0xf]  ;;  %v16500_v59 = vld [vmem:[#allocation9 + $0x14a4] sm:$0xf] }
 0x4d7   :  { %8743 = vmatpush.bf16.msra.mxu1 %v12271_v2  ;;  %v12708_v2 = vld [vmem:[#allocation9 + $0xe90] sm:$0xf0]  ;;  %v16152_v7 = vld [vmem:[#allocation9 + $0x9c4] sm:$0xf] }
 0x4d8   :  { %8756 = vmatpush.bf16.msra.mxu2 %v12463_v42  ;;  %v12196_v42 = vld [vmem:[#allocation9 + $0xa98] sm:$0xf0]  ;;  %9371 = vmatmul.bf16.vlgmr.msra.gmra.mxu0 %v17741_v19  ;;  %v12711_v22 = vor.u32 %v16303_v23, %v12708_v2  ;;  %v16404_v23 = vld [vmem:[#allocation9 + $0x11a4] sm:$0xf]  ;;  %v12612_v17 = vld [vmem:[#allocation9 + $0xdd0] sm:$0xf0] }
 0x4d9   :  { %9415 = vmatpush.bf16.msrb.mxu0 %v12759_v21  ;;  %v16362_v21 = vld [vmem:[#allocation9 + $0x1054] sm:$0xf]  ;;  %v12199_v9 = vor.u32 %v16176_v38, %v12196_v42  ;;  %v13108_v2 = vld [vmem:[#allocation9 + $0x11b8] sm:$0xf0] }
 0x4da   :  { %8692 = vmatpush.bf16.msrb.mxu3 %v11479_v39  ;;  %v12940_v39 = vld [vmem:[#allocation9 + $0x1068] sm:$0xf0]  ;;  %v16158_v42 = vld [vmem:[#allocation9 + $0x9f4] sm:$0xf]  ;;  %v13111_v48 = vor.u32 %v16404_v23, %v13108_v2 }
 0x4db   :  { %8744 = vmatpush.bf16.msra.mxu1 %v12247_v61  ;;  %v16410_v61 = vld [vmem:[#allocation9 + $0x11d4] sm:$0xf]  ;;  %v12943_v14 = vor.u32 %v16362_v21, %v12940_v39  ;;  %v12076_v23 = vld [vmem:[#allocation9 + $0x9a8] sm:$0xf0] }
 0x4dc   :  { %8757 = vmatpush.bf16.msra.mxu2 %v12439_v4  ;;  %v12684_v4 = vld [vmem:[#allocation9 + $0xe60] sm:$0xf0]  ;;  %v13135_v15 = vor.u32 %v16410_v61, %v13132_v1  ;;  %v16398_v39 = vld [vmem:[#allocation9 + $0x1174] sm:$0xf]  ;;  %v12895_v1 = vor.u32 %v16350_v50, %v12892_v3  ;;  %v16273_v50 = vld [vmem:[#allocation9 + $0xd8c] sm:$0xf] }
 0x4dd   :  { %9416 = vmatpush.bf16.msrb.mxu0 %v12735_v18  ;;  %v12916_v18 = vld [vmem:[#allocation9 + $0x1038] sm:$0xf0]  ;;  %v9166_v2 = vpop.f32.mrf.mxu0  ;;  %v12588_v3 = vld [vmem:[#allocation9 + $0xda0] sm:$0xf0] }
 0x4de   :  { %8693 = vmatpush.bf16.msrb.mxu3 %v11455_v53  ;;  %v12687_v53 = vor.u32 %v16297_v10, %v12684_v4  ;;  %v12919_v38 = vor.u32 %v16356_v41, %v12916_v18  ;;  %v16285_v41 = vld [vmem:[#allocation9 + $0xdec] sm:$0xf]  ;;  %v16344_v4 = vld [vmem:[#allocation9 + $0xfc4] sm:$0xf] }
 0x4df   :  { %8745 = vmatpush.bf16.msra.mxu1 %v12223_v13  ;;  %v12660_v13 = vld [vmem:[#allocation9 + $0xe30] sm:$0xf0] }
 0x4e0   :  { %8758 = vmatpush.bf16.msra.mxu2 %v12415_v45  ;;  %v12124_v45 = vld [vmem:[#allocation9 + $0xa08] sm:$0xf0]  ;;  %v12663_v21 = vor.u32 %v16291_v37, %v12660_v13  ;;  %v16338_v13 = vld [vmem:[#allocation9 + $0xf94] sm:$0xf] }
 0x4e1   :  { %9417 = vmatpush.bf16.msrb.mxu0 %v12711_v22  ;;  %v13084_v22 = vld [vmem:[#allocation9 + $0x1188] sm:$0xf0]  ;;  %v12127_v61 = vor.u32 %v16158_v42, %v12124_v45  ;;  %v16386_v42 = vld [vmem:[#allocation9 + $0x1114] sm:$0xf] }
 0x4e2   :  { %8694 = vmatpush.bf16.msrb.mxu3 %v11431_v56  ;;  %v12636_v56 = vld [vmem:[#allocation9 + $0xe00] sm:$0xf0]  ;;  %v13087_v10 = vor.u32 %v16398_v39, %v13084_v22  ;;  %v13036_v45 = vld [vmem:[#allocation9 + $0x1128] sm:$0xf0]  ;;  %v16507_v39 = vld [vmem:[#allocation9 + $0x14dc] sm:$0xf] }
 0x4e3   :  { %8746 = vmatpush.bf16.msra.mxu1 %v12199_v9  ;;  %v12100_v9 = vld [vmem:[#allocation9 + $0x9d8] sm:$0xf0] }
 0x4e4   :  { %8759 = vmatpush.bf16.msra.mxu2 %v12391_v5  ;;  %v12639_v5 = vor.u32 %v16285_v41, %v12636_v56  ;;  %v13524_v41 = vld [vmem:[#allocation9 + $0x14f0] sm:$0xf0]  ;;  %v16140_v56 = vld [vmem:[#allocation9 + $0x964] sm:$0xf] }
 0x4e5   :  { %8695 = vmatmul.bf16.vlgmr.msrb.gmra.mxu3 %v17727_v34  ;;  %9418 = vmatpush.bf16.msrb.mxu0 %v12687_v53  ;;  %v16146_v53 = vld [vmem:[#allocation9 + $0x994] sm:$0xf] }
 0x4e6   :  { %8726 = vmatpush.bf16.msra.mxu3 %v12175_v57  ;;  %8747 = vmatmul.bf16.vlgmr.msra.gmra.mxu1 %v17780_v35  ;;  %v12868_v57 = vld [vmem:[#allocation9 + $0xfd8] sm:$0xf0] }
 0x4e7   :  { %8778 = vmatpush.bf16.msrb.mxu1 %v12943_v14  ;;  %8760 = vmatmul.bf16.vlgmr.msra.gmra.mxu2 %v17765_v30  ;;  %v16392_v14 = vld [vmem:[#allocation9 + $0x1144] sm:$0xf]  ;;  %v12871_v18 = vor.u32 %v16344_v4, %v12868_v57  ;;  %v13012_v57 = vld [vmem:[#allocation9 + $0x10f8] sm:$0xf0] }
 0x4e8   :  { %8791 = vmatpush.bf16.msrb.mxu2 %v13135_v15  ;;  %v12103_v15 = vor.u32 %v16152_v7, %v12100_v9  ;;  %v13063_v37 = vor.u32 %v16392_v14, %v13060_v47  ;;  %v16332_v7 = vld [vmem:[#allocation9 + $0xf64] sm:$0xf]  ;;  %v12820_v9 = vld [vmem:[#allocation9 + $0xf78] sm:$0xf0]  ;;  %v16501_v47 = vld [vmem:[#allocation9 + $0x14ac] sm:$0xf] }
 0x4e9   :  { %9419 = vmatpush.bf16.msrb.mxu0 %v12663_v21  ;;  %v12079_v21 = vor.u32 %v16146_v53, %v12076_v23  ;;  %v16380_v4 = vld [vmem:[#allocation9 + $0x10e4] sm:$0xf]  ;;  %v12028_v53 = vld [vmem:[#allocation9 + $0x948] sm:$0xf0] }
 0x4ea   :  { %8727 = vmatpush.bf16.msra.mxu3 %v12151_v28  ;;  %v12844_v28 = vld [vmem:[#allocation9 + $0xfa8] sm:$0xf0]  ;;  %v13015_v2 = vor.u32 %v16380_v4, %v13012_v57  ;;  %v12964_v57 = vld [vmem:[#allocation9 + $0x1098] sm:$0xf0] }
 0x4eb   :  { %8779 = vmatpush.bf16.msrb.mxu1 %v12919_v38  ;;  %v12615_v38 = vor.u32 %v16279_v33, %v12612_v17  ;;  %v12847_v22 = vor.u32 %v16338_v13, %v12844_v28  ;;  %v8540_v33 = vpop.f32.mrf.mxu3  ;;  %v12823_v17 = vor.u32 %v16332_v7, %v12820_v9  ;;  %v12796_v13 = vld [vmem:[#allocation9 + $0xf48] sm:$0xf0]  ;;  %v17926_v28 = vpop.f32.mrf.mxu2  ;;  %v16368_v9 = vld [vmem:[#allocation9 + $0x1084] sm:$0xf] }
 0x4ec   :  { %8792 = vmatpush.bf16.msrb.mxu2 %v13111_v48  ;;  %v17923_v48 = vpop.f32.mrf.mxu1  ;;  %v8541_v23 = vadd.f32 %v8540_v33, %v17916_v6  ;;  %v12748_v4 = vld [vmem:[#allocation9 + $0xee8] sm:$0xf0] }
 0x4ed   :  { %9420 = vmatpush.bf16.msrb.mxu0 %v12639_v5  ;;  %v13527_v5 = vor.u32 %v16507_v39, %v13524_v41  ;;  %v16495_v39 = vld [vmem:[#allocation9 + $0x147c] sm:$0xf]  ;;  %v16128_v41 = vld [vmem:[#allocation9 + $0x904] sm:$0xf] }
 0x4ee   :  { %8728 = vmatpush.bf16.msra.mxu3 %v12127_v61  ;;  %v12052_v61 = vld [vmem:[#allocation9 + $0x978] sm:$0xf0] }
 0x4ef   :  { %8780 = vmatpush.bf16.msrb.mxu1 %v12895_v1  ;;  %v13039_v1 = vor.u32 %v16386_v42, %v13036_v45  ;;  %v12055_v14 = vor.u32 %v16140_v56, %v12052_v61  ;;  %v12988_v42 = vld [vmem:[#allocation9 + $0x10c8] sm:$0xf0]  ;;  %v8554_v45 = vadd.f32 %v17908_v63, %v8541_v23  ;;  %v12004_v56 = vld [vmem:[#allocation9 + $0x918] sm:$0xf0]  ;;  %v16320_v61 = vld [vmem:[#allocation9 + $0xf04] sm:$0xf] }
 0x4f0   :  { %8793 = vmatpush.bf16.msrb.mxu2 %v13087_v10  ;;  %v12591_v10 = vor.u32 %v16273_v50, %v12588_v3  ;;  %v12007_v33 = vor.u32 %v16128_v41, %v12004_v56  ;;  %v16489_v23 = vld [vmem:[#allocation9 + $0x144c] sm:$0xf]  ;;  %v16483_v41 = vld [vmem:[#allocation9 + $0x141c] sm:$0xf] }
 0x4f1   :  { %9421 = vmatpush.bf16.msrb.mxu0 %v12615_v38  ;;  %v16374_v38 = vld [vmem:[#allocation9 + $0x10b4] sm:$0xf]  ;;  %v17931_v63 = vadd.f32 %v17911_v12, %v8554_v45  ;;  %v16308_v12 = vld [vmem:[#allocation9 + $0xea4] sm:$0xf] }
 0x4f2   :  { %8729 = vmatpush.bf16.msra.mxu3 %v12103_v15  ;;  %v13500_v15 = vld [vmem:[#allocation9 + $0x14c0] sm:$0xf0]  ;;  %v12991_v7 = vor.u32 %v16374_v38, %v12988_v42  ;;  %v12724_v42 = vld [vmem:[#allocation9 + $0xeb8] sm:$0xf0] }
 0x4f3   :  { %8781 = vmatpush.bf16.msrb.mxu1 %v12871_v18  ;;  %v16134_v18 = vld [vmem:[#allocation9 + $0x934] sm:$0xf]  ;;  %v13503_v3 = vor.u32 %v16501_v47, %v13500_v15  ;;  %v13708_v15 = vld [vmem:[#allocation9 + $0x1668] sm:$0xf0]  ;;  %v8607_v45 = vpop.f32.mrf.mxu2  ;;  %v12727_v56 = vor.u32 %v16308_v12, %v12724_v42  ;;  %v13636_v12 = vld [vmem:[#allocation9 + $0x15d8] sm:$0xf0] }
 0x4f4   :  { %8794 = vmatpush.bf16.msrb.mxu2 %v13063_v37  ;;  %v16326_v37 = vld [vmem:[#allocation9 + $0xf34] sm:$0xf]  ;;  %v8594_v50 = vpop.f32.mrf.mxu1  ;;  %v16471_v42 = vld [vmem:[#allocation9 + $0x13bc] sm:$0xf] }
 0x4f5   :  { %9422 = vmatpush.bf16.msrb.mxu0 %v12591_v10  ;;  %v12799_v6 = vor.u32 %v16326_v37, %v12796_v13  ;;  %v16314_v10 = vld [vmem:[#allocation9 + $0xed4] sm:$0xf]  ;;  %v12967_v13 = vor.u32 %v16368_v9, %v12964_v57  ;;  %v17933_v9 = vpop.f32.mrf.mxu0  ;;  %v13468_v57 = vld [vmem:[#allocation9 + $0x1488] sm:$0xf0] }
 0x4f6   :  { %8730 = vmatpush.bf16.msra.mxu3 %v12079_v21  ;;  %v12031_v21 = vor.u32 %v16134_v18, %v12028_v53  ;;  %v8542_v18 = vpop.f32.mrf.mxu3  ;;  %v12751_v37 = vor.u32 %v16314_v10, %v12748_v4  ;;  %18533 = vst [vmem:[#allocation20_spill] sm:$0xff] %v17933_v9  ;;  %v16494_v4 = vld [vmem:[#allocation9 + $0x1474] sm:$0xf]  ;;  %v16644_v9 = vld [vmem:[#allocation9 + $0x1924] sm:$0xf] }
 0x4f7   :  { %8782 = vmatpush.bf16.msrb.mxu1 %v12847_v22  ;;  %v13476_v22 = vld [vmem:[#allocation9 + $0x1490] sm:$0xf0]  ;;  %v16296_v18 = vld [vmem:[#allocation9 + $0xe44] sm:$0xf] }
 0x4f8   :  { %8795 = vmatpush.bf16.msrb.mxu2 %v13039_v1  ;;  %v12772_v1 = vld [vmem:[#allocation9 + $0xf18] sm:$0xf0]  ;;  %9423 = vmatmul.bf16.vlgmr.msrb.gmra.mxu0 %v17770_v36  ;;  %v13479_v47 = vor.u32 %v16495_v39, %v13476_v22  ;;  %v16548_v39 = vld [vmem:[#allocation9 + $0x1624] sm:$0xf]  ;;  %v13380_v45 = vld [vmem:[#allocation9 + $0x13d0] sm:$0xf0] }
 0x4f9   :  { %9467 = vmatpush.bf16.msra.mxu0 %v13527_v5  ;;  %v16506_v5 = vld [vmem:[#allocation9 + $0x14d4] sm:$0xf]  ;;  %v12775_v53 = vor.u32 %v16320_v61, %v12772_v1  ;;  %v13684_v22 = vld [vmem:[#allocation9 + $0x1638] sm:$0xf0] }
 0x4fa   :  { %8731 = vmatpush.bf16.msra.mxu3 %v12055_v14  ;;  %v13516_v14 = vld [vmem:[#allocation9 + $0x14e8] sm:$0xf0]  ;;  %v16302_v1 = vld [vmem:[#allocation9 + $0xe74] sm:$0xf]  ;;  %v13687_v10 = vor.u32 %v16548_v39, %v13684_v22 }
 0x4fb   :  { %8783 = vmatpush.bf16.msrb.mxu1 %v12823_v17  ;;  %v16554_v17 = vld [vmem:[#allocation9 + $0x1654] sm:$0xf]  ;;  %v13519_v38 = vor.u32 %v16506_v5, %v13516_v14  ;;  %v12652_v39 = vld [vmem:[#allocation9 + $0xe28] sm:$0xf0] }
 0x4fc   :  { %8796 = vmatpush.bf16.msrb.mxu2 %v13015_v2  ;;  %v13452_v2 = vld [vmem:[#allocation9 + $0x1460] sm:$0xf0]  ;;  %v13711_v50 = vor.u32 %v16554_v17, %v13708_v15  ;;  %v16542_v14 = vld [vmem:[#allocation9 + $0x15f4] sm:$0xf]  ;;  %v13471_v15 = vor.u32 %v16494_v4, %v13468_v57  ;;  %v16465_v4 = vld [vmem:[#allocation9 + $0x138c] sm:$0xf] }
 0x4fd   :  { %9468 = vmatpush.bf16.msra.mxu0 %v13503_v3  ;;  %v13492_v3 = vld [vmem:[#allocation9 + $0x14b8] sm:$0xf0]  ;;  %v9218_v22 = vpop.f32.mrf.mxu0  ;;  %v13356_v57 = vld [vmem:[#allocation9 + $0x13a0] sm:$0xf0] }
 0x4fe   :  { %8732 = vmatpush.bf16.msra.mxu3 %v12031_v21  ;;  %v13455_v21 = vor.u32 %v16489_v23, %v13452_v2  ;;  %v13495_v61 = vor.u32 %v16500_v59, %v13492_v3  ;;  %v16477_v59 = vld [vmem:[#allocation9 + $0x13ec] sm:$0xf]  ;;  %v16488_v2 = vld [vmem:[#allocation9 + $0x1444] sm:$0xf] }
 0x4ff   :  { %8784 = vmatpush.bf16.msrb.mxu1 %v12799_v6  ;;  %v13428_v6 = vld [vmem:[#allocation9 + $0x1430] sm:$0xf0] }
 0x500   :  { %8797 = vmatpush.bf16.msrb.mxu2 %v12991_v7  ;;  %v12700_v7 = vld [vmem:[#allocation9 + $0xe88] sm:$0xf0]  ;;  %v13431_v5 = vor.u32 %v16483_v41, %v13428_v6  ;;  %v16482_v6 = vld [vmem:[#allocation9 + $0x1414] sm:$0xf] }
 0x501   :  { %9469 = vmatpush.bf16.msra.mxu0 %v13479_v47  ;;  %v13660_v47 = vld [vmem:[#allocation9 + $0x1608] sm:$0xf0]  ;;  %v12703_v17 = vor.u32 %v16302_v1, %v12700_v7  ;;  %v16530_v1 = vld [vmem:[#allocation9 + $0x1594] sm:$0xf] }
 0x502   :  { %8733 = vmatpush.bf16.msra.mxu3 %v12007_v33  ;;  %v13404_v33 = vld [vmem:[#allocation9 + $0x1400] sm:$0xf0]  ;;  %v13663_v23 = vor.u32 %v16542_v14, %v13660_v47  ;;  %v13612_v7 = vld [vmem:[#allocation9 + $0x15a8] sm:$0xf0]  ;;  %v16699_v14 = vld [vmem:[#allocation9 + $0x1adc] sm:$0xf] }
 0x503   :  { %8785 = vmatpush.bf16.msrb.mxu1 %v12775_v53  ;;  %v12676_v53 = vld [vmem:[#allocation9 + $0xe58] sm:$0xf0] }
 0x504   :  { %8798 = vmatpush.bf16.msrb.mxu2 %v12967_v13  ;;  %v13407_v13 = vor.u32 %v16477_v59, %v13404_v33  ;;  %v14292_v59 = vld [vmem:[#allocation9 + $0x1af0] sm:$0xf0]  ;;  %v16284_v33 = vld [vmem:[#allocation9 + $0xde4] sm:$0xf] }
 0x505   :  { %8734 = vmatmul.bf16.vlgmr.msra.gmra.mxu3 %v17744_v24  ;;  %9470 = vmatpush.bf16.msra.mxu0 %v13455_v21  ;;  %v16290_v21 = vld [vmem:[#allocation9 + $0xe14] sm:$0xf] }
 0x506   :  { %8765 = vmatpush.bf16.msrb.mxu3 %v12751_v37  ;;  %8786 = vmatmul.bf16.vlgmr.msrb.gmra.mxu1 %v17802_v44  ;;  %v13444_v37 = vld [vmem:[#allocation9 + $0x1458] sm:$0xf0] }
 0x507   :  { %8817 = vmatpush.bf16.msra.mxu1 %v13519_v38  ;;  %8799 = vmatmul.bf16.vlgmr.msrb.gmra.mxu2 %v17784_v40  ;;  %v16536_v38 = vld [vmem:[#allocation9 + $0x15c4] sm:$0xf]  ;;  %v13447_v3 = vor.u32 %v16488_v2, %v13444_v37  ;;  %v13588_v37 = vld [vmem:[#allocation9 + $0x1578] sm:$0xf0] }
 0x508   :  { %8830 = vmatpush.bf16.msra.mxu2 %v13711_v50  ;;  %v12679_v50 = vor.u32 %v16296_v18, %v12676_v53  ;;  %v13639_v41 = vor.u32 %v16536_v38, %v13636_v12  ;;  %v16476_v18 = vld [vmem:[#allocation9 + $0x13e4] sm:$0xf]  ;;  %v13396_v53 = vld [vmem:[#allocation9 + $0x13f8] sm:$0xf0]  ;;  %v16693_v12 = vld [vmem:[#allocation9 + $0x1aac] sm:$0xf] }
 0x509   :  { %9471 = vmatpush.bf16.msra.mxu0 %v13431_v5  ;;  %v12655_v5 = vor.u32 %v16290_v21, %v12652_v39  ;;  %v16524_v2 = vld [vmem:[#allocation9 + $0x1564] sm:$0xf]  ;;  %v12604_v21 = vld [vmem:[#allocation9 + $0xdc8] sm:$0xf0] }
 0x50a   :  { %8766 = vmatpush.bf16.msrb.mxu3 %v12727_v56  ;;  %v13420_v56 = vld [vmem:[#allocation9 + $0x1428] sm:$0xf0]  ;;  %v13591_v22 = vor.u32 %v16524_v2, %v13588_v37  ;;  %v13540_v37 = vld [vmem:[#allocation9 + $0x1518] sm:$0xf0] }
 0x50b   :  { %8818 = vmatpush.bf16.msra.mxu1 %v13495_v61  ;;  %v13383_v61 = vor.u32 %v16471_v42, %v13380_v45  ;;  %v13423_v47 = vor.u32 %v16482_v6, %v13420_v56  ;;  %v8579_v42 = vpop.f32.mrf.mxu3  ;;  %v13399_v45 = vor.u32 %v16476_v18, %v13396_v53  ;;  %v13372_v6 = vld [vmem:[#allocation9 + $0x13c8] sm:$0xf0]  ;;  %v17941_v56 = vpop.f32.mrf.mxu2  ;;  %v16512_v53 = vld [vmem:[#allocation9 + $0x1504] sm:$0xf] }
 0x50c   :  { %8831 = vmatpush.bf16.msra.mxu2 %v13687_v10  ;;  %v17938_v10 = vpop.f32.mrf.mxu1  ;;  %v8580_v39 = vadd.f32 %v8579_v42, %v17931_v63  ;;  %v13324_v2 = vld [vmem:[#allocation9 + $0x1368] sm:$0xf0] }
 0x50d   :  { %9472 = vmatpush.bf16.msra.mxu0 %v13407_v13  ;;  %v14295_v13 = vor.u32 %v16699_v14, %v14292_v59  ;;  %v16687_v14 = vld [vmem:[#allocation9 + $0x1a7c] sm:$0xf]  ;;  %v16272_v59 = vld [vmem:[#allocation9 + $0xd84] sm:$0xf] }
 0x50e   :  { %8767 = vmatpush.bf16.msrb.mxu3 %v12703_v17  ;;  %v12628_v17 = vld [vmem:[#allocation9 + $0xdf8] sm:$0xf0] }
 0x50f   :  { %8819 = vmatpush.bf16.msra.mxu1 %v13471_v15  ;;  %v13615_v15 = vor.u32 %v16530_v1, %v13612_v7  ;;  %v12631_v38 = vor.u32 %v16284_v33, %v12628_v17  ;;  %v13564_v1 = vld [vmem:[#allocation9 + $0x1548] sm:$0xf0]  ;;  %v8593_v7 = vadd.f32 %v17923_v48, %v8580_v39  ;;  %v12580_v33 = vld [vmem:[#allocation9 + $0xd98] sm:$0xf0]  ;;  %v16464_v17 = vld [vmem:[#allocation9 + $0x1384] sm:$0xf] }
 0x510   :  { %8832 = vmatpush.bf16.msra.mxu2 %v13663_v23  ;;  %v13359_v23 = vor.u32 %v16465_v4, %v13356_v57  ;;  %v12583_v42 = vor.u32 %v16272_v59, %v12580_v33  ;;  %v16681_v39 = vld [vmem:[#allocation9 + $0x1a4c] sm:$0xf]  ;;  %v16675_v59 = vld [vmem:[#allocation9 + $0x1a1c] sm:$0xf] }
 0x511   :  { %9473 = vmatpush.bf16.msra.mxu0 %v13383_v61  ;;  %v16518_v61 = vld [vmem:[#allocation9 + $0x1534] sm:$0xf]  ;;  %v17946_v48 = vadd.f32 %v17926_v28, %v8593_v7  ;;  %v16452_v28 = vld [vmem:[#allocation9 + $0x1324] sm:$0xf] }
 0x512   :  { %8768 = vmatpush.bf16.msrb.mxu3 %v12679_v50  ;;  %v14268_v50 = vld [vmem:[#allocation9 + $0x1ac0] sm:$0xf0]  ;;  %v13567_v18 = vor.u32 %v16518_v61, %v13564_v1  ;;  %v13300_v1 = vld [vmem:[#allocation9 + $0x1338] sm:$0xf0] }
 0x513   :  { %8820 = vmatpush.bf16.msra.mxu1 %v13447_v3  ;;  %v16278_v3 = vld [vmem:[#allocation9 + $0xdb4] sm:$0xf]  ;;  %v14271_v57 = vor.u32 %v16693_v12, %v14268_v50  ;;  %v14284_v50 = vld [vmem:[#allocation9 + $0x1ae8] sm:$0xf0]  ;;  %v8646_v7 = vpop.f32.mrf.mxu2  ;;  %v13303_v33 = vor.u32 %v16452_v28, %v13300_v1  ;;  %v14212_v28 = vld [vmem:[#allocation9 + $0x1a58] sm:$0xf0] }
 0x514   :  { %8833 = vmatpush.bf16.msra.mxu2 %v13639_v41  ;;  %v16470_v41 = vld [vmem:[#allocation9 + $0x13b4] sm:$0xf]  ;;  %v8633_v4 = vpop.f32.mrf.mxu1  ;;  %v16663_v1 = vld [vmem:[#allocation9 + $0x19bc] sm:$0xf] }
 0x515   :  { %9474 = vmatpush.bf16.msra.mxu0 %v13359_v23  ;;  %v13375_v63 = vor.u32 %v16470_v41, %v13372_v6  ;;  %v16458_v23 = vld [vmem:[#allocation9 + $0x1354] sm:$0xf]  ;;  %v13543_v6 = vor.u32 %v16512_v53, %v13540_v37  ;;  %v17948_v53 = vpop.f32.mrf.mxu0  ;;  %v14044_v37 = vld [vmem:[#allocation9 + $0x1908] sm:$0xf0] }
 0x516   :  { %8769 = vmatpush.bf16.msrb.mxu3 %v12655_v5  ;;  %v12607_v5 = vor.u32 %v16278_v3, %v12604_v21  ;;  %v8581_v3 = vpop.f32.mrf.mxu3  ;;  %v13327_v41 = vor.u32 %v16458_v23, %v13324_v2  ;;  %18534 = vst [vmem:[#allocation21_spill] sm:$0xff] %v17948_v53  ;;  %v16638_v2 = vld [vmem:[#allocation9 + $0x18f4] sm:$0xf]  ;;  %v17028_v53 = vld [vmem:[#allocation9 + $0x2524] sm:$0xf] }
 0x517   :  { %8821 = vmatpush.bf16.msra.mxu1 %v13423_v47  ;;  %v14244_v47 = vld [vmem:[#allocation9 + $0x1a90] sm:$0xf0]  ;;  %v16440_v3 = vld [vmem:[#allocation9 + $0x12c4] sm:$0xf] }
 0x518   :  { %8834 = vmatpush.bf16.msra.mxu2 %v13615_v15  ;;  %v13348_v15 = vld [vmem:[#allocation9 + $0x1398] sm:$0xf0]  ;;  %9475 = vmatmul.bf16.vlgmr.msra.gmra.mxu0 %v17818_v25  ;;  %v14247_v12 = vor.u32 %v16687_v14, %v14244_v47  ;;  %v16692_v14 = vld [vmem:[#allocation9 + $0x1aa4] sm:$0xf]  ;;  %v14148_v7 = vld [vmem:[#allocation9 + $0x19d0] sm:$0xf0] }
 0x519   :  { %9519 = vmatpush.bf16.msrb.mxu0 %v14295_v13  ;;  %v16650_v13 = vld [vmem:[#allocation9 + $0x1954] sm:$0xf]  ;;  %v13351_v21 = vor.u32 %v16464_v17, %v13348_v15  ;;  %v14260_v47 = vld [vmem:[#allocation9 + $0x1ab8] sm:$0xf0] }
 0x51a   :  { %8770 = vmatpush.bf16.msrb.mxu3 %v12631_v38  ;;  %v14092_v38 = vld [vmem:[#allocation9 + $0x1968] sm:$0xf0]  ;;  %v16446_v15 = vld [vmem:[#allocation9 + $0x12f4] sm:$0xf]  ;;  %v14263_v23 = vor.u32 %v16692_v14, %v14260_v47 }
 0x51b   :  { %8822 = vmatpush.bf16.msra.mxu1 %v13399_v45  ;;  %v16698_v45 = vld [vmem:[#allocation9 + $0x1ad4] sm:$0xf]  ;;  %v14095_v61 = vor.u32 %v16650_v13, %v14092_v38  ;;  %v13228_v14 = vld [vmem:[#allocation9 + $0x12a8] sm:$0xf0] }
 0x51c   :  { %8835 = vmatpush.bf16.msra.mxu2 %v13591_v22  ;;  %v14220_v22 = vld [vmem:[#allocation9 + $0x1a60] sm:$0xf0]  ;;  %v14287_v4 = vor.u32 %v16698_v45, %v14284_v50  ;;  %v16686_v38 = vld [vmem:[#allocation9 + $0x1a74] sm:$0xf]  ;;  %v14047_v50 = vor.u32 %v16638_v2, %v14044_v37  ;;  %v16657_v2 = vld [vmem:[#allocation9 + $0x198c] sm:$0xf] }
 0x51d   :  { %9520 = vmatpush.bf16.msrb.mxu0 %v14271_v57  ;;  %v14068_v57 = vld [vmem:[#allocation9 + $0x1938] sm:$0xf0]  ;;  %v9270_v47 = vpop.f32.mrf.mxu0  ;;  %v14124_v37 = vld [vmem:[#allocation9 + $0x19a0] sm:$0xf0] }
 0x51e   :  { %8771 = vmatpush.bf16.msrb.mxu3 %v12607_v5  ;;  %v14223_v5 = vor.u32 %v16681_v39, %v14220_v22  ;;  %v14071_v17 = vor.u32 %v16644_v9, %v14068_v57  ;;  %v16669_v9 = vld [vmem:[#allocation9 + $0x19ec] sm:$0xf]  ;;  %v16632_v22 = vld [vmem:[#allocation9 + $0x18c4] sm:$0xf] }
 0x51f   :  { %8823 = vmatpush.bf16.msra.mxu1 %v13375_v63  ;;  %v14196_v63 = vld [vmem:[#allocation9 + $0x1a30] sm:$0xf0] }
 0x520   :  { %8836 = vmatpush.bf16.msra.mxu2 %v13567_v18  ;;  %v13276_v18 = vld [vmem:[#allocation9 + $0x1308] sm:$0xf0]  ;;  %v14199_v13 = vor.u32 %v16675_v59, %v14196_v63  ;;  %v16626_v63 = vld [vmem:[#allocation9 + $0x1894] sm:$0xf] }
 0x521   :  { %9521 = vmatpush.bf16.msrb.mxu0 %v14247_v12  ;;  %v14236_v12 = vld [vmem:[#allocation9 + $0x1a88] sm:$0xf0]  ;;  %v13279_v45 = vor.u32 %v16446_v15, %v13276_v18  ;;  %v16674_v15 = vld [vmem:[#allocation9 + $0x1a14] sm:$0xf] }
 0x522   :  { %8772 = vmatpush.bf16.msrb.mxu3 %v12583_v42  ;;  %v14172_v42 = vld [vmem:[#allocation9 + $0x1a00] sm:$0xf0]  ;;  %v14239_v39 = vor.u32 %v16686_v38, %v14236_v12  ;;  %v14188_v18 = vld [vmem:[#allocation9 + $0x1a28] sm:$0xf0]  ;;  %v16891_v38 = vld [vmem:[#allocation9 + $0x20dc] sm:$0xf] }
 0x523   :  { %8824 = vmatpush.bf16.msra.mxu1 %v13351_v21  ;;  %v13252_v21 = vld [vmem:[#allocation9 + $0x12d8] sm:$0xf0] }
 0x524   :  { %8837 = vmatpush.bf16.msra.mxu2 %v13543_v6  ;;  %v14175_v6 = vor.u32 %v16669_v9, %v14172_v42  ;;  %v15060_v9 = vld [vmem:[#allocation9 + $0x20f0] sm:$0xf0]  ;;  %v16428_v42 = vld [vmem:[#allocation9 + $0x1264] sm:$0xf] }
 0x525   :  { %8773 = vmatmul.bf16.vlgmr.msrb.gmra.mxu3 %v17770_v36  ;;  %9522 = vmatpush.bf16.msrb.mxu0 %v14223_v5  ;;  %v16434_v5 = vld [vmem:[#allocation9 + $0x1294] sm:$0xf] }
 0x526   :  { %8804 = vmatpush.bf16.msra.mxu3 %v13327_v41  ;;  %8825 = vmatmul.bf16.vlgmr.msra.gmra.mxu1 %v17818_v25  ;;  %v14020_v41 = vld [vmem:[#allocation9 + $0x18d8] sm:$0xf0] }
 0x527   :  { %8856 = vmatpush.bf16.msrb.mxu1 %v14095_v61  ;;  %8838 = vmatmul.bf16.vlgmr.msra.gmra.mxu2 %v17806_v46  ;;  %v16680_v61 = vld [vmem:[#allocation9 + $0x1a44] sm:$0xf]  ;;  %v14023_v57 = vor.u32 %v16632_v22, %v14020_v41  ;;  %v14164_v41 = vld [vmem:[#allocation9 + $0x19f8] sm:$0xf0] }
 0x528   :  { %8869 = vmatpush.bf16.msrb.mxu2 %v14287_v4  ;;  %v13255_v4 = vor.u32 %v16440_v3, %v13252_v21  ;;  %v14215_v59 = vor.u32 %v16680_v61, %v14212_v28  ;;  %v16620_v3 = vld [vmem:[#allocation9 + $0x1864] sm:$0xf]  ;;  %v13972_v21 = vld [vmem:[#allocation9 + $0x1878] sm:$0xf0]  ;;  %v16885_v28 = vld [vmem:[#allocation9 + $0x20ac] sm:$0xf] }
 0x529   :  { %9523 = vmatpush.bf16.msrb.mxu0 %v14199_v13  ;;  %v13231_v13 = vor.u32 %v16434_v5, %v13228_v14  ;;  %v16668_v22 = vld [vmem:[#allocation9 + $0x19e4] sm:$0xf]  ;;  %v13180_v5 = vld [vmem:[#allocation9 + $0x1248] sm:$0xf0] }
 0x52a   :  { %8805 = vmatpush.bf16.msra.mxu3 %v13303_v33  ;;  %v13996_v33 = vld [vmem:[#allocation9 + $0x18a8] sm:$0xf0]  ;;  %v14167_v47 = vor.u32 %v16668_v22, %v14164_v41  ;;  %v14116_v41 = vld [vmem:[#allocation9 + $0x1998] sm:$0xf0] }
 0x52b   :  { %8857 = vmatpush.bf16.msrb.mxu1 %v14071_v17  ;;  %v14151_v17 = vor.u32 %v16663_v1, %v14148_v7  ;;  %v13999_v12 = vor.u32 %v16626_v63, %v13996_v33  ;;  %v8618_v1 = vpop.f32.mrf.mxu3  ;;  %v13975_v7 = vor.u32 %v16620_v3, %v13972_v21  ;;  %v13948_v63 = vld [vmem:[#allocation9 + $0x1848] sm:$0xf0]  ;;  %v17956_v33 = vpop.f32.mrf.mxu2 }
 0x52c   :  { %8870 = vmatpush.bf16.msrb.mxu2 %v14263_v23  ;;  %v17953_v23 = vpop.f32.mrf.mxu1  ;;  %v8619_v14 = vadd.f32 %v8618_v1, %v17946_v48  ;;  %v13900_v22 = vld [vmem:[#allocation9 + $0x17e8] sm:$0xf0] }
 0x52d   :  { %9524 = vmatpush.bf16.msrb.mxu0 %v14175_v6  ;;  %v15063_v6 = vor.u32 %v16891_v38, %v15060_v9  ;;  %v16879_v38 = vld [vmem:[#allocation9 + $0x207c] sm:$0xf]  ;;  %v16416_v9 = vld [vmem:[#allocation9 + $0x1204] sm:$0xf] }
 0x52e   :  { %8806 = vmatpush.bf16.msra.mxu3 %v13279_v45  ;;  %v13204_v45 = vld [vmem:[#allocation9 + $0x1278] sm:$0xf0] }
 0x52f   :  { %8858 = vmatpush.bf16.msrb.mxu1 %v14047_v50  ;;  %v14191_v50 = vor.u32 %v16674_v15, %v14188_v18  ;;  %v13207_v61 = vor.u32 %v16428_v42, %v13204_v45  ;;  %v14140_v15 = vld [vmem:[#allocation9 + $0x19c8] sm:$0xf0]  ;;  %v8632_v18 = vadd.f32 %v17938_v10, %v8619_v14  ;;  %v13156_v42 = vld [vmem:[#allocation9 + $0x1218] sm:$0xf0]  ;;  %v16608_v45 = vld [vmem:[#allocation9 + $0x1804] sm:$0xf] }
 0x530   :  { %8871 = vmatpush.bf16.msrb.mxu2 %v14239_v39  ;;  %v14127_v39 = vor.u32 %v16657_v2, %v14124_v37  ;;  %v16656_v10 = vld [vmem:[#allocation9 + $0x1984] sm:$0xf]  ;;  %v13159_v1 = vor.u32 %v16416_v9, %v13156_v42  ;;  %v16867_v9 = vld [vmem:[#allocation9 + $0x201c] sm:$0xf] }
 0x531   :  { %9525 = vmatpush.bf16.msrb.mxu0 %v14151_v17  ;;  %v16662_v17 = vld [vmem:[#allocation9 + $0x19b4] sm:$0xf]  ;;  %v17960_v3 = vadd.f32 %v17941_v56, %v8632_v18  ;;  %v14988_v14 = vld [vmem:[#allocation9 + $0x2060] sm:$0xf0] }
 0x532   :  { %8807 = vmatpush.bf16.msra.mxu3 %v13255_v4  ;;  %v15036_v4 = vld [vmem:[#allocation9 + $0x20c0] sm:$0xf0]  ;;  %v14143_v21 = vor.u32 %v16662_v17, %v14140_v15  ;;  %v13876_v15 = vld [vmem:[#allocation9 + $0x17b8] sm:$0xf0] }
 0x533   :  { %8859 = vmatpush.bf16.msrb.mxu1 %v14023_v57  ;;  %v16422_v57 = vld [vmem:[#allocation9 + $0x1234] sm:$0xf]  ;;  %v15039_v37 = vor.u32 %v16885_v28, %v15036_v4  ;;  %18535 = vst [vmem:[#allocation22_spill] sm:$0xff] %v17960_v3  ;;  %v15052_v4 = vld [vmem:[#allocation9 + $0x20e8] sm:$0xf0]  ;;  %v8685_v18 = vpop.f32.mrf.mxu2 }
 0x534   :  { %8872 = vmatpush.bf16.msrb.mxu2 %v14215_v59  ;;  %v16614_v59 = vld [vmem:[#allocation9 + $0x1834] sm:$0xf]  ;;  %v8672_v2 = vpop.f32.mrf.mxu1  ;;  %v16596_v17 = vld [vmem:[#allocation9 + $0x17a4] sm:$0xf] }
 0x535   :  { %9526 = vmatpush.bf16.msrb.mxu0 %v14127_v39  ;;  %v13951_v48 = vor.u32 %v16614_v59, %v13948_v63  ;;  %v16602_v39 = vld [vmem:[#allocation9 + $0x17d4] sm:$0xf]  ;;  %v16836_v3 = vld [vmem:[#allocation9 + $0x1f24] sm:$0xf]  ;;  %v13879_v42 = vor.u32 %v16596_v17, %v13876_v15  ;;  %v14980_v17 = vld [vmem:[#allocation9 + $0x2058] sm:$0xf0] }
 0x536   :  { %8808 = vmatpush.bf16.msra.mxu3 %v13231_v13  ;;  %v13183_v13 = vor.u32 %v16422_v57, %v13180_v5  ;;  %v8620_v57 = vpop.f32.mrf.mxu3  ;;  %v16873_v5 = vld [vmem:[#allocation9 + $0x204c] sm:$0xf]  ;;  %v13903_v59 = vor.u32 %v16602_v39, %v13900_v22  ;;  %v16830_v22 = vld [vmem:[#allocation9 + $0x1ef4] sm:$0xf]  ;;  %v16855_v15 = vld [vmem:[#allocation9 + $0x1fbc] sm:$0xf] }
 0x537   :  { %8860 = vmatpush.bf16.msrb.mxu1 %v13999_v12  ;;  %v15012_v12 = vld [vmem:[#allocation9 + $0x2090] sm:$0xf0]  ;;  %v16584_v57 = vld [vmem:[#allocation9 + $0x1744] sm:$0xf] }
 0x538   :  { %8873 = vmatpush.bf16.msrb.mxu2 %v14191_v50  ;;  %v13924_v50 = vld [vmem:[#allocation9 + $0x1818] sm:$0xf0]  ;;  %9527 = vmatmul.bf16.vlgmr.msrb.gmra.mxu0 %v17822_v58  ;;  %v15015_v28 = vor.u32 %v16879_v38, %v15012_v12  ;;  %v16884_v38 = vld [vmem:[#allocation9 + $0x20a4] sm:$0xf]  ;;  %v14916_v18 = vld [vmem:[#allocation9 + $0x1fd0] sm:$0xf0] }
 0x539   :  { %9571 = vmatpush.bf16.msra.mxu0 %v15063_v6  ;;  %v16842_v6 = vld [vmem:[#allocation9 + $0x1f54] sm:$0xf]  ;;  %v13927_v56 = vor.u32 %v16608_v45, %v13924_v50  ;;  %v15028_v12 = vld [vmem:[#allocation9 + $0x20b8] sm:$0xf0] }
 0x53a   :  { %8809 = vmatpush.bf16.msra.mxu3 %v13207_v61  ;;  %v14860_v61 = vld [vmem:[#allocation9 + $0x1f68] sm:$0xf0]  ;;  %v16590_v50 = vld [vmem:[#allocation9 + $0x1774] sm:$0xf]  ;;  %v15031_v39 = vor.u32 %v16884_v38, %v15028_v12 }
 0x53b   :  { %8861 = vmatpush.bf16.msrb.mxu1 %v13975_v7  ;;  %v16890_v7 = vld [vmem:[#allocation9 + $0x20d4] sm:$0xf]  ;;  %v14863_v63 = vor.u32 %v16842_v6, %v14860_v61  ;;  %v13804_v38 = vld [vmem:[#allocation9 + $0x1728] sm:$0xf0] }
 0x53c   :  { %8874 = vmatpush.bf16.msrb.mxu2 %v14167_v47  ;;  %v14119_v47 = vor.u32 %v16656_v10, %v14116_v41  ;;  %v15055_v2 = vor.u32 %v16890_v7, %v15052_v4  ;;  %v17963_v10 = vpop.f32.mrf.mxu0  ;;  %v14812_v41 = vld [vmem:[#allocation9 + $0x1f08] sm:$0xf0]  ;;  %v16878_v61 = vld [vmem:[#allocation9 + $0x2074] sm:$0xf] }
 0x53d   :  { %9572 = vmatpush.bf16.msra.mxu0 %v15039_v37  ;;  %v14836_v37 = vld [vmem:[#allocation9 + $0x1f38] sm:$0xf0]  ;;  %18536 = vst [vmem:[#allocation23_spill] sm:$0xff] %v17963_v10  ;;  %v14815_v4 = vor.u32 %v16830_v22, %v14812_v41  ;;  %v16849_v22 = vld [vmem:[#allocation9 + $0x1f8c] sm:$0xf] }
 0x53e   :  { %8810 = vmatpush.bf16.msra.mxu3 %v13183_v13  ;;  %v14991_v13 = vor.u32 %v16873_v5, %v14988_v14  ;;  %v14839_v45 = vor.u32 %v16836_v3, %v14836_v37  ;;  %v16861_v3 = vld [vmem:[#allocation9 + $0x1fec] sm:$0xf]  ;;  %v16824_v14 = vld [vmem:[#allocation9 + $0x1ec4] sm:$0xf] }
 0x53f   :  { %8862 = vmatpush.bf16.msrb.mxu1 %v13951_v48  ;;  %v14964_v48 = vld [vmem:[#allocation9 + $0x2030] sm:$0xf0]  ;;  %v14892_v41 = vld [vmem:[#allocation9 + $0x1fa0] sm:$0xf0] }
 0x540   :  { %8875 = vmatpush.bf16.msrb.mxu2 %v14143_v21  ;;  %v13852_v21 = vld [vmem:[#allocation9 + $0x1788] sm:$0xf0]  ;;  %v14967_v6 = vor.u32 %v16867_v9, %v14964_v48  ;;  %v16818_v48 = vld [vmem:[#allocation9 + $0x1e94] sm:$0xf] }
 0x541   :  { %9573 = vmatpush.bf16.msra.mxu0 %v15015_v28  ;;  %v15004_v28 = vld [vmem:[#allocation9 + $0x2088] sm:$0xf0]  ;;  %v13855_v7 = vor.u32 %v16590_v50, %v13852_v21  ;;  %v16866_v50 = vld [vmem:[#allocation9 + $0x2014] sm:$0xf] }
 0x542   :  { %8811 = vmatpush.bf16.msra.mxu3 %v13159_v1  ;;  %v14940_v1 = vld [vmem:[#allocation9 + $0x2000] sm:$0xf0]  ;;  %v15007_v5 = vor.u32 %v16878_v61, %v15004_v28  ;;  %v14956_v21 = vld [vmem:[#allocation9 + $0x2028] sm:$0xf0]  ;;  %v11034_v61 = vld [vmem:[#allocation9 + $0x160] sm:$0xf] }
 0x543   :  { %8863 = vmatpush.bf16.msrb.mxu1 %v13927_v56  ;;  %v13828_v56 = vld [vmem:[#allocation9 + $0x1758] sm:$0xf0] }
 0x544   :  { %8876 = vmatpush.bf16.msrb.mxu2 %v14119_v47  ;;  %v14943_v47 = vor.u32 %v16861_v3, %v14940_v1  ;;  %v9322_v12 = vpop.f32.mrf.mxu0  ;;  %v15887_v3 = vld [vmem:[#allocation9 + $0x174] sm:$0xf0]  ;;  %v16572_v1 = vld [vmem:[#allocation9 + $0x16e4] sm:$0xf] }
 0x545   :  { %8812 = vmatmul.bf16.vlgmr.msra.gmra.mxu3 %v17789_v43  ;;  %9574 = vmatpush.bf16.msra.mxu0 %v14991_v13  ;;  %v16578_v13 = vld [vmem:[#allocation9 + $0x1714] sm:$0xf]  ;;  %v13756_v12 = vld [vmem:[#allocation9 + $0x16c8] sm:$0xf0] }
 0x546   :  { %8843 = vmatpush.bf16.msrb.mxu3 %v13903_v59  ;;  %8864 = vmatmul.bf16.vlgmr.msrb.gmra.mxu1 %v17845_v31  ;;  %v14788_v59 = vld [vmem:[#allocation9 + $0x1ed8] sm:$0xf0] }
 0x547   :  { %8908 = vmatpush.bf16.msra.mxu1 %v14863_v63  ;;  %8877 = vmatmul.bf16.vlgmr.msrb.gmra.mxu2 %v17822_v58  ;;  %v16872_v63 = vld [vmem:[#allocation9 + $0x2044] sm:$0xf]  ;;  %v14791_v37 = vor.u32 %v16824_v14, %v14788_v59  ;;  %v14740_v14 = vld [vmem:[#allocation9 + $0x1e78] sm:$0xf0]  ;;  %v14895_v59 = vor.u32 %v16849_v22, %v14892_v41  ;;  %v14908_v22 = vld [vmem:[#allocation9 + $0x1fc8] sm:$0xf0] }
 0x548   :  { %8921 = vmatpush.bf16.msra.mxu2 %v15055_v2  ;;  %v13831_v2 = vor.u32 %v16584_v57, %v13828_v56  ;;  %v14983_v9 = vor.u32 %v16872_v63, %v14980_v17  ;;  %v17100_v57 = vld [vmem:[#allocation10] sm:$0x3f]  ;;  %v14932_v63 = vld [vmem:[#allocation9 + $0x1ff8] sm:$0xf0]  ;;  %v11035_v17 = vor.u32 %v15887_v3, %v11034_v61 }
 0x549   :  { %9575 = vmatpush.bf16.msra.mxu0 %v14967_v6  ;;  %v13807_v6 = vor.u32 %v16578_v13, %v13804_v38  ;;  %v2312_v56 = vperm.slane %v17100_v57, 1  ;;  %v15881_v13 = vld [vmem:[#allocation9 + $0x144] sm:$0xf0]  ;;  %v16566_v38 = vld [vmem:[#allocation9 + $0x16b4] sm:$0xf] }
 0x54a   :  { %8844 = vmatpush.bf16.msrb.mxu3 %v13879_v42  ;;  %v14764_v42 = vld [vmem:[#allocation9 + $0x1ea8] sm:$0xf0]  ;;  %v10986_v3 = vld [vmem:[#allocation9 + $0x100] sm:$0xf]  ;;  %v13732_v57 = vld [vmem:[#allocation9 + $0x1698] sm:$0xf0] }
 0x54b   :  { %8909 = vmatpush.bf16.msra.mxu1 %v14839_v45  ;;  %v14919_v45 = vor.u32 %v16855_v15, %v14916_v18  ;;  %v14767_v28 = vor.u32 %v16818_v48, %v14764_v42  ;;  %v11010_v18 = vld [vmem:[#allocation9 + $0x130] sm:$0xf]  ;;  %v16806_v42 = vld [vmem:[#allocation9 + $0x1e34] sm:$0xf] }
 0x54c   :  { %8922 = vmatpush.bf16.msra.mxu2 %v15031_v39  ;;  %v17968_v39 = vpop.f32.mrf.mxu1  ;;  %v11011_v61 = vor.u32 %v15881_v13, %v11010_v18  ;;  %v15628_v18 = vld [vmem:[#allocation9 + $0x2568] sm:$0xf0]  ;;  %v11026_v13 = vld [vmem:[#allocation9 + $0x158] sm:$0xf] }
 0x54d   :  { %9576 = vmatpush.bf16.msra.mxu0 %v14943_v47  ;;  %v16860_v47 = vld [vmem:[#allocation9 + $0x1fe4] sm:$0xf] }
 0x54e   :  { %8845 = vmatpush.bf16.msrb.mxu3 %v13855_v7  ;;  %v13780_v7 = vld [vmem:[#allocation9 + $0x16f8] sm:$0xf0]  ;;  %v14935_v48 = vor.u32 %v16860_v47, %v14932_v63  ;;  %v16746_v47 = vld [vmem:[#allocation9 + $0x1c54] sm:$0xf]  ;;  %v14476_v63 = vld [vmem:[#allocation9 + $0x1c68] sm:$0xf0] }
 0x54f   :  { %8910 = vmatpush.bf16.msra.mxu1 %v14815_v4  ;;  %v14959_v4 = vor.u32 %v16866_v50, %v14956_v21  ;;  %v13783_v15 = vor.u32 %v16572_v1, %v13780_v7  ;;  %v14716_v50 = vld [vmem:[#allocation9 + $0x1e48] sm:$0xf0]  ;;  %v16854_v21 = vld [vmem:[#allocation9 + $0x1fb4] sm:$0xf]  ;;  %v15875_v1 = vld [vmem:[#allocation9 + $0x114] sm:$0xf0] }
 0x550   :  { %8923 = vmatpush.bf16.msra.mxu2 %v15007_v5  ;;  %v16812_v5 = vld [vmem:[#allocation9 + $0x1e64] sm:$0xf] }
 0x551   :  { %9577 = vmatpush.bf16.msra.mxu0 %v14919_v45  ;;  %v17970_v45 = vpop.f32.mrf.mxu2  ;;  %v16560_v7 = vld [vmem:[#allocation9 + $0x1684] sm:$0xf] }
 0x552   :  { %8846 = vmatpush.bf16.msrb.mxu3 %v13831_v2  ;;  %v8657_v2 = vpop.f32.mrf.mxu3 }
 0x553   :  { %8911 = vmatpush.bf16.msra.mxu1 %v14791_v37  ;;  %v14743_v37 = vor.u32 %v16812_v5, %v14740_v14  ;;  %v14692_v5 = vld [vmem:[#allocation9 + $0x1e18] sm:$0xf0]  ;;  %v14911_v14 = vor.u32 %v16854_v21, %v14908_v22 }
 0x554   :  { %8924 = vmatpush.bf16.msra.mxu2 %v14983_v9  ;;  %v8658_v9 = vadd.f32 %v8657_v2, %v2312_v56  ;;  %v16800_v56 = vld [vmem:[#allocation9 + $0x1e04] sm:$0xf]  ;;  %v10987_v2 = vor.u32 %v15875_v1, %v10986_v3  ;;  %v11002_v3 = vld [vmem:[#allocation9 + $0x128] sm:$0xf]  ;;  %v15880_v1 = vld [vmem:[#allocation9 + $0x13c] sm:$0xf0] }
 0x555   :  { %9578 = vmatpush.bf16.msra.mxu0 %v14895_v59  ;;  %v16848_v59 = vld [vmem:[#allocation9 + $0x1f84] sm:$0xf] }
 0x556   :  { %8847 = vmatpush.bf16.msrb.mxu3 %v13807_v6  ;;  %v8671_v41 = vadd.f32 %v17953_v23, %v8658_v9  ;;  %v8711_v6 = vpop.f32.mrf.mxu1  ;;  %v14695_v9 = vor.u32 %v16800_v56, %v14692_v5  ;;  %v16734_v5 = vld [vmem:[#allocation9 + $0x1bf4] sm:$0xf] }
 0x557   :  { %8912 = vmatpush.bf16.msra.mxu1 %v14767_v28  ;;  %v13759_v28 = vor.u32 %v16566_v38, %v13756_v12  ;;  %v15886_v38 = vld [vmem:[#allocation9 + $0x16c] sm:$0xf0] }
 0x558   :  { %8925 = vmatpush.bf16.msra.mxu2 %v14959_v4  ;;  %v14719_v4 = vor.u32 %v16806_v42, %v14716_v50  ;;  %9579 = vmatmul.bf16.vlgmr.msra.gmra.mxu0 %v17850_v62  ;;  %v17975_v23 = vadd.f32 %v17956_v33, %v8671_v41  ;;  %v15869_v42 = vld [vmem:[#allocation9 + $0xe4] sm:$0xf0]  ;;  %v14479_v50 = vor.u32 %v16746_v47, %v14476_v63  ;;  %v16740_v33 = vld [vmem:[#allocation9 + $0x1c24] sm:$0xf]  ;;  %v14452_v41 = vld [vmem:[#allocation9 + $0x1c38] sm:$0xf0] }
 0x559   :  { %9623 = vmatpush.bf16.msrb.mxu0 %v11035_v17  ;;  %v14884_v17 = vld [vmem:[#allocation9 + $0x1f98] sm:$0xf0]  ;;  %v8724_v6 = vpop.f32.mrf.mxu2  ;;  %v11027_v10 = vor.u32 %v15886_v38, %v11026_v13  ;;  %v11003_v47 = vor.u32 %v15880_v1, %v11002_v3  ;;  %v17022_v63 = vld [vmem:[#allocation9 + $0x24f4] sm:$0xf]  ;;  %v14380_v3 = vld [vmem:[#allocation9 + $0x1ba8] sm:$0xf0] }
 0x55a   :  { %8848 = vmatpush.bf16.msrb.mxu3 %v13783_v15  ;;  %v17034_v15 = vld [vmem:[#allocation9 + $0x2554] sm:$0xf]  ;;  %v8659_v12 = vpop.f32.mrf.mxu3  ;;  %v14887_v21 = vor.u32 %v16848_v59, %v14884_v17  ;;  %v17977_v59 = vpop.f32.mrf.mxu0  ;;  %v15580_v17 = vld [vmem:[#allocation9 + $0x2508] sm:$0xf0] }
 0x55b   :  { %8913 = vmatpush.bf16.msra.mxu1 %v14743_v37  ;;  %v13735_v37 = vor.u32 %v16560_v7, %v13732_v57  ;;  %v15631_v22 = vor.u32 %v17034_v15, %v15628_v18  ;;  %v10938_v7 = vld [vmem:[#allocation9 + $0xa0] sm:$0xf]  ;;  %v14455_v57 = vor.u32 %v16740_v33, %v14452_v41  ;;  %18537 = vst [vmem:[#allocation24_spill] sm:$0xff] %v17977_v59  ;;  %v10978_v18 = vld [vmem:[#allocation9 + $0xf8] sm:$0xf] }
 0x55c   :  { %8926 = vmatpush.bf16.msra.mxu2 %v14935_v48  ;;  %v10962_v48 = vld [vmem:[#allocation9 + $0xd0] sm:$0xf]  ;;  %v15583_v38 = vor.u32 %v17022_v63, %v15580_v17  ;;  %v14404_v12 = vld [vmem:[#allocation9 + $0x1bd8] sm:$0xf0]  ;;  %v10890_v33 = vld [vmem:[#allocation9 + $0x40] sm:$0xf] }
 0x55d   :  { %9624 = vmatpush.bf16.msrb.mxu0 %v11011_v61  ;;  %v15604_v61 = vld [vmem:[#allocation9 + $0x2538] sm:$0xf0]  ;;  %v15851_v41 = vld [vmem:[#allocation9 + $0x54] sm:$0xf0]  ;;  %v10866_v63 = vld [vmem:[#allocation9 + $0x10] sm:$0xf] }
 0x55e   :  { %8849 = vmatpush.bf16.msrb.mxu3 %v13759_v28  ;;  %v10963_v28 = vor.u32 %v15869_v42, %v10962_v48  ;;  %v15607_v56 = vor.u32 %v17028_v53, %v15604_v61  ;;  %v10914_v53 = vld [vmem:[#allocation9 + $0x70] sm:$0xf]  ;;  %v17016_v48 = vld [vmem:[#allocation9 + $0x24c4] sm:$0xf]  ;;  %v15556_v42 = vld [vmem:[#allocation9 + $0x24d8] sm:$0xf0] }
 0x55f   :  { %8914 = vmatpush.bf16.msra.mxu1 %v14719_v4  ;;  %v15863_v4 = vld [vmem:[#allocation9 + $0xb4] sm:$0xf0]  ;;  %v15559_v61 = vor.u32 %v17016_v48, %v15556_v42  ;;  %v15845_v17 = vld [vmem:[#allocation9 + $0x24] sm:$0xf0]  ;;  %v15856_v42 = vld [vmem:[#allocation9 + $0x7c] sm:$0xf0] }
 0x560   :  { %8927 = vmatpush.bf16.msra.mxu2 %v14911_v14  ;;  %v14428_v14 = vld [vmem:[#allocation9 + $0x1c08] sm:$0xf0]  ;;  %v10939_v15 = vor.u32 %v15863_v4, %v10938_v7  ;;  %v17010_v4 = vld [vmem:[#allocation9 + $0x2494] sm:$0xf]  ;;  %v10906_v48 = vld [vmem:[#allocation9 + $0x68] sm:$0xf] }
 0x561   :  { %9625 = vmatpush.bf16.msrb.mxu0 %v10987_v2  ;;  %v15874_v2 = vld [vmem:[#allocation9 + $0x10c] sm:$0xf0]  ;;  %v14431_v13 = vor.u32 %v16734_v5, %v14428_v14  ;;  %v10930_v5 = vld [vmem:[#allocation9 + $0x98] sm:$0xf]  ;;  %v11578_v59 = vld [vmem:[#allocation9 + $0x5a8] sm:$0xf] }
 0x562   :  { %8850 = vmatpush.bf16.msrb.mxu3 %v13735_v37  ;;  %v15857_v37 = vld [vmem:[#allocation9 + $0x84] sm:$0xf0]  ;;  %v9374_v1 = vpop.f32.mrf.mxu0  ;;  %v15862_v14 = vld [vmem:[#allocation9 + $0xac] sm:$0xf0] }
 0x563   :  { %8915 = vmatpush.bf16.msra.mxu1 %v14695_v9  ;;  %v10979_v9 = vor.u32 %v15874_v2, %v10978_v18  ;;  %v11802_v18 = vld [vmem:[#allocation9 + $0x760] sm:$0xf]  ;;  %v10907_v1 = vor.u32 %v15856_v42, %v10906_v48  ;;  %v15244_v48 = vld [vmem:[#allocation9 + $0x2268] sm:$0xf0] }
 0x564   :  { %8928 = vmatpush.bf16.msra.mxu2 %v14887_v21  ;;  %v10954_v21 = vld [vmem:[#allocation9 + $0xc8] sm:$0xf]  ;;  %v15844_v42 = vld [vmem:[#allocation9 + $0x1c] sm:$0xf0] }
 0x565   :  { %8851 = vmatmul.bf16.vlgmr.msrb.gmra.mxu3 %v17811_v54  ;;  %9626 = vmatpush.bf16.msrb.mxu0 %v10963_v28  ;;  %v16722_v28 = vld [vmem:[#allocation9 + $0x1b94] sm:$0xf] }
 0x566   :  { %8882 = vmatpush.bf16.msra.mxu3 %v14479_v50  ;;  %8916 = vmatmul.bf16.vlgmr.msra.gmra.mxu1 %v17847_v51  ;;  %v10915_v50 = vor.u32 %v15857_v37, %v10914_v53  ;;  %v16079_v53 = vld [vmem:[#allocation9 + $0x774] sm:$0xf0]  ;;  %v16716_v37 = vld [vmem:[#allocation9 + $0x1b64] sm:$0xf] }
 0x567   :  { %8960 = vmatpush.bf16.msrb.mxu1 %v15631_v22  ;;  %8929 = vmatmul.bf16.vlgmr.msra.gmra.mxu2 %v17850_v62  ;;  %v15868_v22 = vld [vmem:[#allocation9 + $0xdc] sm:$0xf0] }
 0x568   :  { %8973 = vmatpush.bf16.msrb.mxu2 %v11027_v10  ;;  %v16728_v10 = vld [vmem:[#allocation9 + $0x1bc4] sm:$0xf]  ;;  %v10955_v7 = vor.u32 %v15868_v22, %v10954_v21  ;;  %v11778_v22 = vld [vmem:[#allocation9 + $0x730] sm:$0xf] }
 0x569   :  { %9627 = vmatpush.bf16.msrb.mxu0 %v10939_v15  ;;  %v14407_v6 = vor.u32 %v16728_v10, %v14404_v12  ;;  %v14383_v15 = vor.u32 %v16722_v28, %v14380_v3  ;;  %v17004_v10 = vld [vmem:[#allocation9 + $0x2464] sm:$0xf]  ;;  %v15508_v12 = vld [vmem:[#allocation9 + $0x2478] sm:$0xf0]  ;;  %v14332_v28 = vld [vmem:[#allocation9 + $0x1b48] sm:$0xf0] }
 0x56a   :  { %8883 = vmatpush.bf16.msra.mxu3 %v14455_v57  ;;  %v15532_v57 = vld [vmem:[#allocation9 + $0x24a8] sm:$0xf0] }
 0x56b   :  { %8961 = vmatpush.bf16.msrb.mxu1 %v15607_v56  ;;  %v10891_v56 = vor.u32 %v15851_v41, %v10890_v33  ;;  %v15535_v2 = vor.u32 %v17010_v4, %v15532_v57  ;;  %v8696_v33 = vpop.f32.mrf.mxu3  ;;  %v15511_v41 = vor.u32 %v17004_v10, %v15508_v12  ;;  %v15484_v4 = vld [vmem:[#allocation9 + $0x2448] sm:$0xf0]  ;;  %v17985_v57 = vpop.f32.mrf.mxu2  ;;  %v10858_v12 = vld [vmem:[#allocation9 + $0x8] sm:$0xf] }
 0x56c   :  { %8974 = vmatpush.bf16.msrb.mxu2 %v11003_v47  ;;  %v17982_v47 = vpop.f32.mrf.mxu1  ;;  %v8697_v3 = vadd.f32 %v8696_v33, %v17975_v23 }
 0x56d   :  { %9628 = vmatpush.bf16.msrb.mxu0 %v10915_v50  ;;  %v11803_v50 = vor.u32 %v16079_v53, %v11802_v18  ;;  %v11754_v18 = vld [vmem:[#allocation9 + $0x700] sm:$0xf]  ;;  %v16704_v53 = vld [vmem:[#allocation9 + $0x1b04] sm:$0xf] }
 0x56e   :  { %8884 = vmatpush.bf16.msra.mxu3 %v14431_v13  ;;  %v14356_v13 = vld [vmem:[#allocation9 + $0x1b78] sm:$0xf0] }
 0x56f   :  { %8962 = vmatpush.bf16.msrb.mxu1 %v15583_v38  ;;  %v10931_v38 = vor.u32 %v15862_v14, %v10930_v5  ;;  %v14359_v21 = vor.u32 %v16716_v37, %v14356_v13  ;;  %v15850_v5 = vld [vmem:[#allocation9 + $0x4c] sm:$0xf0]  ;;  %v8710_v14 = vadd.f32 %v17968_v39, %v8697_v3  ;;  %v14308_v37 = vld [vmem:[#allocation9 + $0x1b18] sm:$0xf0]  ;;  %v16992_v13 = vld [vmem:[#allocation9 + $0x2404] sm:$0xf] }
 0x570   :  { %8975 = vmatpush.bf16.msrb.mxu2 %v10979_v9  ;;  %v10867_v9 = vor.u32 %v15845_v17, %v10866_v63  ;;  %v14311_v33 = vor.u32 %v16704_v53, %v14308_v37  ;;  %v11730_v3 = vld [vmem:[#allocation9 + $0x6d0] sm:$0xf]  ;;  %v11706_v53 = vld [vmem:[#allocation9 + $0x6a0] sm:$0xf] }
 0x571   :  { %9629 = vmatpush.bf16.msrb.mxu0 %v10891_v56  ;;  %v10882_v56 = vld [vmem:[#allocation9 + $0x38] sm:$0xf]  ;;  %v17990_v39 = vadd.f32 %v17970_v45, %v8710_v14  ;;  %v16932_v45 = vld [vmem:[#allocation9 + $0x2224] sm:$0xf] }
 0x572   :  { %8885 = vmatpush.bf16.msra.mxu3 %v14407_v6  ;;  %v16073_v6 = vld [vmem:[#allocation9 + $0x744] sm:$0xf0]  ;;  %v10883_v10 = vor.u32 %v15850_v5, %v10882_v56  ;;  %v15220_v5 = vld [vmem:[#allocation9 + $0x2238] sm:$0xf0] }
 0x573   :  { %8963 = vmatpush.bf16.msrb.mxu1 %v15559_v61  ;;  %v16710_v61 = vld [vmem:[#allocation9 + $0x1b34] sm:$0xf]  ;;  %v11779_v17 = vor.u32 %v16073_v6, %v11778_v22  ;;  %v16078_v6 = vld [vmem:[#allocation9 + $0x76c] sm:$0xf0]  ;;  %v8763_v14 = vpop.f32.mrf.mxu2  ;;  %v15223_v37 = vor.u32 %v16932_v45, %v15220_v5  ;;  %v16060_v45 = vld [vmem:[#allocation9 + $0x6dc] sm:$0xf0] }
 0x574   :  { %8976 = vmatpush.bf16.msrb.mxu2 %v10955_v7  ;;  %v16998_v7 = vld [vmem:[#allocation9 + $0x2434] sm:$0xf]  ;;  %v8750_v63 = vpop.f32.mrf.mxu1  ;;  %v11658_v5 = vld [vmem:[#allocation9 + $0x640] sm:$0xf]  ;;  %v16043_v14 = vld [vmem:[#allocation9 + $0x654] sm:$0xf0] }
 0x575   :  { %9630 = vmatpush.bf16.msrb.mxu0 %v10867_v9  ;;  %v15487_v23 = vor.u32 %v16998_v7, %v15484_v4  ;;  %v16938_v9 = vld [vmem:[#allocation9 + $0x2254] sm:$0xf]  ;;  %v10859_v4 = vor.u32 %v15844_v42, %v10858_v12  ;;  %v17992_v12 = vpop.f32.mrf.mxu0  ;;  %v16018_v42 = vld [vmem:[#allocation9 + $0x58c] sm:$0xf0] }
 0x576   :  { %8886 = vmatpush.bf16.msra.mxu3 %v14383_v15  ;;  %v14335_v15 = vor.u32 %v16710_v61, %v14332_v28  ;;  %v8698_v61 = vpop.f32.mrf.mxu3  ;;  %v15247_v7 = vor.u32 %v16938_v9, %v15244_v48  ;;  %18538 = vst [vmem:[#allocation25_spill] sm:$0xff] %v17992_v12  ;;  %v11554_v48 = vld [vmem:[#allocation9 + $0x578] sm:$0xf]  ;;  %v12346_v12 = vld [vmem:[#allocation9 + $0xba8] sm:$0xf] }
 0x577   :  { %8964 = vmatpush.bf16.msrb.mxu1 %v15535_v2  ;;  %v16067_v2 = vld [vmem:[#allocation9 + $0x714] sm:$0xf0]  ;;  %v16920_v61 = vld [vmem:[#allocation9 + $0x21c4] sm:$0xf] }
 0x578   :  { %8977 = vmatpush.bf16.msrb.mxu2 %v10931_v38  ;;  %v15460_v38 = vld [vmem:[#allocation9 + $0x2418] sm:$0xf0]  ;;  %9631 = vmatmul.bf16.vlgmr.msrb.gmra.mxu0 %v17722_v26  ;;  %v11755_v22 = vor.u32 %v16067_v2, %v11754_v18  ;;  %v11770_v18 = vld [vmem:[#allocation9 + $0x728] sm:$0xf]  ;;  %v16072_v2 = vld [vmem:[#allocation9 + $0x73c] sm:$0xf0] }
 0x579   :  { %9675 = vmatpush.bf16.msra.mxu0 %v11803_v50  ;;  %v11602_v50 = vld [vmem:[#allocation9 + $0x5d8] sm:$0xf]  ;;  %v15463_v28 = vor.u32 %v16992_v13, %v15460_v38  ;;  %v16926_v38 = vld [vmem:[#allocation9 + $0x21f4] sm:$0xf]  ;;  %v11771_v9 = vor.u32 %v16072_v2, %v11770_v18  ;;  %v15148_v18 = vld [vmem:[#allocation9 + $0x21a8] sm:$0xf0] }
 0x57a   :  { %8887 = vmatpush.bf16.msra.mxu3 %v14359_v21  ;;  %v16030_v21 = vld [vmem:[#allocation9 + $0x5ec] sm:$0xf0] }
 0x57b   :  { %8965 = vmatpush.bf16.msrb.mxu1 %v15511_v41  ;;  %v11794_v41 = vld [vmem:[#allocation9 + $0x758] sm:$0xf]  ;;  %v11603_v56 = vor.u32 %v16030_v21, %v11602_v50 }
 0x57c   :  { %8978 = vmatpush.bf16.msrb.mxu2 %v10907_v1  ;;  %v16061_v1 = vld [vmem:[#allocation9 + $0x6e4] sm:$0xf0]  ;;  %v11795_v63 = vor.u32 %v16078_v6, %v11794_v41  ;;  %v11746_v21 = vld [vmem:[#allocation9 + $0x6f8] sm:$0xf]  ;;  %v11555_v6 = vor.u32 %v16018_v42, %v11554_v48  ;;  %v11634_v48 = vld [vmem:[#allocation9 + $0x610] sm:$0xf] }
 0x57d   :  { %9676 = vmatpush.bf16.msra.mxu0 %v11779_v17  ;;  %v16024_v17 = vld [vmem:[#allocation9 + $0x5bc] sm:$0xf0]  ;;  %v9426_v2 = vpop.f32.mrf.mxu0  ;;  %v16037_v42 = vld [vmem:[#allocation9 + $0x624] sm:$0xf0] }
 0x57e   :  { %8888 = vmatpush.bf16.msra.mxu3 %v14335_v15  ;;  %v11731_v15 = vor.u32 %v16061_v1, %v11730_v3  ;;  %v11579_v13 = vor.u32 %v16024_v17, %v11578_v59  ;;  %v11682_v59 = vld [vmem:[#allocation9 + $0x670] sm:$0xf]  ;;  %v11530_v1 = vld [vmem:[#allocation9 + $0x548] sm:$0xf] }
 0x57f   :  { %8966 = vmatpush.bf16.msrb.mxu1 %v15487_v23  ;;  %v16055_v23 = vld [vmem:[#allocation9 + $0x6b4] sm:$0xf0] }
 0x580   :  { %8979 = vmatpush.bf16.msrb.mxu2 %v10883_v10  ;;  %v15196_v10 = vld [vmem:[#allocation9 + $0x2208] sm:$0xf0]  ;;  %v11707_v50 = vor.u32 %v16055_v23, %v11706_v53  ;;  %v11506_v23 = vld [vmem:[#allocation9 + $0x518] sm:$0xf] }
 0x581   :  { %9677 = vmatpush.bf16.msra.mxu0 %v11755_v22  ;;  %v16066_v22 = vld [vmem:[#allocation9 + $0x70c] sm:$0xf0]  ;;  %v15199_v41 = vor.u32 %v16926_v38, %v15196_v10  ;;  %v11698_v38 = vld [vmem:[#allocation9 + $0x698] sm:$0xf] }
 0x582   :  { %8889 = vmatpush.bf16.msra.mxu3 %v14311_v33  ;;  %v16049_v33 = vld [vmem:[#allocation9 + $0x684] sm:$0xf0]  ;;  %v11747_v3 = vor.u32 %v16066_v22, %v11746_v21  ;;  %v16054_v10 = vld [vmem:[#allocation9 + $0x6ac] sm:$0xf0]  ;;  %v12570_v21 = vld [vmem:[#allocation9 + $0xd60] sm:$0xf] }
 0x583   :  { %8967 = vmatpush.bf16.msrb.mxu1 %v15463_v28  ;;  %v15172_v28 = vld [vmem:[#allocation9 + $0x21d8] sm:$0xf0] }
 0x584   :  { %8980 = vmatpush.bf16.msrb.mxu2 %v10859_v4  ;;  %v11683_v4 = vor.u32 %v16049_v33, %v11682_v59  ;;  %v16271_v59 = vld [vmem:[#allocation9 + $0xd74] sm:$0xf0]  ;;  %v16908_v33 = vld [vmem:[#allocation9 + $0x2164] sm:$0xf] }
 0x585   :  { %8890 = vmatmul.bf16.vlgmr.msra.gmra.mxu3 %v17827_v8  ;;  %9678 = vmatpush.bf16.msra.mxu0 %v11731_v15  ;;  %v16914_v15 = vld [vmem:[#allocation9 + $0x2194] sm:$0xf] }
 0x586   :  { %8934 = vmatpush.bf16.msrb.mxu3 %v15247_v7  ;;  %8968 = vmatmul.bf16.vlgmr.msrb.gmra.mxu1 %v17870_v52  ;;  %v16012_v7 = vld [vmem:[#allocation9 + $0x55c] sm:$0xf0] }
 0x587   :  { %9012 = vmatpush.bf16.msra.mxu1 %v11603_v56  ;;  %8981 = vmatmul.bf16.vlgmr.msrb.gmra.mxu2 %v17722_v26  ;;  %v11722_v56 = vld [vmem:[#allocation9 + $0x6c8] sm:$0xf]  ;;  %v11531_v17 = vor.u32 %v16012_v7, %v11530_v1  ;;  %v16048_v7 = vld [vmem:[#allocation9 + $0x67c] sm:$0xf0] }
 0x588   :  { %9025 = vmatpush.bf16.msra.mxu2 %v11795_v63  ;;  %v15175_v63 = vor.u32 %v16920_v61, %v15172_v28  ;;  %v11723_v53 = vor.u32 %v16060_v45, %v11722_v56  ;;  %v11482_v61 = vld [vmem:[#allocation9 + $0x4e8] sm:$0xf]  ;;  %v16000_v28 = vld [vmem:[#allocation9 + $0x4fc] sm:$0xf0]  ;;  %v12546_v45 = vld [vmem:[#allocation9 + $0xd30] sm:$0xf] }
 0x589   :  { %9679 = vmatpush.bf16.msra.mxu0 %v11707_v50  ;;  %v15151_v50 = vor.u32 %v16914_v15, %v15148_v18  ;;  %v11674_v1 = vld [vmem:[#allocation9 + $0x668] sm:$0xf]  ;;  %v15100_v15 = vld [vmem:[#allocation9 + $0x2148] sm:$0xf0] }
 0x58a   :  { %8935 = vmatpush.bf16.msrb.mxu3 %v15223_v37  ;;  %v16006_v37 = vld [vmem:[#allocation9 + $0x52c] sm:$0xf0]  ;;  %v11675_v2 = vor.u32 %v16048_v7, %v11674_v1  ;;  %v16036_v7 = vld [vmem:[#allocation9 + $0x61c] sm:$0xf0] }
 0x58b   :  { %9013 = vmatpush.bf16.msra.mxu1 %v11579_v13  ;;  %v11659_v13 = vor.u32 %v16043_v14, %v11658_v5  ;;  %v11507_v22 = vor.u32 %v16006_v37, %v11506_v23  ;;  %v8735_v5 = vpop.f32.mrf.mxu3  ;;  %v11483_v14 = vor.u32 %v16000_v28, %v11482_v61  ;;  %v15994_v23 = vld [vmem:[#allocation9 + $0x4cc] sm:$0xf0]  ;;  %v18000_v37 = vpop.f32.mrf.mxu2  ;;  %v11626_v28 = vld [vmem:[#allocation9 + $0x608] sm:$0xf] }
 0x58c   :  { %9026 = vmatpush.bf16.msra.mxu2 %v11771_v9  ;;  %v17997_v9 = vpop.f32.mrf.mxu1  ;;  %v8736_v18 = vadd.f32 %v8735_v5, %v17990_v39  ;;  %v15934_v1 = vld [vmem:[#allocation9 + $0x2ec] sm:$0xf0] }
 0x58d   :  { %9680 = vmatpush.bf16.msra.mxu0 %v11683_v4  ;;  %v12571_v4 = vor.u32 %v16271_v59, %v12570_v21  ;;  %v12522_v21 = vld [vmem:[#allocation9 + $0xd00] sm:$0xf]  ;;  %v16896_v59 = vld [vmem:[#allocation9 + $0x2104] sm:$0xf] }
 0x58e   :  { %8936 = vmatpush.bf16.msrb.mxu3 %v15199_v41  ;;  %v15124_v41 = vld [vmem:[#allocation9 + $0x2178] sm:$0xf0] }
 0x58f   :  { %9014 = vmatpush.bf16.msra.mxu1 %v11555_v6  ;;  %v11699_v6 = vor.u32 %v16054_v10, %v11698_v38  ;;  %v15127_v56 = vor.u32 %v16908_v33, %v15124_v41  ;;  %v16042_v38 = vld [vmem:[#allocation9 + $0x64c] sm:$0xf0]  ;;  %v8749_v10 = vadd.f32 %v17982_v47, %v8736_v18  ;;  %v15076_v33 = vld [vmem:[#allocation9 + $0x2118] sm:$0xf0]  ;;  %v11434_v41 = vld [vmem:[#allocation9 + $0x488] sm:$0xf] }
 0x590   :  { %9027 = vmatpush.bf16.msra.mxu2 %v11747_v3  ;;  %v11635_v3 = vor.u32 %v16037_v42, %v11634_v48  ;;  %v15079_v5 = vor.u32 %v16896_v59, %v15076_v33  ;;  %v12498_v18 = vld [vmem:[#allocation9 + $0xcd0] sm:$0xf]  ;;  %v12474_v59 = vld [vmem:[#allocation9 + $0xca0] sm:$0xf] }
 0x591   :  { %9681 = vmatpush.bf16.msra.mxu0 %v11659_v13  ;;  %v11650_v13 = vld [vmem:[#allocation9 + $0x638] sm:$0xf]  ;;  %v18005_v47 = vadd.f32 %v17985_v57, %v8749_v10  ;;  %v11194_v57 = vld [vmem:[#allocation9 + $0x2a8] sm:$0xf] }
 0x592   :  { %8937 = vmatpush.bf16.msrb.mxu3 %v15175_v63  ;;  %v16265_v63 = vld [vmem:[#allocation9 + $0xd44] sm:$0xf0]  ;;  %v11651_v61 = vor.u32 %v16042_v38, %v11650_v13  ;;  %v15928_v38 = vld [vmem:[#allocation9 + $0x2bc] sm:$0xf0] }
 0x593   :  { %9015 = vmatpush.bf16.msra.mxu1 %v11531_v17  ;;  %v16902_v17 = vld [vmem:[#allocation9 + $0x2134] sm:$0xf]  ;;  %v12547_v42 = vor.u32 %v16265_v63, %v12546_v45  ;;  %v16270_v63 = vld [vmem:[#allocation9 + $0xd6c] sm:$0xf0]  ;;  %v8802_v10 = vpop.f32.mrf.mxu2  ;;  %v11195_v33 = vor.u32 %v15928_v38, %v11194_v57  ;;  %v16252_v57 = vld [vmem:[#allocation9 + $0xcdc] sm:$0xf0] }
 0x594   :  { %9028 = vmatpush.bf16.msra.mxu2 %v11723_v53  ;;  %v11458_v53 = vld [vmem:[#allocation9 + $0x4b8] sm:$0xf]  ;;  %v8789_v48 = vpop.f32.mrf.mxu1  ;;  %v12426_v38 = vld [vmem:[#allocation9 + $0xc40] sm:$0xf] }
 0x595   :  { %9682 = vmatpush.bf16.msra.mxu0 %v11635_v3  ;;  %v11459_v39 = vor.u32 %v15994_v23, %v11458_v53  ;;  %v11218_v3 = vld [vmem:[#allocation9 + $0x2d8] sm:$0xf]  ;;  %v11627_v23 = vor.u32 %v16036_v7, %v11626_v28  ;;  %v18007_v28 = vpop.f32.mrf.mxu0  ;;  %v16210_v7 = vld [vmem:[#allocation9 + $0xb8c] sm:$0xf0] }
 0x596   :  { %8938 = vmatpush.bf16.msrb.mxu3 %v15151_v50  ;;  %v15103_v50 = vor.u32 %v16902_v17, %v15100_v15  ;;  %v8737_v17 = vpop.f32.mrf.mxu3  ;;  %v11219_v53 = vor.u32 %v15934_v1, %v11218_v3  ;;  %18539 = vst [vmem:[#allocation26_spill] sm:$0xff] %v18007_v28  ;;  %v12322_v1 = vld [vmem:[#allocation9 + $0xb78] sm:$0xf]  ;;  %v13114_v28 = vld [vmem:[#allocation9 + $0x11a8] sm:$0xf] }
 0x597   :  { %9016 = vmatpush.bf16.msra.mxu1 %v11507_v22  ;;  %v16259_v22 = vld [vmem:[#allocation9 + $0xd14] sm:$0xf0]  ;;  %v11146_v17 = vld [vmem:[#allocation9 + $0x248] sm:$0xf] }
 0x598   :  { %9029 = vmatpush.bf16.msra.mxu2 %v11699_v6  ;;  %v15988_v6 = vld [vmem:[#allocation9 + $0x49c] sm:$0xf0]  ;;  %9683 = vmatmul.bf16.vlgmr.msra.gmra.mxu0 %v17761_v27  ;;  %v12523_v45 = vor.u32 %v16259_v22, %v12522_v21  ;;  %v12538_v21 = vld [vmem:[#allocation9 + $0xd28] sm:$0xf]  ;;  %v16235_v10 = vld [vmem:[#allocation9 + $0xc54] sm:$0xf0] }
 0x599   :  { %9727 = vmatpush.bf16.msrb.mxu0 %v12571_v4  ;;  %v12370_v4 = vld [vmem:[#allocation9 + $0xbd8] sm:$0xf]  ;;  %v11435_v15 = vor.u32 %v15988_v6, %v11434_v41  ;;  %v16264_v22 = vld [vmem:[#allocation9 + $0xd3c] sm:$0xf0] }
 0x59a   :  { %8939 = vmatpush.bf16.msrb.mxu3 %v15127_v56  ;;  %v16222_v56 = vld [vmem:[#allocation9 + $0xbec] sm:$0xf0]  ;;  %v11170_v6 = vld [vmem:[#allocation9 + $0x278] sm:$0xf]  ;;  %v12539_v3 = vor.u32 %v16264_v22, %v12538_v21 }
 0x59b   :  { %9017 = vmatpush.bf16.msra.mxu1 %v11483_v14  ;;  %v12562_v14 = vld [vmem:[#allocation9 + $0xd58] sm:$0xf]  ;;  %v12371_v13 = vor.u32 %v16222_v56, %v12370_v4  ;;  %v15910_v21 = vld [vmem:[#allocation9 + $0x22c] sm:$0xf0] }
 0x59c   :  { %9030 = vmatpush.bf16.msra.mxu2 %v11675_v2  ;;  %v16253_v2 = vld [vmem:[#allocation9 + $0xce4] sm:$0xf0]  ;;  %v12563_v48 = vor.u32 %v16270_v63, %v12562_v14  ;;  %v12514_v56 = vld [vmem:[#allocation9 + $0xcf8] sm:$0xf]  ;;  %v12323_v63 = vor.u32 %v16210_v7, %v12322_v1  ;;  %v12402_v1 = vld [vmem:[#allocation9 + $0xc10] sm:$0xf] }
 0x59d   :  { %9728 = vmatpush.bf16.msrb.mxu0 %v12547_v42  ;;  %v16216_v42 = vld [vmem:[#allocation9 + $0xbbc] sm:$0xf0]  ;;  %v9478_v22 = vpop.f32.mrf.mxu0  ;;  %v16229_v7 = vld [vmem:[#allocation9 + $0xc24] sm:$0xf0] }
 0x59e   :  { %8940 = vmatpush.bf16.msrb.mxu3 %v15103_v50  ;;  %v12499_v50 = vor.u32 %v16253_v2, %v12498_v18  ;;  %v12347_v41 = vor.u32 %v16216_v42, %v12346_v12  ;;  %v12450_v12 = vld [vmem:[#allocation9 + $0xc70] sm:$0xf]  ;;  %v12298_v2 = vld [vmem:[#allocation9 + $0xb48] sm:$0xf] }
 0x59f   :  { %9018 = vmatpush.bf16.msra.mxu1 %v11459_v39  ;;  %v16247_v39 = vld [vmem:[#allocation9 + $0xcb4] sm:$0xf0] }
 0x5a0   :  { %9031 = vmatpush.bf16.msra.mxu2 %v11651_v61  ;;  %v15922_v61 = vld [vmem:[#allocation9 + $0x28c] sm:$0xf0]  ;;  %v12475_v4 = vor.u32 %v16247_v39, %v12474_v59  ;;  %v12274_v39 = vld [vmem:[#allocation9 + $0xb18] sm:$0xf] }
 0x5a1   :  { %9729 = vmatpush.bf16.msrb.mxu0 %v12523_v45  ;;  %v16258_v45 = vld [vmem:[#allocation9 + $0xd0c] sm:$0xf0]  ;;  %v11171_v14 = vor.u32 %v15922_v61, %v11170_v6  ;;  %v12466_v6 = vld [vmem:[#allocation9 + $0xc98] sm:$0xf] }
 0x5a2   :  { %8941 = vmatpush.bf16.msrb.mxu3 %v15079_v5  ;;  %v16241_v5 = vld [vmem:[#allocation9 + $0xc84] sm:$0xf0]  ;;  %v12515_v18 = vor.u32 %v16258_v45, %v12514_v56  ;;  %v16246_v61 = vld [vmem:[#allocation9 + $0xcac] sm:$0xf0]  ;;  %v13338_v56 = vld [vmem:[#allocation9 + $0x1360] sm:$0xf] }
 0x5a3   :  { %9019 = vmatpush.bf16.msra.mxu1 %v11435_v15  ;;  %v15916_v15 = vld [vmem:[#allocation9 + $0x25c] sm:$0xf0] }
 0x5a4   :  { %9032 = vmatpush.bf16.msra.mxu2 %v11627_v23  ;;  %v12451_v23 = vor.u32 %v16241_v5, %v12450_v12  ;;  %v16463_v12 = vld [vmem:[#allocation9 + $0x1374] sm:$0xf0]  ;;  %v11098_v5 = vld [vmem:[#allocation9 + $0x1e8] sm:$0xf] }
 0x5a5   :  { %8942 = vmatmul.bf16.vlgmr.msrb.gmra.mxu3 %v17881_v49  ;;  %9730 = vmatpush.bf16.msrb.mxu0 %v12499_v50  ;;  %v11122_v50 = vld [vmem:[#allocation9 + $0x218] sm:$0xf] }
 0x5a6   :  { %8986 = vmatpush.bf16.msra.mxu3 %v11219_v53  ;;  %9020 = vmatmul.bf16.vlgmr.msra.gmra.mxu1 %v17727_v34  ;;  %v16204_v53 = vld [vmem:[#allocation9 + $0xb5c] sm:$0xf0] }
 0x5a7   :  { %9064 = vmatpush.bf16.msrb.mxu1 %v12371_v13  ;;  %9033 = vmatmul.bf16.vlgmr.msra.gmra.mxu2 %v17761_v27  ;;  %v12490_v13 = vld [vmem:[#allocation9 + $0xcc8] sm:$0xf]  ;;  %v12299_v42 = vor.u32 %v16204_v53, %v12298_v2  ;;  %v16240_v53 = vld [vmem:[#allocation9 + $0xc7c] sm:$0xf0] }
 0x5a8   :  { %9077 = vmatpush.bf16.msrb.mxu2 %v12563_v48  ;;  %v11147_v48 = vor.u32 %v15916_v15, %v11146_v17  ;;  %v12491_v59 = vor.u32 %v16252_v57, %v12490_v13  ;;  %v12250_v17 = vld [vmem:[#allocation9 + $0xae8] sm:$0xf]  ;;  %v16192_v15 = vld [vmem:[#allocation9 + $0xafc] sm:$0xf0]  ;;  %v13314_v57 = vld [vmem:[#allocation9 + $0x1330] sm:$0xf] }
 0x5a9   :  { %9731 = vmatpush.bf16.msrb.mxu0 %v12475_v4  ;;  %v11123_v4 = vor.u32 %v15910_v21, %v11122_v50  ;;  %v12442_v2 = vld [vmem:[#allocation9 + $0xc68] sm:$0xf]  ;;  %v15898_v50 = vld [vmem:[#allocation9 + $0x1cc] sm:$0xf0] }
 0x5aa   :  { %8987 = vmatpush.bf16.msra.mxu3 %v11195_v33  ;;  %v16198_v33 = vld [vmem:[#allocation9 + $0xb2c] sm:$0xf0]  ;;  %v12443_v22 = vor.u32 %v16240_v53, %v12442_v2  ;;  %v16228_v53 = vld [vmem:[#allocation9 + $0xc1c] sm:$0xf0] }
 0x5ab   :  { %9065 = vmatpush.bf16.msrb.mxu1 %v12347_v41  ;;  %v12427_v41 = vor.u32 %v16235_v10, %v12426_v38  ;;  %v12275_v45 = vor.u32 %v16198_v33, %v12274_v39  ;;  %v8774_v38 = vpop.f32.mrf.mxu3  ;;  %v12251_v10 = vor.u32 %v16192_v15, %v12250_v17  ;;  %v16186_v39 = vld [vmem:[#allocation9 + $0xacc] sm:$0xf0]  ;;  %v18015_v33 = vpop.f32.mrf.mxu2  ;;  %v12394_v15 = vld [vmem:[#allocation9 + $0xc08] sm:$0xf] }
 0x5ac   :  { %9078 = vmatpush.bf16.msrb.mxu2 %v12539_v3  ;;  %v18012_v3 = vpop.f32.mrf.mxu1  ;;  %v8775_v21 = vadd.f32 %v8774_v38, %v18005_v47  ;;  %v16126_v2 = vld [vmem:[#allocation9 + $0x8ec] sm:$0xf0] }
 0x5ad   :  { %9732 = vmatpush.bf16.msrb.mxu0 %v12451_v23  ;;  %v13339_v23 = vor.u32 %v16463_v12, %v13338_v56  ;;  %v13290_v56 = vld [vmem:[#allocation9 + $0x1300] sm:$0xf]  ;;  %v11050_v12 = vld [vmem:[#allocation9 + $0x188] sm:$0xf] }
 0x5ae   :  { %8988 = vmatpush.bf16.msra.mxu3 %v11171_v14  ;;  %v15904_v14 = vld [vmem:[#allocation9 + $0x1fc] sm:$0xf0] }
 0x5af   :  { %9066 = vmatpush.bf16.msrb.mxu1 %v12323_v63  ;;  %v12467_v63 = vor.u32 %v16246_v61, %v12466_v6  ;;  %v11099_v13 = vor.u32 %v15904_v14, %v11098_v5  ;;  %v16234_v6 = vld [vmem:[#allocation9 + $0xc4c] sm:$0xf0]  ;;  %v8788_v61 = vadd.f32 %v17997_v9, %v8775_v21  ;;  %v15892_v5 = vld [vmem:[#allocation9 + $0x19c] sm:$0xf0]  ;;  %v12202_v14 = vld [vmem:[#allocation9 + $0xa88] sm:$0xf] }
 0x5b0   :  { %9079 = vmatpush.bf16.msrb.mxu2 %v12515_v18  ;;  %v12403_v18 = vor.u32 %v16229_v7, %v12402_v1  ;;  %v11051_v38 = vor.u32 %v15892_v5, %v11050_v12  ;;  %v13266_v21 = vld [vmem:[#allocation9 + $0x12d0] sm:$0xf]  ;;  %v13242_v12 = vld [vmem:[#allocation9 + $0x12a0] sm:$0xf] }
 0x5b1   :  { %9733 = vmatpush.bf16.msrb.mxu0 %v12427_v41  ;;  %v12418_v41 = vld [vmem:[#allocation9 + $0xc38] sm:$0xf]  ;;  %v18020_v9 = vadd.f32 %v18000_v37, %v8788_v61  ;;  %v11962_v37 = vld [vmem:[#allocation9 + $0x8a8] sm:$0xf] }
 0x5b2   :  { %8989 = vmatpush.bf16.msra.mxu3 %v11147_v48  ;;  %v16457_v48 = vld [vmem:[#allocation9 + $0x1344] sm:$0xf0]  ;;  %v12419_v17 = vor.u32 %v16234_v6, %v12418_v41  ;;  %v16120_v6 = vld [vmem:[#allocation9 + $0x8bc] sm:$0xf0] }
 0x5b3   :  { %9067 = vmatpush.bf16.msrb.mxu1 %v12299_v42  ;;  %v11074_v42 = vld [vmem:[#allocation9 + $0x1b8] sm:$0xf]  ;;  %v13315_v7 = vor.u32 %v16457_v48, %v13314_v57  ;;  %v16462_v48 = vld [vmem:[#allocation9 + $0x136c] sm:$0xf0]  ;;  %v8841_v61 = vpop.f32.mrf.mxu2  ;;  %v11963_v5 = vor.u32 %v16120_v6, %v11962_v37  ;;  %v16444_v37 = vld [vmem:[#allocation9 + $0x12dc] sm:$0xf0] }
 0x5b4   :  { %9080 = vmatpush.bf16.msrb.mxu2 %v12491_v59  ;;  %v12226_v59 = vld [vmem:[#allocation9 + $0xab8] sm:$0xf]  ;;  %v8828_v1 = vpop.f32.mrf.mxu1  ;;  %v13194_v6 = vld [vmem:[#allocation9 + $0x1240] sm:$0xf] }
 0x5b5   :  { %9734 = vmatpush.bf16.msrb.mxu0 %v12403_v18  ;;  %v12227_v47 = vor.u32 %v16186_v39, %v12226_v59  ;;  %v11986_v18 = vld [vmem:[#allocation9 + $0x8d8] sm:$0xf]  ;;  %v12395_v39 = vor.u32 %v16228_v53, %v12394_v15  ;;  %v18022_v15 = vpop.f32.mrf.mxu0  ;;  %v16402_v53 = vld [vmem:[#allocation9 + $0x118c] sm:$0xf0] }
 0x5b6   :  { %8990 = vmatpush.bf16.msra.mxu3 %v11123_v4  ;;  %v11075_v4 = vor.u32 %v15898_v50, %v11074_v42  ;;  %v8776_v42 = vpop.f32.mrf.mxu3  ;;  %v11987_v59 = vor.u32 %v16126_v2, %v11986_v18  ;;  %18540 = vst [vmem:[#allocation27_spill] sm:$0xff] %v18022_v15  ;;  %v13090_v2 = vld [vmem:[#allocation9 + $0x1178] sm:$0xf]  ;;  %v13882_v15 = vld [vmem:[#allocation9 + $0x17a8] sm:$0xf] }
 0x5b7   :  { %9068 = vmatpush.bf16.msrb.mxu1 %v12275_v45  ;;  %v16451_v45 = vld [vmem:[#allocation9 + $0x1314] sm:$0xf0]  ;;  %v11914_v42 = vld [vmem:[#allocation9 + $0x848] sm:$0xf] }
 0x5b8   :  { %9081 = vmatpush.bf16.msrb.mxu2 %v12467_v63  ;;  %v16180_v63 = vld [vmem:[#allocation9 + $0xa9c] sm:$0xf0]  ;;  %9735 = vmatmul.bf16.vlgmr.msrb.gmra.mxu0 %v17765_v30  ;;  %v13291_v57 = vor.u32 %v16451_v45, %v13290_v56  ;;  %v13306_v56 = vld [vmem:[#allocation9 + $0x1328] sm:$0xf]  ;;  %v16427_v61 = vld [vmem:[#allocation9 + $0x1254] sm:$0xf0] }
 0x5b9   :  { %9779 = vmatpush.bf16.msra.mxu0 %v13339_v23  ;;  %v13138_v23 = vld [vmem:[#allocation9 + $0x11d8] sm:$0xf]  ;;  %v12203_v50 = vor.u32 %v16180_v63, %v12202_v14  ;;  %v16456_v45 = vld [vmem:[#allocation9 + $0x133c] sm:$0xf0] }
 0x5ba   :  { %8991 = vmatpush.bf16.msra.mxu3 %v11099_v13  ;;  %v16414_v13 = vld [vmem:[#allocation9 + $0x11ec] sm:$0xf0]  ;;  %v11938_v63 = vld [vmem:[#allocation9 + $0x878] sm:$0xf]  ;;  %v13307_v18 = vor.u32 %v16456_v45, %v13306_v56 }
 0x5bb   :  { %9069 = vmatpush.bf16.msrb.mxu1 %v12251_v10  ;;  %v13330_v10 = vld [vmem:[#allocation9 + $0x1358] sm:$0xf]  ;;  %v13139_v41 = vor.u32 %v16414_v13, %v13138_v23  ;;  %v16102_v56 = vld [vmem:[#allocation9 + $0x82c] sm:$0xf0] }
 0x5bc   :  { %9082 = vmatpush.bf16.msrb.mxu2 %v12443_v22  ;;  %v16445_v22 = vld [vmem:[#allocation9 + $0x12e4] sm:$0xf0]  ;;  %v13331_v1 = vor.u32 %v16462_v48, %v13330_v10  ;;  %v13282_v13 = vld [vmem:[#allocation9 + $0x12f8] sm:$0xf]  ;;  %v13091_v48 = vor.u32 %v16402_v53, %v13090_v2  ;;  %v13170_v2 = vld [vmem:[#allocation9 + $0x1210] sm:$0xf] }
 0x5bd   :  { %9780 = vmatpush.bf16.msra.mxu0 %v13315_v7  ;;  %v16408_v7 = vld [vmem:[#allocation9 + $0x11bc] sm:$0xf0]  ;;  %v9530_v45 = vpop.f32.mrf.mxu0  ;;  %v16421_v53 = vld [vmem:[#allocation9 + $0x1224] sm:$0xf0] }
 0x5be   :  { %8992 = vmatpush.bf16.msra.mxu3 %v11075_v4  ;;  %v13267_v4 = vor.u32 %v16445_v22, %v13266_v21  ;;  %v13115_v14 = vor.u32 %v16408_v7, %v13114_v28  ;;  %v13218_v28 = vld [vmem:[#allocation9 + $0x1270] sm:$0xf]  ;;  %v13066_v22 = vld [vmem:[#allocation9 + $0x1148] sm:$0xf] }
 0x5bf   :  { %9070 = vmatpush.bf16.msrb.mxu1 %v12227_v47  ;;  %v16439_v47 = vld [vmem:[#allocation9 + $0x12b4] sm:$0xf0] }
 0x5c0   :  { %9083 = vmatpush.bf16.msrb.mxu2 %v12419_v17  ;;  %v16114_v17 = vld [vmem:[#allocation9 + $0x88c] sm:$0xf0]  ;;  %v13243_v23 = vor.u32 %v16439_v47, %v13242_v12  ;;  %v13042_v47 = vld [vmem:[#allocation9 + $0x1118] sm:$0xf] }
 0x5c1   :  { %9781 = vmatpush.bf16.msra.mxu0 %v13291_v57  ;;  %v16450_v57 = vld [vmem:[#allocation9 + $0x130c] sm:$0xf0]  ;;  %v11939_v10 = vor.u32 %v16114_v17, %v11938_v63  ;;  %v13234_v63 = vld [vmem:[#allocation9 + $0x1298] sm:$0xf] }
 0x5c2   :  { %8993 = vmatpush.bf16.msra.mxu3 %v11051_v38  ;;  %v16433_v38 = vld [vmem:[#allocation9 + $0x1284] sm:$0xf0]  ;;  %v13283_v21 = vor.u32 %v16450_v57, %v13282_v13  ;;  %v16438_v17 = vld [vmem:[#allocation9 + $0x12ac] sm:$0xf0]  ;;  %v14106_v13 = vld [vmem:[#allocation9 + $0x1960] sm:$0xf] }
 0x5c3   :  { %9071 = vmatpush.bf16.msrb.mxu1 %v12203_v50  ;;  %v16108_v50 = vld [vmem:[#allocation9 + $0x85c] sm:$0xf0] }
 0x5c4   :  { %9084 = vmatpush.bf16.msrb.mxu2 %v12395_v39  ;;  %v13219_v39 = vor.u32 %v16433_v38, %v13218_v28  ;;  %v16655_v28 = vld [vmem:[#allocation9 + $0x1974] sm:$0xf0]  ;;  %v11866_v38 = vld [vmem:[#allocation9 + $0x7e8] sm:$0xf] }
 0x5c5   :  { %8994 = vmatmul.bf16.vlgmr.msra.gmra.mxu3 %v17739_v16  ;;  %9782 = vmatpush.bf16.msra.mxu0 %v13267_v4  ;;  %v11890_v4 = vld [vmem:[#allocation9 + $0x818] sm:$0xf] }
 0x5c6   :  { %9038 = vmatpush.bf16.msrb.mxu3 %v11987_v59  ;;  %9072 = vmatmul.bf16.vlgmr.msrb.gmra.mxu1 %v17780_v35  ;;  %v16396_v59 = vld [vmem:[#allocation9 + $0x115c] sm:$0xf0] }
 0x5c7   :  { %9116 = vmatpush.bf16.msra.mxu1 %v13139_v41  ;;  %9085 = vmatmul.bf16.vlgmr.msrb.gmra.mxu2 %v17765_v30  ;;  %v13258_v41 = vld [vmem:[#allocation9 + $0x12c8] sm:$0xf]  ;;  %v13067_v7 = vor.u32 %v16396_v59, %v13066_v22  ;;  %v16432_v59 = vld [vmem:[#allocation9 + $0x127c] sm:$0xf0] }
 0x5c8   :  { %9129 = vmatpush.bf16.msra.mxu2 %v13331_v1  ;;  %v11915_v1 = vor.u32 %v16108_v50, %v11914_v42  ;;  %v13259_v12 = vor.u32 %v16444_v37, %v13258_v41  ;;  %v13018_v42 = vld [vmem:[#allocation9 + $0x10e8] sm:$0xf]  ;;  %v16384_v50 = vld [vmem:[#allocation9 + $0x10fc] sm:$0xf0]  ;;  %v14082_v37 = vld [vmem:[#allocation9 + $0x1930] sm:$0xf] }
 0x5c9   :  { %9783 = vmatpush.bf16.msra.mxu0 %v13243_v23  ;;  %v11891_v23 = vor.u32 %v16102_v56, %v11890_v4  ;;  %v13210_v22 = vld [vmem:[#allocation9 + $0x1268] sm:$0xf]  ;;  %v16090_v4 = vld [vmem:[#allocation9 + $0x7cc] sm:$0xf0] }
 0x5ca   :  { %9039 = vmatpush.bf16.msrb.mxu3 %v11963_v5  ;;  %v16390_v5 = vld [vmem:[#allocation9 + $0x112c] sm:$0xf0]  ;;  %v13211_v45 = vor.u32 %v16432_v59, %v13210_v22  ;;  %v16420_v59 = vld [vmem:[#allocation9 + $0x121c] sm:$0xf0] }
 0x5cb   :  { %9117 = vmatpush.bf16.msra.mxu1 %v13115_v14  ;;  %v13195_v14 = vor.u32 %v16427_v61, %v13194_v6  ;;  %v13043_v57 = vor.u32 %v16390_v5, %v13042_v47  ;;  %v8813_v6 = vpop.f32.mrf.mxu3  ;;  %v13019_v61 = vor.u32 %v16384_v50, %v13018_v42  ;;  %v16378_v47 = vld [vmem:[#allocation9 + $0x10cc] sm:$0xf0]  ;;  %v18030_v5 = vpop.f32.mrf.mxu2  ;;  %v13162_v50 = vld [vmem:[#allocation9 + $0x1208] sm:$0xf] }
 0x5cc   :  { %9130 = vmatpush.bf16.msra.mxu2 %v13307_v18  ;;  %v18027_v18 = vpop.f32.mrf.mxu1  ;;  %v8814_v56 = vadd.f32 %v8813_v6, %v18020_v9  ;;  %v16318_v22 = vld [vmem:[#allocation9 + $0xeec] sm:$0xf0] }
 0x5cd   :  { %9784 = vmatpush.bf16.msra.mxu0 %v13219_v39  ;;  %v14107_v39 = vor.u32 %v16655_v28, %v14106_v13  ;;  %v14058_v13 = vld [vmem:[#allocation9 + $0x1900] sm:$0xf]  ;;  %v11818_v28 = vld [vmem:[#allocation9 + $0x788] sm:$0xf] }
 0x5ce   :  { %9040 = vmatpush.bf16.msrb.mxu3 %v11939_v10  ;;  %v16096_v10 = vld [vmem:[#allocation9 + $0x7fc] sm:$0xf0] }
 0x5cf   :  { %9118 = vmatpush.bf16.msra.mxu1 %v13091_v48  ;;  %v13235_v48 = vor.u32 %v16438_v17, %v13234_v63  ;;  %v11867_v41 = vor.u32 %v16096_v10, %v11866_v38  ;;  %v16426_v63 = vld [vmem:[#allocation9 + $0x124c] sm:$0xf0]  ;;  %v8827_v17 = vadd.f32 %v18012_v3, %v8814_v56  ;;  %v16084_v38 = vld [vmem:[#allocation9 + $0x79c] sm:$0xf0]  ;;  %v12970_v10 = vld [vmem:[#allocation9 + $0x1088] sm:$0xf] }
 0x5d0   :  { %9131 = vmatpush.bf16.msra.mxu2 %v13283_v21  ;;  %v13171_v21 = vor.u32 %v16421_v53, %v13170_v2  ;;  %v11819_v6 = vor.u32 %v16084_v38, %v11818_v28  ;;  %v14034_v56 = vld [vmem:[#allocation9 + $0x18d0] sm:$0xf]  ;;  %v14010_v28 = vld [vmem:[#allocation9 + $0x18a0] sm:$0xf] }
 0x5d1   :  { %9785 = vmatpush.bf16.msra.mxu0 %v13195_v14  ;;  %v13186_v14 = vld [vmem:[#allocation9 + $0x1238] sm:$0xf]  ;;  %v18035_v3 = vadd.f32 %v18015_v33, %v8827_v17  ;;  %v12730_v33 = vld [vmem:[#allocation9 + $0xea8] sm:$0xf] }
 0x5d2   :  { %9041 = vmatpush.bf16.msrb.mxu3 %v11915_v1  ;;  %v16649_v1 = vld [vmem:[#allocation9 + $0x1944] sm:$0xf0]  ;;  %v13187_v42 = vor.u32 %v16426_v63, %v13186_v14  ;;  %v16312_v63 = vld [vmem:[#allocation9 + $0xebc] sm:$0xf0] }
 0x5d3   :  { %9119 = vmatpush.bf16.msra.mxu1 %v13067_v7  ;;  %v11842_v7 = vld [vmem:[#allocation9 + $0x7b8] sm:$0xf]  ;;  %v14083_v53 = vor.u32 %v16649_v1, %v14082_v37  ;;  %v16654_v1 = vld [vmem:[#allocation9 + $0x196c] sm:$0xf0]  ;;  %v8880_v17 = vpop.f32.mrf.mxu2  ;;  %v12731_v38 = vor.u32 %v16312_v63, %v12730_v33  ;;  %v16636_v33 = vld [vmem:[#allocation9 + $0x18dc] sm:$0xf0] }
 0x5d4   :  { %9132 = vmatpush.bf16.msra.mxu2 %v13259_v12  ;;  %v12994_v12 = vld [vmem:[#allocation9 + $0x10b8] sm:$0xf]  ;;  %v8867_v2 = vpop.f32.mrf.mxu1  ;;  %v13962_v63 = vld [vmem:[#allocation9 + $0x1840] sm:$0xf] }
 0x5d5   :  { %9786 = vmatpush.bf16.msra.mxu0 %v13171_v21  ;;  %v12995_v9 = vor.u32 %v16378_v47, %v12994_v12  ;;  %v12754_v21 = vld [vmem:[#allocation9 + $0xed8] sm:$0xf]  ;;  %v13163_v47 = vor.u32 %v16420_v59, %v13162_v50  ;;  %v18037_v50 = vpop.f32.mrf.mxu0  ;;  %v16594_v59 = vld [vmem:[#allocation9 + $0x178c] sm:$0xf0] }
 0x5d6   :  { %9042 = vmatpush.bf16.msrb.mxu3 %v11891_v23  ;;  %v11843_v23 = vor.u32 %v16090_v4, %v11842_v7  ;;  %v8815_v7 = vpop.f32.mrf.mxu3  ;;  %v12755_v12 = vor.u32 %v16318_v22, %v12754_v21  ;;  %18541 = vst [vmem:[#allocation28_spill] sm:$0xff] %v18037_v50  ;;  %v13858_v22 = vld [vmem:[#allocation9 + $0x1778] sm:$0xf]  ;;  %v14650_v50 = vld [vmem:[#allocation9 + $0x1da8] sm:$0xf] }
 0x5d7   :  { %9120 = vmatpush.bf16.msra.mxu1 %v13043_v57  ;;  %v16643_v57 = vld [vmem:[#allocation9 + $0x1914] sm:$0xf0]  ;;  %v12682_v7 = vld [vmem:[#allocation9 + $0xe48] sm:$0xf] }
 0x5d8   :  { %9133 = vmatpush.bf16.msra.mxu2 %v13235_v48  ;;  %v16372_v48 = vld [vmem:[#allocation9 + $0x109c] sm:$0xf0]  ;;  %9787 = vmatmul.bf16.vlgmr.msra.gmra.mxu0 %v17789_v43  ;;  %v14059_v37 = vor.u32 %v16643_v57, %v14058_v13  ;;  %v14074_v13 = vld [vmem:[#allocation9 + $0x1928] sm:$0xf]  ;;  %v16619_v17 = vld [vmem:[#allocation9 + $0x1854] sm:$0xf0] }
 0x5d9   :  { %9831 = vmatpush.bf16.msrb.mxu0 %v14107_v39  ;;  %v13906_v39 = vld [vmem:[#allocation9 + $0x17d8] sm:$0xf]  ;;  %v12971_v4 = vor.u32 %v16372_v48, %v12970_v10  ;;  %v16648_v57 = vld [vmem:[#allocation9 + $0x193c] sm:$0xf0] }
 0x5da   :  { %9043 = vmatpush.bf16.msrb.mxu3 %v11867_v41  ;;  %v16606_v41 = vld [vmem:[#allocation9 + $0x17ec] sm:$0xf0]  ;;  %v12706_v48 = vld [vmem:[#allocation9 + $0xe78] sm:$0xf]  ;;  %v14075_v21 = vor.u32 %v16648_v57, %v14074_v13 }
 0x5db   :  { %9121 = vmatpush.bf16.msra.mxu1 %v13019_v61  ;;  %v14098_v61 = vld [vmem:[#allocation9 + $0x1958] sm:$0xf]  ;;  %v13907_v14 = vor.u32 %v16606_v41, %v13906_v39  ;;  %v16294_v13 = vld [vmem:[#allocation9 + $0xe2c] sm:$0xf0] }
 0x5dc   :  { %9134 = vmatpush.bf16.msra.mxu2 %v13211_v45  ;;  %v16637_v45 = vld [vmem:[#allocation9 + $0x18e4] sm:$0xf0]  ;;  %v14099_v2 = vor.u32 %v16654_v1, %v14098_v61  ;;  %v14050_v41 = vld [vmem:[#allocation9 + $0x18f8] sm:$0xf]  ;;  %v13859_v1 = vor.u32 %v16594_v59, %v13858_v22  ;;  %v13938_v22 = vld [vmem:[#allocation9 + $0x1810] sm:$0xf] }
 0x5dd   :  { %9832 = vmatpush.bf16.msrb.mxu0 %v14083_v53  ;;  %v16600_v53 = vld [vmem:[#allocation9 + $0x17bc] sm:$0xf0]  ;;  %v9582_v57 = vpop.f32.mrf.mxu0  ;;  %v16613_v59 = vld [vmem:[#allocation9 + $0x1824] sm:$0xf0] }
 0x5de   :  { %9044 = vmatpush.bf16.msrb.mxu3 %v11843_v23  ;;  %v14035_v23 = vor.u32 %v16637_v45, %v14034_v56  ;;  %v13883_v10 = vor.u32 %v16600_v53, %v13882_v15  ;;  %v13986_v15 = vld [vmem:[#allocation9 + $0x1870] sm:$0xf]  ;;  %v13834_v45 = vld [vmem:[#allocation9 + $0x1748] sm:$0xf] }
 0x5df   :  { %9122 = vmatpush.bf16.msra.mxu1 %v12995_v9  ;;  %v16631_v9 = vld [vmem:[#allocation9 + $0x18b4] sm:$0xf0] }
 0x5e0   :  { %9135 = vmatpush.bf16.msra.mxu2 %v13187_v42  ;;  %v16306_v42 = vld [vmem:[#allocation9 + $0xe8c] sm:$0xf0]  ;;  %v14011_v39 = vor.u32 %v16631_v9, %v14010_v28  ;;  %v13810_v9 = vld [vmem:[#allocation9 + $0x1718] sm:$0xf] }
 0x5e1   :  { %9833 = vmatpush.bf16.msrb.mxu0 %v14059_v37  ;;  %v16642_v37 = vld [vmem:[#allocation9 + $0x190c] sm:$0xf0]  ;;  %v12707_v61 = vor.u32 %v16306_v42, %v12706_v48  ;;  %v14002_v48 = vld [vmem:[#allocation9 + $0x1898] sm:$0xf] }
 0x5e2   :  { %9045 = vmatpush.bf16.msrb.mxu3 %v11819_v6  ;;  %v16625_v6 = vld [vmem:[#allocation9 + $0x1884] sm:$0xf0]  ;;  %v14051_v56 = vor.u32 %v16642_v37, %v14050_v41  ;;  %v16630_v42 = vld [vmem:[#allocation9 + $0x18ac] sm:$0xf0]  ;;  %v14874_v41 = vld [vmem:[#allocation9 + $0x1f60] sm:$0xf] }
 0x5e3   :  { %9123 = vmatpush.bf16.msra.mxu1 %v12971_v4  ;;  %v16300_v4 = vld [vmem:[#allocation9 + $0xe5c] sm:$0xf0] }
 0x5e4   :  { %9136 = vmatpush.bf16.msra.mxu2 %v13163_v47  ;;  %v13987_v47 = vor.u32 %v16625_v6, %v13986_v15  ;;  %v16847_v15 = vld [vmem:[#allocation9 + $0x1f74] sm:$0xf0]  ;;  %v12634_v6 = vld [vmem:[#allocation9 + $0xde8] sm:$0xf] }
 0x5e5   :  { %9046 = vmatmul.bf16.vlgmr.msrb.gmra.mxu3 %v17741_v19  ;;  %9834 = vmatpush.bf16.msrb.mxu0 %v14035_v23  ;;  %v12658_v23 = vld [vmem:[#allocation9 + $0xe18] sm:$0xf] }
 0x5e6   :  { %9090 = vmatpush.bf16.msra.mxu3 %v12755_v12  ;;  %9124 = vmatmul.bf16.vlgmr.msra.gmra.mxu1 %v17784_v40  ;;  %v16588_v12 = vld [vmem:[#allocation9 + $0x175c] sm:$0xf0] }
 0x5e7   :  { %9168 = vmatpush.bf16.msrb.mxu1 %v13907_v14  ;;  %9137 = vmatmul.bf16.vlgmr.msra.gmra.mxu2 %v17789_v43  ;;  %v14026_v14 = vld [vmem:[#allocation9 + $0x18c8] sm:$0xf]  ;;  %v13835_v53 = vor.u32 %v16588_v12, %v13834_v45  ;;  %v16624_v12 = vld [vmem:[#allocation9 + $0x187c] sm:$0xf0] }
 0x5e8   :  { %9181 = vmatpush.bf16.msrb.mxu2 %v14099_v2  ;;  %v12683_v2 = vor.u32 %v16300_v4, %v12682_v7  ;;  %v14027_v28 = vor.u32 %v16636_v33, %v14026_v14  ;;  %v13786_v7 = vld [vmem:[#allocation9 + $0x16e8] sm:$0xf]  ;;  %v16576_v4 = vld [vmem:[#allocation9 + $0x16fc] sm:$0xf0]  ;;  %v14850_v33 = vld [vmem:[#allocation9 + $0x1f30] sm:$0xf] }
 0x5e9   :  { %9835 = vmatpush.bf16.msrb.mxu0 %v14011_v39  ;;  %v12659_v39 = vor.u32 %v16294_v13, %v12658_v23  ;;  %v13978_v45 = vld [vmem:[#allocation9 + $0x1868] sm:$0xf]  ;;  %v16282_v23 = vld [vmem:[#allocation9 + $0xdcc] sm:$0xf0] }
 0x5ea   :  { %9091 = vmatpush.bf16.msra.mxu3 %v12731_v38  ;;  %v16582_v38 = vld [vmem:[#allocation9 + $0x172c] sm:$0xf0]  ;;  %v13979_v57 = vor.u32 %v16624_v12, %v13978_v45  ;;  %v16612_v12 = vld [vmem:[#allocation9 + $0x181c] sm:$0xf0] }
 0x5eb   :  { %9169 = vmatpush.bf16.msrb.mxu1 %v13883_v10  ;;  %v13963_v10 = vor.u32 %v16619_v17, %v13962_v63  ;;  %v13811_v37 = vor.u32 %v16582_v38, %v13810_v9  ;;  %v8852_v63 = vpop.f32.mrf.mxu3  ;;  %v13787_v17 = vor.u32 %v16576_v4, %v13786_v7  ;;  %v16570_v9 = vld [vmem:[#allocation9 + $0x16cc] sm:$0xf0]  ;;  %v18045_v38 = vpop.f32.mrf.mxu2  ;;  %v13930_v4 = vld [vmem:[#allocation9 + $0x1808] sm:$0xf] }
 0x5ec   :  { %9182 = vmatpush.bf16.msrb.mxu2 %v14075_v21  ;;  %v18042_v21 = vpop.f32.mrf.mxu1  ;;  %v8853_v13 = vadd.f32 %v8852_v63, %v18035_v3  ;;  %v16510_v45 = vld [vmem:[#allocation9 + $0x14ec] sm:$0xf0] }
 0x5ed   :  { %9836 = vmatpush.bf16.msrb.mxu0 %v13987_v47  ;;  %v14875_v47 = vor.u32 %v16847_v15, %v14874_v41  ;;  %v14826_v41 = vld [vmem:[#allocation9 + $0x1f00] sm:$0xf]  ;;  %v12586_v15 = vld [vmem:[#allocation9 + $0xd88] sm:$0xf] }
 0x5ee   :  { %9092 = vmatpush.bf16.msra.mxu3 %v12707_v61  ;;  %v16288_v61 = vld [vmem:[#allocation9 + $0xdfc] sm:$0xf0] }
 0x5ef   :  { %9170 = vmatpush.bf16.msrb.mxu1 %v13859_v1  ;;  %v14003_v1 = vor.u32 %v16630_v42, %v14002_v48  ;;  %v12635_v14 = vor.u32 %v16288_v61, %v12634_v6  ;;  %v16618_v48 = vld [vmem:[#allocation9 + $0x184c] sm:$0xf0]  ;;  %v8866_v42 = vadd.f32 %v18027_v18, %v8853_v13  ;;  %v16276_v6 = vld [vmem:[#allocation9 + $0xd9c] sm:$0xf0]  ;;  %v13738_v61 = vld [vmem:[#allocation9 + $0x1688] sm:$0xf] }
 0x5f0   :  { %9183 = vmatpush.bf16.msrb.mxu2 %v14051_v56  ;;  %v13939_v56 = vor.u32 %v16613_v59, %v13938_v22  ;;  %v12587_v63 = vor.u32 %v16276_v6, %v12586_v15  ;;  %v14802_v13 = vld [vmem:[#allocation9 + $0x1ed0] sm:$0xf]  ;;  %v14778_v15 = vld [vmem:[#allocation9 + $0x1ea0] sm:$0xf] }
 0x5f1   :  { %9837 = vmatpush.bf16.msrb.mxu0 %v13963_v10  ;;  %v13954_v10 = vld [vmem:[#allocation9 + $0x1838] sm:$0xf]  ;;  %v18050_v18 = vadd.f32 %v18030_v5, %v8866_v42  ;;  %v13498_v5 = vld [vmem:[#allocation9 + $0x14a8] sm:$0xf] }
 0x5f2   :  { %9093 = vmatpush.bf16.msra.mxu3 %v12683_v2  ;;  %v16841_v2 = vld [vmem:[#allocation9 + $0x1f44] sm:$0xf0]  ;;  %v13955_v7 = vor.u32 %v16618_v48, %v13954_v10  ;;  %v16504_v48 = vld [vmem:[#allocation9 + $0x14bc] sm:$0xf0] }
 0x5f3   :  { %9171 = vmatpush.bf16.msrb.mxu1 %v13835_v53  ;;  %v12610_v53 = vld [vmem:[#allocation9 + $0xdb8] sm:$0xf]  ;;  %v14851_v59 = vor.u32 %v16841_v2, %v14850_v33  ;;  %v16846_v2 = vld [vmem:[#allocation9 + $0x1f6c] sm:$0xf0]  ;;  %v8932_v42 = vpop.f32.mrf.mxu2  ;;  %v13499_v6 = vor.u32 %v16504_v48, %v13498_v5  ;;  %v16828_v5 = vld [vmem:[#allocation9 + $0x1edc] sm:$0xf0] }
 0x5f4   :  { %9184 = vmatpush.bf16.msrb.mxu2 %v14027_v28  ;;  %v13762_v28 = vld [vmem:[#allocation9 + $0x16b8] sm:$0xf]  ;;  %v8919_v22 = vpop.f32.mrf.mxu1  ;;  %v14730_v48 = vld [vmem:[#allocation9 + $0x1e40] sm:$0xf] }
 0x5f5   :  { %9838 = vmatpush.bf16.msrb.mxu0 %v13939_v56  ;;  %v13763_v3 = vor.u32 %v16570_v9, %v13762_v28  ;;  %v13522_v56 = vld [vmem:[#allocation9 + $0x14d8] sm:$0xf]  ;;  %v13931_v9 = vor.u32 %v16612_v12, %v13930_v4  ;;  %v18052_v4 = vpop.f32.mrf.mxu0  ;;  %v16786_v12 = vld [vmem:[#allocation9 + $0x1d8c] sm:$0xf0] }
 0x5f6   :  { %9094 = vmatpush.bf16.msra.mxu3 %v12659_v39  ;;  %v12611_v39 = vor.u32 %v16282_v23, %v12610_v53  ;;  %v8854_v53 = vpop.f32.mrf.mxu3  ;;  %v13523_v28 = vor.u32 %v16510_v45, %v13522_v56  ;;  %v14626_v45 = vld [vmem:[#allocation9 + $0x1d78] sm:$0xf] }
 0x5f7   :  { %9172 = vmatpush.bf16.msrb.mxu1 %v13811_v37  ;;  %v16835_v37 = vld [vmem:[#allocation9 + $0x1f14] sm:$0xf0]  ;;  %v13450_v53 = vld [vmem:[#allocation9 + $0x1448] sm:$0xf] }
 0x5f8   :  { %9185 = vmatpush.bf16.msrb.mxu2 %v14003_v1  ;;  %v16564_v1 = vld [vmem:[#allocation9 + $0x169c] sm:$0xf0]  ;;  %9839 = vmatmul.bf16.vlgmr.msrb.gmra.mxu0 %v17845_v31  ;;  %v14827_v33 = vor.u32 %v16835_v37, %v14826_v41  ;;  %v14842_v41 = vld [vmem:[#allocation9 + $0x1f28] sm:$0xf]  ;;  %v16811_v42 = vld [vmem:[#allocation9 + $0x1e54] sm:$0xf0] }
 0x5f9   :  { %9883 = vmatpush.bf16.msra.mxu0 %v14875_v47  ;;  %v14674_v47 = vld [vmem:[#allocation9 + $0x1dd8] sm:$0xf]  ;;  %v13739_v23 = vor.u32 %v16564_v1, %v13738_v61  ;;  %v16840_v37 = vld [vmem:[#allocation9 + $0x1f3c] sm:$0xf0] }
 0x5fa   :  { %9095 = vmatpush.bf16.msra.mxu3 %v12635_v14  ;;  %v16798_v14 = vld [vmem:[#allocation9 + $0x1dec] sm:$0xf0]  ;;  %v13474_v1 = vld [vmem:[#allocation9 + $0x1478] sm:$0xf]  ;;  %v14843_v56 = vor.u32 %v16840_v37, %v14842_v41 }
 0x5fb   :  { %9173 = vmatpush.bf16.msrb.mxu1 %v13787_v17  ;;  %v14866_v17 = vld [vmem:[#allocation9 + $0x1f58] sm:$0xf]  ;;  %v14675_v10 = vor.u32 %v16798_v14, %v14674_v47  ;;  %v16486_v41 = vld [vmem:[#allocation9 + $0x142c] sm:$0xf0] }
 0x5fc   :  { %9186 = vmatpush.bf16.msrb.mxu2 %v13979_v57  ;;  %v16829_v57 = vld [vmem:[#allocation9 + $0x1ee4] sm:$0xf0]  ;;  %v14867_v22 = vor.u32 %v16846_v2, %v14866_v17  ;;  %v14818_v14 = vld [vmem:[#allocation9 + $0x1ef8] sm:$0xf]  ;;  %v14627_v2 = vor.u32 %v16786_v12, %v14626_v45  ;;  %v14706_v45 = vld [vmem:[#allocation9 + $0x1e10] sm:$0xf] }
 0x5fd   :  { %9884 = vmatpush.bf16.msra.mxu0 %v14851_v59  ;;  %v16792_v59 = vld [vmem:[#allocation9 + $0x1dbc] sm:$0xf0]  ;;  %v9634_v37 = vpop.f32.mrf.mxu0  ;;  %v16805_v12 = vld [vmem:[#allocation9 + $0x1e24] sm:$0xf0] }
 0x5fe   :  { %9096 = vmatpush.bf16.msra.mxu3 %v12611_v39  ;;  %v14803_v39 = vor.u32 %v16829_v57, %v14802_v13  ;;  %v14651_v61 = vor.u32 %v16792_v59, %v14650_v50  ;;  %v14754_v50 = vld [vmem:[#allocation9 + $0x1e70] sm:$0xf]  ;;  %v14602_v57 = vld [vmem:[#allocation9 + $0x1d48] sm:$0xf] }
 0x5ff   :  { %9174 = vmatpush.bf16.msrb.mxu1 %v13763_v3  ;;  %v16823_v3 = vld [vmem:[#allocation9 + $0x1eb4] sm:$0xf0] }
 0x600   :  { %9187 = vmatpush.bf16.msrb.mxu2 %v13955_v7  ;;  %v16498_v7 = vld [vmem:[#allocation9 + $0x148c] sm:$0xf0]  ;;  %v14779_v47 = vor.u32 %v16823_v3, %v14778_v15  ;;  %v14578_v3 = vld [vmem:[#allocation9 + $0x1d18] sm:$0xf] }
 0x601   :  { %9885 = vmatpush.bf16.msra.mxu0 %v14827_v33  ;;  %v16834_v33 = vld [vmem:[#allocation9 + $0x1f0c] sm:$0xf0]  ;;  %v13475_v17 = vor.u32 %v16498_v7, %v13474_v1  ;;  %v14770_v1 = vld [vmem:[#allocation9 + $0x1e98] sm:$0xf] }
 0x602   :  { %9097 = vmatpush.bf16.msra.mxu3 %v12587_v63  ;;  %v16817_v63 = vld [vmem:[#allocation9 + $0x1e84] sm:$0xf0]  ;;  %v14819_v13 = vor.u32 %v16834_v33, %v14818_v14  ;;  %v16822_v7 = vld [vmem:[#allocation9 + $0x1eac] sm:$0xf0]  ;;  %v15642_v14 = vld [vmem:[#allocation9 + $0x2560] sm:$0xf] }
 0x603   :  { %9175 = vmatpush.bf16.msrb.mxu1 %v13739_v23  ;;  %v16492_v23 = vld [vmem:[#allocation9 + $0x145c] sm:$0xf0] }
 0x604   :  { %9188 = vmatpush.bf16.msrb.mxu2 %v13931_v9  ;;  %v14755_v9 = vor.u32 %v16817_v63, %v14754_v50  ;;  %v17039_v50 = vld [vmem:[#allocation9 + $0x2574] sm:$0xf0]  ;;  %v13402_v63 = vld [vmem:[#allocation9 + $0x13e8] sm:$0xf] }
 0x605   :  { %9098 = vmatmul.bf16.vlgmr.msra.gmra.mxu3 %v17770_v36  ;;  %9886 = vmatpush.bf16.msra.mxu0 %v14803_v39  ;;  %v13426_v39 = vld [vmem:[#allocation9 + $0x1418] sm:$0xf] }
 0x606   :  { %9142 = vmatpush.bf16.msrb.mxu3 %v13523_v28  ;;  %9176 = vmatmul.bf16.vlgmr.msrb.gmra.mxu1 %v17811_v54  ;;  %v16780_v28 = vld [vmem:[#allocation9 + $0x1d5c] sm:$0xf0] }
 0x607   :  { %9220 = vmatpush.bf16.msra.mxu1 %v14675_v10  ;;  %9189 = vmatmul.bf16.vlgmr.msrb.gmra.mxu2 %v17845_v31  ;;  %v14794_v10 = vld [vmem:[#allocation9 + $0x1ec8] sm:$0xf]  ;;  %v14603_v59 = vor.u32 %v16780_v28, %v14602_v57  ;;  %v16816_v28 = vld [vmem:[#allocation9 + $0x1e7c] sm:$0xf0] }
 0x608   :  { %9233 = vmatpush.bf16.msra.mxu2 %v14867_v22  ;;  %v13451_v22 = vor.u32 %v16492_v23, %v13450_v53  ;;  %v14795_v15 = vor.u32 %v16828_v5, %v14794_v10  ;;  %v14554_v53 = vld [vmem:[#allocation9 + $0x1ce8] sm:$0xf]  ;;  %v16768_v23 = vld [vmem:[#allocation9 + $0x1cfc] sm:$0xf0]  ;;  %v15618_v5 = vld [vmem:[#allocation9 + $0x2530] sm:$0xf] }
 0x609   :  { %9887 = vmatpush.bf16.msra.mxu0 %v14779_v47  ;;  %v13427_v47 = vor.u32 %v16486_v41, %v13426_v39  ;;  %v14746_v57 = vld [vmem:[#allocation9 + $0x1e68] sm:$0xf]  ;;  %v16474_v39 = vld [vmem:[#allocation9 + $0x13cc] sm:$0xf0] }
 0x60a   :  { %9143 = vmatpush.bf16.msrb.mxu3 %v13499_v6  ;;  %v16774_v6 = vld [vmem:[#allocation9 + $0x1d2c] sm:$0xf0]  ;;  %v14747_v37 = vor.u32 %v16816_v28, %v14746_v57  ;;  %v16804_v28 = vld [vmem:[#allocation9 + $0x1e1c] sm:$0xf0] }
 0x60b   :  { %9221 = vmatpush.bf16.msra.mxu1 %v14651_v61  ;;  %v14731_v61 = vor.u32 %v16811_v42, %v14730_v48  ;;  %v14579_v33 = vor.u32 %v16774_v6, %v14578_v3  ;;  %v8891_v48 = vpop.f32.mrf.mxu3  ;;  %v14555_v42 = vor.u32 %v16768_v23, %v14554_v53  ;;  %v16762_v3 = vld [vmem:[#allocation9 + $0x1ccc] sm:$0xf0]  ;;  %v18060_v6 = vpop.f32.mrf.mxu2  ;;  %v14698_v23 = vld [vmem:[#allocation9 + $0x1e08] sm:$0xf] }
 0x60c   :  { %9234 = vmatpush.bf16.msra.mxu2 %v14843_v56  ;;  %v18057_v56 = vpop.f32.mrf.mxu1  ;;  %v8892_v41 = vadd.f32 %v8891_v48, %v18050_v18  ;;  %v16702_v57 = vld [vmem:[#allocation9 + $0x1aec] sm:$0xf0] }
 0x60d   :  { %9888 = vmatpush.bf16.msra.mxu0 %v14755_v9  ;;  %v15643_v9 = vor.u32 %v17039_v50, %v15642_v14  ;;  %v15594_v14 = vld [vmem:[#allocation9 + $0x2500] sm:$0xf]  ;;  %v13354_v50 = vld [vmem:[#allocation9 + $0x1388] sm:$0xf] }
 0x60e   :  { %9144 = vmatpush.bf16.msrb.mxu3 %v13475_v17  ;;  %v16480_v17 = vld [vmem:[#allocation9 + $0x13fc] sm:$0xf0] }
 0x60f   :  { %9222 = vmatpush.bf16.msra.mxu1 %v14627_v2  ;;  %v14771_v2 = vor.u32 %v16822_v7, %v14770_v1  ;;  %v13403_v10 = vor.u32 %v16480_v17, %v13402_v63  ;;  %v16810_v1 = vld [vmem:[#allocation9 + $0x1e4c] sm:$0xf0]  ;;  %v8905_v7 = vadd.f32 %v17840_v20, %v8892_v41  ;;  %v16468_v63 = vld [vmem:[#allocation9 + $0x139c] sm:$0xf0]  ;;  %v14506_v17 = vld [vmem:[#allocation9 + $0x1c88] sm:$0xf] }
 0x610   :  { %9235 = vmatpush.bf16.msra.mxu2 %v14819_v13  ;;  %v14707_v13 = vor.u32 %v16805_v12, %v14706_v45  ;;  %v13355_v48 = vor.u32 %v16468_v63, %v13354_v50  ;;  %v17032_v50 = vld [vmem:[#allocation9 + $0x253c] sm:$0xf0]  ;;  %v17015_v63 = vld [vmem:[#allocation9 + $0x24b4] sm:$0xf0] }
 0x611   :  { %9889 = vmatpush.bf16.msra.mxu0 %v14731_v61  ;;  %v14722_v61 = vld [vmem:[#allocation9 + $0x1e38] sm:$0xf]  ;;  %v8918_v20 = vadd.f32 %v18042_v21, %v8905_v7  ;;  %v14699_v21 = vor.u32 %v16804_v28, %v14698_v23  ;;  %v16696_v7 = vld [vmem:[#allocation9 + $0x1abc] sm:$0xf0]  ;;  %v16690_v23 = vld [vmem:[#allocation9 + $0x1a8c] sm:$0xf0] }
 0x612   :  { %9145 = vmatpush.bf16.msrb.mxu3 %v13451_v22  ;;  %v17033_v22 = vld [vmem:[#allocation9 + $0x2544] sm:$0xf0]  ;;  %v14723_v53 = vor.u32 %v16810_v1, %v14722_v61  ;;  %v16978_v28 = vld [vmem:[#allocation9 + $0x238c] sm:$0xf0] }
 0x613   :  { %9223 = vmatpush.bf16.msra.mxu1 %v14603_v59  ;;  %v13378_v59 = vld [vmem:[#allocation9 + $0x13b8] sm:$0xf]  ;;  %v15619_v12 = vor.u32 %v17033_v22, %v15618_v5  ;;  %v17038_v22 = vld [vmem:[#allocation9 + $0x256c] sm:$0xf0]  ;;  %v14266_v1 = vld [vmem:[#allocation9 + $0x1aa8] sm:$0xf] }
 0x614   :  { %9236 = vmatpush.bf16.msra.mxu2 %v14795_v15  ;;  %v14530_v15 = vld [vmem:[#allocation9 + $0x1cb8] sm:$0xf]  ;;  %v8971_v45 = vpop.f32.mrf.mxu1 }
 0x615   :  { %9890 = vmatpush.bf16.msra.mxu0 %v14707_v13  ;;  %v14531_v18 = vor.u32 %v16762_v3, %v14530_v15  ;;  %v14290_v13 = vld [vmem:[#allocation9 + $0x1ad8] sm:$0xf]  ;;  %v17021_v15 = vld [vmem:[#allocation9 + $0x24e4] sm:$0xf0]  ;;  %v8984_v45 = vpop.f32.mrf.mxu2 }
 0x616   :  { %9146 = vmatpush.bf16.msrb.mxu3 %v13427_v47  ;;  %v13379_v47 = vor.u32 %v16474_v39, %v13378_v59  ;;  %v18066_v59 = vadd.f32 %v18045_v38, %v8918_v20  ;;  %v8893_v39 = vpop.f32.mrf.mxu3  ;;  %v14291_v3 = vor.u32 %v16702_v57, %v14290_v13  ;;  %v15610_v38 = vld [vmem:[#allocation9 + $0x2528] sm:$0xf]  ;;  %v18068_v13 = vpop.f32.mrf.mxu0  ;;  %v15394_v20 = vld [vmem:[#allocation9 + $0x2378] sm:$0xf]  ;;  %v15498_v45 = vld [vmem:[#allocation9 + $0x2440] sm:$0xf] }
 0x617   :  { %9224 = vmatpush.bf16.msra.mxu1 %v14579_v33  ;;  %v17027_v33 = vld [vmem:[#allocation9 + $0x2514] sm:$0xf0]  ;;  %v15611_v57 = vor.u32 %v17032_v50, %v15610_v38  ;;  %v15395_v39 = vor.u32 %v16978_v28, %v15394_v20  ;;  %v16678_v38 = vld [vmem:[#allocation9 + $0x1a2c] sm:$0xf0]  ;;  %v16997_v28 = vld [vmem:[#allocation9 + $0x2424] sm:$0xf0] }
 0x618   :  { %9237 = vmatpush.bf16.msra.mxu2 %v14771_v2  ;;  %v16756_v2 = vld [vmem:[#allocation9 + $0x1c9c] sm:$0xf0]  ;;  %9891 = vmatmul.bf16.vlgmr.msra.gmra.mxu0 %v17847_v51  ;;  %v15595_v5 = vor.u32 %v17027_v33, %v15594_v14  ;;  %v15474_v20 = vld [vmem:[#allocation9 + $0x2410] sm:$0xf] }
 0x619   :  { %9935 = vmatpush.bf16.msrb.mxu0 %v15643_v9  ;;  %v15442_v9 = vld [vmem:[#allocation9 + $0x23d8] sm:$0xf]  ;;  %v14507_v41 = vor.u32 %v16756_v2, %v14506_v17  ;;  %v16984_v14 = vld [vmem:[#allocation9 + $0x23bc] sm:$0xf0]  ;;  %v14267_v17 = vor.u32 %v16696_v7, %v14266_v1  ;;  %v15562_v1 = vld [vmem:[#allocation9 + $0x24c8] sm:$0xf] }
 0x61a   :  { %9147 = vmatpush.bf16.msrb.mxu3 %v13403_v10  ;;  %v16990_v10 = vld [vmem:[#allocation9 + $0x23ec] sm:$0xf0]  ;;  %v17020_v7 = vld [vmem:[#allocation9 + $0x24dc] sm:$0xf0] }
 0x61b   :  { %9225 = vmatpush.bf16.msra.mxu1 %v14555_v42  ;;  %v15634_v42 = vld [vmem:[#allocation9 + $0x2558] sm:$0xf]  ;;  %v15443_v61 = vor.u32 %v16990_v10, %v15442_v9 }
 0x61c   :  { %9238 = vmatpush.bf16.msra.mxu2 %v14747_v37  ;;  %v15570_v37 = vld [vmem:[#allocation9 + $0x24d0] sm:$0xf]  ;;  %v15586_v10 = vld [vmem:[#allocation9 + $0x24f8] sm:$0xf] }
 0x61d   :  { %9936 = vmatpush.bf16.msrb.mxu0 %v15619_v12  ;;  %v15635_v12 = vor.u32 %v17038_v22, %v15634_v42  ;;  %v15571_v33 = vor.u32 %v17021_v15, %v15570_v37  ;;  %v17009_v42 = vld [vmem:[#allocation9 + $0x2484] sm:$0xf0]  ;;  %v16684_v37 = vld [vmem:[#allocation9 + $0x1a5c] sm:$0xf0] }
 0x61e   :  { %9148 = vmatpush.bf16.msrb.mxu3 %v13379_v47  ;;  %v15418_v47 = vld [vmem:[#allocation9 + $0x23a8] sm:$0xf]  ;;  %v9686_v50 = vpop.f32.mrf.mxu0 }
 0x61f   :  { %9226 = vmatpush.bf16.msra.mxu1 %v14531_v18  ;;  %v15546_v18 = vld [vmem:[#allocation9 + $0x24a0] sm:$0xf]  ;;  %v15419_v2 = vor.u32 %v16984_v14, %v15418_v47 }
 0x620   :  { %9239 = vmatpush.bf16.msra.mxu2 %v14723_v53  ;;  %v14242_v53 = vld [vmem:[#allocation9 + $0x1a78] sm:$0xf]  ;;  %v15547_v9 = vor.u32 %v17015_v63, %v15546_v18  ;;  %v15563_v18 = vor.u32 %v17020_v7, %v15562_v1  ;;  %v16022_v7 = vld [vmem:[#allocation9 + $0x5b4] sm:$0xf] }
 0x621   :  { %9937 = vmatpush.bf16.msrb.mxu0 %v15595_v5  ;;  %v17026_v5 = vld [vmem:[#allocation9 + $0x250c] sm:$0xf0]  ;;  %v14243_v22 = vor.u32 %v16690_v23, %v14242_v53  ;;  %v15346_v63 = vld [vmem:[#allocation9 + $0x2318] sm:$0xf] }
 0x622   :  { %9149 = vmatpush.bf16.msrb.mxu3 %v13355_v48  ;;  %v15522_v48 = vld [vmem:[#allocation9 + $0x2470] sm:$0xf]  ;;  %v15587_v15 = vor.u32 %v17026_v5, %v15586_v10  ;;  %v15538_v53 = vld [vmem:[#allocation9 + $0x2498] sm:$0xf]  ;;  %v16028_v10 = vld [vmem:[#allocation9 + $0x5e4] sm:$0xf] }
 0x623   :  { %9227 = vmatpush.bf16.msra.mxu1 %v14507_v41  ;;  %v14218_v41 = vld [vmem:[#allocation9 + $0x1a48] sm:$0xf]  ;;  %v17014_v23 = vld [vmem:[#allocation9 + $0x24ac] sm:$0xf0] }
 0x624   :  { %9240 = vmatpush.bf16.msra.mxu2 %v14699_v21  ;;  %v16972_v21 = vld [vmem:[#allocation9 + $0x235c] sm:$0xf0]  ;;  %v14219_v47 = vor.u32 %v16684_v37, %v14218_v41  ;;  %v15322_v41 = vld [vmem:[#allocation9 + $0x22e8] sm:$0xf] }
 0x625   :  { %9150 = vmatmul.bf16.vlgmr.msrb.gmra.mxu3 %v17818_v25  ;;  %9938 = vmatpush.bf16.msrb.mxu0 %v15571_v33  ;;  %v14194_v33 = vld [vmem:[#allocation9 + $0x1a18] sm:$0xf]  ;;  %v16960_v37 = vld [vmem:[#allocation9 + $0x22fc] sm:$0xf0] }
 0x626   :  { %9194 = vmatpush.bf16.msra.mxu3 %v14291_v3  ;;  %9228 = vmatmul.bf16.vlgmr.msra.gmra.mxu1 %v17748_v32  ;;  %v15370_v3 = vld [vmem:[#allocation9 + $0x2348] sm:$0xf] }
 0x627   :  { %9272 = vmatpush.bf16.msrb.mxu1 %v15443_v61  ;;  %9241 = vmatmul.bf16.vlgmr.msra.gmra.mxu2 %v17847_v51  ;;  %v15523_v61 = vor.u32 %v17009_v42, %v15522_v48  ;;  %v15371_v14 = vor.u32 %v16972_v21, %v15370_v3  ;;  %v11612_v48 = vld [vmem:[#allocation9 + $0x5f8] sm:$0xf0]  ;;  %v14170_v42 = vld [vmem:[#allocation9 + $0x19e8] sm:$0xf]  ;;  %v17008_v21 = vld [vmem:[#allocation9 + $0x247c] sm:$0xf0] }
 0x628   :  { %9285 = vmatpush.bf16.msrb.mxu2 %v15635_v12  ;;  %v17003_v12 = vld [vmem:[#allocation9 + $0x2454] sm:$0xf0]  ;;  %v15514_v3 = vld [vmem:[#allocation9 + $0x2468] sm:$0xf] }
 0x629   :  { %9939 = vmatpush.bf16.msrb.mxu0 %v15547_v9  ;;  %v14195_v9 = vor.u32 %v16678_v38, %v14194_v33  ;;  %v16666_v33 = vld [vmem:[#allocation9 + $0x19cc] sm:$0xf0]  ;;  %v15515_v50 = vor.u32 %v17008_v21, %v15514_v3  ;;  %v16996_v21 = vld [vmem:[#allocation9 + $0x241c] sm:$0xf0] }
 0x62a   :  { %9195 = vmatpush.bf16.msra.mxu3 %v14267_v17  ;;  %v16966_v17 = vld [vmem:[#allocation9 + $0x232c] sm:$0xf0] }
 0x62b   :  { %9273 = vmatpush.bf16.msrb.mxu1 %v15419_v2  ;;  %v15499_v2 = vor.u32 %v17003_v12, %v15498_v45  ;;  %v15347_v5 = vor.u32 %v16966_v17, %v15346_v63  ;;  %v8943_v45 = vpop.f32.mrf.mxu3  ;;  %v15323_v12 = vor.u32 %v16960_v37, %v15322_v41  ;;  %v16954_v63 = vld [vmem:[#allocation9 + $0x22cc] sm:$0xf0]  ;;  %v18076_v17 = vpop.f32.mrf.mxu2 }
 0x62c   :  { %9286 = vmatpush.bf16.msrb.mxu2 %v15611_v57  ;;  %v18073_v57 = vpop.f32.mrf.mxu1  ;;  %v8944_v38 = vadd.f32 %v8943_v45, %v18066_v59  ;;  %v16894_v3 = vld [vmem:[#allocation9 + $0x20ec] sm:$0xf0] }
 0x62d   :  { %9940 = vmatpush.bf16.msrb.mxu0 %v15523_v61  ;;  %v11615_v61 = vor.u32 %v16028_v10, %v11612_v48  ;;  %v16016_v10 = vld [vmem:[#allocation9 + $0x584] sm:$0xf]  ;;  %v14122_v48 = vld [vmem:[#allocation9 + $0x1988] sm:$0xf] }
 0x62e   :  { %9196 = vmatpush.bf16.msra.mxu3 %v14243_v22  ;;  %v16672_v22 = vld [vmem:[#allocation9 + $0x19fc] sm:$0xf0] }
 0x62f   :  { %9274 = vmatpush.bf16.msrb.mxu1 %v15395_v39  ;;  %v15539_v39 = vor.u32 %v17014_v23, %v15538_v53  ;;  %v14171_v1 = vor.u32 %v16672_v22, %v14170_v42  ;;  %v17002_v53 = vld [vmem:[#allocation9 + $0x244c] sm:$0xf0]  ;;  %v8957_v23 = vadd.f32 %v17860_v55, %v8944_v38  ;;  %v16660_v42 = vld [vmem:[#allocation9 + $0x199c] sm:$0xf0]  ;;  %v15274_v22 = vld [vmem:[#allocation9 + $0x2288] sm:$0xf] }
 0x630   :  { %9287 = vmatpush.bf16.msrb.mxu2 %v15587_v15  ;;  %v15475_v15 = vor.u32 %v16997_v28, %v15474_v20  ;;  %v15466_v55 = vld [vmem:[#allocation9 + $0x2408] sm:$0xf]  ;;  %v14123_v45 = vor.u32 %v16660_v42, %v14122_v48  ;;  %v11540_v38 = vld [vmem:[#allocation9 + $0x568] sm:$0xf0]  ;;  %v16004_v48 = vld [vmem:[#allocation9 + $0x524] sm:$0xf] }
 0x631   :  { %9941 = vmatpush.bf16.msrb.mxu0 %v15499_v2  ;;  %v15490_v2 = vld [vmem:[#allocation9 + $0x2438] sm:$0xf]  ;;  %v18080_v41 = vadd.f32 %v18057_v56, %v8957_v23 }
 0x632   :  { %9197 = vmatpush.bf16.msra.mxu3 %v14219_v47  ;;  %v11588_v47 = vld [vmem:[#allocation9 + $0x5c8] sm:$0xf0]  ;;  %v15491_v37 = vor.u32 %v17002_v53, %v15490_v2  ;;  %v15034_v2 = vld [vmem:[#allocation9 + $0x20a8] sm:$0xf]  ;;  %v16888_v53 = vld [vmem:[#allocation9 + $0x20bc] sm:$0xf0] }
 0x633   :  { %9275 = vmatpush.bf16.msrb.mxu1 %v15371_v14  ;;  %v14146_v14 = vld [vmem:[#allocation9 + $0x19b8] sm:$0xf]  ;;  %v11591_v28 = vor.u32 %v16022_v7, %v11588_v47  ;;  %18542 = vst [vmem:[#allocation29_spill] sm:$0xff] %v18080_v41  ;;  %v11604_v47 = vld [vmem:[#allocation9 + $0x5f0] sm:$0xf0]  ;;  %v9036_v23 = vpop.f32.mrf.mxu2  ;;  %v15035_v42 = vor.u32 %v16888_v53, %v15034_v2 }
 0x634   :  { %9288 = vmatpush.bf16.msrb.mxu2 %v15563_v18  ;;  %v15298_v18 = vld [vmem:[#allocation9 + $0x22b8] sm:$0xf]  ;;  %v9023_v20 = vpop.f32.mrf.mxu1  ;;  %v15973_v41 = vld [vmem:[#allocation9 + $0x42c] sm:$0xf]  ;;  %v11532_v2 = vld [vmem:[#allocation9 + $0x560] sm:$0xf0] }
 0x635   :  { %9942 = vmatpush.bf16.msrb.mxu0 %v15475_v15  ;;  %v15299_v59 = vor.u32 %v16954_v63, %v15298_v18  ;;  %v15058_v15 = vld [vmem:[#allocation9 + $0x20d8] sm:$0xf]  ;;  %v15992_v53 = vld [vmem:[#allocation9 + $0x4c4] sm:$0xf]  ;;  %v11468_v23 = vld [vmem:[#allocation9 + $0x4d8] sm:$0xf0] }
 0x636   :  { %9198 = vmatpush.bf16.msra.mxu3 %v14195_v9  ;;  %v14147_v9 = vor.u32 %v16666_v33, %v14146_v14  ;;  %v8945_v14 = vpop.f32.mrf.mxu3  ;;  %v16010_v33 = vld [vmem:[#allocation9 + $0x554] sm:$0xf]  ;;  %v15059_v18 = vor.u32 %v16894_v3, %v15058_v15  ;;  %v15967_v3 = vld [vmem:[#allocation9 + $0x3fc] sm:$0xf] }
 0x637   :  { %9276 = vmatpush.bf16.msrb.mxu1 %v15347_v5  ;;  %v11564_v5 = vld [vmem:[#allocation9 + $0x598] sm:$0xf0]  ;;  %v14986_v14 = vld [vmem:[#allocation9 + $0x2048] sm:$0xf] }
 0x638   :  { %9289 = vmatpush.bf16.msrb.mxu2 %v15539_v39  ;;  %v16948_v39 = vld [vmem:[#allocation9 + $0x229c] sm:$0xf0]  ;;  %9943 = vmatmul.bf16.vlgmr.msrb.gmra.mxu0 %v17870_v52  ;;  %v11567_v7 = vor.u32 %v16016_v10, %v11564_v5  ;;  %v16021_v10 = vld [vmem:[#allocation9 + $0x5ac] sm:$0xf]  ;;  %v11580_v5 = vld [vmem:[#allocation9 + $0x5c0] sm:$0xf0] }
 0x639   :  { %9987 = vmatpush.bf16.msra.mxu0 %v11615_v61  ;;  %v15979_v61 = vld [vmem:[#allocation9 + $0x45c] sm:$0xf]  ;;  %v15275_v56 = vor.u32 %v16948_v39, %v15274_v22  ;;  %v15010_v39 = vld [vmem:[#allocation9 + $0x2078] sm:$0xf]  ;;  %v11583_v15 = vor.u32 %v16021_v10, %v11580_v5  ;;  %v16870_v10 = vld [vmem:[#allocation9 + $0x202c] sm:$0xf0] }
 0x63a   :  { %9199 = vmatpush.bf16.msra.mxu3 %v14171_v1  ;;  %v11412_v1 = vld [vmem:[#allocation9 + $0x470] sm:$0xf0] }
 0x63b   :  { %9277 = vmatpush.bf16.msrb.mxu1 %v15323_v12  ;;  %v16027_v12 = vld [vmem:[#allocation9 + $0x5dc] sm:$0xf]  ;;  %v11415_v63 = vor.u32 %v15979_v61, %v11412_v1 }
 0x63c   :  { %9290 = vmatpush.bf16.msrb.mxu2 %v15515_v50  ;;  %v15467_v50 = vor.u32 %v16996_v21, %v15466_v55  ;;  %v11607_v20 = vor.u32 %v16027_v12, %v11604_v47  ;;  %v18083_v55 = vpop.f32.mrf.mxu0  ;;  %v11364_v21 = vld [vmem:[#allocation9 + $0x410] sm:$0xf0]  ;;  %v16015_v1 = vld [vmem:[#allocation9 + $0x57c] sm:$0xf] }
 0x63d   :  { %9988 = vmatpush.bf16.msra.mxu0 %v11591_v28  ;;  %v11388_v28 = vld [vmem:[#allocation9 + $0x440] sm:$0xf0]  ;;  %v11367_v47 = vor.u32 %v15967_v3, %v11364_v21  ;;  %v11508_v3 = vld [vmem:[#allocation9 + $0x530] sm:$0xf0] }
 0x63e   :  { %9200 = vmatpush.bf16.msra.mxu3 %v14147_v9  ;;  %v11543_v9 = vor.u32 %v16010_v33, %v11540_v38  ;;  %v11391_v22 = vor.u32 %v15973_v41, %v11388_v28  ;;  %v15998_v41 = vld [vmem:[#allocation9 + $0x4f4] sm:$0xf]  ;;  %v15961_v38 = vld [vmem:[#allocation9 + $0x3cc] sm:$0xf] }
 0x63f   :  { %9278 = vmatpush.bf16.msrb.mxu1 %v15299_v59  ;;  %v11516_v59 = vld [vmem:[#allocation9 + $0x538] sm:$0xf0] }
 0x640   :  { %9291 = vmatpush.bf16.msrb.mxu2 %v15491_v37  ;;  %v16882_v37 = vld [vmem:[#allocation9 + $0x208c] sm:$0xf0]  ;;  %v11519_v61 = vor.u32 %v16004_v48, %v11516_v59  ;;  %v15955_v59 = vld [vmem:[#allocation9 + $0x39c] sm:$0xf] }
 0x641   :  { %9989 = vmatpush.bf16.msra.mxu0 %v11567_v7  ;;  %v11556_v7 = vld [vmem:[#allocation9 + $0x590] sm:$0xf0]  ;;  %v15011_v12 = vor.u32 %v16882_v37, %v15010_v39  ;;  %v11471_v37 = vor.u32 %v15992_v53, %v11468_v23 }
 0x642   :  { %9201 = vmatpush.bf16.msra.mxu3 %v14123_v45  ;;  %v11492_v45 = vld [vmem:[#allocation9 + $0x508] sm:$0xf0]  ;;  %v11559_v33 = vor.u32 %v16015_v1, %v11556_v7 }
 0x643   :  { %9279 = vmatpush.bf16.msrb.mxu1 %v15275_v56  ;;  %v16876_v56 = vld [vmem:[#allocation9 + $0x205c] sm:$0xf0]  ;;  %v18088_v21 = vpop.f32.mrf.mxu1  ;;  %v11444_v1 = vld [vmem:[#allocation9 + $0x4a8] sm:$0xf0] }
 0x644   :  { %9292 = vmatpush.bf16.msrb.mxu2 %v15467_v50  ;;  %v11495_v50 = vor.u32 %v15998_v41, %v11492_v45  ;;  %v9738_v5 = vpop.f32.mrf.mxu0  ;;  %v16220_v41 = vld [vmem:[#allocation9 + $0xbe4] sm:$0xf] }
 0x645   :  { %9202 = vmatmul.bf16.vlgmr.msra.gmra.mxu3 %v17822_v58  ;;  %9990 = vmatpush.bf16.msra.mxu0 %v11543_v9  ;;  %v14962_v9 = vld [vmem:[#allocation9 + $0x2018] sm:$0xf] }
 0x646   :  { %9246 = vmatpush.bf16.msrb.mxu3 %v15059_v18  ;;  %9280 = vmatmul.bf16.vlgmr.msrb.gmra.mxu1 %v17774_v60  ;;  %v11340_v18 = vld [vmem:[#allocation9 + $0x3e0] sm:$0xf0]  ;;  %v14963_v7 = vor.u32 %v16870_v10, %v14962_v9  ;;  %v12356_v10 = vld [vmem:[#allocation9 + $0xbc8] sm:$0xf0]  ;;  %v14914_v5 = vld [vmem:[#allocation9 + $0x1fb8] sm:$0xf] }
 0x647   :  { %9324 = vmatpush.bf16.msra.mxu1 %v11415_v63  ;;  %9293 = vmatmul.bf16.vlgmr.msrb.gmra.mxu2 %v17870_v52  ;;  %v16009_v63 = vld [vmem:[#allocation9 + $0x54c] sm:$0xf]  ;;  %v11343_v28 = vor.u32 %v15961_v38, %v11340_v18  ;;  %v11292_v38 = vld [vmem:[#allocation9 + $0x380] sm:$0xf0] }
 0x648   :  { %9337 = vmatpush.bf16.msra.mxu2 %v11607_v20  ;;  %v14987_v20 = vor.u32 %v16876_v56, %v14986_v14  ;;  %v11535_v48 = vor.u32 %v16009_v63, %v11532_v2  ;;  %v16864_v14 = vld [vmem:[#allocation9 + $0x1ffc] sm:$0xf0]  ;;  %v11484_v63 = vld [vmem:[#allocation9 + $0x500] sm:$0xf0] }
 0x649   :  { %9991 = vmatpush.bf16.msra.mxu0 %v11519_v61  ;;  %v15986_v61 = vld [vmem:[#allocation9 + $0x494] sm:$0xf] }
 0x64a   :  { %9247 = vmatpush.bf16.msrb.mxu3 %v15035_v42  ;;  %v11316_v42 = vld [vmem:[#allocation9 + $0x3b0] sm:$0xf0]  ;;  %v11447_v18 = vor.u32 %v15986_v61, %v11444_v1 }
 0x64b   :  { %9325 = vmatpush.bf16.msra.mxu1 %v11391_v22  ;;  %v17101_v22 = vld [vmem:[#allocation10] sm:$0x3f]  ;;  %v11319_v45 = vor.u32 %v15955_v59, %v11316_v42  ;;  %v16858_v59 = vld [vmem:[#allocation9 + $0x1fcc] sm:$0xf0]  ;;  %v9075_v61 = vpop.f32.mrf.mxu1 }
 0x64c   :  { %9338 = vmatpush.bf16.msra.mxu2 %v11583_v15  ;;  %v2313_v39 = vperm.slane %v17101_v22, 2  ;;  %v16003_v15 = vld [vmem:[#allocation9 + $0x51c] sm:$0xf] }
 0x64d   :  { %9992 = vmatpush.bf16.msra.mxu0 %v11495_v50  ;;  %v11511_v56 = vor.u32 %v16003_v15, %v11508_v3  ;;  %v15997_v50 = vld [vmem:[#allocation9 + $0x4ec] sm:$0xf]  ;;  %v15943_v22 = vld [vmem:[#allocation9 + $0x33c] sm:$0xf]  ;;  %v18091_v15 = vpop.f32.mrf.mxu2 }
 0x64e   :  { %9248 = vmatpush.bf16.msrb.mxu3 %v15011_v12  ;;  %v12380_v12 = vld [vmem:[#allocation9 + $0xbf8] sm:$0xf0]  ;;  %v8983_v2 = vadd.f32 %v18060_v6, %v2313_v39  ;;  %v11487_v42 = vor.u32 %v15997_v50, %v11484_v63  ;;  %v11460_v6 = vld [vmem:[#allocation9 + $0x4d0] sm:$0xf0] }
 0x64f   :  { %9326 = vmatpush.bf16.msra.mxu1 %v11367_v47  ;;  %v14938_v47 = vld [vmem:[#allocation9 + $0x1fe8] sm:$0xf]  ;;  %v12383_v53 = vor.u32 %v16220_v41, %v12380_v12  ;;  %v15991_v3 = vld [vmem:[#allocation9 + $0x4bc] sm:$0xf]  ;;  %v16208_v41 = vld [vmem:[#allocation9 + $0xb84] sm:$0xf] }
 0x650   :  { %9339 = vmatpush.bf16.msra.mxu2 %v11559_v33  ;;  %v15949_v33 = vld [vmem:[#allocation9 + $0x36c] sm:$0xf]  ;;  %v14939_v23 = vor.u32 %v16864_v14, %v14938_v47  ;;  %v14890_v12 = vld [vmem:[#allocation9 + $0x1f88] sm:$0xf]  ;;  %v16852_v14 = vld [vmem:[#allocation9 + $0x1f9c] sm:$0xf0] }
 0x651   :  { %9993 = vmatpush.bf16.msra.mxu0 %v11471_v37  ;;  %v11295_v9 = vor.u32 %v15949_v33, %v11292_v38  ;;  %v11268_v37 = vld [vmem:[#allocation9 + $0x350] sm:$0xf0]  ;;  %v11244_v33 = vld [vmem:[#allocation9 + $0x320] sm:$0xf0]  ;;  %v11463_v38 = vor.u32 %v15991_v3, %v11460_v6  ;;  %v15883_v50 = vld [vmem:[#allocation9 + $0x15c] sm:$0xf] }
 0x652   :  { %9249 = vmatpush.bf16.msrb.mxu3 %v14987_v20  ;;  %v16214_v20 = vld [vmem:[#allocation9 + $0xbb4] sm:$0xf]  ;;  %v11271_v47 = vor.u32 %v15943_v22, %v11268_v37  ;;  %v12308_v22 = vld [vmem:[#allocation9 + $0xb68] sm:$0xf0] }
 0x653   :  { %9327 = vmatpush.bf16.msra.mxu1 %v11343_v28  ;;  %v8995_v28 = vpop.f32.mrf.mxu3  ;;  %v12359_v1 = vor.u32 %v16214_v20, %v12356_v10  ;;  %v11028_v63 = vld [vmem:[#allocation9 + $0x170] sm:$0xf0]  ;;  %v15877_v6 = vld [vmem:[#allocation9 + $0x12c] sm:$0xf] }
 0x654   :  { %9340 = vmatpush.bf16.msra.mxu2 %v11535_v48  ;;  %v8996_v48 = vadd.f32 %v8995_v28, %v8983_v2  ;;  %v11436_v2 = vld [vmem:[#allocation9 + $0x4a0] sm:$0xf0]  ;;  %v14891_v28 = vor.u32 %v16852_v14, %v14890_v12  ;;  %v12372_v10 = vld [vmem:[#allocation9 + $0xbf0] sm:$0xf0]  ;;  %v11031_v37 = vor.u32 %v15883_v50, %v11028_v63  ;;  %v12284_v14 = vld [vmem:[#allocation9 + $0xb38] sm:$0xf0] }
 0x655   :  { %9994 = vmatpush.bf16.msra.mxu0 %v11447_v18  ;;  %v15985_v18 = vld [vmem:[#allocation9 + $0x48c] sm:$0xf]  ;;  %v9088_v61 = vpop.f32.mrf.mxu2  ;;  %v12348_v12 = vld [vmem:[#allocation9 + $0xbc0] sm:$0xf0]  ;;  %v18099_v50 = vpop.f32.mrf.mxu0 }
 0x656   :  { %9250 = vmatpush.bf16.msrb.mxu3 %v14963_v7  ;;  %v9009_v39 = vadd.f32 %v17874_v11, %v8996_v48  ;;  %v14915_v7 = vor.u32 %v16858_v59, %v14914_v5  ;;  %v16184_v61 = vld [vmem:[#allocation9 + $0xac4] sm:$0xf] }
 0x657   :  { %9328 = vmatpush.bf16.msra.mxu1 %v11319_v45  ;;  %v12332_v45 = vld [vmem:[#allocation9 + $0xb98] sm:$0xf0] }
 0x658   :  { %9341 = vmatpush.bf16.msra.mxu2 %v11511_v56  ;;  %v15937_v56 = vld [vmem:[#allocation9 + $0x30c] sm:$0xf]  ;;  %9995 = vmatmul.bf16.vlgmr.msra.gmra.mxu0 %v17727_v34  ;;  %v9022_v11 = vadd.f32 %v18073_v57, %v9009_v39  ;;  %v12335_v20 = vor.u32 %v16208_v41, %v12332_v45  ;;  %v11439_v57 = vor.u32 %v15985_v18, %v11436_v2  ;;  %v11004_v39 = vld [vmem:[#allocation9 + $0x140] sm:$0xf0]  ;;  %v10980_v18 = vld [vmem:[#allocation9 + $0x110] sm:$0xf0] }
 0x659   :  { %10039 = vmatpush.bf16.msrb.mxu0 %v12383_v53  ;;  %v16171_v53 = vld [vmem:[#allocation9 + $0xa5c] sm:$0xf]  ;;  %v11247_v48 = vor.u32 %v15937_v56, %v11244_v33  ;;  %v12156_v41 = vld [vmem:[#allocation9 + $0xa40] sm:$0xf0]  ;;  %v11007_v56 = vor.u32 %v15877_v6, %v11004_v39  ;;  %v12132_v2 = vld [vmem:[#allocation9 + $0xa10] sm:$0xf0] }
 0x65a   :  { %9251 = vmatpush.bf16.msrb.mxu3 %v14939_v23  ;;  %v12180_v23 = vld [vmem:[#allocation9 + $0xa70] sm:$0xf0]  ;;  %v18097_v5 = vadd.f32 %v18076_v17, %v9022_v11  ;;  %v16213_v17 = vld [vmem:[#allocation9 + $0xbac] sm:$0xf]  ;;  %v16159_v11 = vld [vmem:[#allocation9 + $0x9fc] sm:$0xf] }
 0x65b   :  { %9329 = vmatpush.bf16.msra.mxu1 %v11295_v9  ;;  %v16219_v9 = vld [vmem:[#allocation9 + $0xbdc] sm:$0xf]  ;;  %v8997_v59 = vpop.f32.mrf.mxu3  ;;  %v12183_v3 = vor.u32 %v16171_v53, %v12180_v23  ;;  %v12351_v63 = vor.u32 %v16213_v17, %v12348_v12  ;;  %v16201_v6 = vld [vmem:[#allocation9 + $0xb4c] sm:$0xf]  ;;  %v12300_v39 = vld [vmem:[#allocation9 + $0xb60] sm:$0xf0] }
 0x65c   :  { %9342 = vmatpush.bf16.msra.mxu2 %v11487_v42  ;;  %v16202_v42 = vld [vmem:[#allocation9 + $0xb54] sm:$0xf]  ;;  %v16207_v23 = vld [vmem:[#allocation9 + $0xb7c] sm:$0xf]  ;;  %v12135_v59 = vor.u32 %v16159_v11, %v12132_v2  ;;  %v12212_v2 = vld [vmem:[#allocation9 + $0xaa8] sm:$0xf0] }
 0x65d   :  { %10040 = vmatpush.bf16.msrb.mxu0 %v12359_v1  ;;  %v12375_v1 = vor.u32 %v16219_v9, %v12372_v10  ;;  %v12311_v45 = vor.u32 %v16202_v42, %v12308_v22  ;;  %v12260_v9 = vld [vmem:[#allocation9 + $0xb08] sm:$0xf0]  ;;  %v10956_v42 = vld [vmem:[#allocation9 + $0xe0] sm:$0xf0]  ;;  %v10932_v17 = vld [vmem:[#allocation9 + $0xb0] sm:$0xf0]  ;;  %v9790_v12 = vpop.f32.mrf.mxu0 }
 0x65e   :  { %9252 = vmatpush.bf16.msrb.mxu3 %v14915_v7  ;;  %v16165_v7 = vld [vmem:[#allocation9 + $0xa2c] sm:$0xf]  ;;  %v16178_v11 = vld [vmem:[#allocation9 + $0xa94] sm:$0xf] }
 0x65f   :  { %9330 = vmatpush.bf16.msra.mxu1 %v11271_v47  ;;  %v16196_v47 = vld [vmem:[#allocation9 + $0xb24] sm:$0xf]  ;;  %v12159_v33 = vor.u32 %v16165_v7, %v12156_v41 }
 0x660   :  { %9343 = vmatpush.bf16.msra.mxu2 %v11463_v38  ;;  %v15871_v38 = vld [vmem:[#allocation9 + $0xfc] sm:$0xf]  ;;  %v12287_v53 = vor.u32 %v16196_v47, %v12284_v14  ;;  %v12303_v47 = vor.u32 %v16201_v6, %v12300_v39  ;;  %v16406_v39 = vld [vmem:[#allocation9 + $0x11b4] sm:$0xf] }
 0x661   :  { %10041 = vmatpush.bf16.msrb.mxu0 %v12335_v20  ;;  %v12324_v20 = vld [vmem:[#allocation9 + $0xb90] sm:$0xf0]  ;;  %v10983_v10 = vor.u32 %v15871_v38, %v10980_v18  ;;  %v16147_v14 = vld [vmem:[#allocation9 + $0x99c] sm:$0xf] }
 0x662   :  { %9253 = vmatpush.bf16.msrb.mxu3 %v14891_v28  ;;  %v16190_v28 = vld [vmem:[#allocation9 + $0xaf4] sm:$0xf]  ;;  %v12327_v22 = vor.u32 %v16207_v23, %v12324_v20  ;;  %v16195_v38 = vld [vmem:[#allocation9 + $0xb1c] sm:$0xf]  ;;  %v16412_v23 = vld [vmem:[#allocation9 + $0x11e4] sm:$0xf] }
 0x663   :  { %9331 = vmatpush.bf16.msra.mxu1 %v11247_v48  ;;  %v15865_v48 = vld [vmem:[#allocation9 + $0xcc] sm:$0xf]  ;;  %v12276_v18 = vld [vmem:[#allocation9 + $0xb30] sm:$0xf0] }
 0x664   :  { %9344 = vmatpush.bf16.msra.mxu2 %v11439_v57  ;;  %v12108_v57 = vld [vmem:[#allocation9 + $0x9e0] sm:$0xf0]  ;;  %v10959_v7 = vor.u32 %v15865_v48, %v10956_v42  ;;  %v16141_v48 = vld [vmem:[#allocation9 + $0x96c] sm:$0xf] }
 0x665   :  { %9254 = vmatmul.bf16.vlgmr.msrb.gmra.mxu3 %v17850_v62  ;;  %10042 = vmatpush.bf16.msrb.mxu0 %v12311_v45  ;;  %v15859_v45 = vld [vmem:[#allocation9 + $0x9c] sm:$0xf]  ;;  %v12060_v42 = vld [vmem:[#allocation9 + $0x980] sm:$0xf0] }
 0x666   :  { %9298 = vmatpush.bf16.msra.mxu3 %v11031_v37  ;;  %9332 = vmatmul.bf16.vlgmr.msra.gmra.mxu1 %v17724_v29  ;;  %v16153_v37 = vld [vmem:[#allocation9 + $0x9cc] sm:$0xf] }
 0x667   :  { %9376 = vmatpush.bf16.msrb.mxu1 %v12183_v3  ;;  %9345 = vmatmul.bf16.vlgmr.msra.gmra.mxu2 %v17727_v34  ;;  %v12263_v3 = vor.u32 %v16190_v28, %v12260_v9  ;;  %v12111_v41 = vor.u32 %v16153_v37, %v12108_v57  ;;  %v13148_v28 = vld [vmem:[#allocation9 + $0x11f8] sm:$0xf0]  ;;  %v15853_v9 = vld [vmem:[#allocation9 + $0x6c] sm:$0xf]  ;;  %v12252_v57 = vld [vmem:[#allocation9 + $0xb00] sm:$0xf0] }
 0x668   :  { %9389 = vmatpush.bf16.msrb.mxu2 %v12375_v1  ;;  %v12236_v1 = vld [vmem:[#allocation9 + $0xad8] sm:$0xf0]  ;;  %v16189_v37 = vld [vmem:[#allocation9 + $0xaec] sm:$0xf] }
 0x669   :  { %10043 = vmatpush.bf16.msrb.mxu0 %v12287_v53  ;;  %v10935_v53 = vor.u32 %v15859_v45, %v10932_v17  ;;  %v10884_v45 = vld [vmem:[#allocation9 + $0x50] sm:$0xf0]  ;;  %v12255_v12 = vor.u32 %v16189_v37, %v12252_v57  ;;  %v12204_v57 = vld [vmem:[#allocation9 + $0xaa0] sm:$0xf0] }
 0x66a   :  { %9299 = vmatpush.bf16.msra.mxu3 %v11007_v56  ;;  %v12084_v56 = vld [vmem:[#allocation9 + $0x9b0] sm:$0xf0] }
 0x66b   :  { %9377 = vmatpush.bf16.msrb.mxu1 %v12159_v33  ;;  %v12239_v33 = vor.u32 %v16184_v61, %v12236_v1  ;;  %v12087_v20 = vor.u32 %v16147_v14, %v12084_v56  ;;  %v9047_v61 = vpop.f32.mrf.mxu3  ;;  %v12063_v1 = vor.u32 %v16141_v48, %v12060_v42  ;;  %v12036_v14 = vld [vmem:[#allocation9 + $0x950] sm:$0xf0]  ;;  %v18107_v56 = vpop.f32.mrf.mxu2  ;;  %v16177_v42 = vld [vmem:[#allocation9 + $0xa8c] sm:$0xf] }
 0x66c   :  { %9390 = vmatpush.bf16.msrb.mxu2 %v12351_v63  ;;  %v18104_v63 = vpop.f32.mrf.mxu1  ;;  %v9048_v17 = vadd.f32 %v9047_v61, %v18097_v5  ;;  %v11796_v37 = vld [vmem:[#allocation9 + $0x770] sm:$0xf0] }
 0x66d   :  { %10044 = vmatpush.bf16.msrb.mxu0 %v12263_v3  ;;  %v13151_v3 = vor.u32 %v16412_v23, %v13148_v28  ;;  %v16400_v23 = vld [vmem:[#allocation9 + $0x1184] sm:$0xf]  ;;  %v15841_v28 = vld [vmem:[#allocation9 + $0xc] sm:$0xf] }
 0x66e   :  { %9300 = vmatpush.bf16.msra.mxu3 %v10983_v10  ;;  %v10908_v10 = vld [vmem:[#allocation9 + $0x80] sm:$0xf0] }
 0x66f   :  { %9378 = vmatpush.bf16.msrb.mxu1 %v12135_v59  ;;  %v12279_v59 = vor.u32 %v16195_v38, %v12276_v18  ;;  %v10911_v6 = vor.u32 %v15853_v9, %v10908_v10  ;;  %v12228_v38 = vld [vmem:[#allocation9 + $0xad0] sm:$0xf0]  ;;  %v9061_v18 = vadd.f32 %v17888_v0, %v9048_v17  ;;  %v10860_v9 = vld [vmem:[#allocation9 + $0x20] sm:$0xf0]  ;;  %v16129_v10 = vld [vmem:[#allocation9 + $0x90c] sm:$0xf] }
 0x670   :  { %9391 = vmatpush.bf16.msrb.mxu2 %v12327_v22  ;;  %v12215_v22 = vor.u32 %v16178_v11, %v12212_v2  ;;  %v10863_v61 = vor.u32 %v15841_v28, %v10860_v9  ;;  %v13116_v28 = vld [vmem:[#allocation9 + $0x11c0] sm:$0xf0]  ;;  %v13052_v9 = vld [vmem:[#allocation9 + $0x1138] sm:$0xf0] }
 0x671   :  { %10045 = vmatpush.bf16.msrb.mxu0 %v12239_v33  ;;  %v16183_v33 = vld [vmem:[#allocation9 + $0xabc] sm:$0xf]  ;;  %v9074_v0 = vadd.f32 %v18088_v21, %v9061_v18  ;;  %v12207_v21 = vor.u32 %v16177_v42, %v12204_v57  ;;  %v11772_v18 = vld [vmem:[#allocation9 + $0x740] sm:$0xf0]  ;;  %v11748_v42 = vld [vmem:[#allocation9 + $0x710] sm:$0xf0] }
 0x672   :  { %9301 = vmatpush.bf16.msra.mxu3 %v10959_v7  ;;  %v13124_v7 = vld [vmem:[#allocation9 + $0x11c8] sm:$0xf0]  ;;  %v12231_v48 = vor.u32 %v16183_v33, %v12228_v38  ;;  %v12900_v57 = vld [vmem:[#allocation9 + $0x1010] sm:$0xf0] }
 0x673   :  { %9379 = vmatpush.bf16.msrb.mxu1 %v12111_v41  ;;  %v15847_v41 = vld [vmem:[#allocation9 + $0x3c] sm:$0xf]  ;;  %v13127_v2 = vor.u32 %v16406_v39, %v13124_v7  ;;  %v13140_v7 = vld [vmem:[#allocation9 + $0x11f0] sm:$0xf0]  ;;  %v16069_v38 = vld [vmem:[#allocation9 + $0x72c] sm:$0xf] }
 0x674   :  { %9392 = vmatpush.bf16.msrb.mxu2 %v12303_v47  ;;  %v16135_v47 = vld [vmem:[#allocation9 + $0x93c] sm:$0xf]  ;;  %v9127_v11 = vpop.f32.mrf.mxu1 }
 0x675   :  { %10046 = vmatpush.bf16.msrb.mxu0 %v12215_v22  ;;  %v12039_v5 = vor.u32 %v16135_v47, %v12036_v14  ;;  %v16075_v22 = vld [vmem:[#allocation9 + $0x75c] sm:$0xf]  ;;  %v13076_v47 = vld [vmem:[#allocation9 + $0x1168] sm:$0xf0]  ;;  %v9140_v11 = vpop.f32.mrf.mxu2 }
 0x676   :  { %9302 = vmatpush.bf16.msra.mxu3 %v10935_v53  ;;  %v10887_v53 = vor.u32 %v15847_v41, %v10884_v45  ;;  %v18113_v41 = vadd.f32 %v18091_v15, %v9074_v0  ;;  %v9049_v45 = vpop.f32.mrf.mxu3  ;;  %v11799_v14 = vor.u32 %v16075_v22, %v11796_v37  ;;  %v16405_v15 = vld [vmem:[#allocation9 + $0x11ac] sm:$0xf]  ;;  %v18115_v22 = vpop.f32.mrf.mxu0  ;;  %v16351_v0 = vld [vmem:[#allocation9 + $0xffc] sm:$0xf]  ;;  %v16376_v11 = vld [vmem:[#allocation9 + $0x10c4] sm:$0xf] }
 0x677   :  { %9380 = vmatpush.bf16.msrb.mxu1 %v12087_v20  ;;  %v13100_v20 = vld [vmem:[#allocation9 + $0x1198] sm:$0xf0]  ;;  %v13119_v37 = vor.u32 %v16405_v15, %v13116_v28  ;;  %v12903_v45 = vor.u32 %v16351_v0, %v12900_v57  ;;  %v11700_v15 = vld [vmem:[#allocation9 + $0x6b0] sm:$0xf0]  ;;  %v12980_v57 = vld [vmem:[#allocation9 + $0x10a8] sm:$0xf0] }
 0x678   :  { %9393 = vmatpush.bf16.msrb.mxu2 %v12279_v59  ;;  %v12012_v59 = vld [vmem:[#allocation9 + $0x920] sm:$0xf0]  ;;  %10047 = vmatmul.bf16.vlgmr.msrb.gmra.mxu0 %v17780_v35  ;;  %v13103_v39 = vor.u32 %v16400_v23, %v13100_v20  ;;  %v16370_v0 = vld [vmem:[#allocation9 + $0x1094] sm:$0xf] }
 0x679   :  { %10091 = vmatpush.bf16.msra.mxu0 %v13151_v3  ;;  %v16363_v3 = vld [vmem:[#allocation9 + $0x105c] sm:$0xf]  ;;  %v12015_v17 = vor.u32 %v16129_v10, %v12012_v59  ;;  %v12924_v23 = vld [vmem:[#allocation9 + $0x1040] sm:$0xf0]  ;;  %v11775_v10 = vor.u32 %v16069_v38, %v11772_v18  ;;  %v16393_v38 = vld [vmem:[#allocation9 + $0x114c] sm:$0xf] }
 0x67a   :  { %9303 = vmatpush.bf16.msra.mxu3 %v10911_v6  ;;  %v12948_v6 = vld [vmem:[#allocation9 + $0x1070] sm:$0xf0]  ;;  %v13068_v18 = vld [vmem:[#allocation9 + $0x1160] sm:$0xf0] }
 0x67b   :  { %9381 = vmatpush.bf16.msrb.mxu1 %v12063_v1  ;;  %v16411_v1 = vld [vmem:[#allocation9 + $0x11dc] sm:$0xf]  ;;  %v12951_v33 = vor.u32 %v16363_v3, %v12948_v6 }
 0x67c   :  { %9394 = vmatpush.bf16.msrb.mxu2 %v12255_v12  ;;  %v16394_v12 = vld [vmem:[#allocation9 + $0x1154] sm:$0xf]  ;;  %v16399_v6 = vld [vmem:[#allocation9 + $0x117c] sm:$0xf] }
 0x67d   :  { %10092 = vmatpush.bf16.msra.mxu0 %v13127_v2  ;;  %v13143_v2 = vor.u32 %v16411_v1, %v13140_v7  ;;  %v13079_v20 = vor.u32 %v16394_v12, %v13076_v47  ;;  %v13028_v1 = vld [vmem:[#allocation9 + $0x1108] sm:$0xf0]  ;;  %v11724_v12 = vld [vmem:[#allocation9 + $0x6e0] sm:$0xf0] }
 0x67e   :  { %9304 = vmatpush.bf16.msra.mxu3 %v10887_v53  ;;  %v16357_v53 = vld [vmem:[#allocation9 + $0x102c] sm:$0xf]  ;;  %v9842_v28 = vpop.f32.mrf.mxu0 }
 0x67f   :  { %9382 = vmatpush.bf16.msrb.mxu1 %v12039_v5  ;;  %v16388_v5 = vld [vmem:[#allocation9 + $0x1124] sm:$0xf]  ;;  %v12927_v59 = vor.u32 %v16357_v53, %v12924_v23 }
 0x680   :  { %9395 = vmatpush.bf16.msrb.mxu2 %v12231_v48  ;;  %v16063_v48 = vld [vmem:[#allocation9 + $0x6fc] sm:$0xf]  ;;  %v13055_v3 = vor.u32 %v16388_v5, %v13052_v9  ;;  %v13071_v5 = vor.u32 %v16393_v38, %v13068_v18  ;;  %v16598_v18 = vld [vmem:[#allocation9 + $0x17b4] sm:$0xf] }
 0x681   :  { %10093 = vmatpush.bf16.msra.mxu0 %v13103_v39  ;;  %v13092_v39 = vld [vmem:[#allocation9 + $0x1190] sm:$0xf0]  ;;  %v11751_v7 = vor.u32 %v16063_v48, %v11748_v42  ;;  %v16339_v9 = vld [vmem:[#allocation9 + $0xf9c] sm:$0xf] }
 0x682   :  { %9305 = vmatpush.bf16.msra.mxu3 %v10863_v61  ;;  %v16382_v61 = vld [vmem:[#allocation9 + $0x10f4] sm:$0xf]  ;;  %v13095_v47 = vor.u32 %v16399_v6, %v13092_v39  ;;  %v16387_v48 = vld [vmem:[#allocation9 + $0x111c] sm:$0xf]  ;;  %v16604_v6 = vld [vmem:[#allocation9 + $0x17e4] sm:$0xf] }
 0x683   :  { %9383 = vmatpush.bf16.msrb.mxu1 %v12015_v17  ;;  %v16057_v17 = vld [vmem:[#allocation9 + $0x6cc] sm:$0xf]  ;;  %v13044_v42 = vld [vmem:[#allocation9 + $0x1130] sm:$0xf0] }
 0x684   :  { %9396 = vmatpush.bf16.msrb.mxu2 %v12207_v21  ;;  %v12876_v21 = vld [vmem:[#allocation9 + $0xfe0] sm:$0xf0]  ;;  %v11727_v53 = vor.u32 %v16057_v17, %v11724_v12  ;;  %v16333_v17 = vld [vmem:[#allocation9 + $0xf6c] sm:$0xf] }
 0x685   :  { %9306 = vmatmul.bf16.vlgmr.msra.gmra.mxu3 %v17722_v26  ;;  %10094 = vmatpush.bf16.msra.mxu0 %v13079_v20  ;;  %v16051_v20 = vld [vmem:[#allocation9 + $0x69c] sm:$0xf]  ;;  %v12828_v12 = vld [vmem:[#allocation9 + $0xf80] sm:$0xf0] }
 0x686   :  { %9350 = vmatpush.bf16.msrb.mxu3 %v11799_v14  ;;  %9384 = vmatmul.bf16.vlgmr.msrb.gmra.mxu1 %v17744_v24  ;;  %v16345_v14 = vld [vmem:[#allocation9 + $0xfcc] sm:$0xf] }
 0x687   :  { %9428 = vmatpush.bf16.msra.mxu1 %v12951_v33  ;;  %9397 = vmatmul.bf16.vlgmr.msrb.gmra.mxu2 %v17780_v35  ;;  %v13031_v33 = vor.u32 %v16382_v61, %v13028_v1  ;;  %v12879_v23 = vor.u32 %v16345_v14, %v12876_v21  ;;  %v13916_v61 = vld [vmem:[#allocation9 + $0x17f8] sm:$0xf0]  ;;  %v16045_v1 = vld [vmem:[#allocation9 + $0x66c] sm:$0xf]  ;;  %v13020_v21 = vld [vmem:[#allocation9 + $0x1100] sm:$0xf0] }
 0x688   :  { %9441 = vmatpush.bf16.msra.mxu2 %v13143_v2  ;;  %v13004_v2 = vld [vmem:[#allocation9 + $0x10d8] sm:$0xf0]  ;;  %v16381_v14 = vld [vmem:[#allocation9 + $0x10ec] sm:$0xf] }
 0x689   :  { %10095 = vmatpush.bf16.msra.mxu0 %v13055_v3  ;;  %v11703_v3 = vor.u32 %v16051_v20, %v11700_v15  ;;  %v11652_v20 = vld [vmem:[#allocation9 + $0x650] sm:$0xf0]  ;;  %v13023_v28 = vor.u32 %v16381_v14, %v13020_v21  ;;  %v16267_v14 = vld [vmem:[#allocation9 + $0xd5c] sm:$0xf] }
 0x68a   :  { %9351 = vmatpush.bf16.msrb.mxu3 %v11775_v10  ;;  %v12852_v10 = vld [vmem:[#allocation9 + $0xfb0] sm:$0xf0] }
 0x68b   :  { %9429 = vmatpush.bf16.msra.mxu1 %v12927_v59  ;;  %v13007_v59 = vor.u32 %v16376_v11, %v13004_v2  ;;  %v12855_v39 = vor.u32 %v16339_v9, %v12852_v10  ;;  %v9099_v11 = vpop.f32.mrf.mxu3  ;;  %v12831_v2 = vor.u32 %v16333_v17, %v12828_v12  ;;  %v12804_v9 = vld [vmem:[#allocation9 + $0xf50] sm:$0xf0]  ;;  %v18123_v10 = vpop.f32.mrf.mxu2  ;;  %v12780_v17 = vld [vmem:[#allocation9 + $0xf20] sm:$0xf0] }
 0x68c   :  { %9442 = vmatpush.bf16.msra.mxu2 %v13119_v37  ;;  %v18120_v37 = vpop.f32.mrf.mxu1  ;;  %v9100_v15 = vadd.f32 %v9099_v11, %v18113_v41  ;;  %v12564_v21 = vld [vmem:[#allocation9 + $0xd70] sm:$0xf0] }
 0x68d   :  { %10096 = vmatpush.bf16.msra.mxu0 %v13031_v33  ;;  %v13919_v33 = vor.u32 %v16604_v6, %v13916_v61  ;;  %v13868_v61 = vld [vmem:[#allocation9 + $0x1798] sm:$0xf0]  ;;  %v13716_v11 = vld [vmem:[#allocation9 + $0x1670] sm:$0xf0] }
 0x68e   :  { %9352 = vmatpush.bf16.msrb.mxu3 %v11751_v7  ;;  %v11676_v7 = vld [vmem:[#allocation9 + $0x680] sm:$0xf0] }
 0x68f   :  { %9430 = vmatpush.bf16.msra.mxu1 %v12903_v45  ;;  %v13047_v45 = vor.u32 %v16387_v48, %v13044_v42  ;;  %v11679_v38 = vor.u32 %v16045_v1, %v11676_v7  ;;  %v12996_v48 = vld [vmem:[#allocation9 + $0x10d0] sm:$0xf0]  ;;  %v18543_v42 = vld [vmem:[#allocation18_spill] sm:$0xff]  ;;  %v11628_v7 = vld [vmem:[#allocation9 + $0x620] sm:$0xf0] }
 0x690   :  { %9443 = vmatpush.bf16.msra.mxu2 %v13095_v47  ;;  %v12983_v47 = vor.u32 %v16370_v0, %v12980_v57  ;;  %v9113_v0 = vadd.f32 %v18543_v42, %v9100_v15  ;;  %v16033_v1 = vld [vmem:[#allocation9 + $0x60c] sm:$0xf] }
 0x691   :  { %10097 = vmatpush.bf16.msra.mxu0 %v13007_v59  ;;  %v16375_v59 = vld [vmem:[#allocation9 + $0x10bc] sm:$0xf] }
 0x692   :  { %9353 = vmatpush.bf16.msrb.mxu3 %v11727_v53  ;;  %v13892_v53 = vld [vmem:[#allocation9 + $0x17c8] sm:$0xf0]  ;;  %v12999_v12 = vor.u32 %v16375_v59, %v12996_v48  ;;  %v12567_v48 = vor.u32 %v16267_v14, %v12564_v21  ;;  %v12516_v14 = vld [vmem:[#allocation9 + $0xd10] sm:$0xf0] }
 0x693   :  { %9431 = vmatpush.bf16.msra.mxu1 %v12879_v23  ;;  %v16039_v23 = vld [vmem:[#allocation9 + $0x63c] sm:$0xf]  ;;  %v13844_v59 = vld [vmem:[#allocation9 + $0x1768] sm:$0xf0] }
 0x694   :  { %9444 = vmatpush.bf16.msra.mxu2 %v13071_v5  ;;  %v16327_v5 = vld [vmem:[#allocation9 + $0xf3c] sm:$0xf]  ;;  %v9179_v57 = vpop.f32.mrf.mxu1  ;;  %v11655_v6 = vor.u32 %v16039_v23, %v11652_v20  ;;  %v13908_v20 = vld [vmem:[#allocation9 + $0x17f0] sm:$0xf0] }
 0x695   :  { %10098 = vmatpush.bf16.msra.mxu0 %v12983_v47  ;;  %v12807_v41 = vor.u32 %v16327_v5, %v12804_v9  ;;  %v16369_v47 = vld [vmem:[#allocation9 + $0x108c] sm:$0xf]  ;;  %v16603_v23 = vld [vmem:[#allocation9 + $0x17dc] sm:$0xf]  ;;  %v16586_v9 = vld [vmem:[#allocation9 + $0x1754] sm:$0xf]  ;;  %v18131_v21 = vpop.f32.mrf.mxu0 }
 0x696   :  { %9354 = vmatpush.bf16.msrb.mxu3 %v11703_v3  ;;  %v13895_v3 = vor.u32 %v16598_v18, %v13892_v53  ;;  %v16555_v18 = vld [vmem:[#allocation9 + $0x165c] sm:$0xf]  ;;  %v12540_v57 = vld [vmem:[#allocation9 + $0xd40] sm:$0xf0]  ;;  %18544 = vst [vmem:[#allocation18_spill] sm:$0xff] %v18131_v21 }
 0x697   :  { %9432 = vmatpush.bf16.msra.mxu1 %v12855_v39  ;;  %v16592_v39 = vld [vmem:[#allocation9 + $0x1784] sm:$0xf]  ;;  %v13719_v42 = vor.u32 %v16555_v18, %v13716_v11  ;;  %v13668_v18 = vld [vmem:[#allocation9 + $0x1610] sm:$0xf0] }
 0x698   :  { %9445 = vmatpush.bf16.msra.mxu2 %v13047_v45  ;;  %v16321_v45 = vld [vmem:[#allocation9 + $0xf0c] sm:$0xf]  ;;  %10099 = vmatmul.bf16.vlgmr.msra.gmra.mxu0 %v17784_v40  ;;  %v13871_v53 = vor.u32 %v16592_v39, %v13868_v61  ;;  %v13692_v61 = vld [vmem:[#allocation9 + $0x1640] sm:$0xf0] }
 0x699   :  { %10143 = vmatpush.bf16.msrb.mxu0 %v13919_v33  ;;  %v9126_v33 = vadd.f32 %v18104_v63, %v9113_v0  ;;  %v12783_v5 = vor.u32 %v16321_v45, %v12780_v17  ;;  %v16261_v0 = vld [vmem:[#allocation9 + $0xd2c] sm:$0xf]  ;;  %v13820_v45 = vld [vmem:[#allocation9 + $0x1738] sm:$0xf0]  ;;  %v13308_v21 = vld [vmem:[#allocation9 + $0x1340] sm:$0xf0] }
 0x69a   :  { %9355 = vmatpush.bf16.msrb.mxu3 %v11679_v38  ;;  %v12972_v38 = vld [vmem:[#allocation9 + $0x10a0] sm:$0xf0]  ;;  %v16549_v39 = vld [vmem:[#allocation9 + $0x162c] sm:$0xf]  ;;  %v12543_v17 = vor.u32 %v16261_v0, %v12540_v57 }
 0x69b   :  { %9433 = vmatpush.bf16.msra.mxu1 %v12831_v2  ;;  %v11631_v2 = vor.u32 %v16033_v1, %v11628_v7  ;;  %v18129_v15 = vadd.f32 %v18107_v56, %v9126_v33  ;;  %v12975_v63 = vor.u32 %v16369_v47, %v12972_v38  ;;  %v13847_v1 = vor.u32 %v16586_v9, %v13844_v59  ;;  %v16597_v56 = vld [vmem:[#allocation9 + $0x17ac] sm:$0xf]  ;;  %v13884_v7 = vld [vmem:[#allocation9 + $0x17c0] sm:$0xf0]  ;;  %v16255_v47 = vld [vmem:[#allocation9 + $0xcfc] sm:$0xf] }
 0x69c   :  { %9446 = vmatpush.bf16.msra.mxu2 %v13023_v28  ;;  %v9101_v28 = vpop.f32.mrf.mxu3  ;;  %v13887_v33 = vor.u32 %v16597_v56, %v13884_v7  ;;  %v16543_v38 = vld [vmem:[#allocation9 + $0x15fc] sm:$0xf]  ;;  %v16249_v9 = vld [vmem:[#allocation9 + $0xccc] sm:$0xf]  ;;  %v12492_v59 = vld [vmem:[#allocation9 + $0xce0] sm:$0xf0] }
 0x69d   :  { %10144 = vmatpush.bf16.msrb.mxu0 %v13895_v3  ;;  %v9192_v3 = vpop.f32.mrf.mxu2  ;;  %v12519_v28 = vor.u32 %v16255_v47, %v12516_v14  ;;  %v16585_v57 = vld [vmem:[#allocation9 + $0x174c] sm:$0xf]  ;;  %v16243_v56 = vld [vmem:[#allocation9 + $0xc9c] sm:$0xf]  ;;  %v12468_v7 = vld [vmem:[#allocation9 + $0xcb0] sm:$0xf0] }
 0x69e   :  { %9356 = vmatpush.bf16.msrb.mxu3 %v11655_v6  ;;  %v13911_v6 = vor.u32 %v16603_v23, %v13908_v20  ;;  %v16574_v23 = vld [vmem:[#allocation9 + $0x16f4] sm:$0xf]  ;;  %v13796_v20 = vld [vmem:[#allocation9 + $0x1708] sm:$0xf0]  ;;  %v13836_v3 = vld [vmem:[#allocation9 + $0x1760] sm:$0xf0] }
 0x69f   :  { %9434 = vmatpush.bf16.msra.mxu1 %v12807_v41  ;;  %v16580_v41 = vld [vmem:[#allocation9 + $0x1724] sm:$0xf]  ;;  %v13799_v0 = vor.u32 %v16574_v23, %v13796_v20  ;;  %v16579_v14 = vld [vmem:[#allocation9 + $0x171c] sm:$0xf] }
 0x6a0   :  { %9447 = vmatpush.bf16.msra.mxu2 %v12999_v12  ;;  %v13695_v12 = vor.u32 %v16549_v39, %v13692_v61  ;;  %v13823_v11 = vor.u32 %v16580_v41, %v13820_v45  ;;  %v13772_v39 = vld [vmem:[#allocation9 + $0x16d8] sm:$0xf0]  ;;  %v12495_v61 = vor.u32 %v16249_v9, %v12492_v59  ;;  %v9894_v41 = vpop.f32.mrf.mxu0  ;;  %v13839_v45 = vor.u32 %v16585_v57, %v13836_v3  ;;  %v16525_v59 = vld [vmem:[#allocation9 + $0x156c] sm:$0xf] }
 0x6a1   :  { %10145 = vmatpush.bf16.msrb.mxu0 %v13871_v53  ;;  %v16591_v53 = vld [vmem:[#allocation9 + $0x177c] sm:$0xf] }
 0x6a2   :  { %9357 = vmatpush.bf16.msrb.mxu3 %v11631_v2  ;;  %v13860_v2 = vld [vmem:[#allocation9 + $0x1790] sm:$0xf0]  ;;  %v14684_v20 = vld [vmem:[#allocation9 + $0x1df8] sm:$0xf0] }
 0x6a3   :  { %9435 = vmatpush.bf16.msra.mxu1 %v12783_v5  ;;  %v13671_v5 = vor.u32 %v16543_v38, %v13668_v18  ;;  %v18136_v38 = vpop.f32.mrf.mxu1  ;;  %v16562_v18 = vld [vmem:[#allocation9 + $0x1694] sm:$0xf] }
 0x6a4   :  { %9448 = vmatpush.bf16.msra.mxu2 %v12975_v63  ;;  %v16537_v63 = vld [vmem:[#allocation9 + $0x15cc] sm:$0xf] }
 0x6a5   :  { %9358 = vmatmul.bf16.vlgmr.msrb.gmra.mxu3 %v17761_v27  ;;  %10146 = vmatpush.bf16.msrb.mxu0 %v13847_v1 }
 0x6a6   :  { %9402 = vmatpush.bf16.msra.mxu3 %v12567_v48  ;;  %9436 = vmatmul.bf16.vlgmr.msra.gmra.mxu1 %v17802_v44  ;;  %v13863_v48 = vor.u32 %v16591_v53, %v13860_v2  ;;  %v12471_v53 = vor.u32 %v16243_v56, %v12468_v7  ;;  %v16796_v2 = vld [vmem:[#allocation9 + $0x1de4] sm:$0xf]  ;;  %v16231_v56 = vld [vmem:[#allocation9 + $0xc3c] sm:$0xf]  ;;  %v12420_v7 = vld [vmem:[#allocation9 + $0xc50] sm:$0xf0] }
 0x6a7   :  { %9480 = vmatpush.bf16.msrb.mxu1 %v13719_v42  ;;  %9449 = vmatmul.bf16.vlgmr.msra.gmra.mxu2 %v17784_v40  ;;  %v13644_v42 = vld [vmem:[#allocation9 + $0x15e0] sm:$0xf0]  ;;  %v14687_v57 = vor.u32 %v16796_v2, %v14684_v20 }
 0x6a8   :  { %9493 = vmatpush.bf16.msrb.mxu2 %v13911_v6  ;;  %v16568_v6 = vld [vmem:[#allocation9 + $0x16c4] sm:$0xf]  ;;  %v13647_v1 = vor.u32 %v16537_v63, %v13644_v42  ;;  %v16573_v42 = vld [vmem:[#allocation9 + $0x16ec] sm:$0xf] }
 0x6a9   :  { %10147 = vmatpush.bf16.msrb.mxu0 %v13823_v11  ;;  %v13775_v47 = vor.u32 %v16568_v6, %v13772_v39  ;;  %v13748_v11 = vld [vmem:[#allocation9 + $0x16a8] sm:$0xf0]  ;;  %v16790_v6 = vld [vmem:[#allocation9 + $0x1db4] sm:$0xf]  ;;  %v9151_v39 = vpop.f32.mrf.mxu3  ;;  %v16784_v20 = vld [vmem:[#allocation9 + $0x1d84] sm:$0xf] }
 0x6aa   :  { %9403 = vmatpush.bf16.msra.mxu3 %v12543_v17  ;;  %v16531_v17 = vld [vmem:[#allocation9 + $0x159c] sm:$0xf]  ;;  %v13751_v63 = vor.u32 %v16562_v18, %v13748_v11  ;;  %v9152_v41 = vadd.f32 %v9151_v39, %v18129_v15  ;;  %v18545_v18 = vld [vmem:[#allocation19_spill] sm:$0xff] }
 0x6ab   :  { %9481 = vmatpush.bf16.msrb.mxu1 %v13695_v12  ;;  %v13620_v12 = vld [vmem:[#allocation9 + $0x15b0] sm:$0xf0] }
 0x6ac   :  { %9494 = vmatpush.bf16.msrb.mxu2 %v13887_v33  ;;  %v13812_v33 = vld [vmem:[#allocation9 + $0x1730] sm:$0xf0]  ;;  %v13623_v23 = vor.u32 %v16531_v17, %v13620_v12  ;;  %v16519_v17 = vld [vmem:[#allocation9 + $0x153c] sm:$0xf]  ;;  %v9165_v11 = vadd.f32 %v18545_v18, %v9152_v41 }
 0x6ad   :  { %10148 = vmatpush.bf16.msrb.mxu0 %v13799_v0  ;;  %v13815_v9 = vor.u32 %v16579_v14, %v13812_v33  ;;  %v13788_v0 = vld [vmem:[#allocation9 + $0x1700] sm:$0xf0]  ;;  %v13572_v12 = vld [vmem:[#allocation9 + $0x1550] sm:$0xf0]  ;;  %v16567_v14 = vld [vmem:[#allocation9 + $0x16bc] sm:$0xf] }
 0x6ae   :  { %9404 = vmatpush.bf16.msra.mxu3 %v12519_v28  ;;  %v16237_v28 = vld [vmem:[#allocation9 + $0xc6c] sm:$0xf]  ;;  %v13764_v33 = vld [vmem:[#allocation9 + $0x16d0] sm:$0xf0]  ;;  %v13575_v15 = vor.u32 %v16519_v17, %v13572_v12  ;;  %v9178_v39 = vadd.f32 %v18120_v37, %v9165_v11 }
 0x6af   :  { %9482 = vmatpush.bf16.msrb.mxu1 %v13671_v5  ;;  %v12444_v5 = vld [vmem:[#allocation9 + $0xc80] sm:$0xf0]  ;;  %v14676_v41 = vld [vmem:[#allocation9 + $0x1df0] sm:$0xf0] }
 0x6b0   :  { %9495 = vmatpush.bf16.msrb.mxu2 %v13863_v48  ;;  %v13596_v48 = vld [vmem:[#allocation9 + $0x1580] sm:$0xf0]  ;;  %v12447_v3 = vor.u32 %v16237_v28, %v12444_v5  ;;  %v14636_v28 = vld [vmem:[#allocation9 + $0x1d98] sm:$0xf0]  ;;  %v16225_v5 = vld [vmem:[#allocation9 + $0xc0c] sm:$0xf]  ;;  %v18145_v17 = vadd.f32 %v18123_v10, %v9178_v39 }
 0x6b1   :  { %10149 = vmatpush.bf16.msrb.mxu0 %v13775_v47  ;;  %v18139_v47 = vpop.f32.mrf.mxu2  ;;  %v16789_v10 = vld [vmem:[#allocation9 + $0x1dac] sm:$0xf] }
 0x6b2   :  { %9405 = vmatpush.bf16.msra.mxu3 %v12495_v61  ;;  %v13599_v61 = vor.u32 %v16525_v59, %v13596_v48  ;;  %v16513_v59 = vld [vmem:[#allocation9 + $0x150c] sm:$0xf]  ;;  %v13548_v48 = vld [vmem:[#allocation9 + $0x1520] sm:$0xf0] }
 0x6b3   :  { %9483 = vmatpush.bf16.msrb.mxu1 %v13647_v1  ;;  %v14660_v1 = vld [vmem:[#allocation9 + $0x1dc8] sm:$0xf0]  ;;  %v13551_v12 = vor.u32 %v16513_v59, %v13548_v48  ;;  %v14588_v59 = vld [vmem:[#allocation9 + $0x1d38] sm:$0xf0] }
 0x6b4   :  { %9496 = vmatpush.bf16.msrb.mxu2 %v13839_v45  ;;  %v13791_v45 = vor.u32 %v16573_v42, %v13788_v0  ;;  %v14663_v2 = vor.u32 %v16790_v6, %v14660_v1  ;;  %v16561_v42 = vld [vmem:[#allocation9 + $0x168c] sm:$0xf]  ;;  %v16459_v0 = vld [vmem:[#allocation9 + $0x135c] sm:$0xf]  ;;  %v14484_v1 = vld [vmem:[#allocation9 + $0x1c70] sm:$0xf0] }
 0x6b5   :  { %10150 = vmatpush.bf16.msrb.mxu0 %v13751_v63  ;;  %v13767_v63 = vor.u32 %v16567_v14, %v13764_v33  ;;  %v16747_v6 = vld [vmem:[#allocation9 + $0x1c5c] sm:$0xf]  ;;  %v16778_v14 = vld [vmem:[#allocation9 + $0x1d54] sm:$0xf]  ;;  %v14612_v33 = vld [vmem:[#allocation9 + $0x1d68] sm:$0xf0] }
 0x6b6   :  { %9406 = vmatpush.bf16.msra.mxu3 %v12471_v53  ;;  %v9231_v53 = vpop.f32.mrf.mxu1  ;;  %v14487_v11 = vor.u32 %v16747_v6, %v14484_v1  ;;  %v14436_v6 = vld [vmem:[#allocation9 + $0x1c10] sm:$0xf0] }
 0x6b7   :  { %9484 = vmatpush.bf16.msrb.mxu1 %v13623_v23  ;;  %v12423_v23 = vor.u32 %v16231_v56, %v12420_v7  ;;  %v14639_v56 = vor.u32 %v16784_v20, %v14636_v28  ;;  %v16795_v7 = vld [vmem:[#allocation9 + $0x1ddc] sm:$0xf]  ;;  %v16453_v53 = vld [vmem:[#allocation9 + $0x132c] sm:$0xf]  ;;  %v14460_v28 = vld [vmem:[#allocation9 + $0x1c40] sm:$0xf0] }
 0x6b8   :  { %9497 = vmatpush.bf16.msrb.mxu2 %v13815_v9  ;;  %v12396_v9 = vld [vmem:[#allocation9 + $0xc20] sm:$0xf0]  ;;  %10151 = vmatmul.bf16.vlgmr.msrb.gmra.mxu0 %v17811_v54  ;;  %v16741_v20 = vld [vmem:[#allocation9 + $0x1c2c] sm:$0xf]  ;;  %v13311_v48 = vor.u32 %v16453_v53, %v13308_v21  ;;  %v16766_v21 = vld [vmem:[#allocation9 + $0x1cf4] sm:$0xf] }
 0x6b9   :  { %10195 = vmatpush.bf16.msra.mxu0 %v14687_v57  ;;  %v13332_v57 = vld [vmem:[#allocation9 + $0x1370] sm:$0xf0]  ;;  %v16777_v53 = vld [vmem:[#allocation9 + $0x1d4c] sm:$0xf] }
 0x6ba   :  { %9407 = vmatpush.bf16.msra.mxu3 %v12447_v3  ;;  %v13740_v3 = vld [vmem:[#allocation9 + $0x16a0] sm:$0xf0]  ;;  %v13335_v18 = vor.u32 %v16459_v0, %v13332_v57  ;;  %v13284_v0 = vld [vmem:[#allocation9 + $0x1310] sm:$0xf0]  ;;  %v18147_v57 = vpop.f32.mrf.mxu0 }
 0x6bb   :  { %9485 = vmatpush.bf16.msrb.mxu1 %v13599_v61  ;;  %v12399_v61 = vor.u32 %v16225_v5, %v12396_v9  ;;  %v13743_v37 = vor.u32 %v16561_v42, %v13740_v3  ;;  %v14615_v5 = vor.u32 %v16778_v14, %v14612_v33  ;;  %v14652_v9 = vld [vmem:[#allocation9 + $0x1dc0] sm:$0xf0]  ;;  %v16447_v42 = vld [vmem:[#allocation9 + $0x12fc] sm:$0xf]  ;;  %18546 = vst [vmem:[#allocation19_spill] sm:$0xff] %v18147_v57 }
 0x6bc   :  { %9498 = vmatpush.bf16.msrb.mxu2 %v13791_v45  ;;  %v9153_v45 = vpop.f32.mrf.mxu3  ;;  %v14655_v39 = vor.u32 %v16789_v10, %v14652_v9  ;;  %v16735_v3 = vld [vmem:[#allocation9 + $0x1bfc] sm:$0xf]  ;;  %v13260_v14 = vld [vmem:[#allocation9 + $0x12e0] sm:$0xf0]  ;;  %v13236_v9 = vld [vmem:[#allocation9 + $0x12b0] sm:$0xf0] }
 0x6bd   :  { %10196 = vmatpush.bf16.msra.mxu0 %v14663_v2  ;;  %v9244_v2 = vpop.f32.mrf.mxu2  ;;  %v14439_v45 = vor.u32 %v16735_v3, %v14436_v6  ;;  %v16435_v10 = vld [vmem:[#allocation9 + $0x129c] sm:$0xf]  ;;  %v16754_v6 = vld [vmem:[#allocation9 + $0x1c94] sm:$0xf]  ;;  %v14076_v57 = vld [vmem:[#allocation9 + $0x1940] sm:$0xf0] }
 0x6be   :  { %9408 = vmatpush.bf16.msra.mxu3 %v12423_v23  ;;  %v14679_v23 = vor.u32 %v16795_v7, %v14676_v41  ;;  %v14564_v7 = vld [vmem:[#allocation9 + $0x1d08] sm:$0xf0]  ;;  %v13287_v41 = vor.u32 %v16447_v42, %v13284_v0  ;;  %v14604_v2 = vld [vmem:[#allocation9 + $0x1d60] sm:$0xf0]  ;;  %v16771_v0 = vld [vmem:[#allocation9 + $0x1d1c] sm:$0xf] }
 0x6bf   :  { %9486 = vmatpush.bf16.msrb.mxu1 %v13575_v15  ;;  %v16772_v15 = vld [vmem:[#allocation9 + $0x1d24] sm:$0xf] }
 0x6c0   :  { %9499 = vmatpush.bf16.msrb.mxu2 %v13767_v63  ;;  %v14463_v63 = vor.u32 %v16741_v20, %v14460_v28  ;;  %v14591_v1 = vor.u32 %v16772_v15, %v14588_v59  ;;  %v14540_v20 = vld [vmem:[#allocation9 + $0x1cd8] sm:$0xf0]  ;;  %v14607_v59 = vor.u32 %v16777_v53, %v14604_v2 }
 0x6c1   :  { %10197 = vmatpush.bf16.msra.mxu0 %v14639_v56  ;;  %v16783_v56 = vld [vmem:[#allocation9 + $0x1d7c] sm:$0xf] }
 0x6c2   :  { %9409 = vmatpush.bf16.msra.mxu3 %v12399_v61  ;;  %v14628_v61 = vld [vmem:[#allocation9 + $0x1d90] sm:$0xf0]  ;;  %v9946_v15 = vpop.f32.mrf.mxu0 }
 0x6c3   :  { %9487 = vmatpush.bf16.msrb.mxu1 %v13551_v12  ;;  %v16441_v12 = vld [vmem:[#allocation9 + $0x12cc] sm:$0xf]  ;;  %v14631_v33 = vor.u32 %v16783_v56, %v14628_v61  ;;  %v18152_v3 = vpop.f32.mrf.mxu1  ;;  %v13239_v56 = vor.u32 %v16435_v10, %v13236_v9  ;;  %v16988_v61 = vld [vmem:[#allocation9 + $0x23e4] sm:$0xf]  ;;  %v16423_v10 = vld [vmem:[#allocation9 + $0x123c] sm:$0xf] }
 0x6c4   :  { %9500 = vmatpush.bf16.msrb.mxu2 %v13743_v37  ;;  %v14412_v37 = vld [vmem:[#allocation9 + $0x1be0] sm:$0xf0]  ;;  %v13263_v28 = vor.u32 %v16441_v12, %v13260_v14  ;;  %v16717_v14 = vld [vmem:[#allocation9 + $0x1b6c] sm:$0xf]  ;;  %v13188_v9 = vld [vmem:[#allocation9 + $0x1250] sm:$0xf0] }
 0x6c5   :  { %9410 = vmatmul.bf16.vlgmr.msra.gmra.mxu3 %v17765_v30  ;;  %10198 = vmatpush.bf16.msra.mxu0 %v14615_v5 }
 0x6c6   :  { %9454 = vmatpush.bf16.msrb.mxu3 %v13335_v18  ;;  %9488 = vmatmul.bf16.vlgmr.msrb.gmra.mxu1 %v17806_v46  ;;  %v16729_v18 = vld [vmem:[#allocation9 + $0x1bcc] sm:$0xf] }
 0x6c7   :  { %9532 = vmatpush.bf16.msra.mxu1 %v14487_v11  ;;  %9501 = vmatmul.bf16.vlgmr.msrb.gmra.mxu2 %v17811_v54  ;;  %v14567_v11 = vor.u32 %v16766_v21, %v14564_v7  ;;  %v14415_v5 = vor.u32 %v16729_v18, %v14412_v37  ;;  %v15452_v7 = vld [vmem:[#allocation9 + $0x23f8] sm:$0xf0]  ;;  %v16765_v37 = vld [vmem:[#allocation9 + $0x1cec] sm:$0xf] }
 0x6c8   :  { %9545 = vmatpush.bf16.msra.mxu2 %v14679_v23  ;;  %v16760_v23 = vld [vmem:[#allocation9 + $0x1cc4] sm:$0xf]  ;;  %v15455_v53 = vor.u32 %v16988_v61, %v15452_v7 }
 0x6c9   :  { %10199 = vmatpush.bf16.msra.mxu0 %v14591_v1  ;;  %v14543_v42 = vor.u32 %v16760_v23, %v14540_v20  ;;  %v14516_v1 = vld [vmem:[#allocation9 + $0x1ca8] sm:$0xf0]  ;;  %v16982_v23 = vld [vmem:[#allocation9 + $0x23b4] sm:$0xf]  ;;  %v9203_v20 = vpop.f32.mrf.mxu3  ;;  %v16976_v7 = vld [vmem:[#allocation9 + $0x2384] sm:$0xf] }
 0x6ca   :  { %9455 = vmatpush.bf16.msrb.mxu3 %v13311_v48  ;;  %v16723_v48 = vld [vmem:[#allocation9 + $0x1b9c] sm:$0xf]  ;;  %v14519_v18 = vor.u32 %v16754_v6, %v14516_v1  ;;  %v9204_v15 = vadd.f32 %v9203_v20, %v18145_v17 }
 0x6cb   :  { %9533 = vmatpush.bf16.msra.mxu1 %v14463_v63  ;;  %v14388_v63 = vld [vmem:[#allocation9 + $0x1bb0] sm:$0xf0]  ;;  %v18547_v6 = vld [vmem:[#allocation20_spill] sm:$0xff] }
 0x6cc   :  { %9546 = vmatpush.bf16.msra.mxu2 %v14655_v39  ;;  %v14580_v39 = vld [vmem:[#allocation9 + $0x1d30] sm:$0xf0]  ;;  %v14391_v21 = vor.u32 %v16723_v48, %v14388_v63  ;;  %v16711_v48 = vld [vmem:[#allocation9 + $0x1b3c] sm:$0xf]  ;;  %v9217_v1 = vadd.f32 %v18547_v6, %v9204_v15 }
 0x6cd   :  { %10200 = vmatpush.bf16.msra.mxu0 %v14567_v11  ;;  %v14583_v12 = vor.u32 %v16771_v0, %v14580_v39  ;;  %v14556_v11 = vld [vmem:[#allocation9 + $0x1d00] sm:$0xf0]  ;;  %v14340_v63 = vld [vmem:[#allocation9 + $0x1b50] sm:$0xf0]  ;;  %v16759_v0 = vld [vmem:[#allocation9 + $0x1cbc] sm:$0xf] }
 0x6ce   :  { %9456 = vmatpush.bf16.msrb.mxu3 %v13287_v41  ;;  %v16429_v41 = vld [vmem:[#allocation9 + $0x126c] sm:$0xf]  ;;  %v14532_v39 = vld [vmem:[#allocation9 + $0x1cd0] sm:$0xf0]  ;;  %v14343_v17 = vor.u32 %v16711_v48, %v14340_v63  ;;  %v9230_v20 = vadd.f32 %v18136_v38, %v9217_v1 }
 0x6cf   :  { %9534 = vmatpush.bf16.msra.mxu1 %v14439_v45  ;;  %v13212_v45 = vld [vmem:[#allocation9 + $0x1280] sm:$0xf0]  ;;  %v15444_v15 = vld [vmem:[#allocation9 + $0x23f0] sm:$0xf0] }
 0x6d0   :  { %9547 = vmatpush.bf16.msra.mxu2 %v14631_v33  ;;  %v14364_v33 = vld [vmem:[#allocation9 + $0x1b80] sm:$0xf0]  ;;  %v13215_v2 = vor.u32 %v16429_v41, %v13212_v45  ;;  %v15404_v41 = vld [vmem:[#allocation9 + $0x2398] sm:$0xf0]  ;;  %v16417_v45 = vld [vmem:[#allocation9 + $0x120c] sm:$0xf]  ;;  %v18161_v48 = vadd.f32 %v18139_v47, %v9230_v20 }
 0x6d1   :  { %10201 = vmatpush.bf16.msra.mxu0 %v14543_v42  ;;  %v18155_v42 = vpop.f32.mrf.mxu2  ;;  %v16981_v47 = vld [vmem:[#allocation9 + $0x23ac] sm:$0xf] }
 0x6d2   :  { %9457 = vmatpush.bf16.msrb.mxu3 %v13263_v28  ;;  %v14367_v28 = vor.u32 %v16717_v14, %v14364_v33  ;;  %v16705_v14 = vld [vmem:[#allocation9 + $0x1b0c] sm:$0xf]  ;;  %v14316_v33 = vld [vmem:[#allocation9 + $0x1b20] sm:$0xf0] }
 0x6d3   :  { %9535 = vmatpush.bf16.msra.mxu1 %v14415_v5  ;;  %v15428_v5 = vld [vmem:[#allocation9 + $0x23c8] sm:$0xf0]  ;;  %v14319_v63 = vor.u32 %v16705_v14, %v14316_v33  ;;  %v15356_v14 = vld [vmem:[#allocation9 + $0x2338] sm:$0xf0] }
 0x6d4   :  { %9548 = vmatpush.bf16.msra.mxu2 %v14607_v59  ;;  %v14559_v59 = vor.u32 %v16765_v37, %v14556_v11  ;;  %v15431_v61 = vor.u32 %v16982_v23, %v15428_v5  ;;  %v16753_v37 = vld [vmem:[#allocation9 + $0x1c8c] sm:$0xf]  ;;  %v16651_v11 = vld [vmem:[#allocation9 + $0x195c] sm:$0xf]  ;;  %v15252_v5 = vld [vmem:[#allocation9 + $0x2270] sm:$0xf0] }
 0x6d5   :  { %10202 = vmatpush.bf16.msra.mxu0 %v14519_v18  ;;  %v14535_v18 = vor.u32 %v16759_v0, %v14532_v39  ;;  %v16939_v23 = vld [vmem:[#allocation9 + $0x225c] sm:$0xf]  ;;  %v16970_v0 = vld [vmem:[#allocation9 + $0x2354] sm:$0xf]  ;;  %v15380_v39 = vld [vmem:[#allocation9 + $0x2368] sm:$0xf0] }
 0x6d6   :  { %9458 = vmatpush.bf16.msrb.mxu3 %v13239_v56  ;;  %v9283_v56 = vpop.f32.mrf.mxu1  ;;  %v15255_v1 = vor.u32 %v16939_v23, %v15252_v5  ;;  %v15204_v23 = vld [vmem:[#allocation9 + $0x2210] sm:$0xf0] }
 0x6d7   :  { %9536 = vmatpush.bf16.msra.mxu1 %v14391_v21  ;;  %v13191_v21 = vor.u32 %v16423_v10, %v13188_v9  ;;  %v15407_v10 = vor.u32 %v16976_v7, %v15404_v41  ;;  %v16987_v9 = vld [vmem:[#allocation9 + $0x23dc] sm:$0xf]  ;;  %v16645_v56 = vld [vmem:[#allocation9 + $0x192c] sm:$0xf]  ;;  %v15228_v41 = vld [vmem:[#allocation9 + $0x2240] sm:$0xf0] }
 0x6d8   :  { %9549 = vmatpush.bf16.msra.mxu2 %v14583_v12  ;;  %v13164_v12 = vld [vmem:[#allocation9 + $0x1220] sm:$0xf0]  ;;  %10203 = vmatmul.bf16.vlgmr.msra.gmra.mxu0 %v17748_v32  ;;  %v16933_v7 = vld [vmem:[#allocation9 + $0x222c] sm:$0xf]  ;;  %v14079_v33 = vor.u32 %v16645_v56, %v14076_v57  ;;  %v16958_v57 = vld [vmem:[#allocation9 + $0x22f4] sm:$0xf] }
 0x6d9   :  { %10247 = vmatpush.bf16.msrb.mxu0 %v15455_v53  ;;  %v14100_v53 = vld [vmem:[#allocation9 + $0x1970] sm:$0xf0]  ;;  %v16969_v56 = vld [vmem:[#allocation9 + $0x234c] sm:$0xf] }
 0x6da   :  { %9459 = vmatpush.bf16.msrb.mxu3 %v13215_v2  ;;  %v14508_v2 = vld [vmem:[#allocation9 + $0x1ca0] sm:$0xf0]  ;;  %v14103_v6 = vor.u32 %v16651_v11, %v14100_v53  ;;  %v14052_v11 = vld [vmem:[#allocation9 + $0x1910] sm:$0xf0]  ;;  %v18163_v53 = vpop.f32.mrf.mxu0 }
 0x6db   :  { %9537 = vmatpush.bf16.msra.mxu1 %v14367_v28  ;;  %v13167_v28 = vor.u32 %v16417_v45, %v13164_v12  ;;  %v14511_v38 = vor.u32 %v16753_v37, %v14508_v2  ;;  %v15383_v45 = vor.u32 %v16970_v0, %v15380_v39  ;;  %v15420_v12 = vld [vmem:[#allocation9 + $0x23c0] sm:$0xf0]  ;;  %v16639_v37 = vld [vmem:[#allocation9 + $0x18fc] sm:$0xf] }
 0x6dc   :  { %9550 = vmatpush.bf16.msra.mxu2 %v14559_v59  ;;  %v9205_v59 = vpop.f32.mrf.mxu3  ;;  %v15423_v20 = vor.u32 %v16981_v47, %v15420_v12  ;;  %v16927_v2 = vld [vmem:[#allocation9 + $0x21fc] sm:$0xf]  ;;  %v14028_v0 = vld [vmem:[#allocation9 + $0x18e0] sm:$0xf0]  ;;  %v14004_v12 = vld [vmem:[#allocation9 + $0x18b0] sm:$0xf0] }
 0x6dd   :  { %10248 = vmatpush.bf16.msrb.mxu0 %v15431_v61  ;;  %v9296_v61 = vpop.f32.mrf.mxu2  ;;  %v15207_v59 = vor.u32 %v16927_v2, %v15204_v23  ;;  %v16627_v47 = vld [vmem:[#allocation9 + $0x189c] sm:$0xf]  ;;  %v16946_v23 = vld [vmem:[#allocation9 + $0x2294] sm:$0xf] }
 0x6de   :  { %9460 = vmatpush.bf16.msrb.mxu3 %v13191_v21  ;;  %v15447_v21 = vor.u32 %v16987_v9, %v15444_v15  ;;  %v15332_v9 = vld [vmem:[#allocation9 + $0x2308] sm:$0xf0]  ;;  %v14055_v15 = vor.u32 %v16639_v37, %v14052_v11  ;;  %v15372_v61 = vld [vmem:[#allocation9 + $0x2360] sm:$0xf0]  ;;  %v16963_v11 = vld [vmem:[#allocation9 + $0x231c] sm:$0xf] }
 0x6df   :  { %9538 = vmatpush.bf16.msra.mxu1 %v14343_v17  ;;  %v16964_v17 = vld [vmem:[#allocation9 + $0x2324] sm:$0xf] }
 0x6e0   :  { %9551 = vmatpush.bf16.msra.mxu2 %v14535_v18  ;;  %v15231_v18 = vor.u32 %v16933_v7, %v15228_v41  ;;  %v15359_v5 = vor.u32 %v16964_v17, %v15356_v14  ;;  %v15308_v7 = vld [vmem:[#allocation9 + $0x22d8] sm:$0xf0]  ;;  %v15375_v14 = vor.u32 %v16969_v56, %v15372_v61 }
 0x6e1   :  { %10249 = vmatpush.bf16.msrb.mxu0 %v15407_v10  ;;  %v16975_v10 = vld [vmem:[#allocation9 + $0x237c] sm:$0xf] }
 0x6e2   :  { %9461 = vmatpush.bf16.msrb.mxu3 %v13167_v28  ;;  %v15396_v28 = vld [vmem:[#allocation9 + $0x2390] sm:$0xf0]  ;;  %v9998_v17 = vpop.f32.mrf.mxu0 }
 0x6e3   :  { %9539 = vmatpush.bf16.msra.mxu1 %v14319_v63  ;;  %v16633_v63 = vld [vmem:[#allocation9 + $0x18cc] sm:$0xf]  ;;  %v15399_v39 = vor.u32 %v16975_v10, %v15396_v28  ;;  %v18168_v2 = vpop.f32.mrf.mxu1  ;;  %v14007_v10 = vor.u32 %v16627_v47, %v14004_v12  ;;  %v15108_v47 = vld [vmem:[#allocation9 + $0x2150] sm:$0xf0]  ;;  %v16951_v17 = vld [vmem:[#allocation9 + $0x22bc] sm:$0xf] }
 0x6e4   :  { %9552 = vmatpush.bf16.msra.mxu2 %v14511_v38  ;;  %v15180_v38 = vld [vmem:[#allocation9 + $0x21e0] sm:$0xf0]  ;;  %v14031_v41 = vor.u32 %v16633_v63, %v14028_v0 }
 0x6e5   :  { %9462 = vmatmul.bf16.vlgmr.msrb.gmra.mxu3 %v17789_v43  ;;  %10250 = vmatpush.bf16.msrb.mxu0 %v15383_v45  ;;  %v15132_v63 = vld [vmem:[#allocation9 + $0x2180] sm:$0xf0] }
 0x6e6   :  { %9506 = vmatpush.bf16.msra.mxu3 %v14103_v6  ;;  %9540 = vmatmul.bf16.vlgmr.msra.gmra.mxu1 %v17827_v8  ;;  %v16921_v6 = vld [vmem:[#allocation9 + $0x21cc] sm:$0xf] }
 0x6e7   :  { %9584 = vmatpush.bf16.msrb.mxu1 %v15255_v1  ;;  %9553 = vmatmul.bf16.vlgmr.msra.gmra.mxu2 %v17748_v32  ;;  %v15335_v1 = vor.u32 %v16958_v57, %v15332_v9  ;;  %v15183_v45 = vor.u32 %v16921_v6, %v15180_v38  ;;  %v16621_v57 = vld [vmem:[#allocation9 + $0x186c] sm:$0xf]  ;;  %v13980_v9 = vld [vmem:[#allocation9 + $0x1880] sm:$0xf0] }
 0x6e8   :  { %9597 = vmatpush.bf16.msrb.mxu2 %v15447_v21  ;;  %v16952_v21 = vld [vmem:[#allocation9 + $0x22c4] sm:$0xf]  ;;  %v17063_v38 = vld [vmem:[%s18528_s6 + $0xb8] sm:$0xff]  ;;  %v18173_v56 = vpop.f32.mrf.mxu3 }
 0x6e9   :  { %10251 = vmatpush.bf16.msrb.mxu0 %v15359_v5  ;;  %v15311_v37 = vor.u32 %v16952_v21, %v15308_v7  ;;  %v15284_v5 = vld [vmem:[#allocation9 + $0x22a8] sm:$0xf0]  ;;  %v15324_v6 = vld [vmem:[#allocation9 + $0x2300] sm:$0xf0]  ;;  %v16615_v21 = vld [vmem:[#allocation9 + $0x183c] sm:$0xf] }
 0x6ea   :  { %9507 = vmatpush.bf16.msra.mxu3 %v14079_v33  ;;  %v16915_v33 = vld [vmem:[#allocation9 + $0x219c] sm:$0xf]  ;;  %v15287_v0 = vor.u32 %v16946_v23, %v15284_v5  ;;  %v13956_v7 = vld [vmem:[#allocation9 + $0x1850] sm:$0xf0]  ;;  %v18175_v12 = vpop.f32.mrf.mxu2  ;;  %v13932_v23 = vld [vmem:[#allocation9 + $0x1820] sm:$0xf0] }
 0x6eb   :  { %9585 = vmatpush.bf16.msrb.mxu1 %v15231_v18  ;;  %v15156_v18 = vld [vmem:[#allocation9 + $0x21b0] sm:$0xf0]  ;;  %v16897_v5 = vld [vmem:[#allocation9 + $0x210c] sm:$0xf] }
 0x6ec   :  { %9598 = vmatpush.bf16.msrb.mxu2 %v15423_v20  ;;  %v15348_v20 = vld [vmem:[#allocation9 + $0x2330] sm:$0xf0]  ;;  %v15159_v28 = vor.u32 %v16915_v33, %v15156_v18  ;;  %v9335_v33 = vpop.f32.mrf.mxu1  ;;  %v17062_v18 = vld [vmem:[%s18528_s6 + $0xb0] sm:$0xff] }
 0x6ed   :  { %10252 = vmatpush.bf16.msrb.mxu0 %v15335_v1  ;;  %v13983_v1 = vor.u32 %v16621_v57, %v13980_v9  ;;  %v16945_v57 = vld [vmem:[#allocation9 + $0x228c] sm:$0xf]  ;;  %v16843_v9 = vld [vmem:[#allocation9 + $0x1f5c] sm:$0xf] }
 0x6ee   :  { %9508 = vmatpush.bf16.msra.mxu3 %v14055_v15  ;;  %v15351_v15 = vor.u32 %v16963_v11, %v15348_v20  ;;  %v16609_v11 = vld [vmem:[#allocation9 + $0x180c] sm:$0xf] }
 0x6ef   :  { %9586 = vmatpush.bf16.msrb.mxu1 %v15207_v59  ;;  %v16909_v59 = vld [vmem:[#allocation9 + $0x216c] sm:$0xf] }
 0x6f0   :  { %9599 = vmatpush.bf16.msrb.mxu2 %v15399_v39  ;;  %v16957_v39 = vld [vmem:[#allocation9 + $0x22ec] sm:$0xf]  ;;  %v15135_v61 = vor.u32 %v16909_v59, %v15132_v63  ;;  %v15276_v59 = vld [vmem:[#allocation9 + $0x22a0] sm:$0xf0]  ;;  %v11226_v63 = vld [vmem:[#allocation9 + $0x2e0] sm:$0xf] }
 0x6f1   :  { %10253 = vmatpush.bf16.msrb.mxu0 %v15311_v37  ;;  %v13959_v37 = vor.u32 %v16615_v21, %v13956_v7 }
 0x6f2   :  { %9509 = vmatpush.bf16.msra.mxu3 %v14031_v41  ;;  %v15327_v41 = vor.u32 %v16957_v39, %v15324_v6  ;;  %v17061_v39 = vld [vmem:[%s18528_s6 + $0xa8] sm:$0xff]  ;;  %v13935_v6 = vor.u32 %v16609_v11, %v13932_v23  ;;  %v17060_v11 = vld [vmem:[%s18528_s6 + $0xa0] sm:$0xff]  ;;  %v11394_v23 = vld [vmem:[#allocation9 + $0x430] sm:$0xf] }
 0x6f3   :  { %9587 = vmatpush.bf16.msrb.mxu1 %v15183_v45  ;;  %v16903_v45 = vld [vmem:[#allocation9 + $0x213c] sm:$0xf] }
 0x6f4   :  { %9600 = vmatpush.bf16.msrb.mxu2 %v15375_v14  ;;  %v15300_v14 = vld [vmem:[#allocation9 + $0x22d0] sm:$0xf0]  ;;  %v15111_v20 = vor.u32 %v16903_v45, %v15108_v47  ;;  %v16837_v47 = vld [vmem:[#allocation9 + $0x1f2c] sm:$0xf] }
 0x6f5   :  { %10254 = vmatpush.bf16.msrb.mxu0 %v15287_v0  ;;  %v15935_v0 = vld [vmem:[#allocation9 + $0x2f4] sm:$0xf0] }
 0x6f6   :  { %9510 = vmatpush.bf16.msra.mxu3 %v14007_v10  ;;  %v15084_v10 = vld [vmem:[#allocation9 + $0x2120] sm:$0xf0]  ;;  %v11227_v45 = vor.u32 %v15935_v0, %v11226_v63  ;;  %v15923_v63 = vld [vmem:[#allocation9 + $0x294] sm:$0xf0]  ;;  %v17059_v0 = vld [vmem:[%s18528_s6 + $0x98] sm:$0xff] }
 0x6f7   :  { %9588 = vmatpush.bf16.msrb.mxu1 %v15159_v28  ;;  %v15303_v28 = vor.u32 %v16951_v17, %v15300_v14  ;;  %v15087_v21 = vor.u32 %v16897_v5, %v15084_v10  ;;  %v14844_v17 = vld [vmem:[#allocation9 + $0x1f40] sm:$0xf0]  ;;  %v9348_v14 = vpop.f32.mrf.mxu2 }
 0x6f8   :  { %9601 = vmatpush.bf16.msrb.mxu2 %v15351_v15  ;;  %10255 = vmatmul.bf16.vlgmr.msrb.gmra.mxu0 %v17774_v60  ;;  %v14868_v15 = vld [vmem:[#allocation9 + $0x1f70] sm:$0xf0]  ;;  %v14847_v5 = vor.u32 %v16837_v47, %v14844_v17  ;;  %v15917_v47 = vld [vmem:[#allocation9 + $0x264] sm:$0xf0]  ;;  %v11346_v14 = vld [vmem:[#allocation9 + $0x3d0] sm:$0xf] }
 0x6f9   :  { %10693 = vmatpush.bf16.msra.mxu0 %v17063_v38  ;;  %v11418_v38 = vld [vmem:[#allocation9 + $0x460] sm:$0xf]  ;;  %v14871_v7 = vor.u32 %v16843_v9, %v14868_v15  ;;  %v18187_v9 = vpop.f32.mrf.mxu0  ;;  %v17058_v17 = vld [vmem:[%s18528_s6 + $0x90] sm:$0xff] }
 0x6fa   :  { %9511 = vmatpush.bf16.msra.mxu3 %v13983_v1  ;;  %v15983_v1 = vld [vmem:[#allocation9 + $0x474] sm:$0xf0] }
 0x6fb   :  { %9589 = vmatpush.bf16.msrb.mxu1 %v15135_v61  ;;  %v9257_v61 = vpop.f32.mrf.mxu3  ;;  %v11419_v33 = vor.u32 %v15983_v1, %v11418_v38  ;;  %v9256_v38 = vadd.f32 %v18173_v56, %v18161_v48  ;;  %v18548_v48 = vld [vmem:[#allocation21_spill] sm:$0xff] }
 0x6fc   :  { %9602 = vmatpush.bf16.msrb.mxu2 %v15327_v41  ;;  %v15279_v41 = vor.u32 %v16945_v57, %v15276_v59  ;;  %v14820_v57 = vld [vmem:[#allocation9 + $0x1f10] sm:$0xf0]  ;;  %v11178_v59 = vld [vmem:[#allocation9 + $0x280] sm:$0xf] }
 0x6fd   :  { %10694 = vmatpush.bf16.msra.mxu0 %v17062_v18  ;;  %v11202_v18 = vld [vmem:[#allocation9 + $0x2b0] sm:$0xf]  ;;  %v11179_v61 = vor.u32 %v15923_v63, %v11178_v59  ;;  %v9269_v56 = vadd.f32 %v18548_v48, %v9256_v38  ;;  %v15959_v59 = vld [vmem:[#allocation9 + $0x3b4] sm:$0xf0]  ;;  %v16813_v38 = vld [vmem:[#allocation9 + $0x1e6c] sm:$0xf] }
 0x6fe   :  { %9512 = vmatpush.bf16.msra.mxu3 %v13959_v37  ;;  %v15929_v37 = vld [vmem:[#allocation9 + $0x2c4] sm:$0xf0] }
 0x6ff   :  { %9590 = vmatpush.bf16.msrb.mxu1 %v15111_v20  ;;  %v15977_v20 = vld [vmem:[#allocation9 + $0x444] sm:$0xf0]  ;;  %v11203_v10 = vor.u32 %v15929_v37, %v11202_v18  ;;  %v9282_v63 = vadd.f32 %v18152_v3, %v9269_v56  ;;  %v11298_v3 = vld [vmem:[#allocation9 + $0x370] sm:$0xf] }
 0x700   :  { %9603 = vmatpush.bf16.msrb.mxu2 %v15303_v28  ;;  %v16831_v28 = vld [vmem:[#allocation9 + $0x1efc] sm:$0xf]  ;;  %v11395_v15 = vor.u32 %v15977_v20, %v11394_v23  ;;  %v14772_v23 = vld [vmem:[#allocation9 + $0x1eb0] sm:$0xf0] }
 0x701   :  { %10695 = vmatpush.bf16.msra.mxu0 %v17061_v39  ;;  %v11370_v39 = vld [vmem:[#allocation9 + $0x400] sm:$0xf]  ;;  %v14823_v1 = vor.u32 %v16831_v28, %v14820_v57  ;;  %v10050_v20 = vpop.f32.mrf.mxu0  ;;  %v15911_v28 = vld [vmem:[#allocation9 + $0x234] sm:$0xf0] }
 0x702   :  { %9513 = vmatpush.bf16.msra.mxu3 %v13935_v6  ;;  %v15971_v6 = vld [vmem:[#allocation9 + $0x414] sm:$0xf0]  ;;  %v17057_v57 = vld [vmem:[%s18528_s6 + $0x88] sm:$0xff] }
 0x703   :  { %9591 = vmatpush.bf16.msrb.mxu1 %v15087_v21  ;;  %v16825_v21 = vld [vmem:[#allocation9 + $0x1ecc] sm:$0xf]  ;;  %v11082_v20 = vld [vmem:[#allocation9 + $0x1c0] sm:$0xf] }
 0x704   :  { %9604 = vmatpush.bf16.msrb.mxu2 %v15279_v41  ;;  %v11371_v41 = vor.u32 %v15971_v6, %v11370_v39 }
 0x705   :  { %9514 = vmatmul.bf16.vlgmr.msra.gmra.mxu3 %v17845_v31  ;;  %10696 = vmatpush.bf16.msra.mxu0 %v17060_v11  ;;  %v16819_v11 = vld [vmem:[#allocation9 + $0x1e9c] sm:$0xf] }
 0x706   :  { %9558 = vmatpush.bf16.msrb.mxu3 %v14871_v7  ;;  %9592 = vmatmul.bf16.vlgmr.msrb.gmra.mxu1 %v17881_v49  ;;  %v14796_v7 = vld [vmem:[#allocation9 + $0x1ee0] sm:$0xf0]  ;;  %v14775_v39 = vor.u32 %v16819_v11, %v14772_v23 }
 0x707   :  { %9636 = vmatpush.bf16.msra.mxu1 %v11227_v45  ;;  %9605 = vmatmul.bf16.vlgmr.msrb.gmra.mxu2 %v17774_v60  ;;  %v11154_v45 = vld [vmem:[#allocation9 + $0x250] sm:$0xf]  ;;  %v14799_v18 = vor.u32 %v16825_v21, %v14796_v7  ;;  %v17102_v21 = vld [vmem:[#allocation10] sm:$0x3f] }
 0x708   :  { %9649 = vmatpush.bf16.msra.mxu2 %v11419_v33  ;;  %v15965_v33 = vld [vmem:[#allocation9 + $0x3e4] sm:$0xf0]  ;;  %v11155_v37 = vor.u32 %v15917_v47, %v11154_v45  ;;  %v2314_v7 = vperm.slane %v17102_v21, 3  ;;  %v17056_v47 = vld [vmem:[%s18528_s6 + $0x80] sm:$0xff]  ;;  %v9307_v48 = vpop.f32.mrf.mxu3 }
 0x709   :  { %10697 = vmatpush.bf16.msra.mxu0 %v17059_v0  ;;  %v18205_v0 = vpop.f32.mrf.mxu1  ;;  %v15905_v45 = vld [vmem:[#allocation9 + $0x204] sm:$0xf0] }
 0x70a   :  { %9559 = vmatpush.bf16.msrb.mxu3 %v14847_v5  ;;  %v11347_v5 = vor.u32 %v15965_v33, %v11346_v14  ;;  %v9295_v14 = vadd.f32 %v18155_v42, %v9282_v63  ;;  %v9308_v11 = vadd.f32 %v9307_v48, %v2314_v7  ;;  %v15893_v21 = vld [vmem:[#allocation9 + $0x1a4] sm:$0xf0]  ;;  %v16127_v48 = vld [vmem:[#allocation9 + $0x8f4] sm:$0xf0] }
 0x70b   :  { %9637 = vmatpush.bf16.msra.mxu1 %v11203_v10  ;;  %v11130_v10 = vld [vmem:[#allocation9 + $0x220] sm:$0xf] }
 0x70c   :  { %9650 = vmatpush.bf16.msra.mxu2 %v11395_v15  ;;  %v11322_v15 = vld [vmem:[#allocation9 + $0x3a0] sm:$0xf]  ;;  %v11131_v6 = vor.u32 %v15911_v28, %v11130_v10  ;;  %v18211_v10 = vpop.f32.mrf.mxu2 }
 0x70d   :  { %10698 = vmatpush.bf16.msra.mxu0 %v17058_v17  ;;  %v15953_v17 = vld [vmem:[#allocation9 + $0x384] sm:$0xf0]  ;;  %v11274_v28 = vld [vmem:[#allocation9 + $0x340] sm:$0xf] }
 0x70e   :  { %9560 = vmatpush.bf16.msrb.mxu3 %v14823_v1  ;;  %v14748_v1 = vld [vmem:[#allocation9 + $0x1e80] sm:$0xf0]  ;;  %v11299_v23 = vor.u32 %v15953_v17, %v11298_v3  ;;  %v15941_v17 = vld [vmem:[#allocation9 + $0x324] sm:$0xf0] }
 0x70f   :  { %9638 = vmatpush.bf16.msra.mxu1 %v11179_v61  ;;  %v11323_v61 = vor.u32 %v15959_v59, %v11322_v15  ;;  %v14751_v33 = vor.u32 %v16813_v38, %v14748_v1  ;;  %v10275_v15 = vpack.c.bf16 %v9295_v14, %v9295_v14  ;;  %v18549_v59 = vld [vmem:[#allocation23_spill] sm:$0xff]  ;;  %v14700_v1 = vld [vmem:[#allocation9 + $0x1e20] sm:$0xf0]  ;;  %v11994_v14 = vld [vmem:[#allocation9 + $0x8e0] sm:$0xf] }
 0x710   :  { %9651 = vmatpush.bf16.msra.mxu2 %v11371_v41  ;;  %v11106_v41 = vld [vmem:[#allocation9 + $0x1f0] sm:$0xf]  ;;  %v9321_v42 = vadd.f32 %v18549_v59, %v9308_v11  ;;  %v9309_v11 = vpop.f32.mrf.mxu3 }
 0x711   :  { %10699 = vmatpush.bf16.msra.mxu0 %v17057_v57  ;;  %v11107_v56 = vor.u32 %v15905_v45, %v11106_v41  ;;  %v15947_v57 = vld [vmem:[#allocation9 + $0x354] sm:$0xf0]  ;;  %v9387_v63 = vpop.f32.mrf.mxu1  ;;  %v11250_v41 = vld [vmem:[#allocation9 + $0x310] sm:$0xf]  ;;  %v17035_v45 = vld [vmem:[#allocation9 + $0x255c] sm:$0xf] }
 0x712   :  { %9561 = vmatpush.bf16.msrb.mxu3 %v14799_v18  ;;  %v16807_v18 = vld [vmem:[#allocation9 + $0x1e3c] sm:$0xf]  ;;  %v11275_v7 = vor.u32 %v15947_v57, %v11274_v28  ;;  %v9334_v3 = vadd.f32 %v18168_v2, %v9321_v42  ;;  %v11995_v28 = vor.u32 %v16127_v48, %v11994_v14  ;;  %v17029_v57 = vld [vmem:[#allocation9 + $0x252c] sm:$0xf]  ;;  %v11970_v42 = vld [vmem:[#allocation9 + $0x8b0] sm:$0xf] }
 0x713   :  { %9639 = vmatpush.bf16.msra.mxu1 %v11155_v37  ;;  %v14724_v37 = vld [vmem:[#allocation9 + $0x1e50] sm:$0xf0]  ;;  %v16121_v63 = vld [vmem:[#allocation9 + $0x8c4] sm:$0xf0]  ;;  %v17017_v48 = vld [vmem:[#allocation9 + $0x24cc] sm:$0xf] }
 0x714   :  { %9652 = vmatpush.bf16.msra.mxu2 %v11347_v5  ;;  %v15899_v5 = vld [vmem:[#allocation9 + $0x1d4] sm:$0xf0]  ;;  %v9400_v2 = vpop.f32.mrf.mxu2  ;;  %v16109_v11 = vld [vmem:[#allocation9 + $0x864] sm:$0xf0] }
 0x715   :  { %10700 = vmatpush.bf16.msra.mxu0 %v17056_v47  ;;  %v11083_v38 = vor.u32 %v15899_v5, %v11082_v20  ;;  %v15636_v47 = vld [vmem:[#allocation9 + $0x2570] sm:$0xf0]  ;;  %v11251_v5 = vor.u32 %v15941_v17, %v11250_v41  ;;  %v11946_v41 = vld [vmem:[#allocation9 + $0x880] sm:$0xf] }
 0x716   :  { %9562 = vmatpush.bf16.msrb.mxu3 %v14775_v39  ;;  %v14727_v39 = vor.u32 %v16807_v18, %v14724_v37  ;;  %v12186_v18 = vld [vmem:[#allocation9 + $0xa60] sm:$0xf]  ;;  %v16175_v37 = vld [vmem:[#allocation9 + $0xa74] sm:$0xf0] }
 0x717   :  { %9640 = vmatpush.bf16.msra.mxu1 %v11131_v6  ;;  %v16801_v6 = vld [vmem:[#allocation9 + $0x1e0c] sm:$0xf]  ;;  %v12187_v59 = vor.u32 %v16175_v37, %v12186_v18  ;;  %v11922_v37 = vld [vmem:[#allocation9 + $0x850] sm:$0xf] }
 0x718   :  { %9653 = vmatpush.bf16.msra.mxu2 %v11323_v61  ;;  %v11058_v61 = vld [vmem:[#allocation9 + $0x190] sm:$0xf]  ;;  %10701 = vmatmul.bf16.vlgmr.msra.gmra.mxu0 %v10275_v15  ;;  %v15612_v15 = vld [vmem:[#allocation9 + $0x2540] sm:$0xf0] }
 0x719   :  { %v11059_v20 = vor.u32 %v15893_v21, %v11058_v61  ;;  %v15588_v61 = vld [vmem:[#allocation9 + $0x2510] sm:$0xf0]  ;;  %v18218_v21 = vpop.f32.mrf.mxu0 }
 0x71a   :  { %9563 = vmatpush.bf16.msrb.mxu3 %v14751_v33  ;;  %v14703_v33 = vor.u32 %v16801_v6, %v14700_v1  ;;  %v16169_v6 = vld [vmem:[#allocation9 + $0xa44] sm:$0xf0]  ;;  %v17023_v1 = vld [vmem:[#allocation9 + $0x24fc] sm:$0xf]  ;;  %18550 = vst [vmem:[#allocation20_spill] sm:$0xff] %v18218_v21 }
 0x71b   :  { %9641 = vmatpush.bf16.msra.mxu1 %v11107_v56  ;;  %v18216_v56 = vadd.f32 %v18175_v12, %v9334_v3  ;;  %v15615_v12 = vor.u32 %v17029_v57, %v15612_v15  ;;  %v16163_v3 = vld [vmem:[#allocation9 + $0xa14] sm:$0xf0]  ;;  %v15591_v17 = vor.u32 %v17023_v1, %v15588_v61  ;;  %v17011_v57 = vld [vmem:[#allocation9 + $0x249c] sm:$0xf]  ;;  %v15540_v15 = vld [vmem:[#allocation9 + $0x24b0] sm:$0xf0] }
 0x71c   :  { %9654 = vmatpush.bf16.msra.mxu2 %v11299_v23  ;;  %v15639_v23 = vor.u32 %v17035_v45, %v15636_v47  ;;  %v16115_v45 = vld [vmem:[#allocation9 + $0x894] sm:$0xf0]  ;;  %v12138_v47 = vld [vmem:[#allocation9 + $0xa00] sm:$0xf]  ;;  %v17005_v61 = vld [vmem:[#allocation9 + $0x246c] sm:$0xf] }
 0x71d   :  { %v11947_v14 = vor.u32 %v16115_v45, %v11946_v41  ;;  %v12139_v18 = vor.u32 %v16163_v3, %v12138_v47  ;;  %v11874_v45 = vld [vmem:[#allocation9 + $0x7f0] sm:$0xf]  ;;  %v16097_v47 = vld [vmem:[#allocation9 + $0x804] sm:$0xf0] }
 0x71e   :  { %9564 = vmatpush.bf16.msrb.mxu3 %v14727_v39  ;;  %v12162_v39 = vld [vmem:[#allocation9 + $0xa30] sm:$0xf]  ;;  %v16313_v21 = vld [vmem:[#allocation9 + $0xec4] sm:$0xf0] }
 0x71f   :  { %9642 = vmatpush.bf16.msra.mxu1 %v11083_v38  ;;  %v11971_v38 = vor.u32 %v16121_v63, %v11970_v42  ;;  %v11898_v42 = vld [vmem:[#allocation9 + $0x820] sm:$0xf]  ;;  %v16103_v63 = vld [vmem:[#allocation9 + $0x834] sm:$0xf0]  ;;  %v12066_v3 = vld [vmem:[#allocation9 + $0x970] sm:$0xf] }
 0x720   :  { %9655 = vmatpush.bf16.msra.mxu2 %v11275_v7  ;;  %v12163_v7 = vor.u32 %v16169_v6, %v12162_v39  ;;  %v12090_v39 = vld [vmem:[#allocation9 + $0x9a0] sm:$0xf]  ;;  %v16151_v6 = vld [vmem:[#allocation9 + $0x9b4] sm:$0xf0]  ;;  %v11899_v1 = vor.u32 %v16103_v63, %v11898_v42 }
 0x721   :  { %v10102_v2 = vpop.f32.mrf.mxu0  ;;  %v12091_v41 = vor.u32 %v16151_v6, %v12090_v39  ;;  %v16993_v39 = vld [vmem:[#allocation9 + $0x240c] sm:$0xf] }
 0x722   :  { %9565 = vmatpush.bf16.msrb.mxu3 %v14703_v33  ;;  %v15564_v33 = vld [vmem:[#allocation9 + $0x24e0] sm:$0xf0]  ;;  %v18551_v2 = vld [vmem:[#allocation24_spill] sm:$0xff] }
 0x723   :  { %9643 = vmatpush.bf16.msra.mxu1 %v11059_v20  ;;  %v12114_v20 = vld [vmem:[#allocation9 + $0x9d0] sm:$0xf] }
 0x724   :  { %9656 = vmatpush.bf16.msra.mxu2 %v11251_v5  ;;  %v15567_v5 = vor.u32 %v17017_v48, %v15564_v33  ;;  %v11875_v33 = vor.u32 %v16097_v47, %v11874_v45  ;;  %v16031_v45 = vld [vmem:[#allocation9 + $0x5f4] sm:$0xf0] }
 0x725   :  { %9566 = vmatmul.bf16.vlgmr.msrb.gmra.mxu3 %v17847_v51 }
 0x726   :  { %9610 = vmatpush.bf16.msra.mxu3 %v15639_v23  ;;  %9644 = vmatmul.bf16.vlgmr.msra.gmra.mxu1 %v17739_v16  ;;  %v16157_v23 = vld [vmem:[#allocation9 + $0x9e4] sm:$0xf0] }
 0x727   :  { %9688 = vmatpush.bf16.msrb.mxu1 %v11995_v28  ;;  %9657 = vmatmul.bf16.vlgmr.msra.gmra.mxu2 %v17724_v29  ;;  %v11923_v28 = vor.u32 %v16109_v11, %v11922_v37  ;;  %v15492_v37 = vld [vmem:[#allocation9 + $0x2450] sm:$0xf0] }
 0x728   :  { %9701 = vmatpush.bf16.msrb.mxu2 %v12187_v59  ;;  %v12115_v59 = vor.u32 %v16157_v23, %v12114_v20  ;;  %v9359_v48 = vpop.f32.mrf.mxu3  ;;  %v11850_v23 = vld [vmem:[#allocation9 + $0x7c0] sm:$0xf] }
 0x729   :  { %v9360_v11 = vadd.f32 %v9359_v48, %v18216_v56  ;;  %v16319_v48 = vld [vmem:[#allocation9 + $0xef4] sm:$0xf0] }
 0x72a   :  { %9611 = vmatpush.bf16.msra.mxu3 %v15615_v12  ;;  %v18223_v12 = vpop.f32.mrf.mxu1 }
 0x72b   :  { %9689 = vmatpush.bf16.msrb.mxu1 %v11971_v38  ;;  %v15543_v38 = vor.u32 %v17011_v57, %v15540_v15  ;;  %v12042_v57 = vld [vmem:[#allocation9 + $0x940] sm:$0xf]  ;;  %v16139_v15 = vld [vmem:[#allocation9 + $0x954] sm:$0xf0] }
 0x72c   :  { %9702 = vmatpush.bf16.msrb.mxu2 %v12163_v7  ;;  %v15516_v7 = vld [vmem:[#allocation9 + $0x2480] sm:$0xf0]  ;;  %v12043_v56 = vor.u32 %v16139_v15, %v12042_v57  ;;  %v11586_v15 = vld [vmem:[#allocation9 + $0x5b0] sm:$0xf] }
 0x72e   :  { %9612 = vmatpush.bf16.msra.mxu3 %v15591_v17  ;;  %v16145_v17 = vld [vmem:[#allocation9 + $0x984] sm:$0xf0] }
 0x72f   :  { %9690 = vmatpush.bf16.msrb.mxu1 %v11947_v14  ;;  %v15519_v14 = vor.u32 %v17005_v61, %v15516_v7  ;;  %v12067_v20 = vor.u32 %v16145_v17, %v12066_v3  ;;  %v16085_v61 = vld [vmem:[#allocation9 + $0x7a4] sm:$0xf0]  ;;  %v12018_v7 = vld [vmem:[#allocation9 + $0x910] sm:$0xf]  ;;  %v12762_v17 = vld [vmem:[#allocation9 + $0xee0] sm:$0xf] }
 0x730   :  { %9703 = vmatpush.bf16.msrb.mxu2 %v12139_v18  ;;  %v16999_v18 = vld [vmem:[#allocation9 + $0x243c] sm:$0xf]  ;;  %v16133_v3 = vld [vmem:[#allocation9 + $0x924] sm:$0xf0]  ;;  %v12763_v57 = vor.u32 %v16319_v48, %v12762_v17  ;;  %v11538_v17 = vld [vmem:[#allocation9 + $0x550] sm:$0xf] }
 0x731   :  { %v15495_v63 = vor.u32 %v16999_v18, %v15492_v37  ;;  %v16367_v18 = vld [vmem:[#allocation9 + $0x1074] sm:$0xf0]  ;;  %v9361_v37 = vpop.f32.mrf.mxu3  ;;  %v16013_v48 = vld [vmem:[#allocation9 + $0x564] sm:$0xf0] }
 0x732   :  { %9613 = vmatpush.bf16.msra.mxu3 %v15567_v5  ;;  %v16091_v5 = vld [vmem:[#allocation9 + $0x7d4] sm:$0xf0]  ;;  %v9439_v42 = vpop.f32.mrf.mxu1  ;;  %v12882_v37 = vld [vmem:[#allocation9 + $0xfd0] sm:$0xf] }
 0x733   :  { %9691 = vmatpush.bf16.msrb.mxu1 %v11923_v28  ;;  %v18226_v28 = vpop.f32.mrf.mxu2  ;;  %v11851_v6 = vor.u32 %v16091_v5, %v11850_v23  ;;  %v12019_v5 = vor.u32 %v16133_v3, %v12018_v7  ;;  %v12738_v42 = vld [vmem:[#allocation9 + $0xeb0] sm:$0xf]  ;;  %v12714_v7 = vld [vmem:[#allocation9 + $0xe80] sm:$0xf] }
 0x734   :  { %9704 = vmatpush.bf16.msrb.mxu2 %v12115_v59  ;;  %v9373_v59 = vadd.f32 %v18551_v2, %v9360_v11  ;;  %v16025_v2 = vld [vmem:[#allocation9 + $0x5c4] sm:$0xf0] }
 0x736   :  { %9614 = vmatpush.bf16.msra.mxu3 %v15543_v38  ;;  %v15468_v38 = vld [vmem:[#allocation9 + $0x2420] sm:$0xf0]  ;;  %v9386_v47 = vadd.f32 %v18205_v0, %v9373_v59 }
 0x737   :  { %9692 = vmatpush.bf16.msrb.mxu1 %v11899_v1  ;;  %v11826_v1 = vld [vmem:[#allocation9 + $0x790] sm:$0xf]  ;;  %v15471_v11 = vor.u32 %v16993_v39, %v15468_v38  ;;  %v16361_v39 = vld [vmem:[#allocation9 + $0x1044] sm:$0xf0]  ;;  %v11562_v38 = vld [vmem:[#allocation9 + $0x580] sm:$0xf] }
 0x738   :  { %9705 = vmatpush.bf16.msrb.mxu2 %v12091_v41  ;;  %v11610_v41 = vld [vmem:[#allocation9 + $0x5e0] sm:$0xf]  ;;  %v11827_v23 = vor.u32 %v16085_v61, %v11826_v1  ;;  %v16019_v1 = vld [vmem:[#allocation9 + $0x594] sm:$0xf0]  ;;  %v18233_v61 = vpop.f32.mrf.mxu0 }
 0x739   :  { %18552 = vst [vmem:[#allocation21_spill] sm:$0xff] %v18233_v61  ;;  %v11563_v3 = vor.u32 %v16019_v1, %v11562_v38  ;;  %v11490_v1 = vld [vmem:[#allocation9 + $0x4f0] sm:$0xf]  ;;  %v16505_v61 = vld [vmem:[#allocation9 + $0x14c4] sm:$0xf0] }
 0x73a   :  { %9615 = vmatpush.bf16.msra.mxu3 %v15519_v14  ;;  %v12954_v14 = vld [vmem:[#allocation9 + $0x1060] sm:$0xf] }
 0x73b   :  { %9693 = vmatpush.bf16.msrb.mxu1 %v11875_v33  ;;  %v18231_v33 = vadd.f32 %v18211_v10, %v9386_v47  ;;  %v9452_v0 = vpop.f32.mrf.mxu2  ;;  %v12955_v59 = vor.u32 %v16367_v18, %v12954_v14  ;;  %v11587_v10 = vor.u32 %v16025_v2, %v11586_v15  ;;  %v16355_v47 = vld [vmem:[#allocation9 + $0x1014] sm:$0xf0]  ;;  %v12690_v14 = vld [vmem:[#allocation9 + $0xe50] sm:$0xf]  ;;  %v16301_v18 = vld [vmem:[#allocation9 + $0xe64] sm:$0xf0] }
 0x73c   :  { %9706 = vmatpush.bf16.msrb.mxu2 %v12067_v20  ;;  %v11611_v20 = vor.u32 %v16031_v45, %v11610_v41  ;;  %v16307_v41 = vld [vmem:[#allocation9 + $0xe94] sm:$0xf0]  ;;  %v12906_v45 = vld [vmem:[#allocation9 + $0x1000] sm:$0xf] }
 0x73d   :  { %v16007_v15 = vld [vmem:[#allocation9 + $0x534] sm:$0xf0] }
 0x73e   :  { %9616 = vmatpush.bf16.msra.mxu3 %v15495_v63  ;;  %v12930_v63 = vld [vmem:[#allocation9 + $0x1030] sm:$0xf] }
 0x73f   :  { %9694 = vmatpush.bf16.msrb.mxu1 %v11851_v6  ;;  %v12739_v6 = vor.u32 %v16313_v21, %v12738_v42  ;;  %v12715_v21 = vor.u32 %v16307_v41, %v12714_v7  ;;  %v16295_v42 = vld [vmem:[#allocation9 + $0xe34] sm:$0xf0]  ;;  %v12642_v41 = vld [vmem:[#allocation9 + $0xdf0] sm:$0xf] }
 0x740   :  { %9707 = vmatpush.bf16.msrb.mxu2 %v12043_v56  ;;  %v12931_v56 = vor.u32 %v16361_v39, %v12930_v63  ;;  %v10154_v2 = vpop.f32.mrf.mxu0  ;;  %v12858_v63 = vld [vmem:[#allocation9 + $0xfa0] sm:$0xf]  ;;  %v16343_v39 = vld [vmem:[#allocation9 + $0xfb4] sm:$0xf0] }
 0x741   :  { %v12859_v7 = vor.u32 %v16343_v39, %v12858_v63  ;;  %v18553_v2 = vld [vmem:[#allocation25_spill] sm:$0xff]  ;;  %v11442_v63 = vld [vmem:[#allocation9 + $0x490] sm:$0xf] }
 0x742   :  { %9617 = vmatpush.bf16.msra.mxu3 %v15471_v11  ;;  %v12907_v11 = vor.u32 %v16355_v47, %v12906_v45  ;;  %v16289_v45 = vld [vmem:[#allocation9 + $0xe04] sm:$0xf0]  ;;  %v12834_v47 = vld [vmem:[#allocation9 + $0xf70] sm:$0xf] }
 0x743   :  { %9695 = vmatpush.bf16.msrb.mxu1 %v11827_v23  ;;  %v16349_v23 = vld [vmem:[#allocation9 + $0xfe4] sm:$0xf0] }
 0x744   :  { %9708 = vmatpush.bf16.msrb.mxu2 %v12019_v5  ;;  %v12691_v5 = vor.u32 %v16301_v18, %v12690_v14  ;;  %v12883_v0 = vor.u32 %v16349_v23, %v12882_v37  ;;  %v15995_v14 = vld [vmem:[#allocation9 + $0x4d4] sm:$0xf0]  ;;  %v12618_v23 = vld [vmem:[#allocation9 + $0xdc0] sm:$0xf] }
 0x745   :  { %9618 = vmatmul.bf16.vlgmr.msra.gmra.mxu3 %v17870_v52 }
 0x746   :  { %9662 = vmatpush.bf16.msrb.mxu3 %v11611_v20  ;;  %9696 = vmatmul.bf16.vlgmr.msrb.gmra.mxu1 %v17741_v19  ;;  %v11539_v20 = vor.u32 %v16013_v48, %v11538_v17  ;;  %v12643_v48 = vor.u32 %v16289_v45, %v12642_v41  ;;  %v16223_v41 = vld [vmem:[#allocation9 + $0xbf4] sm:$0xf0] }
 0x747   :  { %9740 = vmatpush.bf16.msra.mxu1 %v12763_v57  ;;  %9709 = vmatmul.bf16.vlgmr.msrb.gmra.mxu2 %v17744_v24  ;;  %v11514_v57 = vld [vmem:[#allocation9 + $0x520] sm:$0xf] }
 0x748   :  { %9753 = vmatpush.bf16.msra.mxu2 %v12955_v59  ;;  %v12666_v59 = vld [vmem:[#allocation9 + $0xe20] sm:$0xf]  ;;  %v9411_v17 = vpop.f32.mrf.mxu3 }
 0x749   :  { %v12667_v38 = vor.u32 %v16295_v42, %v12666_v59  ;;  %v9412_v18 = vadd.f32 %v9411_v17, %v18231_v33  ;;  %v16511_v17 = vld [vmem:[#allocation9 + $0x14f4] sm:$0xf0] }
 0x74a   :  { %9663 = vmatpush.bf16.msrb.mxu3 %v11587_v10  ;;  %v18238_v10 = vpop.f32.mrf.mxu1 }
 0x74b   :  { %9741 = vmatpush.bf16.msra.mxu1 %v12739_v6  ;;  %v11515_v6 = vor.u32 %v16007_v15, %v11514_v57  ;;  %v12810_v57 = vld [vmem:[#allocation9 + $0xf40] sm:$0xf]  ;;  %v16331_v15 = vld [vmem:[#allocation9 + $0xf54] sm:$0xf0] }
 0x74c   :  { %9754 = vmatpush.bf16.msra.mxu2 %v12931_v56  ;;  %v16001_v56 = vld [vmem:[#allocation9 + $0x504] sm:$0xf0]  ;;  %v12811_v33 = vor.u32 %v16331_v15, %v12810_v57  ;;  %v12354_v15 = vld [vmem:[#allocation9 + $0xbb0] sm:$0xf] }
 0x74e   :  { %9664 = vmatpush.bf16.msrb.mxu3 %v11563_v3  ;;  %v16337_v3 = vld [vmem:[#allocation9 + $0xf84] sm:$0xf0] }
 0x74f   :  { %9742 = vmatpush.bf16.msra.mxu1 %v12715_v21  ;;  %v11491_v21 = vor.u32 %v16001_v56, %v11490_v1  ;;  %v12835_v37 = vor.u32 %v16337_v3, %v12834_v47  ;;  %v16277_v1 = vld [vmem:[#allocation9 + $0xda4] sm:$0xf0]  ;;  %v12786_v56 = vld [vmem:[#allocation9 + $0xf10] sm:$0xf]  ;;  %v13530_v3 = vld [vmem:[#allocation9 + $0x14e0] sm:$0xf] }
 0x750   :  { %9755 = vmatpush.bf16.msra.mxu2 %v12907_v11  ;;  %v11466_v11 = vld [vmem:[#allocation9 + $0x4c0] sm:$0xf]  ;;  %v16325_v47 = vld [vmem:[#allocation9 + $0xf24] sm:$0xf0]  ;;  %v13531_v57 = vor.u32 %v16511_v17, %v13530_v3  ;;  %v12306_v3 = vld [vmem:[#allocation9 + $0xb50] sm:$0xf] }
 0x751   :  { %v11467_v42 = vor.u32 %v15995_v14, %v11466_v11  ;;  %v16559_v11 = vld [vmem:[#allocation9 + $0x1674] sm:$0xf0]  ;;  %v9413_v14 = vpop.f32.mrf.mxu3  ;;  %v16205_v17 = vld [vmem:[#allocation9 + $0xb64] sm:$0xf0] }
 0x752   :  { %9665 = vmatpush.bf16.msrb.mxu3 %v11539_v20  ;;  %v16283_v20 = vld [vmem:[#allocation9 + $0xdd4] sm:$0xf0]  ;;  %v9491_v59 = vpop.f32.mrf.mxu1  ;;  %v16541_v14 = vld [vmem:[#allocation9 + $0x15e4] sm:$0xf0] }
 0x753   :  { %9743 = vmatpush.bf16.msra.mxu1 %v12691_v5  ;;  %v18241_v5 = vpop.f32.mrf.mxu2  ;;  %v12619_v39 = vor.u32 %v16283_v20, %v12618_v23  ;;  %v12787_v20 = vor.u32 %v16325_v47, %v12786_v56  ;;  %v13506_v59 = vld [vmem:[#allocation9 + $0x14b0] sm:$0xf]  ;;  %v13482_v56 = vld [vmem:[#allocation9 + $0x1480] sm:$0xf] }
 0x754   :  { %9756 = vmatpush.bf16.msra.mxu2 %v12883_v0  ;;  %v9425_v0 = vadd.f32 %v18553_v2, %v9412_v18  ;;  %v16217_v2 = vld [vmem:[#allocation9 + $0xbc4] sm:$0xf0] }
 0x756   :  { %9666 = vmatpush.bf16.msrb.mxu3 %v11515_v6  ;;  %v15989_v6 = vld [vmem:[#allocation9 + $0x4a4] sm:$0xf0]  ;;  %v9438_v45 = vadd.f32 %v18223_v12, %v9425_v0 }
 0x757   :  { %9744 = vmatpush.bf16.msra.mxu1 %v12667_v38  ;;  %v12594_v38 = vld [vmem:[#allocation9 + $0xd90] sm:$0xf]  ;;  %v11443_v18 = vor.u32 %v15989_v6, %v11442_v63  ;;  %v16553_v63 = vld [vmem:[#allocation9 + $0x1644] sm:$0xf0]  ;;  %v12330_v6 = vld [vmem:[#allocation9 + $0xb80] sm:$0xf] }
 0x758   :  { %9757 = vmatpush.bf16.msra.mxu2 %v12859_v7  ;;  %v12378_v7 = vld [vmem:[#allocation9 + $0xbe0] sm:$0xf]  ;;  %v12595_v23 = vor.u32 %v16277_v1, %v12594_v38  ;;  %v16211_v38 = vld [vmem:[#allocation9 + $0xb94] sm:$0xf0]  ;;  %v18248_v1 = vpop.f32.mrf.mxu0 }
 0x759   :  { %v12331_v47 = vor.u32 %v16211_v38, %v12330_v6  ;;  %v12258_v6 = vld [vmem:[#allocation9 + $0xaf0] sm:$0xf]  ;;  %v16193_v38 = vld [vmem:[#allocation9 + $0xb04] sm:$0xf0] }
 0x75a   :  { %9667 = vmatpush.bf16.msrb.mxu3 %v11491_v21  ;;  %v13722_v21 = vld [vmem:[#allocation9 + $0x1660] sm:$0xf] }
 0x75b   :  { %9745 = vmatpush.bf16.msra.mxu1 %v12643_v48  ;;  %v18246_v48 = vadd.f32 %v18226_v28, %v9438_v45  ;;  %v9504_v12 = vpop.f32.mrf.mxu2  ;;  %v13723_v0 = vor.u32 %v16559_v11, %v13722_v21  ;;  %v12355_v28 = vor.u32 %v16217_v2, %v12354_v15  ;;  %v16547_v45 = vld [vmem:[#allocation9 + $0x1614] sm:$0xf0]  ;;  %v13458_v21 = vld [vmem:[#allocation9 + $0x1450] sm:$0xf]  ;;  %v16493_v11 = vld [vmem:[#allocation9 + $0x1464] sm:$0xf0] }
 0x75c   :  { %9758 = vmatpush.bf16.msra.mxu2 %v12835_v37  ;;  %v12379_v37 = vor.u32 %v16223_v41, %v12378_v7  ;;  %v16499_v7 = vld [vmem:[#allocation9 + $0x1494] sm:$0xf0]  ;;  %v13674_v41 = vld [vmem:[#allocation9 + $0x1600] sm:$0xf] }
 0x75d   :  { %v13434_v12 = vld [vmem:[#allocation9 + $0x1420] sm:$0xf] }
 0x75e   :  { %9668 = vmatpush.bf16.msrb.mxu3 %v11467_v42  ;;  %v13698_v42 = vld [vmem:[#allocation9 + $0x1630] sm:$0xf] }
 0x75f   :  { %9746 = vmatpush.bf16.msra.mxu1 %v12619_v39  ;;  %v13507_v39 = vor.u32 %v16505_v61, %v13506_v59  ;;  %v13483_v61 = vor.u32 %v16499_v7, %v13482_v56  ;;  %v13626_v59 = vld [vmem:[#allocation9 + $0x15a0] sm:$0xf]  ;;  %v13410_v56 = vld [vmem:[#allocation9 + $0x13f0] sm:$0xf]  ;;  %v16481_v7 = vld [vmem:[#allocation9 + $0x1404] sm:$0xf0] }
 0x760   :  { %9759 = vmatpush.bf16.msra.mxu2 %v12811_v33  ;;  %v13699_v33 = vor.u32 %v16553_v63, %v13698_v42  ;;  %v10206_v15 = vpop.f32.mrf.mxu0  ;;  %v16535_v42 = vld [vmem:[#allocation9 + $0x15b4] sm:$0xf0] }
 0x762   :  { %9669 = vmatpush.bf16.msrb.mxu3 %v11443_v18  ;;  %v13675_v18 = vor.u32 %v16547_v45, %v13674_v41  ;;  %v13602_v41 = vld [vmem:[#allocation9 + $0x1570] sm:$0xf]  ;;  %v16529_v45 = vld [vmem:[#allocation9 + $0x1584] sm:$0xf0] }
 0x763   :  { %9747 = vmatpush.bf16.msra.mxu1 %v12595_v23  ;;  %v12307_v23 = vor.u32 %v16205_v17, %v12306_v3  ;;  %v18253_v63 = vpop.f32.mrf.mxu1  ;;  %v13411_v3 = vor.u32 %v16481_v7, %v13410_v56  ;;  %v12234_v17 = vld [vmem:[#allocation9 + $0xac0] sm:$0xf]  ;;  %v16517_v7 = vld [vmem:[#allocation9 + $0x1524] sm:$0xf0] }
 0x764   :  { %9760 = vmatpush.bf16.msra.mxu2 %v12787_v20  ;;  %v12282_v20 = vld [vmem:[#allocation9 + $0xb20] sm:$0xf] }
 0x765   :  { %9670 = vmatmul.bf16.vlgmr.msrb.gmra.mxu3 %v17727_v34  ;;  %v13650_v34 = vld [vmem:[#allocation9 + $0x15d0] sm:$0xf] }
 0x766   :  { %9714 = vmatpush.bf16.msra.mxu3 %v12379_v37  ;;  %9748 = vmatmul.bf16.vlgmr.msra.gmra.mxu1 %v17770_v36  ;;  %v13459_v37 = vor.u32 %v16493_v11, %v13458_v21  ;;  %v13651_v2 = vor.u32 %v16541_v14, %v13650_v34  ;;  %v13603_v11 = vor.u32 %v16529_v45, %v13602_v41  ;;  %v13386_v34 = vld [vmem:[#allocation9 + $0x13c0] sm:$0xf]  ;;  %v16475_v14 = vld [vmem:[#allocation9 + $0x13d4] sm:$0xf0] }
 0x767   :  { %9792 = vmatpush.bf16.msrb.mxu1 %v13531_v57  ;;  %9761 = vmatmul.bf16.vlgmr.msra.gmra.mxu2 %v17802_v44  ;;  %v16199_v57 = vld [vmem:[#allocation9 + $0xb34] sm:$0xf0]  ;;  %v14298_v41 = vld [vmem:[#allocation9 + $0x1ae0] sm:$0xf] }
 0x768   :  { %9805 = vmatpush.bf16.msrb.mxu2 %v13723_v0  ;;  %v16487_v0 = vld [vmem:[#allocation9 + $0x1434] sm:$0xf0] }
 0x769   :  { %v16703_v45 = vld [vmem:[#allocation9 + $0x1af4] sm:$0xf0] }
 0x76a   :  { %9715 = vmatpush.bf16.msra.mxu3 %v12355_v28  ;;  %v12283_v28 = vor.u32 %v16199_v57, %v12282_v20  ;;  %v16523_v20 = vld [vmem:[#allocation9 + $0x1554] sm:$0xf0]  ;;  %v18554_v57 = vld [vmem:[#allocation26_spill] sm:$0xff] }
 0x76b   :  { %9793 = vmatpush.bf16.msrb.mxu1 %v13507_v39  ;;  %v13435_v39 = vor.u32 %v16487_v0, %v13434_v12  ;;  %v12210_v0 = vld [vmem:[#allocation9 + $0xa90] sm:$0xf] }
 0x76c   :  { %9806 = vmatpush.bf16.msrb.mxu2 %v13699_v33  ;;  %v13627_v33 = vor.u32 %v16535_v42, %v13626_v59  ;;  %v13387_v59 = vor.u32 %v16475_v14, %v13386_v34  ;;  %v16181_v42 = vld [vmem:[#allocation9 + $0xaa4] sm:$0xf0]  ;;  %v14299_v14 = vor.u32 %v16703_v45, %v14298_v41  ;;  %v13074_v45 = vld [vmem:[#allocation9 + $0x1150] sm:$0xf] }
 0x76e   :  { %9716 = vmatpush.bf16.msra.mxu3 %v12331_v47  ;;  %v12259_v47 = vor.u32 %v16193_v38, %v12258_v6  ;;  %v13554_v6 = vld [vmem:[#allocation9 + $0x1510] sm:$0xf]  ;;  %v13146_v38 = vld [vmem:[#allocation9 + $0x11e0] sm:$0xf] }
 0x76f   :  { %9794 = vmatpush.bf16.msrb.mxu1 %v13483_v61  ;;  %v9463_v61 = vpop.f32.mrf.mxu3  ;;  %v13555_v34 = vor.u32 %v16517_v7, %v13554_v6  ;;  %v14250_v6 = vld [vmem:[#allocation9 + $0x1a80] sm:$0xf] }
 0x770   :  { %9807 = vmatpush.bf16.msrb.mxu2 %v13675_v18  ;;  %v16187_v18 = vld [vmem:[#allocation9 + $0xad4] sm:$0xf0]  ;;  %v9464_v21 = vadd.f32 %v9463_v61, %v18246_v48  ;;  %v12211_v61 = vor.u32 %v16181_v42, %v12210_v0  ;;  %v16745_v0 = vld [vmem:[#allocation9 + $0x1c44] sm:$0xf0]  ;;  %v13098_v42 = vld [vmem:[#allocation9 + $0x1180] sm:$0xf] }
 0x771   :  { %v12235_v12 = vor.u32 %v16187_v18, %v12234_v17  ;;  %v16751_v17 = vld [vmem:[#allocation9 + $0x1c74] sm:$0xf0] }
 0x772   :  { %9717 = vmatpush.bf16.msra.mxu3 %v12307_v23  ;;  %v18256_v23 = vpop.f32.mrf.mxu2  ;;  %v9477_v15 = vadd.f32 %v18554_v57, %v9464_v21 }
 0x773   :  { %9795 = vmatpush.bf16.msrb.mxu1 %v13459_v37  ;;  %v13578_v37 = vld [vmem:[#allocation9 + $0x1540] sm:$0xf] }
 0x774   :  { %9808 = vmatpush.bf16.msrb.mxu2 %v13651_v2  ;;  %v9543_v2 = vpop.f32.mrf.mxu1  ;;  %v13579_v48 = vor.u32 %v16523_v20, %v13578_v37  ;;  %v9490_v56 = vadd.f32 %v18238_v10, %v9477_v15  ;;  %v13122_v37 = vld [vmem:[#allocation9 + $0x11b0] sm:$0xf]  ;;  %v16409_v20 = vld [vmem:[#allocation9 + $0x11c4] sm:$0xf0] }
 0x775   :  { %v14274_v15 = vld [vmem:[#allocation9 + $0x1ab0] sm:$0xf]  ;;  %v16697_v2 = vld [vmem:[#allocation9 + $0x1ac4] sm:$0xf0] }
 0x776   :  { %9718 = vmatpush.bf16.msra.mxu3 %v12283_v28  ;;  %v13362_v28 = vld [vmem:[#allocation9 + $0x1390] sm:$0xf] }
 0x777   :  { %9796 = vmatpush.bf16.msrb.mxu1 %v13435_v39  ;;  %v16469_v39 = vld [vmem:[#allocation9 + $0x13a4] sm:$0xf0]  ;;  %v9465_v18 = vpop.f32.mrf.mxu3 }
 0x778   :  { %9809 = vmatpush.bf16.msrb.mxu2 %v13627_v33  ;;  %v16415_v33 = vld [vmem:[#allocation9 + $0x11f4] sm:$0xf0]  ;;  %v13363_v21 = vor.u32 %v16469_v39, %v13362_v28  ;;  %v18263_v39 = vpop.f32.mrf.mxu0  ;;  %v16685_v18 = vld [vmem:[#allocation9 + $0x1a64] sm:$0xf0] }
 0x779   :  { %v16403_v28 = vld [vmem:[#allocation9 + $0x1194] sm:$0xf0] }
 0x77a   :  { %9719 = vmatpush.bf16.msra.mxu3 %v12259_v47  ;;  %v14490_v47 = vld [vmem:[#allocation9 + $0x1c60] sm:$0xf]  ;;  %v9556_v10 = vpop.f32.mrf.mxu2  ;;  %v13099_v7 = vor.u32 %v16403_v28, %v13098_v42  ;;  %v13026_v42 = vld [vmem:[#allocation9 + $0x10f0] sm:$0xf]  ;;  %v16385_v28 = vld [vmem:[#allocation9 + $0x1104] sm:$0xf0] }
 0x77b   :  { %9797 = vmatpush.bf16.msrb.mxu1 %v13411_v3  ;;  %v18261_v3 = vadd.f32 %v18241_v5, %v9490_v56  ;;  %v14491_v57 = vor.u32 %v16751_v17, %v14490_v47  ;;  %v13123_v5 = vor.u32 %v16409_v20, %v13122_v37  ;;  %v16739_v56 = vld [vmem:[#allocation9 + $0x1c14] sm:$0xf0]  ;;  %v14226_v17 = vld [vmem:[#allocation9 + $0x1a50] sm:$0xf] }
 0x77c   :  { %9810 = vmatpush.bf16.msrb.mxu2 %v13603_v11  ;;  %v13147_v11 = vor.u32 %v16415_v33, %v13146_v38  ;;  %v16691_v38 = vld [vmem:[#allocation9 + $0x1a94] sm:$0xf0]  ;;  %v14442_v33 = vld [vmem:[#allocation9 + $0x1c00] sm:$0xf] }
 0x77d   :  { %v14251_v41 = vor.u32 %v16691_v38, %v14250_v6  ;;  %v14443_v47 = vor.u32 %v16739_v56, %v14442_v33  ;;  %v16391_v37 = vld [vmem:[#allocation9 + $0x1134] sm:$0xf0]  ;;  %v14178_v6 = vld [vmem:[#allocation9 + $0x19f0] sm:$0xf]  ;;  %v16673_v38 = vld [vmem:[#allocation9 + $0x1a04] sm:$0xf0] }
 0x77e   :  { %9720 = vmatpush.bf16.msra.mxu3 %v12235_v12  ;;  %v14466_v12 = vld [vmem:[#allocation9 + $0x1c30] sm:$0xf]  ;;  %v16721_v56 = vld [vmem:[#allocation9 + $0x1b84] sm:$0xf0] }
 0x77f   :  { %9798 = vmatpush.bf16.msrb.mxu1 %v13387_v59  ;;  %v14275_v59 = vor.u32 %v16697_v2, %v14274_v15  ;;  %v16679_v15 = vld [vmem:[#allocation9 + $0x1a34] sm:$0xf0]  ;;  %v14394_v2 = vld [vmem:[#allocation9 + $0x1ba0] sm:$0xf]  ;;  %v14370_v33 = vld [vmem:[#allocation9 + $0x1b70] sm:$0xf] }
 0x780   :  { %9811 = vmatpush.bf16.msrb.mxu2 %v13579_v48  ;;  %v14467_v48 = vor.u32 %v16745_v0, %v14466_v12  ;;  %v10258_v20 = vpop.f32.mrf.mxu0  ;;  %v16727_v12 = vld [vmem:[#allocation9 + $0x1bb4] sm:$0xf0] }
 0x782   :  { %9721 = vmatpush.bf16.msra.mxu3 %v12211_v61  ;;  %v16397_v61 = vld [vmem:[#allocation9 + $0x1164] sm:$0xf0] }
 0x783   :  { %9799 = vmatpush.bf16.msrb.mxu1 %v13363_v21  ;;  %v16733_v21 = vld [vmem:[#allocation9 + $0x1be4] sm:$0xf0]  ;;  %v18268_v0 = vpop.f32.mrf.mxu1 }
 0x784   :  { %9812 = vmatpush.bf16.msrb.mxu2 %v13555_v34  ;;  %v14227_v34 = vor.u32 %v16685_v18, %v14226_v17  ;;  %v14371_v18 = vor.u32 %v16721_v56, %v14370_v33  ;;  %v15066_v33 = vld [vmem:[#allocation9 + $0x20e0] sm:$0xf]  ;;  %v16895_v56 = vld [vmem:[#allocation9 + $0x20f4] sm:$0xf0] }
 0x785   :  { %9722 = vmatmul.bf16.vlgmr.msra.gmra.mxu3 %v17780_v35  ;;  %v14418_v35 = vld [vmem:[#allocation9 + $0x1bd0] sm:$0xf] }
 0x786   :  { %9766 = vmatpush.bf16.msrb.mxu3 %v13147_v11  ;;  %9800 = vmatmul.bf16.vlgmr.msrb.gmra.mxu1 %v17818_v25  ;;  %v13075_v11 = vor.u32 %v16397_v61, %v13074_v45  ;;  %v14419_v10 = vor.u32 %v16733_v21, %v14418_v35  ;;  %v14179_v45 = vor.u32 %v16673_v38, %v14178_v6  ;;  %v13002_v61 = vld [vmem:[#allocation9 + $0x10c0] sm:$0xf]  ;;  %v16667_v21 = vld [vmem:[#allocation9 + $0x19d4] sm:$0xf0]  ;;  %v16709_v38 = vld [vmem:[#allocation9 + $0x1b24] sm:$0xf0] }
 0x787   :  { %9844 = vmatpush.bf16.msra.mxu1 %v14299_v14  ;;  %9813 = vmatmul.bf16.vlgmr.msrb.gmra.mxu2 %v17806_v46  ;;  %v13050_v14 = vld [vmem:[#allocation9 + $0x1120] sm:$0xf] }
 0x788   :  { %9857 = vmatpush.bf16.msra.mxu2 %v14491_v57  ;;  %v14202_v57 = vld [vmem:[#allocation9 + $0x1a20] sm:$0xf] }
 0x789   :  { %v14154_v35 = vld [vmem:[#allocation9 + $0x19c0] sm:$0xf] }
 0x78a   :  { %9767 = vmatpush.bf16.msrb.mxu3 %v13123_v5  ;;  %v13051_v5 = vor.u32 %v16391_v37, %v13050_v14  ;;  %v16715_v14 = vld [vmem:[#allocation9 + $0x1b54] sm:$0xf0] }
 0x78b   :  { %9845 = vmatpush.bf16.msra.mxu1 %v14275_v59  ;;  %v14203_v59 = vor.u32 %v16679_v15, %v14202_v57  ;;  %v18555_v37 = vld [vmem:[#allocation27_spill] sm:$0xff] }
 0x78c   :  { %9858 = vmatpush.bf16.msra.mxu2 %v14467_v48  ;;  %v14395_v48 = vor.u32 %v16727_v12, %v14394_v2  ;;  %v12978_v15 = vld [vmem:[#allocation9 + $0x1090] sm:$0xf]  ;;  %v14155_v2 = vor.u32 %v16667_v21, %v14154_v35  ;;  %v16373_v12 = vld [vmem:[#allocation9 + $0x10a4] sm:$0xf0]  ;;  %v15067_v21 = vor.u32 %v16895_v56, %v15066_v33 }
 0x78d   :  { %v13842_v56 = vld [vmem:[#allocation9 + $0x1750] sm:$0xf] }
 0x78e   :  { %9768 = vmatpush.bf16.msrb.mxu3 %v13099_v7  ;;  %v13027_v7 = vor.u32 %v16385_v28, %v13026_v42  ;;  %v14322_v42 = vld [vmem:[#allocation9 + $0x1b10] sm:$0xf]  ;;  %v13914_v28 = vld [vmem:[#allocation9 + $0x17e0] sm:$0xf] }
 0x78f   :  { %9846 = vmatpush.bf16.msra.mxu1 %v14251_v41  ;;  %v9515_v41 = vpop.f32.mrf.mxu3  ;;  %v14323_v35 = vor.u32 %v16709_v38, %v14322_v42  ;;  %v15018_v42 = vld [vmem:[#allocation9 + $0x2080] sm:$0xf] }
 0x790   :  { %9859 = vmatpush.bf16.msra.mxu2 %v14443_v47  ;;  %v16379_v47 = vld [vmem:[#allocation9 + $0x10d4] sm:$0xf0]  ;;  %v9516_v17 = vadd.f32 %v9515_v41, %v18261_v3  ;;  %v12979_v41 = vor.u32 %v16373_v12, %v12978_v15  ;;  %v16937_v15 = vld [vmem:[#allocation9 + $0x2244] sm:$0xf0]  ;;  %v13866_v12 = vld [vmem:[#allocation9 + $0x1780] sm:$0xf] }
 0x791   :  { %v13003_v57 = vor.u32 %v16379_v47, %v13002_v61  ;;  %v16943_v61 = vld [vmem:[#allocation9 + $0x2274] sm:$0xf0] }
 0x792   :  { %9769 = vmatpush.bf16.msrb.mxu3 %v13075_v11  ;;  %v18271_v11 = vpop.f32.mrf.mxu2  ;;  %v9529_v20 = vadd.f32 %v18555_v37, %v9516_v17 }
 0x793   :  { %9847 = vmatpush.bf16.msra.mxu1 %v14227_v34  ;;  %v14346_v34 = vld [vmem:[#allocation9 + $0x1b40] sm:$0xf] }
 0x794   :  { %9860 = vmatpush.bf16.msra.mxu2 %v14419_v10  ;;  %v9595_v10 = vpop.f32.mrf.mxu1  ;;  %v14347_v3 = vor.u32 %v16715_v14, %v14346_v34  ;;  %v9542_v6 = vadd.f32 %v18253_v63, %v9529_v20  ;;  %v13890_v34 = vld [vmem:[#allocation9 + $0x17b0] sm:$0xf]  ;;  %v16601_v14 = vld [vmem:[#allocation9 + $0x17c4] sm:$0xf0] }
 0x795   :  { %v15042_v20 = vld [vmem:[#allocation9 + $0x20b0] sm:$0xf]  ;;  %v16889_v10 = vld [vmem:[#allocation9 + $0x20c4] sm:$0xf0] }
 0x796   :  { %9770 = vmatpush.bf16.msrb.mxu3 %v13051_v5  ;;  %v14130_v5 = vld [vmem:[#allocation9 + $0x1990] sm:$0xf] }
 0x797   :  { %9848 = vmatpush.bf16.msra.mxu1 %v14203_v59  ;;  %v16661_v59 = vld [vmem:[#allocation9 + $0x19a4] sm:$0xf0]  ;;  %v9517_v47 = vpop.f32.mrf.mxu3 }
 0x798   :  { %9861 = vmatpush.bf16.msra.mxu2 %v14395_v48  ;;  %v16607_v48 = vld [vmem:[#allocation9 + $0x17f4] sm:$0xf0]  ;;  %v14131_v17 = vor.u32 %v16661_v59, %v14130_v5  ;;  %v18278_v59 = vpop.f32.mrf.mxu0  ;;  %v16877_v47 = vld [vmem:[#allocation9 + $0x2064] sm:$0xf0] }
 0x799   :  { %v16595_v5 = vld [vmem:[#allocation9 + $0x1794] sm:$0xf0] }
 0x79a   :  { %9771 = vmatpush.bf16.msrb.mxu3 %v13027_v7  ;;  %v15258_v7 = vld [vmem:[#allocation9 + $0x2260] sm:$0xf]  ;;  %v9608_v63 = vpop.f32.mrf.mxu2  ;;  %v13867_v38 = vor.u32 %v16595_v5, %v13866_v12 }
 0x79b   :  { %9849 = vmatpush.bf16.msra.mxu1 %v14179_v45  ;;  %v18276_v45 = vadd.f32 %v18256_v23, %v9542_v6  ;;  %v15259_v37 = vor.u32 %v16943_v61, %v15258_v7  ;;  %v13891_v23 = vor.u32 %v16601_v14, %v13890_v34  ;;  %v16931_v6 = vld [vmem:[#allocation9 + $0x2214] sm:$0xf0]  ;;  %v14994_v61 = vld [vmem:[#allocation9 + $0x2050] sm:$0xf]  ;;  %v13818_v14 = vld [vmem:[#allocation9 + $0x1720] sm:$0xf] }
 0x79c   :  { %9862 = vmatpush.bf16.msra.mxu2 %v14371_v18  ;;  %v13915_v18 = vor.u32 %v16607_v48, %v13914_v28  ;;  %v16883_v28 = vld [vmem:[#allocation9 + $0x2094] sm:$0xf0]  ;;  %v15210_v48 = vld [vmem:[#allocation9 + $0x2200] sm:$0xf]  ;;  %v14995_v34 = vor.u32 %v16877_v47, %v14994_v61 }
 0x79d   :  { %v15019_v33 = vor.u32 %v16883_v28, %v15018_v42  ;;  %v15211_v7 = vor.u32 %v16931_v6, %v15210_v48  ;;  %v16583_v63 = vld [vmem:[#allocation9 + $0x1734] sm:$0xf0]  ;;  %v13794_v28 = vld [vmem:[#allocation9 + $0x16f0] sm:$0xf]  ;;  %v16577_v48 = vld [vmem:[#allocation9 + $0x1704] sm:$0xf0] }
 0x79e   :  { %9772 = vmatpush.bf16.msrb.mxu3 %v13003_v57  ;;  %v15234_v57 = vld [vmem:[#allocation9 + $0x2230] sm:$0xf]  ;;  %v13819_v5 = vor.u32 %v16583_v63, %v13818_v14  ;;  %v13770_v47 = vld [vmem:[#allocation9 + $0x16c0] sm:$0xf]  ;;  %v16907_v63 = vld [vmem:[#allocation9 + $0x2154] sm:$0xf0] }
 0x79f   :  { %9850 = vmatpush.bf16.msra.mxu1 %v14155_v2  ;;  %v15043_v2 = vor.u32 %v16889_v10, %v15042_v20  ;;  %v14970_v10 = vld [vmem:[#allocation9 + $0x2020] sm:$0xf] }
 0x7a0   :  { %9863 = vmatpush.bf16.msra.mxu2 %v14347_v3  ;;  %v15235_v3 = vor.u32 %v16937_v15, %v15234_v57  ;;  %v16871_v57 = vld [vmem:[#allocation9 + $0x2034] sm:$0xf0]  ;;  %v15114_v14 = vld [vmem:[#allocation9 + $0x2140] sm:$0xf] }
 0x7a1   :  { %v14971_v42 = vor.u32 %v16871_v57, %v14970_v10 }
 0x7a2   :  { %9773 = vmatpush.bf16.msrb.mxu3 %v12979_v41  ;;  %v16589_v41 = vld [vmem:[#allocation9 + $0x1764] sm:$0xf0] }
 0x7a3   :  { %9851 = vmatpush.bf16.msra.mxu1 %v14131_v17  ;;  %v9645_v12 = vpop.f32.mrf.mxu1 }
 0x7a4   :  { %9864 = vmatpush.bf16.msra.mxu2 %v14323_v35  ;;  %v16925_v35 = vld [vmem:[#allocation9 + $0x21e4] sm:$0xf0] }
 0x7a5   :  { %9774 = vmatmul.bf16.vlgmr.msrb.gmra.mxu3 %v17784_v40  ;;  %v17103_v40 = vld [vmem:[#allocation10] sm:$0x3f] }
 0x7a6   :  { %9818 = vmatpush.bf16.msra.mxu3 %v13915_v18  ;;  %9852 = vmatmul.bf16.vlgmr.msra.gmra.mxu1 %v17822_v58  ;;  %v2315_v17 = vperm.slane %v17103_v40, 4  ;;  %v15186_v18 = vld [vmem:[#allocation9 + $0x21d0] sm:$0xf]  ;;  %v16571_v40 = vld [vmem:[#allocation9 + $0x16d4] sm:$0xf0] }
 0x7a7   :  { %9896 = vmatpush.bf16.msrb.mxu1 %v15067_v21  ;;  %9865 = vmatmul.bf16.vlgmr.msra.gmra.mxu2 %v17827_v8  ;;  %v13843_v21 = vor.u32 %v16589_v41, %v13842_v56  ;;  %v15187_v20 = vor.u32 %v16925_v35, %v15186_v18  ;;  %v15138_v56 = vld [vmem:[#allocation9 + $0x2170] sm:$0xf]  ;;  %v16913_v41 = vld [vmem:[#allocation9 + $0x2184] sm:$0xf0]  ;;  %v14922_v35 = vld [vmem:[#allocation9 + $0x1fc0] sm:$0xf] }
 0x7a8   :  { %9909 = vmatpush.bf16.msrb.mxu2 %v15259_v37  ;;  %v10704_v37 = vpop.f32.mrf.mxu0  ;;  %v9633_v15 = vadd.f32 %v18052_v4, %v2315_v17  ;;  %v9567_v4 = vpop.f32.mrf.mxu3  ;;  %v15139_v18 = vor.u32 %v16913_v41, %v15138_v56  ;;  %v15884_v56 = vld [vmem:[#allocation9 + $0x164] sm:$0xf] }
 0x7a9   :  { %v9568_v17 = vadd.f32 %v9567_v4, %v18276_v45  ;;  %v18556_v37 = vld [vmem:[#allocation28_spill] sm:$0xff]  ;;  %v15115_v45 = vor.u32 %v16907_v63, %v15114_v14  ;;  %v15878_v63 = vld [vmem:[#allocation9 + $0x134] sm:$0xf] }
 0x7aa   :  { %9819 = vmatpush.bf16.msra.mxu3 %v13891_v23  ;;  %v15162_v23 = vld [vmem:[#allocation9 + $0x21a0] sm:$0xf]  ;;  %v11228_v4 = vld [vmem:[#allocation9 + $0x2f8] sm:$0xf0] }
 0x7ab   :  { %9897 = vmatpush.bf16.msrb.mxu1 %v15043_v2  ;;  %v16919_v2 = vld [vmem:[#allocation9 + $0x21b4] sm:$0xf0]  ;;  %v9647_v57 = vpop.f32.mrf.mxu1 }
 0x7ac   :  { %9910 = vmatpush.bf16.msrb.mxu2 %v15235_v3  ;;  %v9646_v3 = vadd.f32 %v9645_v12, %v9633_v15  ;;  %v15163_v6 = vor.u32 %v16919_v2, %v15162_v23  ;;  %v13771_v15 = vor.u32 %v16571_v40, %v13770_v47  ;;  %v13746_v23 = vld [vmem:[#allocation9 + $0x1690] sm:$0xf]  ;;  %v16565_v12 = vld [vmem:[#allocation9 + $0x16a4] sm:$0xf0]  ;;  %v11204_v57 = vld [vmem:[#allocation9 + $0x2c8] sm:$0xf0] }
 0x7ad   :  { %v13747_v41 = vor.u32 %v16565_v12, %v13746_v23  ;;  %v14634_v23 = vld [vmem:[#allocation9 + $0x1d80] sm:$0xf] }
 0x7ae   :  { %9820 = vmatpush.bf16.msra.mxu3 %v13867_v38  ;;  %v14946_v38 = vld [vmem:[#allocation9 + $0x1ff0] sm:$0xf] }
 0x7af   :  { %9898 = vmatpush.bf16.msrb.mxu1 %v15019_v33  ;;  %v16865_v33 = vld [vmem:[#allocation9 + $0x2004] sm:$0xf0] }
 0x7b0   :  { %9911 = vmatpush.bf16.msrb.mxu2 %v15211_v7  ;;  %v13795_v7 = vor.u32 %v16577_v48, %v13794_v28  ;;  %v14947_v61 = vor.u32 %v16865_v33, %v14946_v38  ;;  %v15090_v28 = vld [vmem:[#allocation9 + $0x2110] sm:$0xf]  ;;  %v14682_v48 = vld [vmem:[#allocation9 + $0x1de0] sm:$0xf]  ;;  %v16901_v33 = vld [vmem:[#allocation9 + $0x2124] sm:$0xf0]  ;;  %v9569_v47 = vpop.f32.mrf.mxu3 }
 0x7b2   :  { %9821 = vmatpush.bf16.msra.mxu3 %v13843_v21  ;;  %v16859_v21 = vld [vmem:[#allocation9 + $0x1fd4] sm:$0xf0] }
 0x7b3   :  { %9899 = vmatpush.bf16.msrb.mxu1 %v14995_v34  ;;  %v9658_v34 = vpop.f32.mrf.mxu2  ;;  %v14923_v2 = vor.u32 %v16859_v21, %v14922_v35  ;;  %v14658_v21 = vld [vmem:[#allocation9 + $0x1db0] sm:$0xf] }
 0x7b4   :  { %9912 = vmatpush.bf16.msrb.mxu2 %v15187_v20  ;;  %v9581_v20 = vadd.f32 %v18556_v37, %v9568_v17  ;;  %v18286_v10 = vadd.f32 %v9658_v34, %v9646_v3  ;;  %v11036_v3 = vld [vmem:[#allocation9 + $0x178] sm:$0xf0]  ;;  %v16793_v34 = vld [vmem:[#allocation9 + $0x1dc4] sm:$0xf0]  ;;  %v11012_v37 = vld [vmem:[#allocation9 + $0x148] sm:$0xf0] }
 0x7b5   :  { %v11039_v35 = vor.u32 %v15884_v56, %v11036_v3  ;;  %v15866_v3 = vld [vmem:[#allocation9 + $0xd4] sm:$0xf] }
 0x7b6   :  { %9822 = vmatpush.bf16.msra.mxu3 %v13819_v5  ;;  %v14898_v5 = vld [vmem:[#allocation9 + $0x1f90] sm:$0xf]  ;;  %v9594_v38 = vadd.f32 %v18268_v0, %v9581_v20  ;;  %v15926_v20 = vld [vmem:[#allocation9 + $0x2b4] sm:$0xf] }
 0x7b7   :  { %9900 = vmatpush.bf16.msrb.mxu1 %v14971_v42  ;;  %v16853_v42 = vld [vmem:[#allocation9 + $0x1fa4] sm:$0xf0]  ;;  %v11207_v12 = vor.u32 %v15926_v20, %v11204_v57  ;;  %v14562_v20 = vld [vmem:[#allocation9 + $0x1cf0] sm:$0xf] }
 0x7b8   :  { %9913 = vmatpush.bf16.msrb.mxu2 %v15163_v6  ;;  %v16799_v6 = vld [vmem:[#allocation9 + $0x1df4] sm:$0xf0]  ;;  %v14899_v40 = vor.u32 %v16853_v42, %v14898_v5  ;;  %v15872_v5 = vld [vmem:[#allocation9 + $0x104] sm:$0xf]  ;;  %v10988_v42 = vld [vmem:[#allocation9 + $0x118] sm:$0xf0] }
 0x7b9   :  { %v14683_v17 = vor.u32 %v16799_v6, %v14682_v48  ;;  %v10991_v6 = vor.u32 %v15872_v5, %v10988_v42  ;;  %v16769_v57 = vld [vmem:[#allocation9 + $0x1d04] sm:$0xf0] }
 0x7ba   :  { %9823 = vmatpush.bf16.msra.mxu3 %v13795_v7  ;;  %v15932_v7 = vld [vmem:[#allocation9 + $0x2e4] sm:$0xf]  ;;  %v14563_v5 = vor.u32 %v16769_v57, %v14562_v20  ;;  %v11804_v20 = vld [vmem:[#allocation9 + $0x778] sm:$0xf0] }
 0x7bb   :  { %9901 = vmatpush.bf16.msrb.mxu1 %v14947_v61  ;;  %v18290_v61 = vadd.f32 %v18271_v11, %v9594_v38  ;;  %v9660_v0 = vpop.f32.mrf.mxu2  ;;  %v11231_v14 = vor.u32 %v15932_v7, %v11228_v4  ;;  %v14659_v11 = vor.u32 %v16793_v34, %v14658_v21  ;;  %v14610_v38 = vld [vmem:[#allocation9 + $0x1d50] sm:$0xf]  ;;  %v11156_v7 = vld [vmem:[#allocation9 + $0x268] sm:$0xf0]  ;;  %v10940_v21 = vld [vmem:[#allocation9 + $0xb8] sm:$0xf0] }
 0x7bc   :  { %9914 = vmatpush.bf16.msrb.mxu2 %v15139_v18  ;;  %v15091_v18 = vor.u32 %v16901_v33, %v15090_v28  ;;  %v11180_v28 = vld [vmem:[#allocation9 + $0x298] sm:$0xf0]  ;;  %v16781_v33 = vld [vmem:[#allocation9 + $0x1d64] sm:$0xf0]  ;;  %v15908_v34 = vld [vmem:[#allocation9 + $0x224] sm:$0xf] }
 0x7bd   :  { %v14611_v4 = vor.u32 %v16781_v33, %v14610_v38  ;;  %v11132_v0 = vld [vmem:[#allocation9 + $0x238] sm:$0xf0]  ;;  %v15848_v33 = vld [vmem:[#allocation9 + $0x44] sm:$0xf] }
 0x7be   :  { %9824 = vmatpush.bf16.msra.mxu3 %v13771_v15  ;;  %v11015_v15 = vor.u32 %v15878_v63, %v11012_v37 }
 0x7bf   :  { %9902 = vmatpush.bf16.msrb.mxu1 %v14923_v2  ;;  %v16787_v2 = vld [vmem:[#allocation9 + $0x1d94] sm:$0xf0] }
 0x7c0   :  { %9915 = vmatpush.bf16.msrb.mxu2 %v15115_v45  ;;  %v15920_v45 = vld [vmem:[#allocation9 + $0x284] sm:$0xf]  ;;  %v14635_v48 = vor.u32 %v16787_v2, %v14634_v23  ;;  %v10916_v23 = vld [vmem:[#allocation9 + $0x88] sm:$0xf0]  ;;  %v15902_v2 = vld [vmem:[#allocation9 + $0x1f4] sm:$0xf] }
 0x7c1   :  { %v11183_v56 = vor.u32 %v15920_v45, %v11180_v28  ;;  %v14538_v28 = vld [vmem:[#allocation9 + $0x1cc0] sm:$0xf] }
 0x7c2   :  { %9825 = vmatpush.bf16.msra.mxu3 %v13747_v41  ;;  %v10964_v41 = vld [vmem:[#allocation9 + $0xe8] sm:$0xf0] }
 0x7c3   :  { %9903 = vmatpush.bf16.msrb.mxu1 %v14899_v40  ;;  %v10967_v47 = vor.u32 %v15866_v3, %v10964_v41  ;;  %v14586_v40 = vld [vmem:[#allocation9 + $0x1d20] sm:$0xf]  ;;  %v15896_v41 = vld [vmem:[#allocation9 + $0x1c4] sm:$0xf] }
 0x7c4   :  { %9916 = vmatpush.bf16.msrb.mxu2 %v15091_v18 }
 0x7c5   :  { %9826 = vmatmul.bf16.vlgmr.msra.gmra.mxu3 %v17811_v54  ;;  %v15914_v54 = vld [vmem:[#allocation9 + $0x254] sm:$0xf] }
 0x7c6   :  { %9870 = vmatpush.bf16.msrb.mxu3 %v14683_v17  ;;  %9904 = vmatmul.bf16.vlgmr.msrb.gmra.mxu1 %v17850_v62  ;;  %v16775_v17 = vld [vmem:[#allocation9 + $0x1d34] sm:$0xf0]  ;;  %v11159_v18 = vor.u32 %v15914_v54, %v11156_v7  ;;  %v11084_v54 = vld [vmem:[#allocation9 + $0x1d8] sm:$0xf0] }
 0x7c7   :  { %9948 = vmatpush.bf16.msra.mxu1 %v11039_v35  ;;  %9917 = vmatmul.bf16.vlgmr.msrb.gmra.mxu2 %v17881_v49  ;;  %v15860_v35 = vld [vmem:[#allocation9 + $0xa4] sm:$0xf]  ;;  %v14587_v63 = vor.u32 %v16775_v17, %v14586_v40  ;;  %v16757_v17 = vld [vmem:[#allocation9 + $0x1ca4] sm:$0xf0] }
 0x7c8   :  { %9961 = vmatpush.bf16.msra.mxu2 %v11231_v14  ;;  %v18295_v14 = vpop.f32.mrf.mxu1  ;;  %v10943_v37 = vor.u32 %v15860_v35, %v10940_v21  ;;  %v9619_v42 = vpop.f32.mrf.mxu3  ;;  %v10868_v35 = vld [vmem:[#allocation9 + $0x28] sm:$0xf0]  ;;  %v11087_v21 = vor.u32 %v15896_v41, %v11084_v54  ;;  %v16118_v41 = vld [vmem:[#allocation9 + $0x8b4] sm:$0xf] }
 0x7c9   :  { %v11972_v54 = vld [vmem:[#allocation9 + $0x8c8] sm:$0xf0] }
 0x7ca   :  { %9871 = vmatpush.bf16.msrb.mxu3 %v14659_v11  ;;  %v11135_v11 = vor.u32 %v15908_v34, %v11132_v0  ;;  %v18300_v3 = vpop.f32.mrf.mxu2  ;;  %v15450_v34 = vld [vmem:[#allocation9 + $0x23e0] sm:$0xf]  ;;  %v16991_v0 = vld [vmem:[#allocation9 + $0x23f4] sm:$0xf0] }
 0x7cb   :  { %9949 = vmatpush.bf16.msra.mxu1 %v11015_v15  ;;  %v15854_v15 = vld [vmem:[#allocation9 + $0x74] sm:$0xf] }
 0x7cc   :  { %9962 = vmatpush.bf16.msra.mxu2 %v11207_v12  ;;  %v11108_v12 = vld [vmem:[#allocation9 + $0x208] sm:$0xf0]  ;;  %v10919_v45 = vor.u32 %v15854_v15, %v10916_v23  ;;  %v11996_v15 = vld [vmem:[#allocation9 + $0x8f8] sm:$0xf0] }
 0x7cd   :  { %v11111_v38 = vor.u32 %v15902_v2, %v11108_v12  ;;  %v15451_v12 = vor.u32 %v16991_v0, %v15450_v34 }
 0x7ce   :  { %9872 = vmatpush.bf16.msrb.mxu3 %v14635_v48  ;;  %v16763_v48 = vld [vmem:[#allocation9 + $0x1cd4] sm:$0xf0] }
 0x7cf   :  { %9950 = vmatpush.bf16.msra.mxu1 %v10991_v6  ;;  %v18298_v6 = vadd.f32 %v9619_v42, %v18290_v61  ;;  %v15890_v61 = vld [vmem:[#allocation9 + $0x194] sm:$0xf] }
 0x7d0   :  { %9963 = vmatpush.bf16.msra.mxu2 %v11183_v56  ;;  %v10892_v56 = vld [vmem:[#allocation9 + $0x58] sm:$0xf0]  ;;  %v9699_v7 = vpop.f32.mrf.mxu1  ;;  %v9621_v23 = vpop.f32.mrf.mxu3 }
 0x7d1   :  { %v10895_v40 = vor.u32 %v15848_v33, %v10892_v56  ;;  %v16070_v33 = vld [vmem:[#allocation9 + $0x734] sm:$0xf]  ;;  %v11780_v56 = vld [vmem:[#allocation9 + $0x748] sm:$0xf0] }
 0x7d2   :  { %9873 = vmatpush.bf16.msrb.mxu3 %v14611_v4  ;;  %v14539_v4 = vor.u32 %v16763_v48, %v14538_v28  ;;  %v16985_v28 = vld [vmem:[#allocation9 + $0x23c4] sm:$0xf0]  ;;  %v9712_v48 = vpop.f32.mrf.mxu2 }
 0x7d3   :  { %9951 = vmatpush.bf16.msra.mxu1 %v10967_v47  ;;  %v14514_v47 = vld [vmem:[#allocation9 + $0x1c90] sm:$0xf] }
 0x7d4   :  { %9964 = vmatpush.bf16.msra.mxu2 %v11159_v18  ;;  %v15842_v18 = vld [vmem:[#allocation9 + $0x14] sm:$0xf]  ;;  %v14515_v57 = vor.u32 %v16757_v17, %v14514_v47  ;;  %v15402_v47 = vld [vmem:[#allocation9 + $0x2380] sm:$0xf]  ;;  %v11975_v17 = vor.u32 %v16118_v41, %v11972_v54  ;;  %v16961_v41 = vld [vmem:[#allocation9 + $0x2304] sm:$0xf0] }
 0x7d5   :  { %v10871_v2 = vor.u32 %v15842_v18, %v10868_v35  ;;  %v16064_v18 = vld [vmem:[#allocation9 + $0x704] sm:$0xf]  ;;  %v11756_v35 = vld [vmem:[#allocation9 + $0x718] sm:$0xf0] }
 0x7d6   :  { %9874 = vmatpush.bf16.msrb.mxu3 %v14587_v63  ;;  %v11060_v63 = vld [vmem:[#allocation9 + $0x1a8] sm:$0xf0]  ;;  %v11759_v0 = vor.u32 %v16064_v18, %v11756_v35 }
 0x7d7   :  { %9952 = vmatpush.bf16.msra.mxu1 %v10943_v37  ;;  %v16076_v37 = vld [vmem:[#allocation9 + $0x764] sm:$0xf] }
 0x7d8   :  { %9965 = vmatpush.bf16.msra.mxu2 %v11135_v11  ;;  %v16124_v11 = vld [vmem:[#allocation9 + $0x8e4] sm:$0xf]  ;;  %v11807_v42 = vor.u32 %v16076_v37, %v11804_v20  ;;  %v16973_v37 = vld [vmem:[#allocation9 + $0x2364] sm:$0xf0] }
 0x7da   :  { %9875 = vmatpush.bf16.msrb.mxu3 %v14563_v5  ;;  %v11063_v5 = vor.u32 %v15890_v61, %v11060_v63  ;;  %v11948_v61 = vld [vmem:[#allocation9 + $0x898] sm:$0xf0]  ;;  %v15378_v63 = vld [vmem:[#allocation9 + $0x2350] sm:$0xf] }
 0x7db   :  { %9953 = vmatpush.bf16.msra.mxu1 %v10919_v45  ;;  %v15426_v45 = vld [vmem:[#allocation9 + $0x23b0] sm:$0xf]  ;;  %v15379_v23 = vor.u32 %v16973_v37, %v15378_v63  ;;  %v16040_v63 = vld [vmem:[#allocation9 + $0x644] sm:$0xf]  ;;  %v11660_v37 = vld [vmem:[#allocation9 + $0x658] sm:$0xf0] }
 0x7dc   :  { %9966 = vmatpush.bf16.msra.mxu2 %v11111_v38  ;;  %v11999_v38 = vor.u32 %v16124_v11, %v11996_v15  ;;  %v15427_v7 = vor.u32 %v16985_v28, %v15426_v45  ;;  %v11732_v11 = vld [vmem:[#allocation9 + $0x6e8] sm:$0xf0]  ;;  %v16100_v45 = vld [vmem:[#allocation9 + $0x824] sm:$0xf]  ;;  %v11900_v28 = vld [vmem:[#allocation9 + $0x838] sm:$0xf0] }
 0x7dd   :  { %v11924_v15 = vld [vmem:[#allocation9 + $0x868] sm:$0xf0]  ;;  %v11903_v54 = vor.u32 %v16100_v45, %v11900_v28  ;;  %v15980_v45 = vld [vmem:[#allocation9 + $0x464] sm:$0xf]  ;;  %v11420_v28 = vld [vmem:[#allocation9 + $0x478] sm:$0xf0] }
 0x7de   :  { %9876 = vmatpush.bf16.msrb.mxu3 %v14539_v4  ;;  %v11783_v4 = vor.u32 %v16070_v33, %v11780_v56  ;;  %v15330_v56 = vld [vmem:[#allocation9 + $0x22f0] sm:$0xf] }
 0x7df   :  { %9954 = vmatpush.bf16.msra.mxu1 %v10895_v40  ;;  %v16979_v40 = vld [vmem:[#allocation9 + $0x2394] sm:$0xf0] }
 0x7e0   :  { %9967 = vmatpush.bf16.msra.mxu2 %v11087_v21  ;;  %v16112_v21 = vld [vmem:[#allocation9 + $0x884] sm:$0xf]  ;;  %v15403_v34 = vor.u32 %v16979_v40, %v15402_v47  ;;  %v16094_v47 = vld [vmem:[#allocation9 + $0x7f4] sm:$0xf]  ;;  %v11876_v40 = vld [vmem:[#allocation9 + $0x808] sm:$0xf0] }
 0x7e1   :  { %v11951_v20 = vor.u32 %v16112_v21, %v11948_v61  ;;  %v15306_v21 = vld [vmem:[#allocation9 + $0x22c0] sm:$0xf]  ;;  %v16955_v61 = vld [vmem:[#allocation9 + $0x22d4] sm:$0xf0] }
 0x7e2   :  { %9877 = vmatpush.bf16.msrb.mxu3 %v14515_v57  ;;  %v16058_v57 = vld [vmem:[#allocation9 + $0x6d4] sm:$0xf] }
 0x7e3   :  { %9955 = vmatpush.bf16.msra.mxu1 %v10871_v2  ;;  %v15354_v2 = vld [vmem:[#allocation9 + $0x2320] sm:$0xf]  ;;  %v18305_v48 = vpop.f32.mrf.mxu1 }
 0x7e4   :  { %9968 = vmatpush.bf16.msra.mxu2 %v11063_v5  ;;  %v16052_v5 = vld [vmem:[#allocation9 + $0x6a4] sm:$0xf] }
 0x7e5   :  { %9878 = vmatmul.bf16.vlgmr.msrb.gmra.mxu3 %v17748_v32  ;;  %v16106_v32 = vld [vmem:[#allocation9 + $0x854] sm:$0xf] }
 0x7e6   :  { %9922 = vmatpush.bf16.msra.mxu3 %v15451_v12  ;;  %9956 = vmatmul.bf16.vlgmr.msra.gmra.mxu1 %v17722_v26  ;;  %v11735_v26 = vor.u32 %v16058_v57, %v11732_v11  ;;  %v16967_v12 = vld [vmem:[#allocation9 + $0x2334] sm:$0xf0]  ;;  %v16088_v57 = vld [vmem:[#allocation9 + $0x7c4] sm:$0xf]  ;;  %v11852_v11 = vld [vmem:[#allocation9 + $0x7d8] sm:$0xf0] }
 0x7e7   :  { %10000 = vmatpush.bf16.msrb.mxu1 %v11807_v42  ;;  %9969 = vmatmul.bf16.vlgmr.msra.gmra.mxu2 %v17739_v16  ;;  %v11927_v16 = vor.u32 %v16106_v32, %v11924_v15  ;;  %v11708_v42 = vld [vmem:[#allocation9 + $0x6b8] sm:$0xf0] }
 0x7e8   :  { %10013 = vmatpush.bf16.msrb.mxu2 %v11999_v38  ;;  %v15355_v38 = vor.u32 %v16967_v12, %v15354_v2  ;;  %v11711_v33 = vor.u32 %v16052_v5, %v11708_v42  ;;  %v9671_v18 = vpop.f32.mrf.mxu3  ;;  %v11663_v2 = vor.u32 %v16040_v63, %v11660_v37  ;;  %v16949_v12 = vld [vmem:[#allocation9 + $0x22a4] sm:$0xf0]  ;;  %v11636_v5 = vld [vmem:[#allocation9 + $0x628] sm:$0xf0]  ;;  %v16082_v42 = vld [vmem:[#allocation9 + $0x794] sm:$0xf] }
 0x7e9   :  { %v12548_v63 = vld [vmem:[#allocation9 + $0xd48] sm:$0xf0]  ;;  %v16310_v37 = vld [vmem:[#allocation9 + $0xeb4] sm:$0xf] }
 0x7ea   :  { %9923 = vmatpush.bf16.msra.mxu3 %v15427_v7  ;;  %v16046_v7 = vld [vmem:[#allocation9 + $0x674] sm:$0xf] }
 0x7eb   :  { %10001 = vmatpush.bf16.msrb.mxu1 %v11783_v4  ;;  %v11684_v4 = vld [vmem:[#allocation9 + $0x688] sm:$0xf0]  ;;  %v9751_v15 = vpop.f32.mrf.mxu1 }
 0x7ec   :  { %10014 = vmatpush.bf16.msrb.mxu2 %v11975_v17  ;;  %v15331_v17 = vor.u32 %v16961_v41, %v15330_v56  ;;  %v11687_v35 = vor.u32 %v16046_v7, %v11684_v4  ;;  %v16268_v56 = vld [vmem:[#allocation9 + $0xd64] sm:$0xf]  ;;  %v12572_v41 = vld [vmem:[#allocation9 + $0xd78] sm:$0xf0] }
 0x7ed   :  { %v12764_v7 = vld [vmem:[#allocation9 + $0xef8] sm:$0xf0] }
 0x7ee   :  { %9924 = vmatpush.bf16.msra.mxu3 %v15403_v34  ;;  %v9672_v34 = vadd.f32 %v9671_v18, %v18286_v10  ;;  %v11855_v10 = vor.u32 %v16088_v57, %v11852_v11  ;;  %v12740_v57 = vld [vmem:[#allocation9 + $0xec8] sm:$0xf0]  ;;  %v11372_v15 = vld [vmem:[#allocation9 + $0x418] sm:$0xf0] }
 0x7ef   :  { %10002 = vmatpush.bf16.msrb.mxu1 %v11759_v0  ;;  %v11879_v0 = vor.u32 %v16094_v47, %v11876_v40 }
 0x7f0   :  { %10015 = vmatpush.bf16.msrb.mxu2 %v11951_v20  ;;  %v18308_v20 = vpop.f32.mrf.mxu2  ;;  %v9685_v32 = vadd.f32 %v18068_v13, %v9672_v34  ;;  %v9673_v47 = vpop.f32.mrf.mxu3 }
 0x7f1   :  { %v12476_v47 = vld [vmem:[#allocation9 + $0xcb8] sm:$0xf0] }
 0x7f2   :  { %9925 = vmatpush.bf16.msra.mxu3 %v15379_v23  ;;  %v15307_v23 = vor.u32 %v16955_v61, %v15306_v21  ;;  %v15974_v21 = vld [vmem:[#allocation9 + $0x434] sm:$0xf]  ;;  %v11396_v61 = vld [vmem:[#allocation9 + $0x448] sm:$0xf0] }
 0x7f3   :  { %10003 = vmatpush.bf16.msrb.mxu1 %v11735_v26  ;;  %v15282_v26 = vld [vmem:[#allocation9 + $0x2290] sm:$0xf] }
 0x7f4   :  { %10016 = vmatpush.bf16.msrb.mxu2 %v11927_v16  ;;  %v16034_v16 = vld [vmem:[#allocation9 + $0x614] sm:$0xf]  ;;  %v15283_v13 = vor.u32 %v16949_v12, %v15282_v26  ;;  %v16256_v26 = vld [vmem:[#allocation9 + $0xd04] sm:$0xf] }
 0x7f5   :  { %v11639_v40 = vor.u32 %v16034_v16, %v11636_v5  ;;  %v16304_v12 = vld [vmem:[#allocation9 + $0xe84] sm:$0xf]  ;;  %v12716_v16 = vld [vmem:[#allocation9 + $0xe98] sm:$0xf0] }
 0x7f6   :  { %9926 = vmatpush.bf16.msra.mxu3 %v15355_v38  ;;  %v9698_v38 = vadd.f32 %v18295_v14, %v9685_v32  ;;  %v15968_v32 = vld [vmem:[#allocation9 + $0x404] sm:$0xf] }
 0x7f7   :  { %10004 = vmatpush.bf16.msrb.mxu1 %v11711_v33  ;;  %v11828_v33 = vld [vmem:[#allocation9 + $0x7a8] sm:$0xf0]  ;;  %v11375_v5 = vor.u32 %v15968_v32, %v11372_v15  ;;  %v15944_v15 = vld [vmem:[#allocation9 + $0x344] sm:$0xf] }
 0x7f8   :  { %10017 = vmatpush.bf16.msrb.mxu2 %v11903_v54  ;;  %v16316_v54 = vld [vmem:[#allocation9 + $0xee4] sm:$0xf]  ;;  %v18313_v4 = vadd.f32 %v18300_v3, %v9698_v38  ;;  %v11831_v18 = vor.u32 %v16082_v42, %v11828_v33  ;;  %v9764_v14 = vpop.f32.mrf.mxu2  ;;  %v11399_v3 = vor.u32 %v15974_v21, %v11396_v61  ;;  %v15962_v42 = vld [vmem:[#allocation9 + $0x3d4] sm:$0xf]  ;;  %v12500_v33 = vld [vmem:[#allocation9 + $0xce8] sm:$0xf0] }
 0x7f9   :  { %v12767_v34 = vor.u32 %v16316_v54, %v12764_v7  ;;  %v16250_v38 = vld [vmem:[#allocation9 + $0xcd4] sm:$0xf]  ;;  %v11324_v54 = vld [vmem:[#allocation9 + $0x3b8] sm:$0xf0]  ;;  %v16244_v7 = vld [vmem:[#allocation9 + $0xca4] sm:$0xf] }
 0x7fa   :  { %9927 = vmatpush.bf16.msra.mxu3 %v15331_v17  ;;  %v11423_v17 = vor.u32 %v15980_v45, %v11420_v28  ;;  %v11348_v45 = vld [vmem:[#allocation9 + $0x3e8] sm:$0xf0]  ;;  %v12719_v28 = vor.u32 %v16304_v12, %v12716_v16  ;;  %v12479_v21 = vor.u32 %v16244_v7, %v12476_v47  ;;  %v15950_v61 = vld [vmem:[#allocation9 + $0x374] sm:$0xf]  ;;  %v16232_v12 = vld [vmem:[#allocation9 + $0xc44] sm:$0xf] }
 0x7fb   :  { %10005 = vmatpush.bf16.msrb.mxu1 %v11687_v35  ;;  %v12575_v35 = vor.u32 %v16268_v56, %v12572_v41  ;;  %v12692_v56 = vld [vmem:[#allocation9 + $0xe68] sm:$0xf0]  ;;  %v11351_v41 = vor.u32 %v15962_v42, %v11348_v45  ;;  %v12428_v16 = vld [vmem:[#allocation9 + $0xc58] sm:$0xf0] }
 0x7fc   :  { %10018 = vmatpush.bf16.msrb.mxu2 %v11879_v0  ;;  %v16262_v0 = vld [vmem:[#allocation9 + $0xd34] sm:$0xf]  ;;  %v11300_v14 = vld [vmem:[#allocation9 + $0x388] sm:$0xf0]  ;;  %v12620_v42 = vld [vmem:[#allocation9 + $0xdd8] sm:$0xf0] }
 0x7fd   :  { %v12551_v11 = vor.u32 %v16262_v0, %v12548_v63  ;;  %v16238_v0 = vld [vmem:[#allocation9 + $0xc74] sm:$0xf]  ;;  %v12452_v63 = vld [vmem:[#allocation9 + $0xc88] sm:$0xf0] }
 0x7fe   :  { %9928 = vmatpush.bf16.msra.mxu3 %v15307_v23  ;;  %v12743_v23 = vor.u32 %v16310_v37, %v12740_v57  ;;  %v16286_v37 = vld [vmem:[#allocation9 + $0xdf4] sm:$0xf]  ;;  %v12644_v57 = vld [vmem:[#allocation9 + $0xe08] sm:$0xf0]  ;;  %v12455_v32 = vor.u32 %v16238_v0, %v12452_v63 }
 0x7ff   :  { %10006 = vmatpush.bf16.msrb.mxu1 %v11663_v2  ;;  %v12524_v2 = vld [vmem:[#allocation9 + $0xd18] sm:$0xf0]  ;;  %v12596_v47 = vld [vmem:[#allocation9 + $0xda8] sm:$0xf0] }
 0x800   :  { %10019 = vmatpush.bf16.msrb.mxu2 %v11855_v10  ;;  %v12527_v10 = vor.u32 %v16256_v26, %v12524_v2  ;;  %v12647_v2 = vor.u32 %v16286_v37, %v12644_v57  ;;  %v16166_v57 = vld [vmem:[#allocation9 + $0xa34] sm:$0xf] }
 0x802   :  { %9929 = vmatpush.bf16.msra.mxu3 %v15283_v13  ;;  %v15956_v13 = vld [vmem:[#allocation9 + $0x3a4] sm:$0xf] }
 0x803   :  { %10007 = vmatpush.bf16.msrb.mxu1 %v11639_v40  ;;  %v16292_v40 = vld [vmem:[#allocation9 + $0xe24] sm:$0xf] }
 0x804   :  { %10020 = vmatpush.bf16.msrb.mxu2 %v11831_v18  ;;  %v18318_v18 = vpop.f32.mrf.mxu1 }
 0x805   :  { %9930 = vmatmul.bf16.vlgmr.msra.gmra.mxu3 %v17774_v60  ;;  %v16298_v60 = vld [vmem:[#allocation9 + $0xe54] sm:$0xf] }
 0x806   :  { %9974 = vmatpush.bf16.msrb.mxu3 %v11423_v17  ;;  %10008 = vmatmul.bf16.vlgmr.msrb.gmra.mxu1 %v17761_v27  ;;  %v12503_v27 = vor.u32 %v16250_v38, %v12500_v33  ;;  %v12668_v17 = vld [vmem:[#allocation9 + $0xe38] sm:$0xf0]  ;;  %v15938_v33 = vld [vmem:[#allocation9 + $0x314] sm:$0xf] }
 0x807   :  { %10052 = vmatpush.bf16.msra.mxu1 %v12575_v35  ;;  %10021 = vmatmul.bf16.vlgmr.msrb.gmra.mxu2 %v17741_v19  ;;  %v12695_v19 = vor.u32 %v16298_v60, %v12692_v56  ;;  %v11327_v35 = vor.u32 %v15956_v13, %v11324_v54  ;;  %v12431_v60 = vor.u32 %v16232_v12, %v12428_v16  ;;  %v11252_v56 = vld [vmem:[#allocation9 + $0x328] sm:$0xf0]  ;;  %v16274_v13 = vld [vmem:[#allocation9 + $0xd94] sm:$0xf]  ;;  %v16172_v54 = vld [vmem:[#allocation9 + $0xa64] sm:$0xf] }
 0x808   :  { %10065 = vmatpush.bf16.msra.mxu2 %v12767_v34  ;;  %v12671_v34 = vor.u32 %v16292_v40, %v12668_v17  ;;  %v16460_v40 = vld [vmem:[#allocation9 + $0x1364] sm:$0xf]  ;;  %v13340_v17 = vld [vmem:[#allocation9 + $0x1378] sm:$0xf0]  ;;  %v12599_v63 = vor.u32 %v16274_v13, %v12596_v47  ;;  %v13268_v13 = vld [vmem:[#allocation9 + $0x12e8] sm:$0xf0] }
 0x809   :  { %v13343_v37 = vor.u32 %v16460_v40, %v13340_v17  ;;  %v16160_v12 = vld [vmem:[#allocation9 + $0xa04] sm:$0xf]  ;;  %v12140_v16 = vld [vmem:[#allocation9 + $0xa18] sm:$0xf0] }
 0x80a   :  { %9975 = vmatpush.bf16.msrb.mxu3 %v11399_v3  ;;  %v11303_v3 = vor.u32 %v15950_v61, %v11300_v14  ;;  %v12092_v47 = vld [vmem:[#allocation9 + $0x9b8] sm:$0xf0]  ;;  %v16436_v40 = vld [vmem:[#allocation9 + $0x12a4] sm:$0xf] }
 0x80b   :  { %10053 = vmatpush.bf16.msra.mxu1 %v12551_v11  ;;  %v9723_v11 = vpop.f32.mrf.mxu3  ;;  %v13244_v17 = vld [vmem:[#allocation9 + $0x12b8] sm:$0xf0] }
 0x80c   :  { %10066 = vmatpush.bf16.msra.mxu2 %v12743_v23  ;;  %v11276_v23 = vld [vmem:[#allocation9 + $0x358] sm:$0xf0]  ;;  %v9724_v26 = vadd.f32 %v9723_v11, %v18313_v4 }
 0x80d   :  { %v11279_v38 = vor.u32 %v15944_v15, %v11276_v23  ;;  %v13316_v15 = vld [vmem:[#allocation9 + $0x1348] sm:$0xf0]  ;;  %v16502_v23 = vld [vmem:[#allocation9 + $0x14b4] sm:$0xf] }
 0x80e   :  { %9976 = vmatpush.bf16.msrb.mxu3 %v11375_v5  ;;  %v18321_v5 = vpop.f32.mrf.mxu2  ;;  %v9737_v45 = vadd.f32 %v18083_v55, %v9724_v26  ;;  %v11255_v55 = vor.u32 %v15938_v33, %v11252_v56  ;;  %v13508_v26 = vld [vmem:[#allocation9 + $0x14c8] sm:$0xf0]  ;;  %v12143_v33 = vor.u32 %v16160_v12, %v12140_v16  ;;  %v16154_v56 = vld [vmem:[#allocation9 + $0x9d4] sm:$0xf]  ;;  %v16424_v16 = vld [vmem:[#allocation9 + $0x1244] sm:$0xf] }
 0x80f   :  { %10054 = vmatpush.bf16.msra.mxu1 %v12527_v10  ;;  %v16280_v10 = vld [vmem:[#allocation9 + $0xdc4] sm:$0xf] }
 0x810   :  { %10067 = vmatpush.bf16.msra.mxu2 %v12719_v28  ;;  %v9803_v28 = vpop.f32.mrf.mxu1  ;;  %v12623_v4 = vor.u32 %v16280_v10, %v12620_v42  ;;  %v9750_v7 = vadd.f32 %v18305_v48, %v9737_v45  ;;  %v13511_v10 = vor.u32 %v16502_v23, %v13508_v26  ;;  %v16448_v42 = vld [vmem:[#allocation9 + $0x1304] sm:$0xf]  ;;  %v13292_v45 = vld [vmem:[#allocation9 + $0x1318] sm:$0xf0] }
 0x811   :  { %v16496_v28 = vld [vmem:[#allocation9 + $0x1484] sm:$0xf] }
 0x812   :  { %9977 = vmatpush.bf16.msrb.mxu3 %v11351_v41  ;;  %v16226_v41 = vld [vmem:[#allocation9 + $0xc14] sm:$0xf]  ;;  %v18326_v61 = vadd.f32 %v18308_v20, %v9750_v7  ;;  %v16148_v7 = vld [vmem:[#allocation9 + $0x9a4] sm:$0xf] }
 0x813   :  { %10055 = vmatpush.bf16.msra.mxu1 %v12503_v27  ;;  %v12404_v27 = vld [vmem:[#allocation9 + $0xc28] sm:$0xf0]  ;;  %v9725_v14 = vpop.f32.mrf.mxu3  ;;  %v16136_v26 = vld [vmem:[#allocation9 + $0x944] sm:$0xf] }
 0x814   :  { %10068 = vmatpush.bf16.msra.mxu2 %v12695_v19  ;;  %v12188_v19 = vld [vmem:[#allocation9 + $0xa78] sm:$0xf0]  ;;  %v12095_v14 = vor.u32 %v16148_v7, %v12092_v47  ;;  %v13364_v7 = vld [vmem:[#allocation9 + $0x13a8] sm:$0xf0]  ;;  %v16652_v47 = vld [vmem:[#allocation9 + $0x1964] sm:$0xf] }
 0x815   :  { %v12191_v0 = vor.u32 %v16172_v54, %v12188_v19  ;;  %v13460_v54 = vld [vmem:[#allocation9 + $0x1468] sm:$0xf0] }
 0x816   :  { %9978 = vmatpush.bf16.msrb.mxu3 %v11327_v35  ;;  %v16508_v35 = vld [vmem:[#allocation9 + $0x14e4] sm:$0xf]  ;;  %v9816_v48 = vpop.f32.mrf.mxu2 }
 0x817   :  { %10056 = vmatpush.bf16.msra.mxu1 %v12479_v21  ;;  %v13532_v21 = vld [vmem:[#allocation9 + $0x14f8] sm:$0xf0]  ;;  %v16478_v48 = vld [vmem:[#allocation9 + $0x13f4] sm:$0xf] }
 0x818   :  { %10069 = vmatpush.bf16.msra.mxu2 %v12671_v34  ;;  %v12407_v34 = vor.u32 %v16226_v41, %v12404_v27  ;;  %v13535_v11 = vor.u32 %v16508_v35, %v13532_v21  ;;  %v12116_v41 = vld [vmem:[#allocation9 + $0x9e8] sm:$0xf0]  ;;  %v13436_v35 = vld [vmem:[#allocation9 + $0x1438] sm:$0xf0] }
 0x819   :  { %v12119_v19 = vor.u32 %v16154_v56, %v12116_v41  ;;  %v16130_v56 = vld [vmem:[#allocation9 + $0x914] sm:$0xf] }
 0x81a   :  { %9979 = vmatpush.bf16.msrb.mxu3 %v11303_v3  ;;  %v12164_v3 = vld [vmem:[#allocation9 + $0xa48] sm:$0xf0] }
 0x81b   :  { %10057 = vmatpush.bf16.msra.mxu1 %v12455_v32  ;;  %v16454_v32 = vld [vmem:[#allocation9 + $0x1334] sm:$0xf]  ;;  %v12167_v20 = vor.u32 %v16166_v57, %v12164_v3  ;;  %v13220_v3 = vld [vmem:[#allocation9 + $0x1288] sm:$0xf0] }
 0x81c   :  { %10070 = vmatpush.bf16.msra.mxu2 %v12647_v2  ;;  %v13319_v2 = vor.u32 %v16454_v32, %v13316_v15  ;;  %v16430_v57 = vld [vmem:[#allocation9 + $0x1274] sm:$0xf] }
 0x81d   :  { %v13223_v23 = vor.u32 %v16430_v57, %v13220_v3  ;;  %v12932_v57 = vld [vmem:[#allocation9 + $0x1048] sm:$0xf0] }
 0x81e   :  { %9980 = vmatpush.bf16.msrb.mxu3 %v11279_v38  ;;  %v13484_v38 = vld [vmem:[#allocation9 + $0x1498] sm:$0xf0] }
 0x81f   :  { %10058 = vmatpush.bf16.msra.mxu1 %v12431_v60  ;;  %v13295_v60 = vor.u32 %v16448_v42, %v13292_v45  ;;  %v13487_v27 = vor.u32 %v16496_v28, %v13484_v38  ;;  %v16472_v45 = vld [vmem:[#allocation9 + $0x13c4] sm:$0xf]  ;;  %v13388_v28 = vld [vmem:[#allocation9 + $0x13d8] sm:$0xf0] }
 0x820   :  { %10071 = vmatpush.bf16.msra.mxu2 %v12623_v4  ;;  %v16442_v4 = vld [vmem:[#allocation9 + $0x12d4] sm:$0xf] }
 0x822   :  { %9981 = vmatpush.bf16.msrb.mxu3 %v11255_v55  ;;  %v16484_v55 = vld [vmem:[#allocation9 + $0x1424] sm:$0xf] }
 0x823   :  { %10059 = vmatpush.bf16.msra.mxu1 %v12407_v34  ;;  %v18331_v21 = vpop.f32.mrf.mxu1  ;;  %v13247_v34 = vor.u32 %v16436_v40, %v13244_v17  ;;  %v16700_v40 = vld [vmem:[#allocation9 + $0x1ae4] sm:$0xf]  ;;  %v14300_v17 = vld [vmem:[#allocation9 + $0x1af8] sm:$0xf0] }
 0x824   :  { %10072 = vmatpush.bf16.msra.mxu2 %v12599_v63  ;;  %v12068_v63 = vld [vmem:[#allocation9 + $0x988] sm:$0xf0]  ;;  %v14303_v3 = vor.u32 %v16700_v40, %v14300_v17  ;;  %v16334_v40 = vld [vmem:[#allocation9 + $0xf74] sm:$0xf] }
 0x825   :  { %9982 = vmatmul.bf16.vlgmr.msrb.gmra.mxu3 %v17724_v29  ;;  %v16490_v29 = vld [vmem:[#allocation9 + $0x1454] sm:$0xf]  ;;  %v12836_v17 = vld [vmem:[#allocation9 + $0xf88] sm:$0xf0] }
 0x826   :  { %10026 = vmatpush.bf16.msra.mxu3 %v12191_v0  ;;  %10060 = vmatmul.bf16.vlgmr.msra.gmra.mxu1 %v17765_v30  ;;  %v13271_v30 = vor.u32 %v16442_v4, %v13268_v13  ;;  %v16142_v0 = vld [vmem:[#allocation9 + $0x974] sm:$0xf]  ;;  %v13172_v13 = vld [vmem:[#allocation9 + $0x1228] sm:$0xf0] }
 0x827   :  { %10104 = vmatpush.bf16.msrb.mxu1 %v13343_v37  ;;  %10073 = vmatmul.bf16.vlgmr.msra.gmra.mxu2 %v17770_v36  ;;  %v13463_v36 = vor.u32 %v16490_v29, %v13460_v54  ;;  %v13439_v37 = vor.u32 %v16484_v55, %v13436_v35  ;;  %v12071_v32 = vor.u32 %v16142_v0, %v12068_v63  ;;  %v16418_v4 = vld [vmem:[#allocation9 + $0x1214] sm:$0xf]  ;;  %v16364_v54 = vld [vmem:[#allocation9 + $0x1064] sm:$0xf] }
 0x828   :  { %10117 = vmatpush.bf16.msrb.mxu2 %v13535_v11  ;;  %v13412_v11 = vld [vmem:[#allocation9 + $0x1408] sm:$0xf0]  ;;  %v9775_v15 = vpop.f32.mrf.mxu3  ;;  %v16466_v29 = vld [vmem:[#allocation9 + $0x1394] sm:$0xf] }
 0x829   :  { %v13415_v12 = vor.u32 %v16478_v48, %v13412_v11  ;;  %v13367_v0 = vor.u32 %v16466_v29, %v13364_v7  ;;  %v16646_v48 = vld [vmem:[#allocation9 + $0x1934] sm:$0xf]  ;;  %v14084_v11 = vld [vmem:[#allocation9 + $0x1948] sm:$0xf0]  ;;  %v12860_v29 = vld [vmem:[#allocation9 + $0xfb8] sm:$0xf0] }
 0x82a   :  { %10027 = vmatpush.bf16.msra.mxu3 %v12167_v20  ;;  %v12044_v20 = vld [vmem:[#allocation9 + $0x958] sm:$0xf0]  ;;  %v18334_v42 = vpop.f32.mrf.mxu2 }
 0x82b   :  { %10105 = vmatpush.bf16.msrb.mxu1 %v13319_v2  ;;  %v9776_v2 = vadd.f32 %v9775_v15, %v18326_v61  ;;  %v13391_v61 = vor.u32 %v16472_v45, %v13388_v28  ;;  %v14276_v15 = vld [vmem:[#allocation9 + $0x1ac8] sm:$0xf0]  ;;  %v14252_v45 = vld [vmem:[#allocation9 + $0x1a98] sm:$0xf0] }
 0x82c   :  { %10118 = vmatpush.bf16.msrb.mxu2 %v13511_v10  ;;  %v13196_v10 = vld [vmem:[#allocation9 + $0x1258] sm:$0xf0] }
 0x82d   :  { %v9789_v38 = vadd.f32 %v18099_v50, %v9776_v2  ;;  %v13199_v41 = vor.u32 %v16424_v16, %v13196_v10  ;;  %v14060_v16 = vld [vmem:[#allocation9 + $0x1918] sm:$0xf0]  ;;  %v16688_v10 = vld [vmem:[#allocation9 + $0x1a84] sm:$0xf] }
 0x82e   :  { %10028 = vmatpush.bf16.msra.mxu3 %v12143_v33  ;;  %v9855_v33 = vpop.f32.mrf.mxu1  ;;  %v14204_v7 = vld [vmem:[#allocation9 + $0x1a38] sm:$0xf0] }
 0x82f   :  { %10106 = vmatpush.bf16.msrb.mxu1 %v13295_v60  ;;  %v12047_v60 = vor.u32 %v16136_v26, %v12044_v20  ;;  %v16352_v26 = vld [vmem:[#allocation9 + $0x1004] sm:$0xf]  ;;  %v12908_v20 = vld [vmem:[#allocation9 + $0x1018] sm:$0xf0]  ;;  %v16346_v33 = vld [vmem:[#allocation9 + $0xfd4] sm:$0xf] }
 0x830   :  { %10119 = vmatpush.bf16.msrb.mxu2 %v13487_v27  ;;  %v12020_v27 = vld [vmem:[#allocation9 + $0x928] sm:$0xf0]  ;;  %v9777_v35 = vpop.f32.mrf.mxu3  ;;  %v12911_v28 = vor.u32 %v16352_v26, %v12908_v20  ;;  %v16664_v26 = vld [vmem:[#allocation9 + $0x19c4] sm:$0xf]  ;;  %v14156_v20 = vld [vmem:[#allocation9 + $0x19d8] sm:$0xf0] }
 0x831   :  { %v12023_v50 = vor.u32 %v16130_v56, %v12020_v27  ;;  %v14255_v56 = vor.u32 %v16688_v10, %v14252_v45  ;;  %v14036_v27 = vld [vmem:[#allocation9 + $0x18e8] sm:$0xf0]  ;;  %v16322_v10 = vld [vmem:[#allocation9 + $0xf14] sm:$0xf] }
 0x832   :  { %10029 = vmatpush.bf16.msra.mxu3 %v12119_v19  ;;  %v12956_v19 = vld [vmem:[#allocation9 + $0x1078] sm:$0xf0] }
 0x833   :  { %10107 = vmatpush.bf16.msrb.mxu1 %v13271_v30  ;;  %v9802_v30 = vadd.f32 %v18318_v18, %v9789_v38  ;;  %v9868_v18 = vpop.f32.mrf.mxu2 }
 0x834   :  { %10120 = vmatpush.bf16.msrb.mxu2 %v13463_v36  ;;  %v14108_v36 = vld [vmem:[#allocation9 + $0x1978] sm:$0xf0] }
 0x835   :  { %v18339_v55 = vadd.f32 %v18321_v5, %v9802_v30  ;;  %v14111_v63 = vor.u32 %v16652_v47, %v14108_v36  ;;  %v16676_v30 = vld [vmem:[#allocation9 + $0x1a24] sm:$0xf] }
 0x836   :  { %10030 = vmatpush.bf16.msra.mxu3 %v12095_v14  ;;  %v13175_v14 = vor.u32 %v16418_v4, %v13172_v13  ;;  %v14228_v4 = vld [vmem:[#allocation9 + $0x1a68] sm:$0xf0]  ;;  %v14207_v35 = vor.u32 %v16676_v30, %v14204_v7 }
 0x837   :  { %10108 = vmatpush.bf16.msrb.mxu1 %v13247_v34  ;;  %v12959_v34 = vor.u32 %v16364_v54, %v12956_v19  ;;  %v16628_v54 = vld [vmem:[#allocation9 + $0x18a4] sm:$0xf]  ;;  %v14012_v19 = vld [vmem:[#allocation9 + $0x18b8] sm:$0xf0] }
 0x838   :  { %10121 = vmatpush.bf16.msrb.mxu2 %v13439_v37  ;;  %v16358_v37 = vld [vmem:[#allocation9 + $0x1034] sm:$0xf] }
 0x839   :  { %v12935_v5 = vor.u32 %v16358_v37, %v12932_v57  ;;  %v12839_v37 = vor.u32 %v16334_v40, %v12836_v17  ;;  %v16838_v17 = vld [vmem:[#allocation9 + $0x1f34] sm:$0xf] }
 0x83a   :  { %10031 = vmatpush.bf16.msra.mxu3 %v12071_v32  ;;  %v16694_v32 = vld [vmem:[#allocation9 + $0x1ab4] sm:$0xf] }
 0x83b   :  { %10109 = vmatpush.bf16.msrb.mxu1 %v13223_v23  ;;  %v14087_v23 = vor.u32 %v16646_v48, %v14084_v11  ;;  %v14279_v2 = vor.u32 %v16694_v32, %v14276_v15  ;;  %v12812_v48 = vld [vmem:[#allocation9 + $0xf58] sm:$0xf0]  ;;  %v16616_v15 = vld [vmem:[#allocation9 + $0x1844] sm:$0xf] }
 0x83c   :  { %10122 = vmatpush.bf16.msrb.mxu2 %v13415_v12  ;;  %v16640_v12 = vld [vmem:[#allocation9 + $0x1904] sm:$0xf] }
 0x83d   :  { %v14063_v38 = vor.u32 %v16640_v12, %v14060_v16 }
 0x83e   :  { %10032 = vmatpush.bf16.msra.mxu3 %v12047_v60  ;;  %v12884_v60 = vld [vmem:[#allocation9 + $0xfe8] sm:$0xf0] }
 0x83f   :  { %10110 = vmatpush.bf16.msrb.mxu1 %v13199_v41  ;;  %v16634_v41 = vld [vmem:[#allocation9 + $0x18d4] sm:$0xf]  ;;  %v12887_v13 = vor.u32 %v16346_v33, %v12884_v60  ;;  %v13940_v33 = vld [vmem:[#allocation9 + $0x1828] sm:$0xf0] }
 0x840   :  { %10123 = vmatpush.bf16.msrb.mxu2 %v13391_v61  ;;  %v16340_v61 = vld [vmem:[#allocation9 + $0xfa4] sm:$0xf]  ;;  %v16658_v60 = vld [vmem:[#allocation9 + $0x1994] sm:$0xf] }
 0x841   :  { %v12863_v36 = vor.u32 %v16340_v61, %v12860_v29  ;;  %v15068_v61 = vld [vmem:[#allocation9 + $0x20f8] sm:$0xf0] }
 0x842   :  { %10033 = vmatpush.bf16.msra.mxu3 %v12023_v50  ;;  %v14015_v50 = vor.u32 %v16628_v54, %v14012_v19 }
 0x843   :  { %10111 = vmatpush.bf16.msrb.mxu1 %v13175_v14  ;;  %v18344_v47 = vpop.f32.mrf.mxu1  ;;  %v16622_v14 = vld [vmem:[#allocation9 + $0x1874] sm:$0xf] }
 0x844   :  { %10124 = vmatpush.bf16.msrb.mxu2 %v13367_v0  ;;  %v16670_v0 = vld [vmem:[#allocation9 + $0x19f4] sm:$0xf] }
 0x845   :  { %10034 = vmatmul.bf16.vlgmr.msra.gmra.mxu3 %v17744_v24  ;;  %v16682_v24 = vld [vmem:[#allocation9 + $0x1a54] sm:$0xf] }
 0x846   :  { %10078 = vmatpush.bf16.msrb.mxu3 %v12959_v34  ;;  %10112 = vmatmul.bf16.vlgmr.msrb.gmra.mxu1 %v17789_v43  ;;  %v14039_v43 = vor.u32 %v16634_v41, %v14036_v27  ;;  %v13988_v34 = vld [vmem:[#allocation9 + $0x1888] sm:$0xf0]  ;;  %v13724_v41 = vld [vmem:[#allocation9 + $0x1678] sm:$0xf0] }
 0x847   :  { %10156 = vmatpush.bf16.msra.mxu1 %v14111_v63  ;;  %10125 = vmatmul.bf16.vlgmr.msrb.gmra.mxu2 %v17818_v25  ;;  %v14231_v25 = vor.u32 %v16682_v24, %v14228_v4  ;;  %v14180_v63 = vld [vmem:[#allocation9 + $0x1a08] sm:$0xf0]  ;;  %v13991_v18 = vor.u32 %v16622_v14, %v13988_v34  ;;  %v16844_v4 = vld [vmem:[#allocation9 + $0x1f64] sm:$0xf]  ;;  %v16886_v14 = vld [vmem:[#allocation9 + $0x20b4] sm:$0xf] }
 0x848   :  { %10169 = vmatpush.bf16.msra.mxu2 %v14303_v3  ;;  %v9827_v57 = vpop.f32.mrf.mxu3  ;;  %v16328_v3 = vld [vmem:[#allocation9 + $0xf44] sm:$0xf]  ;;  %v14183_v32 = vor.u32 %v16670_v0, %v14180_v63  ;;  %v14132_v24 = vld [vmem:[#allocation9 + $0x19a8] sm:$0xf0] }
 0x849   :  { %v9828_v11 = vadd.f32 %v9827_v57, %v18339_v55  ;;  %v12815_v16 = vor.u32 %v16328_v3, %v12812_v48  ;;  %v14159_v55 = vor.u32 %v16664_v26, %v14156_v20  ;;  %v14135_v30 = vor.u32 %v16658_v60, %v14132_v24  ;;  %v15044_v34 = vld [vmem:[#allocation9 + $0x20c8] sm:$0xf0]  ;;  %v16544_v63 = vld [vmem:[#allocation9 + $0x1604] sm:$0xf]  ;;  %v14828_v3 = vld [vmem:[#allocation9 + $0x1f18] sm:$0xf0] }
 0x84a   :  { %10079 = vmatpush.bf16.msrb.mxu3 %v12935_v5  ;;  %v13964_v5 = vld [vmem:[#allocation9 + $0x1858] sm:$0xf0]  ;;  %v15047_v57 = vor.u32 %v16886_v14, %v15044_v34  ;;  %v16880_v48 = vld [vmem:[#allocation9 + $0x2084] sm:$0xf]  ;;  %v13652_v26 = vld [vmem:[#allocation9 + $0x15e8] sm:$0xf0] }
 0x84b   :  { %10157 = vmatpush.bf16.msra.mxu1 %v14087_v23  ;;  %v18347_v23 = vpop.f32.mrf.mxu2  ;;  %v9907_v12 = vpop.f32.mrf.mxu1  ;;  %v13967_v45 = vor.u32 %v16616_v15, %v13964_v5  ;;  %v16538_v5 = vld [vmem:[#allocation9 + $0x15d4] sm:$0xf]  ;;  %v14972_v60 = vld [vmem:[#allocation9 + $0x2038] sm:$0xf0]  ;;  %v16808_v14 = vld [vmem:[#allocation9 + $0x1e44] sm:$0xf] }
 0x84c   :  { %10170 = vmatpush.bf16.msra.mxu2 %v14279_v2  ;;  %v9841_v2 = vadd.f32 %v18115_v22, %v9828_v11  ;;  %v15020_v11 = vld [vmem:[#allocation9 + $0x2098] sm:$0xf0]  ;;  %v14804_v12 = vld [vmem:[#allocation9 + $0x1ee8] sm:$0xf0]  ;;  %v16526_v24 = vld [vmem:[#allocation9 + $0x1574] sm:$0xf] }
 0x84d   :  { %v15023_v20 = vor.u32 %v16880_v48, %v15020_v11  ;;  %v14732_v34 = vld [vmem:[#allocation9 + $0x1e58] sm:$0xf0]  ;;  %v16514_v11 = vld [vmem:[#allocation9 + $0x1514] sm:$0xf] }
 0x84e   :  { %10080 = vmatpush.bf16.msrb.mxu3 %v12911_v28  ;;  %v12788_v28 = vld [vmem:[#allocation9 + $0xf28] sm:$0xf0]  ;;  %v9854_v27 = vadd.f32 %v18331_v21, %v9841_v2  ;;  %v16826_v2 = vld [vmem:[#allocation9 + $0x1ed4] sm:$0xf] }
 0x84f   :  { %10158 = vmatpush.bf16.msra.mxu1 %v14063_v38  ;;  %v16610_v38 = vld [vmem:[#allocation9 + $0x1814] sm:$0xf]  ;;  %v12791_v22 = vor.u32 %v16322_v10, %v12788_v28  ;;  %v13655_v10 = vor.u32 %v16538_v5, %v13652_v26  ;;  %v13628_v28 = vld [vmem:[#allocation9 + $0x15b8] sm:$0xf0]  ;;  %v14708_v26 = vld [vmem:[#allocation9 + $0x1e28] sm:$0xf0] }
 0x850   :  { %10171 = vmatpush.bf16.msra.mxu2 %v14255_v56  ;;  %v16556_v56 = vld [vmem:[#allocation9 + $0x1664] sm:$0xf]  ;;  %v18352_v29 = vadd.f32 %v18334_v42, %v9854_v27  ;;  %v13943_v54 = vor.u32 %v16610_v38, %v13940_v33  ;;  %v14780_v33 = vld [vmem:[#allocation9 + $0x1eb8] sm:$0xf0]  ;;  %v16802_v5 = vld [vmem:[#allocation9 + $0x1e14] sm:$0xf] }
 0x851   :  { %v13727_v19 = vor.u32 %v16556_v56, %v13724_v41  ;;  %v16820_v38 = vld [vmem:[#allocation9 + $0x1ea4] sm:$0xf] }
 0x852   :  { %10081 = vmatpush.bf16.msrb.mxu3 %v12887_v13  ;;  %v14876_v13 = vld [vmem:[#allocation9 + $0x1f78] sm:$0xf0]  ;;  %v14783_v27 = vor.u32 %v16820_v38, %v14780_v33  ;;  %v14711_v38 = vor.u32 %v16802_v5, %v14708_v26  ;;  %v16712_v26 = vld [vmem:[#allocation9 + $0x1b44] sm:$0xf] }
 0x853   :  { %10159 = vmatpush.bf16.msra.mxu1 %v14039_v43  ;;  %v16892_v43 = vld [vmem:[#allocation9 + $0x20e4] sm:$0xf]  ;;  %v14879_v7 = vor.u32 %v16844_v4, %v14876_v13  ;;  %v9920_v21 = vpop.f32.mrf.mxu2  ;;  %v13604_v4 = vld [vmem:[#allocation9 + $0x1588] sm:$0xf0] }
 0x854   :  { %10172 = vmatpush.bf16.msra.mxu2 %v14231_v25  ;;  %v9829_v25 = vpop.f32.mrf.mxu3  ;;  %v15071_v40 = vor.u32 %v16892_v43, %v15068_v61  ;;  %v17104_v13 = vld [vmem:[#allocation10] sm:$0x3f]  ;;  %v16814_v61 = vld [vmem:[#allocation9 + $0x1e74] sm:$0xf]  ;;  %v13580_v21 = vld [vmem:[#allocation9 + $0x1558] sm:$0xf0] }
 0x855   :  { %v14756_v25 = vld [vmem:[#allocation9 + $0x1e88] sm:$0xf0] }
 0x856   :  { %10082 = vmatpush.bf16.msrb.mxu3 %v12863_v36  ;;  %v16550_v36 = vld [vmem:[#allocation9 + $0x1634] sm:$0xf] }
 0x857   :  { %10160 = vmatpush.bf16.msra.mxu1 %v14015_v50  ;;  %v13700_v50 = vld [vmem:[#allocation9 + $0x1648] sm:$0xf0] }
 0x858   :  { %10173 = vmatpush.bf16.msra.mxu2 %v14207_v35  ;;  %v14852_v35 = vld [vmem:[#allocation9 + $0x1f48] sm:$0xf0]  ;;  %v13703_v42 = vor.u32 %v16550_v36, %v13700_v50  ;;  %v14759_v36 = vor.u32 %v16814_v61, %v14756_v25  ;;  %v16520_v50 = vld [vmem:[#allocation9 + $0x1544] sm:$0xf] }
 0x859   :  { %v14855_v0 = vor.u32 %v16838_v17, %v14852_v35  ;;  %v13583_v48 = vor.u32 %v16520_v50, %v13580_v21  ;;  %v17046_v61 = vld [vmem:[%s18528_s6 + $0x30] sm:$0xff]  ;;  %v17018_v50 = vld [vmem:[#allocation9 + $0x24d4] sm:$0xf]  ;;  %v15572_v21 = vld [vmem:[#allocation9 + $0x24e8] sm:$0xf0] }
 0x85a   :  { %10083 = vmatpush.bf16.msrb.mxu3 %v12839_v37  ;;  %v13676_v37 = vld [vmem:[#allocation9 + $0x1618] sm:$0xf0]  ;;  %v17024_v25 = vld [vmem:[#allocation9 + $0x2504] sm:$0xf] }
 0x85b   :  { %10161 = vmatpush.bf16.msra.mxu1 %v13991_v18  ;;  %v16832_v18 = vld [vmem:[#allocation9 + $0x1f04] sm:$0xf] }
 0x85c   :  { %10174 = vmatpush.bf16.msra.mxu2 %v14183_v32  ;;  %v13679_v32 = vor.u32 %v16544_v63, %v13676_v37  ;;  %v14831_v15 = vor.u32 %v16832_v18, %v14828_v3  ;;  %v14924_v63 = vld [vmem:[#allocation9 + $0x1fd8] sm:$0xf0]  ;;  %v18557_v37 = vld [vmem:[#allocation18_spill] sm:$0xff] }
 0x85e   :  { %10084 = vmatpush.bf16.msrb.mxu3 %v12815_v16  ;;  %v14996_v16 = vld [vmem:[#allocation9 + $0x2068] sm:$0xf0] }
 0x85f   :  { %10162 = vmatpush.bf16.msra.mxu1 %v13967_v45  ;;  %v16532_v45 = vld [vmem:[#allocation9 + $0x15a4] sm:$0xf] }
 0x860   :  { %10175 = vmatpush.bf16.msra.mxu2 %v14159_v55  ;;  %v16868_v55 = vld [vmem:[#allocation9 + $0x2024] sm:$0xf]  ;;  %v13631_v41 = vor.u32 %v16532_v45, %v13628_v28 }
 0x861   :  { %v14975_v43 = vor.u32 %v16868_v55, %v14972_v60 }
 0x862   :  { %10085 = vmatpush.bf16.msrb.mxu3 %v12791_v22  ;;  %v2316_v22 = vperm.slane %v17104_v13, 5 }
 0x863   :  { %10163 = vmatpush.bf16.msra.mxu1 %v13943_v54  ;;  %v9957_v56 = vpop.f32.mrf.mxu1  ;;  %v16862_v54 = vld [vmem:[#allocation9 + $0x1ff4] sm:$0xf] }
 0x864   :  { %10176 = vmatpush.bf16.msra.mxu2 %v14135_v30  ;;  %v13607_v30 = vor.u32 %v16526_v24, %v13604_v4  ;;  %v17030_v24 = vld [vmem:[#allocation9 + $0x2534] sm:$0xf]  ;;  %v15620_v4 = vld [vmem:[#allocation9 + $0x2548] sm:$0xf0] }
 0x865   :  { %10086 = vmatmul.bf16.vlgmr.msrb.gmra.mxu3 %v17802_v44  ;;  %v16874_v44 = vld [vmem:[#allocation9 + $0x2054] sm:$0xf]  ;;  %v15623_v13 = vor.u32 %v17030_v24, %v15620_v4 }
 0x866   :  { %10130 = vmatpush.bf16.msra.mxu3 %v13727_v19  ;;  %10164 = vmatmul.bf16.vlgmr.msra.gmra.mxu1 %v17845_v31  ;;  %v14807_v31 = vor.u32 %v16826_v2, %v14804_v12  ;;  %v14948_v19 = vld [vmem:[#allocation9 + $0x2008] sm:$0xf0]  ;;  %v16748_v2 = vld [vmem:[#allocation9 + $0x1c64] sm:$0xf]  ;;  %v14492_v12 = vld [vmem:[#allocation9 + $0x1c78] sm:$0xf0] }
 0x867   :  { %10208 = vmatpush.bf16.msrb.mxu1 %v14879_v7  ;;  %10177 = vmatmul.bf16.vlgmr.msra.gmra.mxu2 %v17822_v58  ;;  %v14999_v58 = vor.u32 %v16874_v44, %v14996_v16  ;;  %v14951_v35 = vor.u32 %v16862_v54, %v14948_v19  ;;  %v14900_v16 = vld [vmem:[#allocation9 + $0x1fa8] sm:$0xf0]  ;;  %v14495_v33 = vor.u32 %v16748_v2, %v14492_v12  ;;  %v15596_v54 = vld [vmem:[#allocation9 + $0x2518] sm:$0xf0]  ;;  %v17000_v2 = vld [vmem:[#allocation9 + $0x2444] sm:$0xf] }
 0x868   :  { %10221 = vmatpush.bf16.msrb.mxu2 %v15071_v40  ;;  %v9879_v7 = vpop.f32.mrf.mxu3  ;;  %v9958_v40 = vadd.f32 %v9957_v56, %v2316_v22  ;;  %v16742_v56 = vld [vmem:[#allocation9 + $0x1c34] sm:$0xf]  ;;  %v16736_v22 = vld [vmem:[#allocation9 + $0x1c04] sm:$0xf]  ;;  %v15500_v12 = vld [vmem:[#allocation9 + $0x2458] sm:$0xf0] }
 0x869   :  { %v9880_v17 = vadd.f32 %v9879_v7, %v18352_v29  ;;  %v16730_v7 = vld [vmem:[#allocation9 + $0x1bd4] sm:$0xf] }
 0x86a   :  { %10131 = vmatpush.bf16.msra.mxu3 %v13703_v42  ;;  %v9970_v42 = vpop.f32.mrf.mxu2  ;;  %v17040_v24 = vld [vmem:[%s18528_s6] sm:$0xff] }
 0x86b   :  { %10209 = vmatpush.bf16.msrb.mxu1 %v14855_v0  ;;  %v16856_v0 = vld [vmem:[#allocation9 + $0x1fc4] sm:$0xf]  ;;  %v18359_v18 = vadd.f32 %v9970_v42, %v9958_v40  ;;  %v9959_v3 = vpop.f32.mrf.mxu1 }
 0x86c   :  { %10222 = vmatpush.bf16.msrb.mxu2 %v15047_v57  ;;  %v9893_v57 = vadd.f32 %v18557_v37, %v9880_v17  ;;  %v14927_v29 = vor.u32 %v16856_v0, %v14924_v63  ;;  %v15575_v17 = vor.u32 %v17018_v50, %v15572_v21  ;;  %v16718_v37 = vld [vmem:[#allocation9 + $0x1b74] sm:$0xf]  ;;  %v17043_v3 = vld [vmem:[%s18528_s6 + $0x18] sm:$0xff]  ;;  %v17069_v21 = vld [vmem:[%s18528_s6 + $0xe8] sm:$0xff] }
 0x86e   :  { %10132 = vmatpush.bf16.msra.mxu3 %v13679_v32  ;;  %v14735_v32 = vor.u32 %v16808_v14, %v14732_v34  ;;  %v9906_v44 = vadd.f32 %v18344_v47, %v9893_v57  ;;  %v17047_v47 = vld [vmem:[%s18528_s6 + $0x38] sm:$0xff]  ;;  %v17012_v14 = vld [vmem:[#allocation9 + $0x24a4] sm:$0xf]  ;;  %v15548_v34 = vld [vmem:[#allocation9 + $0x24b8] sm:$0xf0] }
 0x86f   :  { %10210 = vmatpush.bf16.msrb.mxu1 %v14831_v15  ;;  %v13556_v15 = vld [vmem:[#allocation9 + $0x1528] sm:$0xf0]  ;;  %v15551_v63 = vor.u32 %v17012_v14, %v15548_v34  ;;  %v17076_v14 = vld [vmem:[%s18528_s6 + $0x120] sm:$0xff] }
 0x870   :  { %10223 = vmatpush.bf16.msrb.mxu2 %v15023_v20  ;;  %v16850_v20 = vld [vmem:[#allocation9 + $0x1f94] sm:$0xf]  ;;  %v13559_v45 = vor.u32 %v16514_v11, %v13556_v15  ;;  %v18363_v28 = vadd.f32 %v18347_v23, %v9906_v44  ;;  %v14372_v57 = vld [vmem:[#allocation9 + $0x1b88] sm:$0xf0] }
 0x871   :  { %v14903_v55 = vor.u32 %v16850_v20, %v14900_v16  ;;  %v15524_v11 = vld [vmem:[#allocation9 + $0x2488] sm:$0xf0]  ;;  %v17042_v20 = vld [vmem:[%s18528_s6 + $0x10] sm:$0xff] }
 0x872   :  { %10133 = vmatpush.bf16.msra.mxu3 %v13655_v10  ;;  %v17036_v10 = vld [vmem:[#allocation9 + $0x2564] sm:$0xf] }
 0x873   :  { %10211 = vmatpush.bf16.msrb.mxu1 %v14807_v31  ;;  %v15644_v31 = vld [vmem:[#allocation9 + $0x2578] sm:$0xf0] }
 0x874   :  { %10224 = vmatpush.bf16.msrb.mxu2 %v14999_v58  ;;  %v9881_v58 = vpop.f32.mrf.mxu3  ;;  %v15647_v60 = vor.u32 %v17036_v10, %v15644_v31  ;;  %v17041_v31 = vld [vmem:[%s18528_s6 + $0x8] sm:$0xff] }
 0x875   :  { %v16706_v58 = vld [vmem:[#allocation9 + $0x1b14] sm:$0xf] }
 0x876   :  { %10134 = vmatpush.bf16.msra.mxu3 %v13631_v41  ;;  %v14468_v41 = vld [vmem:[#allocation9 + $0x1c48] sm:$0xf0] }
 0x877   :  { %10212 = vmatpush.bf16.msrb.mxu1 %v14783_v27  ;;  %v9972_v27 = vpop.f32.mrf.mxu2  ;;  %v14471_v23 = vor.u32 %v16742_v56, %v14468_v41  ;;  %v15260_v56 = vld [vmem:[#allocation9 + $0x2278] sm:$0xf0] }
 0x878   :  { %10225 = vmatpush.bf16.msrb.mxu2 %v14975_v43  ;;  %v14444_v43 = vld [vmem:[#allocation9 + $0x1c18] sm:$0xf0] }
 0x879   :  { %v14447_v19 = vor.u32 %v16736_v22, %v14444_v43  ;;  %v15236_v22 = vld [vmem:[#allocation9 + $0x2248] sm:$0xf0] }
 0x87a   :  { %10135 = vmatpush.bf16.msra.mxu3 %v13607_v30  ;;  %v15599_v30 = vor.u32 %v17024_v25, %v15596_v54  ;;  %v17070_v54 = vld [vmem:[%s18528_s6 + $0xf0] sm:$0xff] }
 0x87b   :  { %10213 = vmatpush.bf16.msrb.mxu1 %v14759_v36  ;;  %v14420_v36 = vld [vmem:[#allocation9 + $0x1be8] sm:$0xf0] }
 0x87c   :  { %10226 = vmatpush.bf16.msrb.mxu2 %v14951_v35  ;;  %v14423_v40 = vor.u32 %v16730_v7, %v14420_v36  ;;  %v14396_v35 = vld [vmem:[#allocation9 + $0x1bb8] sm:$0xf0]  ;;  %v18558_v7 = vld [vmem:[#allocation22_spill] sm:$0xff] }
 0x87d   :  { %v10273_v36 = vpack.c.bf16 %v18558_v7, %v18558_v7  ;;  %v17048_v7 = vld [vmem:[%s18528_s6 + $0x40] sm:$0xff] }
 0x87e   :  { %10136 = vmatpush.bf16.msra.mxu3 %v13583_v48  ;;  %v17006_v48 = vld [vmem:[#allocation9 + $0x2474] sm:$0xf] }
 0x87f   :  { %10214 = vmatpush.bf16.msrb.mxu1 %v14735_v32  ;;  %v14375_v32 = vor.u32 %v16718_v37, %v14372_v57  ;;  %v15527_v5 = vor.u32 %v17006_v48, %v15524_v11  ;;  %v16910_v37 = vld [vmem:[#allocation9 + $0x2174] sm:$0xf]  ;;  %v15140_v57 = vld [vmem:[#allocation9 + $0x2188] sm:$0xf0] }
 0x880   :  { %10227 = vmatpush.bf16.msrb.mxu2 %v14927_v29  ;;  %v14348_v29 = vld [vmem:[#allocation9 + $0x1b58] sm:$0xf0]  ;;  %v15143_v48 = vor.u32 %v16910_v37, %v15140_v57 }
 0x881   :  { %v14351_v10 = vor.u32 %v16712_v26, %v14348_v29  ;;  %v15116_v26 = vld [vmem:[#allocation9 + $0x2158] sm:$0xf0] }
 0x882   :  { %10137 = vmatpush.bf16.msra.mxu3 %v13559_v45  ;;  %v15503_v45 = vor.u32 %v17000_v2, %v15500_v12 }
 0x883   :  { %10215 = vmatpush.bf16.msrb.mxu1 %v14711_v38  ;;  %v18380_v42 = vpop.f32.mrf.mxu1  ;;  %v14324_v38 = vld [vmem:[#allocation9 + $0x1b28] sm:$0xf0] }
 0x884   :  { %10228 = vmatpush.bf16.msrb.mxu2 %v14903_v55  ;;  %v15476_v55 = vld [vmem:[#allocation9 + $0x2428] sm:$0xf0]  ;;  %v14327_v41 = vor.u32 %v16706_v58, %v14324_v38 }
 0x885   :  { %10138 = vmatmul.bf16.vlgmr.msra.gmra.mxu3 %v17806_v46  ;;  %v17045_v46 = vld [vmem:[%s18528_s6 + $0x28] sm:$0xff]  ;;  %v15092_v58 = vld [vmem:[#allocation9 + $0x2128] sm:$0xf0] }
 0x886   :  { %10182 = vmatpush.bf16.msrb.mxu3 %v14495_v33  ;;  %10216 = vmatmul.bf16.vlgmr.msrb.gmra.mxu1 %v17847_v51  ;;  %v16724_v51 = vld [vmem:[#allocation9 + $0x1ba4] sm:$0xf]  ;;  %v16994_v33 = vld [vmem:[#allocation9 + $0x2414] sm:$0xf] }
 0x887   :  { %10260 = vmatpush.bf16.msra.mxu1 %v15647_v60  ;;  %10229 = vmatmul.bf16.vlgmr.msrb.gmra.mxu2 %v17850_v62  ;;  %v17044_v62 = vld [vmem:[%s18528_s6 + $0x20] sm:$0xff]  ;;  %v14399_v0 = vor.u32 %v16724_v51, %v14396_v35  ;;  %v16940_v60 = vld [vmem:[#allocation9 + $0x2264] sm:$0xf] }
 0x888   :  { %10667 = vmatpush.bf16.msra.mxu2 %v17047_v47  ;;  %v18385_v15 = vpop.f32.mrf.mxu3  ;;  %v15479_v47 = vor.u32 %v16994_v33, %v15476_v55  ;;  %v15263_v4 = vor.u32 %v16940_v60, %v15260_v56  ;;  %v16916_v35 = vld [vmem:[#allocation9 + $0x21a4] sm:$0xf]  ;;  %v17064_v56 = vld [vmem:[%s18528_s6 + $0xc0] sm:$0xff] }
 0x88a   :  { %10183 = vmatpush.bf16.msrb.mxu3 %v14471_v23  ;;  %v18390_v44 = vpop.f32.mrf.mxu2  ;;  %v17071_v23 = vld [vmem:[%s18528_s6 + $0xf8] sm:$0xff] }
 0x88b   :  { %10261 = vmatpush.bf16.msra.mxu1 %v15623_v13  ;;  %v10011_v16 = vpop.f32.mrf.mxu1  ;;  %v16934_v13 = vld [vmem:[#allocation9 + $0x2234] sm:$0xf] }
 0x88c   :  { %10668 = vmatpush.bf16.msra.mxu2 %v17046_v61  ;;  %v17079_v61 = vld [vmem:[%s18528_s6 + $0x138] sm:$0xff]  ;;  %v15239_v25 = vor.u32 %v16934_v13, %v15236_v22 }
 0x88e   :  { %10184 = vmatpush.bf16.msrb.mxu3 %v14447_v19  ;;  %v16928_v19 = vld [vmem:[#allocation9 + $0x2204] sm:$0xf] }
 0x88f   :  { %10262 = vmatpush.bf16.msra.mxu1 %v15599_v30  ;;  %v15212_v30 = vld [vmem:[#allocation9 + $0x2218] sm:$0xf0] }
 0x890   :  { %10669 = vmatpush.bf16.msra.mxu2 %v17045_v46  ;;  %v9933_v27 = vpop.f32.mrf.mxu3  ;;  %v17078_v46 = vld [vmem:[%s18528_s6 + $0x130] sm:$0xff]  ;;  %v15215_v50 = vor.u32 %v16928_v19, %v15212_v30  ;;  %v17049_v19 = vld [vmem:[%s18528_s6 + $0x48] sm:$0xff] }
 0x892   :  { %10185 = vmatpush.bf16.msrb.mxu3 %v14423_v40  ;;  %v10024_v43 = vpop.f32.mrf.mxu2  ;;  %v16922_v40 = vld [vmem:[#allocation9 + $0x21d4] sm:$0xf] }
 0x893   :  { %10263 = vmatpush.bf16.msra.mxu1 %v15575_v17  ;;  %v15188_v17 = vld [vmem:[#allocation9 + $0x21e8] sm:$0xf0] }
 0x894   :  { %10670 = vmatpush.bf16.msra.mxu2 %v17044_v62  ;;  %v15191_v51 = vor.u32 %v16922_v40, %v15188_v17  ;;  %v15164_v62 = vld [vmem:[#allocation9 + $0x21b8] sm:$0xf0] }
 0x896   :  { %10186 = vmatpush.bf16.msrb.mxu3 %v14399_v0  ;;  %v15167_v0 = vor.u32 %v16916_v35, %v15164_v62 }
 0x897   :  { %10264 = vmatpush.bf16.msra.mxu1 %v15551_v63  ;;  %v17067_v63 = vld [vmem:[%s18528_s6 + $0xd8] sm:$0xff] }
 0x898   :  { %10671 = vmatpush.bf16.msra.mxu2 %v17043_v3  ;;  %v17075_v3 = vld [vmem:[%s18528_s6 + $0x118] sm:$0xff] }
 0x89a   :  { %10187 = vmatpush.bf16.msrb.mxu3 %v14375_v32  ;;  %v17066_v32 = vld [vmem:[%s18528_s6 + $0xd0] sm:$0xff] }
 0x89b   :  { %10265 = vmatpush.bf16.msra.mxu1 %v15527_v5  ;;  %v16904_v5 = vld [vmem:[#allocation9 + $0x2144] sm:$0xf] }
 0x89c   :  { %10672 = vmatpush.bf16.msra.mxu2 %v17042_v20  ;;  %v17074_v20 = vld [vmem:[%s18528_s6 + $0x110] sm:$0xff] }
 0x89e   :  { %10188 = vmatpush.bf16.msrb.mxu3 %v14351_v10  ;;  %v15119_v10 = vor.u32 %v16904_v5, %v15116_v26 }
 0x89f   :  { %10266 = vmatpush.bf16.msra.mxu1 %v15503_v45  ;;  %v16898_v45 = vld [vmem:[#allocation9 + $0x2114] sm:$0xf] }
 0x8a0   :  { %10673 = vmatpush.bf16.msra.mxu2 %v17041_v31  ;;  %v17065_v31 = vld [vmem:[%s18528_s6 + $0xc8] sm:$0xff]  ;;  %v15095_v33 = vor.u32 %v16898_v45, %v15092_v58  ;;  %v17083_v45 = vld [vmem:[%s18528_s6 + $0x158] sm:$0xff]  ;;  %v17082_v58 = vld [vmem:[%s18528_s6 + $0x150] sm:$0xff] }
 0x8a2   :  { %10189 = vmatpush.bf16.msrb.mxu3 %v14327_v41  ;;  %v17055_v41 = vld [vmem:[%s18528_s6 + $0x78] sm:$0xff] }
 0x8a3   :  { %10267 = vmatpush.bf16.msra.mxu1 %v15479_v47  ;;  %v18426_v34 = vpop.f32.mrf.mxu1  ;;  %v10276_v47 = vpack.c.bf16 %v18298_v6, %v18298_v6  ;;  %v17051_v6 = vld [vmem:[%s18528_s6 + $0x58] sm:$0xff] }
 0x8a4   :  { %10674 = vmatpush.bf16.msra.mxu2 %v17040_v24 }
 0x8a5   :  { %10190 = vmatmul.bf16.vlgmr.msrb.gmra.mxu3 %v17827_v8  ;;  %v17077_v8 = vld [vmem:[%s18528_s6 + $0x128] sm:$0xff] }
 0x8a6   :  { %10234 = vmatpush.bf16.msra.mxu3 %v15263_v4  ;;  %10268 = vmatmul.bf16.vlgmr.msra.gmra.mxu1 %v17870_v52  ;;  %v17068_v52 = vld [vmem:[%s18528_s6 + $0xe0] sm:$0xff]  ;;  %v17053_v4 = vld [vmem:[%s18528_s6 + $0x68] sm:$0xff] }
 0x8a7   :  { %10706 = vmatpush.bf16.msrb.mxu1 %v17071_v23  ;;  %10675 = vmatmul.bf16.vlgmr.msra.gmra.mxu2 %v10273_v36  ;;  %v17052_v23 = vld [vmem:[%s18528_s6 + $0x60] sm:$0xff] }
 0x8a8   :  { %10719 = vmatpush.bf16.msrb.mxu2 %v17079_v61  ;;  %v9983_v11 = vpop.f32.mrf.mxu3 }
 0x8a9   :  { %v9984_v29 = vadd.f32 %v9983_v11, %v18359_v18  ;;  %v17073_v18 = vld [vmem:[%s18528_s6 + $0x108] sm:$0xff] }
 0x8aa   :  { %10235 = vmatpush.bf16.msra.mxu3 %v15239_v25  ;;  %v10074_v2 = vpop.f32.mrf.mxu2 }
 0x8ab   :  { %10707 = vmatpush.bf16.msrb.mxu1 %v17070_v54  ;;  %v9997_v12 = vadd.f32 %v18163_v53, %v9984_v29  ;;  %v10063_v16 = vpop.f32.mrf.mxu1  ;;  %v9932_v53 = vadd.f32 %v18385_v15, %v18363_v28  ;;  %v18559_v28 = vld [vmem:[#allocation19_spill] sm:$0xff] }
 0x8ac   :  { %10720 = vmatpush.bf16.msrb.mxu2 %v17078_v46  ;;  %v17085_v16 = vld [vmem:[%s18528_s6 + $0x168] sm:$0xff] }
 0x8ad   :  { %v10010_v38 = vadd.f32 %v18380_v42, %v9997_v12  ;;  %v17072_v42 = vld [vmem:[%s18528_s6 + $0x100] sm:$0xff]  ;;  %v9945_v15 = vadd.f32 %v18559_v28, %v9932_v53 }
 0x8ae   :  { %10236 = vmatpush.bf16.msra.mxu3 %v15215_v50 }
 0x8af   :  { %10708 = vmatpush.bf16.msrb.mxu1 %v17069_v21  ;;  %v10023_v55 = vadd.f32 %v18390_v44, %v10010_v38  ;;  %v17054_v44 = vld [vmem:[%s18528_s6 + $0x70] sm:$0xff]  ;;  %v10277_v24 = vpack.c.bf16 %v9945_v15, %v9945_v15 }
 0x8b0   :  { %10721 = vmatpush.bf16.msrb.mxu2 %v17077_v8  ;;  %v9985_v60 = vpop.f32.mrf.mxu3  ;;  %v18560_v21 = vld [vmem:[#allocation29_spill] sm:$0xff] }
 0x8b1   :  { %v17080_v60 = vld [vmem:[%s18528_s6 + $0x140] sm:$0xff] }
 0x8b2   :  { %10237 = vmatpush.bf16.msra.mxu3 %v15191_v51  ;;  %v10076_v27 = vpop.f32.mrf.mxu2 }
 0x8b3   :  { %10709 = vmatpush.bf16.msrb.mxu1 %v17068_v52  ;;  %v18561_v52 = vld [vmem:[#allocation20_spill] sm:$0xff] }
 0x8b4   :  { %10722 = vmatpush.bf16.msrb.mxu2 %v17076_v14 }
 0x8b6   :  { %10238 = vmatpush.bf16.msra.mxu3 %v15167_v0 }
 0x8b7   :  { %10710 = vmatpush.bf16.msrb.mxu1 %v17067_v63 }
 0x8b8   :  { %10723 = vmatpush.bf16.msrb.mxu2 %v17075_v3  ;;  %v17087_v3 = vld [vmem:[%s18528_s6 + $0x178] sm:$0xff] }
 0x8ba   :  { %10239 = vmatpush.bf16.msra.mxu3 %v15143_v48 }
 0x8bb   :  { %10711 = vmatpush.bf16.msrb.mxu1 %v17066_v32  ;;  %v18562_v32 = vld [vmem:[#allocation21_spill] sm:$0xff] }
 0x8bc   :  { %10724 = vmatpush.bf16.msrb.mxu2 %v17074_v20 }
 0x8be   :  { %10240 = vmatpush.bf16.msra.mxu3 %v15119_v10 }
 0x8bf   :  { %10712 = vmatpush.bf16.msrb.mxu1 %v17065_v31  ;;  %v17084_v31 = vld [vmem:[%s18528_s6 + $0x160] sm:$0xff] }
 0x8c0   :  { %10725 = vmatpush.bf16.msrb.mxu2 %v17073_v18 }
 0x8c2   :  { %10241 = vmatpush.bf16.msra.mxu3 %v15095_v33 }
 0x8c3   :  { %10713 = vmatpush.bf16.msrb.mxu1 %v17064_v56  ;;  %v10113_v13 = vpop.f32.mrf.mxu1 }
 0x8c4   :  { %10726 = vmatpush.bf16.msrb.mxu2 %v17072_v42 }
 0x8c5   :  { %10242 = vmatmul.bf16.vlgmr.msra.gmra.mxu3 %v17881_v49  ;;  %v17050_v49 = vld [vmem:[%s18528_s6 + $0x50] sm:$0xff] }
 0x8c6   :  { %10680 = vmatpush.bf16.msrb.mxu3 %v17055_v41  ;;  %10714 = vmatmul.bf16.vlgmr.msrb.gmra.mxu1 %v10276_v47 }
 0x8c7   :  { %10727 = vmatmul.bf16.vlgmr.msrb.gmra.mxu2 %v10277_v24 }
 0x8c8   :  { %v10035_v22 = vpop.f32.mrf.mxu3 }
 0x8c9   :  { %v10036_v43 = vadd.f32 %v10035_v22, %v10023_v55  ;;  %v17081_v55 = vld [vmem:[%s18528_s6 + $0x148] sm:$0xff] }
 0x8ca   :  { %10681 = vmatpush.bf16.msrb.mxu3 %v17054_v44  ;;  %v10126_v61 = vpop.f32.mrf.mxu2 }
 0x8cb   :  { %v10049_v25 = vadd.f32 %v18187_v9, %v10036_v43  ;;  %v10115_v54 = vpop.f32.mrf.mxu1  ;;  %v10274_v9 = vpack.c.bf16 %v18560_v21, %v18560_v21 }
 0x8cd   :  { %v10062_v30 = vadd.f32 %v18426_v34, %v10049_v25 }
 0x8ce   :  { %10682 = vmatpush.bf16.msrb.mxu3 %v17053_v4 }
 0x8cf   :  { %v10075_v36 = vadd.f32 %v10074_v2, %v10062_v30  ;;  %v17086_v2 = vld [vmem:[%s18528_s6 + $0x170] sm:$0xff]  ;;  %s17266_s6 = smov [#allocation13]  }
 0x8d0   :  { %v10037_v46 = vpop.f32.mrf.mxu3  ;;  %s10752_s21 = sshll.u32 %s17266_s6, 4  ;;  %s10753_s21 = int_to_ptr.vmem [resolvable:$true] %s10752_s21 }
 0x8d2   :  { %10683 = vmatpush.bf16.msrb.mxu3 %v17052_v23  ;;  %v10128_v50 = vpop.f32.mrf.mxu2 }
 0x8d6   :  { %10684 = vmatpush.bf16.msrb.mxu3 %v17051_v6 }
 0x8da   :  { %10685 = vmatpush.bf16.msrb.mxu3 %v17050_v49 }
 0x8de   :  { %10686 = vmatpush.bf16.msrb.mxu3 %v17049_v19 }
 0x8e2   :  { %10687 = vmatpush.bf16.msrb.mxu3 %v17048_v7 }
 0x8e3   :  { %v10165_v40 = vpop.f32.mrf.mxu1 }
 0x8e5   :  { %10688 = vmatmul.bf16.vlgmr.msrb.gmra.mxu3 %v10274_v9 }
 0x8e6   :  { %10732 = vmatpush.bf16.msra.mxu3 %v17087_v3 }
 0x8e8   :  { %v10087_v17 = vpop.f32.mrf.mxu3 }
 0x8e9   :  { %v10088_v8 = vadd.f32 %v10087_v17, %v10075_v36 }
 0x8ea   :  { %v10178_v51 = vpop.f32.mrf.mxu2  ;;  %10733 = vmatpush.bf16.msra.mxu3 %v17086_v2 }
 0x8eb   :  { %v10101_v35 = vadd.f32 %v18561_v52, %v10088_v8  ;;  %v10167_v62 = vpop.f32.mrf.mxu1 }
 0x8ed   :  { %v10114_v14 = vadd.f32 %v10113_v13, %v10101_v35 }
 0x8ee   :  { %10734 = vmatpush.bf16.msra.mxu3 %v17085_v16 }
 0x8ef   :  { %v10127_v34 = vadd.f32 %v10126_v61, %v10114_v14  ;;  %v17099_v61 = vld [vmem:[#allocation12] ss:$0 sm:$0xff] }
 0x8f0   :  { %v10089_v0 = vpop.f32.mrf.mxu3 }
 0x8f2   :  { %v10180_v63 = vpop.f32.mrf.mxu2  ;;  %10735 = vmatpush.bf16.msra.mxu3 %v17084_v31 }
 0x8f6   :  { %10736 = vmatpush.bf16.msra.mxu3 %v17083_v45 }
 0x8fa   :  { %10737 = vmatpush.bf16.msra.mxu3 %v17082_v58 }
 0x8fe   :  { %10738 = vmatpush.bf16.msra.mxu3 %v17081_v55 }
 0x902   :  { %10739 = vmatpush.bf16.msra.mxu3 %v17080_v60 }
 0x903   :  { %v10217_v37 = vpop.f32.mrf.mxu1 }
 0x908   :  { %v10139_v57 = vpop.f32.mrf.mxu3 }
 0x909   :  { %v10140_v48 = vadd.f32 %v10139_v57, %v10127_v34 }
 0x90a   :  { %v10230_v11 = vpop.f32.mrf.mxu2 }
 0x90b   :  { %v10153_v5 = vadd.f32 %v18562_v32, %v10140_v48  ;;  %v10219_v26 = vpop.f32.mrf.mxu1 }
 0x90d   :  { %v10166_v29 = vadd.f32 %v10165_v40, %v10153_v5 }
 0x90f   :  { %v10179_v20 = vadd.f32 %v10178_v51, %v10166_v29 }
 0x910   :  { %v10141_v12 = vpop.f32.mrf.mxu3 }
 0x912   :  { %v10232_v10 = vpop.f32.mrf.mxu2 }
 0x923   :  { %v10269_v18 = vpop.f32.mrf.mxu1 }
 0x928   :  { %v10191_v38 = vpop.f32.mrf.mxu3 }
 0x929   :  { %v10192_v42 = vadd.f32 %v10191_v38, %v10179_v20 }
 0x92a   :  { %v10676_v53 = vpop.f32.mrf.mxu2 }
 0x92b   :  { %v10271_v33 = vpop.f32.mrf.mxu1  ;;  %v10205_v28 = vadd.f32 %v18248_v1, %v10192_v42  ;;  %v10677_v25 = vadd.f32 %v17099_v61, %v10676_v53 }
 0x92d   :  { %v10218_v27 = vadd.f32 %v10217_v37, %v10205_v28 }
 0x92f   :  { %v10231_v44 = vadd.f32 %v10230_v11, %v10218_v27 }
 0x930   :  { %v10193_v56 = vpop.f32.mrf.mxu3 }
 0x932   :  { %v10678_v41 = vpop.f32.mrf.mxu2 }
 0x943   :  { %v10715_v15 = vpop.f32.mrf.mxu1 }
 0x948   :  { %v10243_v47 = vpop.f32.mrf.mxu3 }
 0x949   :  { %v10244_v24 = vadd.f32 %v10243_v47, %v10231_v44 }
 0x94a   :  { %v10728_v4 = vpop.f32.mrf.mxu2 }
 0x94b   :  { %v10257_v23 = vadd.f32 %v18263_v39, %v10244_v24  ;;  %v10717_v13 = vpop.f32.mrf.mxu1 }
 0x94d   :  { %v10270_v6 = vadd.f32 %v10269_v18, %v10257_v23 }
 0x94f   :  { %v10278_v49 = vpack.c.bf16 %v10270_v6, %v10270_v6 }
 0x950   :  { %v10245_v22 = vpop.f32.mrf.mxu3 }
 0x951   :  { %10740 = vmatmul.bf16.vlgmr.msra.gmra.mxu3 %v10278_v49 }
 0x952   :  { %v10730_v43 = vpop.f32.mrf.mxu2 }
 0x968   :  { %v10689_v54 = vpop.f32.mrf.mxu3 }
 0x969   :  { %v10690_v19 = vadd.f32 %v10689_v54, %v10677_v25 }
 0x96b   :  { %v10703_v1 = vadd.f32 %v18278_v59, %v10690_v19 }
 0x96d   :  { %v10716_v30 = vadd.f32 %v10715_v15, %v10703_v1 }
 0x96f   :  { %v10729_v7 = vadd.f32 %v10728_v4, %v10716_v30 }
 0x970   :  { %v10691_v36 = vpop.f32.mrf.mxu3 }
 0x9d4   :  { %v10741_v39 = vpop.f32.mrf.mxu3 }
 0x9d5   :  { %v10742_v46 = vadd.f32 %v10741_v39, %v10729_v7 }
 0x9d7   :  { %10746 = vst.msk [vmem:[#allocation13] sm:$0x3] %vm10745_vm4, %v10742_v46 }
 0x9d8   :  { %10757 = dma.vmem_to_hbm [thread:$0]  %s10753_s21, 32, %s10755_s23, [#allocation6]  }
 0x9dc   :  { %v10743_v50 = vpop.f32.mrf.mxu3 }
 0x9dd   :  { %17255 = dma.done.wait [#allocation6], 32  }
 0x9de   :  { %17256 = vsyncadd [#allocation6], 4294967264 }
 0x9df   :  { %10762 = vsyncpa [#allocation5], 1 }
 0x9e0   :  { %10763 = vsyncpa [#allocation8], 1 }
 0x9e1   :  { %10764 = vsyncpa [#allocation11], 1 }
 0x9e2   :  { %10765 = vsyncpa [#allocation6], 1 }

</bundles_post_ra>
